<compile_context>
chip_gen: v5e
topology: v5e:2x2
jax: 0.10.0
libtpu: 0.0.40
codegen_flags: <defaults>
</compile_context>

<pallas_src>
import jax
import jax.numpy as jnp
import numpy as np
from jax import lax
from jax.experimental import pallas as pl
from jax.experimental.pallas import tpu as pltpu

NHIDDEN = 128
KS = 3
EPS = 1e-5
LANE = 128


# ---------------------------------------------------------------------------
# Hardware / tiling helpers
# ---------------------------------------------------------------------------
def _vmem_capacity_bytes():
    try:
        cap = getattr(pltpu.get_tpu_info(), "vmem_capacity_bytes", None)
        if cap:
            return int(cap)
    except Exception:
        pass
    return 64 * 1024 * 1024  # conservative (v7x-sized) fallback


def _largest_divisor_leq(n, cap):
    cap = max(1, min(n, cap))
    for d in range(cap, 0, -1):
        if n % d == 0:
            return d
    return 1


def _pick_tiles(H, W, C, Cp, L, x_bytes, o_bytes, vmem_cap, row_tile_cap):
    """Budget-driven row-tile choice for the fused kernel + the stats pre-pass."""
    NH = NHIDDEN
    # double-buffered block streams per image row (cond bf16, x, out)
    blk_row = W * (2 * L + x_bytes * C + o_bytes * C)
    # in-kernel intermediates per image row (acc_s f32; actv/actv_p/tap patch
    # bf16; gb accumulator f32; x/normalized f32)
    inter_row = W * (4 * NH + 3 * 2 * NH + 4 * 2 * Cp + 2 * 4 * C)
    # weights budgeted x2 in case single-buffering is unavailable
    weight_bytes = 2 * (KS * KS * L * NH * 2 + KS * KS * NH * 2 * Cp * 2
                        + NH * 4 + 2 * Cp * 4)
    budget = int(0.70 * vmem_cap) - weight_bytes
    th_max = max(1, budget // max(1, 2 * blk_row + inter_row))
    row_tile = _largest_divisor_leq(H, min(row_tile_cap, th_max))
    # stats pre-pass only streams the x tile (double-buffered) + tiny accumulators,
    # so it gets a much bigger tile (memory-bound pass wants >=512-wide DMAs).
    th_stats = max(1, int(0.45 * vmem_cap) // max(1, 2 * W * C * x_bytes))
    stats_tile = _largest_divisor_leq(H, th_stats)
    return row_tile, stats_tile
    # TODO(synk): ragged H (no good divisor) currently degrades to small tiles;
    # proper pl.cdiv grid + partial-tile masking pending.


def _resident_spec(block_shape, index_map):
    """Constant operand (same block every grid step): request single buffering
    so the dead second pipeline buffer is not allocated (matters on v7x)."""
    try:
        return pl.BlockSpec(block_shape, index_map,
                            pipeline_mode=pl.Buffered(buffer_count=1))
    except Exception:  # older jax without pipeline_mode / Buffered
        return pl.BlockSpec(block_shape, index_map)


# ---------------------------------------------------------------------------
# Kernel 1: InstanceNorm statistics per (sample, channel).
# grid = (N, n_row_tiles); batch axis "parallel", row axis is the reduction.
# Per-tile two-pass (mean, then centered M2) + Chan combine across tiles:
# numerically stable, unlike E[x^2] - E[x]^2.
# ---------------------------------------------------------------------------
def _stats_kernel(x_ref, mean_ref, rstd_ref, cmean_ref, m2_ref):
    t = pl.program_id(1)
    _, TH, W, C = x_ref.shape
    n_tile = TH * W

    x = x_ref[0].reshape(n_tile, C).astype(jnp.float32)
    tmean = jnp.sum(x, axis=0, keepdims=True) * (1.0 / n_tile)
    d = x - tmean
    tm2 = jnp.sum(d * d, axis=0, keepdims=True)

    @pl.when(t == 0)
    def _():
        cmean_ref[...] = tmean
        m2_ref[...] = tm2

    @pl.when(t > 0)
    def _():
        nt = jnp.float32(n_tile)
        n_prev = (t * n_tile).astype(jnp.float32)
        n_new = n_prev + nt
        delta = tmean - cmean_ref[...]
        cmean_ref[...] = cmean_ref[...] + delta * (nt / n_new)
        m2_ref[...] = m2_ref[...] + tm2 + delta * delta * (n_prev * nt / n_new)

    @pl.when(t == pl.num_programs(1) - 1)
    def _():
        inv_n = 1.0 / (n_tile * pl.num_programs(1))
        mean_ref[0] = cmean_ref[...]
        rstd_ref[0] = lax.rsqrt(m2_ref[...] * inv_n + EPS)


# ---------------------------------------------------------------------------
# Kernel 2: fused SPADE.
#   * in-kernel 3x3 im2col of the raw cond tile -> mlp_shared (+ReLU) as
#     9 accumulating (K = L) MXU matmuls
#   * mlp_gamma / mlp_beta packed on the output lanes (gamma | beta, each
#     padded to a 128-multiple) -> 9 accumulating (K = 128) MXU matmuls
#   * param-free InstanceNorm with precomputed stats + modulation in f32
# grid = (N, n_row_tiles); both axes fully parallel.
# ---------------------------------------------------------------------------
def _spade_kernel(cond_ref, x_ref, mean_ref, rstd_ref,
                  ws_ref, bs_ref, wgb_ref, bgb_ref, out_ref):
    # cond_ref: (1, TH+4, W, L)  bf16  raw cond row tile, 2 halo rows each side
    # x_ref:    (1, TH,   W, C)        input tile
    # mean/rstd:(1, 1, C)         f32  precomputed instance-norm statistics
    # ws_ref:   (9, L, 128)       bf16 mlp_shared weights, per tap
    # bs_ref:   (1, 128)          f32
    # wgb_ref:  (9, 128, 2*Cp)    bf16 gamma|beta weights; gamma lanes [0,C),
    #                                  beta lanes [Cp, Cp+C)  (128-aligned split)
    # bgb_ref:  (1, 2*Cp)         f32
    # out_ref:  (1, TH, W, C)
    _, TH, W, C = x_ref.shape
    THc = cond_ref.shape[1]                     # TH + 4
    L = cond_ref.shape[3]
    NH = ws_ref.shape[2]
    Cp = wgb_ref.shape[2] // 2
    THp = TH + 2                                # actv rows incl. 1-row halo

    t = pl.program_id(1)
    H = TH * pl.num_programs(1)

    # ---- mlp_shared: in-kernel im2col, 9 accumulating matmuls (K = L) ----
    zc = jnp.zeros((THc, 1, L), cond_ref.dtype)
    cond_p = jnp.concatenate([zc, cond_ref[0], zc], axis=1)       # (THc, W+2, L)
    acc_s = None
    for ky in range(KS):
        for kx in range(KS):
            tap = ky * KS + kx
            patch = cond_p[ky:ky + THp, kx:kx + W, :].reshape(THp * W, L)
            contrib = jnp.dot(patch, ws_ref[tap],
                              preferred_element_type=jnp.float32)
            acc_s = contrib if acc_s is None else acc_s + contrib
    actv = jnp.maximum(acc_s + bs_ref[...], 0.0).reshape(THp, W, NH)

    # Halo rows outside the image are the gamma/beta conv's zero padding of the
    # hidden activation -> zero them.  Only rows 0 / THp-1 of the first / last
    # tile can be invalid; the select stays unconditional because a
    # value-producing pl.when is not expressible and a scratch round-trip would
    # cost more than the (off-MXU-critical-path) vsel.
    g = t * TH - 1 + lax.broadcasted_iota(jnp.int32, (THp, 1, 1), 0)
    actv = jnp.where((g >= 0) & (g < H), actv, 0.0).astype(jnp.bfloat16)

    # ---- mlp_gamma / mlp_beta: 9 accumulating matmuls (K = 128) into one f32
    #      accumulator with 2*Cp lane-aligned output lanes (no patch concat) ----
    zn = jnp.zeros((THp, 1, NH), jnp.bfloat16)
    actv_p = jnp.concatenate([zn, actv, zn], axis=1)              # (THp, W+2, NH)
    gb = None
    for ky in range(KS):
        for kx in range(KS):
            tap = ky * KS + kx
            patch = actv_p[ky:ky + TH, kx:kx + W, :].reshape(TH * W, NH)
            contrib = jnp.dot(patch, wgb_ref[tap],
                              preferred_element_type=jnp.float32)
            gb = contrib if gb is None else gb + contrib
    gb = gb + bgb_ref[...]                                        # (TH*W, 2*Cp)
    gamma = gb[:, :C]
    beta = gb[:, Cp:Cp + C]

    # ---- param-free InstanceNorm (precomputed stats) + SPADE modulation (f32) ----
    x = x_ref[0].reshape(TH * W, C).astype(jnp.float32)
    normalized = (x - mean_ref[0]) * rstd_ref[0]
    out = normalized * (1.0 + gamma) + beta
    out_ref[0] = out.reshape(TH, W, C).astype(out_ref.dtype)


# ---------------------------------------------------------------------------
# Wrapper
# ---------------------------------------------------------------------------
def _pack_taps(w_oihw):
    """(O, I, 3, 3) PyTorch layout -> (9, I, O); tap k = ky*3+kx -> w[:, :, ky, kx].T"""
    o, i = w_oihw.shape[0], w_oihw.shape[1]
    return jnp.transpose(w_oihw, (2, 3, 1, 0)).reshape(KS * KS, i, o)


def spade_forward_nhwc(x, cond, params, *, row_tile_cap=32, out_dtype=None):
    """SPADE forward on NHWC tensors. x: (N,H,W,C), cond: (N,Hc,Wc,L)."""
    N, H, W, C = x.shape
    out_dtype = x.dtype if out_dtype is None else out_dtype

    # F.interpolate(mode='nearest') when spatial sizes mismatch (glue, not hot path)
    if cond.shape[1:3] != (H, W):
        Hc, Wc = cond.shape[1], cond.shape[2]
        ih = (jnp.arange(H) * Hc // H).astype(jnp.int32)
        iw = (jnp.arange(W) * Wc // W).astype(jnp.int32)
        cond = cond[:, ih][:, :, iw]
    L = cond.shape[3]

    Cp = ((C + LANE - 1) // LANE) * LANE       # lane-aligned gamma/beta half-width
    x_bytes = jnp.dtype(x.dtype).itemsize
    o_bytes = jnp.dtype(out_dtype).itemsize
    vmem_cap = _vmem_capacity_bytes()
    vmem_limit = min(int(vmem_cap * 0.75), 100 * 1024 * 1024)
    TH, TH_S = _pick_tiles(H, W, C, Cp, L, x_bytes, o_bytes, vmem_cap, row_tile_cap)
    T, T_S = H // TH, H // TH_S
    THc = TH + 4

    # ---------------- instance-norm statistics pre-pass ----------------
    mean, rstd = pl.pallas_call(
        _stats_kernel,
        out_shape=(jax.ShapeDtypeStruct((N, 1, C), jnp.float32),
                   jax.ShapeDtypeStruct((N, 1, C), jnp.float32)),
        grid_spec=pltpu.PrefetchScalarGridSpec(
            num_scalar_prefetch=0,
            grid=(N, T_S),
            in_specs=[pl.BlockSpec((1, TH_S, W, C), lambda n, t: (n, t, 0, 0))],
            out_specs=[pl.BlockSpec((1, 1, C), lambda n, t: (n, 0, 0)),
                       pl.BlockSpec((1, 1, C), lambda n, t: (n, 0, 0))],
            scratch_shapes=[pltpu.VMEM((1, C), jnp.float32),
                            pltpu.VMEM((1, C), jnp.float32)],
        ),
        compiler_params=pltpu.CompilerParams(
            dimension_semantics=("parallel", "arbitrary"),
            vmem_limit_bytes=vmem_limit),
    )(x)

    # ---------------- wrapper-side layout plumbing (cheap) ----------------
    # Raw cond row tiles with a 2-row halo each side; the zero rows at the image
    # border realize the 3x3 conv's zero padding.  ~(1 + 4/TH)x cond bytes; the
    # 9-tap im2col is built inside the kernel.
    cpad = jnp.pad(cond.astype(jnp.float32), ((0, 0), (2, 2), (0, 0), (0, 0)))
    cond_tiles = jnp.stack(
        [cpad[:, tt * TH: tt * TH + THc] for tt in range(T)], axis=1,
    ).reshape(N * T, THc, W, L).astype(jnp.bfloat16)

    ws = _pack_taps(params["w_shared"]).astype(jnp.bfloat16)          # (9, L, 128)
    wg = _pack_taps(params["w_gamma"])                                # (9, 128, C)
    wb = _pack_taps(params["w_beta"])
    wpad = ((0, 0), (0, 0), (0, Cp - C))
    wgb = jnp.concatenate([jnp.pad(wg, wpad), jnp.pad(wb, wpad)],
                          axis=-1).astype(jnp.bfloat16)               # (9, 128, 2*Cp)
    bs = params["b_shared"].reshape(1, NHIDDEN).astype(jnp.float32)
    bgb = jnp.concatenate(
        [jnp.pad(params["b_gamma"], (0, Cp - C)),
         jnp.pad(params["b_beta"], (0, Cp - C))]).reshape(1, 2 * Cp).astype(jnp.float32)

    out = pl.pallas_call(
        _spade_kernel,
        out_shape=jax.ShapeDtypeStruct((N, H, W, C), out_dtype),
        grid_spec=pltpu.PrefetchScalarGridSpec(
            num_scalar_prefetch=0,
            grid=(N, T),   # both parallel -> megacore / v7x 2-TC sharding
            in_specs=[
                pl.BlockSpec((1, THc, W, L), lambda n, t: (n * T + t, 0, 0, 0)),
                pl.BlockSpec((1, TH, W, C), lambda n, t: (n, t, 0, 0)),
                pl.BlockSpec((1, 1, C), lambda n, t: (n, 0, 0)),
                pl.BlockSpec((1, 1, C), lambda n, t: (n, 0, 0)),
                _resident_spec((KS * KS, L, NHIDDEN), lambda n, t: (0, 0, 0)),
                _resident_spec((1, NHIDDEN), lambda n, t: (0, 0)),
                _resident_spec((KS * KS, NHIDDEN, 2 * Cp), lambda n, t: (0, 0, 0)),
                _resident_spec((1, 2 * Cp), lambda n, t: (0, 0)),
            ],
            out_specs=pl.BlockSpec((1, TH, W, C), lambda n, t: (n, t, 0, 0)),
        ),
        compiler_params=pltpu.CompilerParams(
            dimension_semantics=("parallel", "parallel"),
            vmem_limit_bytes=vmem_limit),
    )(cond_tiles, x, mean, rstd, ws, bs, wgb, bgb)
    return out


def spade_forward(x_nchw, cond_nchw, params, *, row_tile_cap=32, out_dtype=None):
    """NCHW wrapper matching the PyTorch module.  The NCHW<->NHWC transposes are
    pure HBM layout plumbing; NHWC pipelines should call spade_forward_nhwc."""
    x = jnp.transpose(x_nchw, (0, 2, 3, 1))
    cond = jnp.transpose(cond_nchw, (0, 2, 3, 1))
    out = spade_forward_nhwc(x, cond, params,
                             row_tile_cap=row_tile_cap, out_dtype=out_dtype)
    return jnp.transpose(out, (0, 3, 1, 2))


# ---------------------------------------------------------------------------
# Pure-JAX reference + params
# ---------------------------------------------------------------------------
def spade_reference(x, cond, params, *, match_bf16=True):
    """Pure-JAX NCHW reference (InstanceNorm branch, PyTorch semantics).
    match_bf16 rounds cond / conv weights / hidden activation to bf16 like the
    kernel, so the comparison measures only summation-order noise."""
    def q(a):
        return a.astype(jnp.bfloat16).astype(jnp.float32) if match_bf16 else a

    mean = x.mean(axis=(2, 3), keepdims=True)
    var = ((x - mean) ** 2).mean(axis=(2, 3), keepdims=True)
    normalized = (x - mean) / jnp.sqrt(var + EPS)

    if cond.shape[2:] != x.shape[2:]:
        H, W = x.shape[2], x.shape[3]
        Hc, Wc = cond.shape[2], cond.shape[3]
        ih = (jnp.arange(H) * Hc // H).astype(jnp.int32)
        iw = (jnp.arange(W) * Wc // W).astype(jnp.int32)
        cond = cond[:, :, ih][:, :, :, iw]

    def conv(inp, w, b):
        y = lax.conv_general_dilated(
            inp, w, window_strides=(1, 1), padding="SAME",
            dimension_numbers=("NCHW", "OIHW", "NCHW"))
        return y + b.reshape(1, -1, 1, 1)

    actv = jnp.maximum(conv(q(cond), q(params["w_shared"]), params["b_shared"]), 0.0)
    actv = q(actv)
    gamma = conv(actv, q(params["w_gamma"]), params["b_gamma"])
    beta = conv(actv, q(params["w_beta"]), params["b_beta"])
    return normalized * (1.0 + gamma) + beta


def init_params(key, norm_nc, label_nc):
    ks = jax.random.split(key, 6)
    scale = 0.05
    return {
        "w_shared": scale * jax.random.normal(ks[0], (NHIDDEN, label_nc, KS, KS), jnp.float32),
        "b_shared": scale * jax.random.normal(ks[1], (NHIDDEN,), jnp.float32),
        "w_gamma": scale * jax.random.normal(ks[2], (norm_nc, NHIDDEN, KS, KS), jnp.float32),
        "b_gamma": scale * jax.random.normal(ks[3], (norm_nc,), jnp.float32),
        "w_beta": scale * jax.random.normal(ks[4], (norm_nc, NHIDDEN, KS, KS), jnp.float32),
        "b_beta": scale * jax.random.normal(ks[5], (norm_nc,), jnp.float32),
    }


if __name__ == "__main__":
    # TODO(synk): only the InstanceNorm2d branch of param_free_norm is implemented
    # (BatchNorm / SyncBatchNorm branches depend on opt & distributed running stats).
    key = jax.random.PRNGKey(0)
    kx_, kc_, kp_ = jax.random.split(key, 3)

    N, C, L, H, W = 2, 4, 4, 16, 16
    x = jax.random.normal(kx_, (N, C, H, W), jnp.float32)
    cond = jax.random.normal(kc_, (N, L, H, W), jnp.float32)
    params = init_params(kp_, norm_nc=C, label_nc=L)

    out = jax.block_until_ready(jax.jit(spade_forward)(x, cond, params))
    assert out.shape == (N, C, H, W)

    ref = jax.block_until_ready(spade_reference(x, cond, params, match_bf16=True))
    np.testing.assert_allclose(np.asarray(out), np.asarray(ref), rtol=5e-3, atol=5e-3)

    print("KERNEL_OK")
</pallas_src>

<mosaic_0001>
module attributes {stable_mosaic.version = 11 : i64} {
  func.func @_stats_kernel(%arg0: i32, %arg1: i32, %arg2: memref<1x16x16x4xf32, #tpu.memory_space<vmem>>, %arg3: memref<1x1x4xf32, #tpu.memory_space<vmem>>, %arg4: memref<1x1x4xf32, #tpu.memory_space<vmem>>, %arg5: memref<1x4xf32, #tpu.memory_space<vmem>>, %arg6: memref<1x4xf32, #tpu.memory_space<vmem>>) attributes {dimension_semantics = [#tpu.dimension_semantics<parallel>, #tpu.dimension_semantics<arbitrary>], iteration_bounds = array<i64: 2, 1>, scalar_prefetch = 0 : i64, scratch_operands = 2 : i64, tpu.core_type = #tpu.core_type<tc>, window_params = [{transform_indices = @transform_0, window_bounds = array<i64: 1, 16, 16, 4>}, {transform_indices = @transform_1, window_bounds = array<i64: 1, 1, 4>}, {transform_indices = @transform_2, window_bounds = array<i64: 1, 1, 4>}]} {
    %c0 = arith.constant 0 : index
    %c0_0 = arith.constant 0 : index
    %c0_1 = arith.constant 0 : index
    %c0_2 = arith.constant 0 : index
    %0 = vector.load %arg2[%c0, %c0_0, %c0_1, %c0_2] : memref<1x16x16x4xf32, #tpu.memory_space<vmem>>, vector<1x16x16x4xf32>
    %1 = vector.shape_cast %0 : vector<1x16x16x4xf32> to vector<16x16x4xf32>
    %2 = vector.shape_cast %1 : vector<16x16x4xf32> to vector<256x4xf32>
    %cst = arith.constant dense<0.000000e+00> : vector<4xf32>
    %3 = vector.multi_reduction <add>, %2, %cst [0] : vector<256x4xf32> to vector<4xf32>
    %4 = vector.shape_cast %3 : vector<4xf32> to vector<1x4xf32>
    %cst_3 = arith.constant 3.906250e-03 : f32
    %5 = vector.broadcast %cst_3 : f32 to vector<1x4xf32>
    %6 = arith.mulf %4, %5 : vector<1x4xf32>
    %7 = vector.broadcast %6 : vector<1x4xf32> to vector<256x4xf32>
    %8 = arith.subf %2, %7 : vector<256x4xf32>
    %9 = arith.mulf %8, %8 : vector<256x4xf32>
    %cst_4 = arith.constant dense<0.000000e+00> : vector<4xf32>
    %10 = vector.multi_reduction <add>, %9, %cst_4 [0] : vector<256x4xf32> to vector<4xf32>
    %11 = vector.shape_cast %10 : vector<4xf32> to vector<1x4xf32>
    %c0_i32 = arith.constant 0 : i32
    %12 = arith.cmpi eq, %arg1, %c0_i32 : i32
    %13 = arith.extui %12 : i1 to i32
    %c0_i32_5 = arith.constant 0 : i32
    %14 = arith.cmpi ne, %13, %c0_i32_5 : i32
    scf.if %14 {
      %c0_10 = arith.constant 0 : index
      %c0_11 = arith.constant 0 : index
      %21 = vector.load %arg5[%c0_10, %c0_11] : memref<1x4xf32, #tpu.memory_space<vmem>>, vector<1x4xf32>
      tpu.vector_store %arg5[%c0_10, %c0_11], %6 {strides = array<i32>} : memref<1x4xf32, #tpu.memory_space<vmem>>, vector<1x4xf32>,
      %c0_12 = arith.constant 0 : index
      %c0_13 = arith.constant 0 : index
      %22 = vector.load %arg6[%c0_12, %c0_13] : memref<1x4xf32, #tpu.memory_space<vmem>>, vector<1x4xf32>
      tpu.vector_store %arg6[%c0_12, %c0_13], %11 {strides = array<i32>} : memref<1x4xf32, #tpu.memory_space<vmem>>, vector<1x4xf32>,
    } else {
    }
    %c0_i32_6 = arith.constant 0 : i32
    %15 = arith.cmpi sgt, %arg1, %c0_i32_6 : i32
    %16 = arith.extui %15 : i1 to i32
    %c0_i32_7 = arith.constant 0 : i32
    %17 = arith.cmpi ne, %16, %c0_i32_7 : i32
    scf.if %17 {
      %c256_i32 = arith.constant 256 : i32
      %21 = arith.muli %arg1, %c256_i32 : i32
      %22 = arith.sitofp %21 : i32 to f32
      %cst_10 = arith.constant 2.560000e+02 : f32
      %23 = arith.addf %22, %cst_10 : f32
      %c0_11 = arith.constant 0 : index
      %c0_12 = arith.constant 0 : index
      %24 = vector.load %arg5[%c0_11, %c0_12] : memref<1x4xf32, #tpu.memory_space<vmem>>, vector<1x4xf32>
      %25 = arith.subf %6, %24 : vector<1x4xf32>
      %c0_13 = arith.constant 0 : index
      %c0_14 = arith.constant 0 : index
      %26 = vector.load %arg5[%c0_13, %c0_14] : memref<1x4xf32, #tpu.memory_space<vmem>>, vector<1x4xf32>
      %cst_15 = arith.constant 2.560000e+02 : f32
      %27 = arith.divf %cst_15, %23 : f32
      %28 = vector.broadcast %27 : f32 to vector<1x4xf32>
      %29 = arith.mulf %25, %28 : vector<1x4xf32>
      %30 = arith.addf %26, %29 : vector<1x4xf32>
      %c0_16 = arith.constant 0 : index
      %c0_17 = arith.constant 0 : index
      %31 = vector.load %arg5[%c0_16, %c0_17] : memref<1x4xf32, #tpu.memory_space<vmem>>, vector<1x4xf32>
      tpu.vector_store %arg5[%c0_16, %c0_17], %30 {strides = array<i32>} : memref<1x4xf32, #tpu.memory_space<vmem>>, vector<1x4xf32>,
      %c0_18 = arith.constant 0 : index
      %c0_19 = arith.constant 0 : index
      %32 = vector.load %arg6[%c0_18, %c0_19] : memref<1x4xf32, #tpu.memory_space<vmem>>, vector<1x4xf32>
      %33 = arith.addf %32, %11 : vector<1x4xf32>
      %34 = arith.mulf %25, %25 : vector<1x4xf32>
      %cst_20 = arith.constant 2.560000e+02 : f32
      %35 = arith.mulf %22, %cst_20 : f32
      %36 = arith.divf %35, %23 : f32
      %37 = vector.broadcast %36 : f32 to vector<1x4xf32>
      %38 = arith.mulf %34, %37 : vector<1x4xf32>
      %39 = arith.addf %33, %38 : vector<1x4xf32>
      %c0_21 = arith.constant 0 : index
      %c0_22 = arith.constant 0 : index
      %40 = vector.load %arg6[%c0_21, %c0_22] : memref<1x4xf32, #tpu.memory_space<vmem>>, vector<1x4xf32>
      tpu.vector_store %arg6[%c0_21, %c0_22], %39 {strides = array<i32>} : memref<1x4xf32, #tpu.memory_space<vmem>>, vector<1x4xf32>,
    } else {
    }
    %c0_i32_8 = arith.constant 0 : i32
    %18 = arith.cmpi eq, %arg1, %c0_i32_8 : i32
    %19 = arith.extui %18 : i1 to i32
    %c0_i32_9 = arith.constant 0 : i32
    %20 = arith.cmpi ne, %19, %c0_i32_9 : i32
    scf.if %20 {
      %c0_10 = arith.constant 0 : index
      %c0_11 = arith.constant 0 : index
      %21 = vector.load %arg5[%c0_10, %c0_11] : memref<1x4xf32, #tpu.memory_space<vmem>>, vector<1x4xf32>
      %c0_12 = arith.constant 0 : index
      %c0_13 = arith.constant 0 : index
      %c0_14 = arith.constant 0 : index
      %22 = vector.load %arg3[%c0_12, %c0_13, %c0_14] : memref<1x1x4xf32, #tpu.memory_space<vmem>>, vector<1x1x4xf32>
      %23 = vector.shape_cast %22 : vector<1x1x4xf32> to vector<1x4xf32>
      %24 = vector.shape_cast %21 : vector<1x4xf32> to vector<1x1x4xf32>
      tpu.vector_store %arg3[%c0_12, %c0_13, %c0_14], %24 {strides = array<i32>} : memref<1x1x4xf32, #tpu.memory_space<vmem>>, vector<1x1x4xf32>,
      %c0_15 = arith.constant 0 : index
      %c0_16 = arith.constant 0 : index
      %25 = vector.load %arg6[%c0_15, %c0_16] : memref<1x4xf32, #tpu.memory_space<vmem>>, vector<1x4xf32>
      %cst_17 = arith.constant 3.906250e-03 : f32
      %26 = vector.broadcast %cst_17 : f32 to vector<1x4xf32>
      %27 = arith.mulf %25, %26 : vector<1x4xf32>
      %cst_18 = arith.constant 9.99999974E-6 : f32
      %28 = vector.broadcast %cst_18 : f32 to vector<1x4xf32>
      %29 = arith.addf %27, %28 : vector<1x4xf32>
      %30 = math.rsqrt %29 : vector<1x4xf32>
      %c0_19 = arith.constant 0 : index
      %c0_20 = arith.constant 0 : index
      %c0_21 = arith.constant 0 : index
      %31 = vector.load %arg4[%c0_19, %c0_20, %c0_21] : memref<1x1x4xf32, #tpu.memory_space<vmem>>, vector<1x1x4xf32>
      %32 = vector.shape_cast %31 : vector<1x1x4xf32> to vector<1x4xf32>
      %33 = vector.shape_cast %30 : vector<1x4xf32> to vector<1x1x4xf32>
      tpu.vector_store %arg4[%c0_19, %c0_20, %c0_21], %33 {strides = array<i32>} : memref<1x1x4xf32, #tpu.memory_space<vmem>>, vector<1x1x4xf32>,
    } else {
    }
    return
  }
  func.func @transform_0(%arg0: i32, %arg1: i32) -> (i32, i32, i32, i32) {
    %c0_i32 = arith.constant 0 : i32
    %c0_i32_0 = arith.constant 0 : i32
    %c0_i32_1 = arith.constant 0 : i32
    return %arg0, %arg1, %c0_i32, %c0_i32_0 : i32, i32, i32, i32
  }
  func.func @transform_1(%arg0: i32, %arg1: i32) -> (i32, i32, i32) {
    %c0_i32 = arith.constant 0 : i32
    %c0_i32_0 = arith.constant 0 : i32
    %c0_i32_1 = arith.constant 0 : i32
    return %arg0, %c0_i32, %c0_i32_0 : i32, i32, i32
  }
  func.func @transform_2(%arg0: i32, %arg1: i32) -> (i32, i32, i32) {
    %c0_i32 = arith.constant 0 : i32
    %c0_i32_0 = arith.constant 0 : i32
    %c0_i32_1 = arith.constant 0 : i32
    return %arg0, %c0_i32, %c0_i32_0 : i32, i32, i32
  }
}

module attributes {stable_mosaic.version = 11 : i64} {
  func.func @_spade_kernel(%arg0: i32, %arg1: i32, %arg2: memref<1x20x16x4xbf16, #tpu.memory_space<vmem>>, %arg3: memref<1x16x16x4xf32, #tpu.memory_space<vmem>>, %arg4: memref<1x1x4xf32, #tpu.memory_space<vmem>>, %arg5: memref<1x1x4xf32, #tpu.memory_space<vmem>>, %arg6: memref<9x4x128xbf16, #tpu.memory_space<vmem>>, %arg7: memref<1x128xf32, #tpu.memory_space<vmem>>, %arg8: memref<9x128x256xbf16, #tpu.memory_space<vmem>>, %arg9: memref<1x256xf32, #tpu.memory_space<vmem>>, %arg10: memref<1x16x16x4xf32, #tpu.memory_space<vmem>>) attributes {dimension_semantics = [#tpu.dimension_semantics<parallel>, #tpu.dimension_semantics<parallel>], iteration_bounds = array<i64: 2, 1>, scalar_prefetch = 0 : i64, scratch_operands = 0 : i64, tpu.core_type = #tpu.core_type<tc>, window_params = [{transform_indices = @transform_0, window_bounds = array<i64: 1, 20, 16, 4>}, {transform_indices = @transform_1, window_bounds = array<i64: 1, 16, 16, 4>}, {transform_indices = @transform_2, window_bounds = array<i64: 1, 1, 4>}, {transform_indices = @transform_3, window_bounds = array<i64: 1, 1, 4>}, {pipeline_mode = #tpu.pipeline_mode<synchronous>, transform_indices = @transform_4, window_bounds = array<i64: 9, 4, 128>}, {pipeline_mode = #tpu.pipeline_mode<synchronous>, transform_indices = @transform_5, window_bounds = array<i64: 1, 128>}, {pipeline_mode = #tpu.pipeline_mode<synchronous>, transform_indices = @transform_6, window_bounds = array<i64: 9, 128, 256>}, {pipeline_mode = #tpu.pipeline_mode<synchronous>, transform_indices = @transform_7, window_bounds = array<i64: 1, 256>}, {transform_indices = @transform_8, window_bounds = array<i64: 1, 16, 16, 4>}]} {
    %cst = arith.constant 0.000000e+00 : bf16
    %0 = vector.broadcast %cst : bf16 to vector<20x1x4xbf16>
    %c0 = arith.constant 0 : index
    %c0_0 = arith.constant 0 : index
    %c0_1 = arith.constant 0 : index
    %c0_2 = arith.constant 0 : index
    %1 = vector.load %arg2[%c0, %c0_0, %c0_1, %c0_2] : memref<1x20x16x4xbf16, #tpu.memory_space<vmem>>, vector<1x20x16x4xbf16>
    %2 = vector.shape_cast %1 : vector<1x20x16x4xbf16> to vector<20x16x4xbf16>
    %3 = tpu.concatenate %0, %2, %0 in 1 : vector<20x1x4xbf16>, vector<20x16x4xbf16>, vector<20x1x4xbf16> -> vector<20x18x4xbf16>
    %4 = vector.extract_strided_slice %3 {offsets = [0, 0, 0], sizes = [18, 16, 4], strides = [1, 1, 1]} : vector<20x18x4xbf16> to vector<18x16x4xbf16>
    %5 = vector.shape_cast %4 : vector<18x16x4xbf16> to vector<288x4xbf16>
    %c0_3 = arith.constant 0 : index
    %c0_4 = arith.constant 0 : index
    %c0_5 = arith.constant 0 : index
    %6 = vector.load %arg6[%c0_3, %c0_4, %c0_5] : memref<9x4x128xbf16, #tpu.memory_space<vmem>>, vector<1x4x128xbf16>
    %7 = vector.shape_cast %6 : vector<1x4x128xbf16> to vector<4x128xbf16>
    %cst_6 = arith.constant dense<0.000000e+00> : vector<288x128xf32>
    %8 = tpu.matmul %5, %7, %cst_6 {dimension_numbers = #tpu.dot_dimension_numbers<[1], [0], [0], [1], [0, 0, 1, 1], [], []>} : vector<288x4xbf16>, vector<4x128xbf16>, vector<288x128xf32> -> vector<288x128xf32>
    %9 = vector.extract_strided_slice %3 {offsets = [0, 1, 0], sizes = [18, 16, 4], strides = [1, 1, 1]} : vector<20x18x4xbf16> to vector<18x16x4xbf16>
    %10 = vector.shape_cast %9 : vector<18x16x4xbf16> to vector<288x4xbf16>
    %c1 = arith.constant 1 : index
    %c0_7 = arith.constant 0 : index
    %c0_8 = arith.constant 0 : index
    %11 = vector.load %arg6[%c1, %c0_7, %c0_8] : memref<9x4x128xbf16, #tpu.memory_space<vmem>>, vector<1x4x128xbf16>
    %12 = vector.shape_cast %11 : vector<1x4x128xbf16> to vector<4x128xbf16>
    %cst_9 = arith.constant dense<0.000000e+00> : vector<288x128xf32>
    %13 = tpu.matmul %10, %12, %cst_9 {dimension_numbers = #tpu.dot_dimension_numbers<[1], [0], [0], [1], [0, 0, 1, 1], [], []>} : vector<288x4xbf16>, vector<4x128xbf16>, vector<288x128xf32> -> vector<288x128xf32>
    %14 = arith.addf %8, %13 : vector<288x128xf32>
    %15 = vector.extract_strided_slice %3 {offsets = [0, 2, 0], sizes = [18, 16, 4], strides = [1, 1, 1]} : vector<20x18x4xbf16> to vector<18x16x4xbf16>
    %16 = vector.shape_cast %15 : vector<18x16x4xbf16> to vector<288x4xbf16>
    %c2 = arith.constant 2 : index
    %c0_10 = arith.constant 0 : index
    %c0_11 = arith.constant 0 : index
    %17 = vector.load %arg6[%c2, %c0_10, %c0_11] : memref<9x4x128xbf16, #tpu.memory_space<vmem>>, vector<1x4x128xbf16>
    %18 = vector.shape_cast %17 : vector<1x4x128xbf16> to vector<4x128xbf16>
    %cst_12 = arith.constant dense<0.000000e+00> : vector<288x128xf32>
    %19 = tpu.matmul %16, %18, %cst_12 {dimension_numbers = #tpu.dot_dimension_numbers<[1], [0], [0], [1], [0, 0, 1, 1], [], []>} : vector<288x4xbf16>, vector<4x128xbf16>, vector<288x128xf32> -> vector<288x128xf32>
    %20 = arith.addf %14, %19 : vector<288x128xf32>
    %21 = vector.extract_strided_slice %3 {offsets = [1, 0, 0], sizes = [18, 16, 4], strides = [1, 1, 1]} : vector<20x18x4xbf16> to vector<18x16x4xbf16>
    %22 = vector.shape_cast %21 : vector<18x16x4xbf16> to vector<288x4xbf16>
    %c3 = arith.constant 3 : index
    %c0_13 = arith.constant 0 : index
    %c0_14 = arith.constant 0 : index
    %23 = vector.load %arg6[%c3, %c0_13, %c0_14] : memref<9x4x128xbf16, #tpu.memory_space<vmem>>, vector<1x4x128xbf16>
    %24 = vector.shape_cast %23 : vector<1x4x128xbf16> to vector<4x128xbf16>
    %cst_15 = arith.constant dense<0.000000e+00> : vector<288x128xf32>
    %25 = tpu.matmul %22, %24, %cst_15 {dimension_numbers = #tpu.dot_dimension_numbers<[1], [0], [0], [1], [0, 0, 1, 1], [], []>} : vector<288x4xbf16>, vector<4x128xbf16>, vector<288x128xf32> -> vector<288x128xf32>
    %26 = arith.addf %20, %25 : vector<288x128xf32>
    %27 = vector.extract_strided_slice %3 {offsets = [1, 1, 0], sizes = [18, 16, 4], strides = [1, 1, 1]} : vector<20x18x4xbf16> to vector<18x16x4xbf16>
    %28 = vector.shape_cast %27 : vector<18x16x4xbf16> to vector<288x4xbf16>
    %c4 = arith.constant 4 : index
    %c0_16 = arith.constant 0 : index
    %c0_17 = arith.constant 0 : index
    %29 = vector.load %arg6[%c4, %c0_16, %c0_17] : memref<9x4x128xbf16, #tpu.memory_space<vmem>>, vector<1x4x128xbf16>
    %30 = vector.shape_cast %29 : vector<1x4x128xbf16> to vector<4x128xbf16>
    %cst_18 = arith.constant dense<0.000000e+00> : vector<288x128xf32>
    %31 = tpu.matmul %28, %30, %cst_18 {dimension_numbers = #tpu.dot_dimension_numbers<[1], [0], [0], [1], [0, 0, 1, 1], [], []>} : vector<288x4xbf16>, vector<4x128xbf16>, vector<288x128xf32> -> vector<288x128xf32>
    %32 = arith.addf %26, %31 : vector<288x128xf32>
    %33 = vector.extract_strided_slice %3 {offsets = [1, 2, 0], sizes = [18, 16, 4], strides = [1, 1, 1]} : vector<20x18x4xbf16> to vector<18x16x4xbf16>
    %34 = vector.shape_cast %33 : vector<18x16x4xbf16> to vector<288x4xbf16>
    %c5 = arith.constant 5 : index
    %c0_19 = arith.constant 0 : index
    %c0_20 = arith.constant 0 : index
    %35 = vector.load %arg6[%c5, %c0_19, %c0_20] : memref<9x4x128xbf16, #tpu.memory_space<vmem>>, vector<1x4x128xbf16>
    %36 = vector.shape_cast %35 : vector<1x4x128xbf16> to vector<4x128xbf16>
    %cst_21 = arith.constant dense<0.000000e+00> : vector<288x128xf32>
    %37 = tpu.matmul %34, %36, %cst_21 {dimension_numbers = #tpu.dot_dimension_numbers<[1], [0], [0], [1], [0, 0, 1, 1], [], []>} : vector<288x4xbf16>, vector<4x128xbf16>, vector<288x128xf32> -> vector<288x128xf32>
    %38 = arith.addf %32, %37 : vector<288x128xf32>
    %39 = vector.extract_strided_slice %3 {offsets = [2, 0, 0], sizes = [18, 16, 4], strides = [1, 1, 1]} : vector<20x18x4xbf16> to vector<18x16x4xbf16>
    %40 = vector.shape_cast %39 : vector<18x16x4xbf16> to vector<288x4xbf16>
    %c6 = arith.constant 6 : index
    %c0_22 = arith.constant 0 : index
    %c0_23 = arith.constant 0 : index
    %41 = vector.load %arg6[%c6, %c0_22, %c0_23] : memref<9x4x128xbf16, #tpu.memory_space<vmem>>, vector<1x4x128xbf16>
    %42 = vector.shape_cast %41 : vector<1x4x128xbf16> to vector<4x128xbf16>
    %cst_24 = arith.constant dense<0.000000e+00> : vector<288x128xf32>
    %43 = tpu.matmul %40, %42, %cst_24 {dimension_numbers = #tpu.dot_dimension_numbers<[1], [0], [0], [1], [0, 0, 1, 1], [], []>} : vector<288x4xbf16>, vector<4x128xbf16>, vector<288x128xf32> -> vector<288x128xf32>
    %44 = arith.addf %38, %43 : vector<288x128xf32>
    %45 = vector.extract_strided_slice %3 {offsets = [2, 1, 0], sizes = [18, 16, 4], strides = [1, 1, 1]} : vector<20x18x4xbf16> to vector<18x16x4xbf16>
    %46 = vector.shape_cast %45 : vector<18x16x4xbf16> to vector<288x4xbf16>
    %c7 = arith.constant 7 : index
    %c0_25 = arith.constant 0 : index
    %c0_26 = arith.constant 0 : index
    %47 = vector.load %arg6[%c7, %c0_25, %c0_26] : memref<9x4x128xbf16, #tpu.memory_space<vmem>>, vector<1x4x128xbf16>
    %48 = vector.shape_cast %47 : vector<1x4x128xbf16> to vector<4x128xbf16>
    %cst_27 = arith.constant dense<0.000000e+00> : vector<288x128xf32>
    %49 = tpu.matmul %46, %48, %cst_27 {dimension_numbers = #tpu.dot_dimension_numbers<[1], [0], [0], [1], [0, 0, 1, 1], [], []>} : vector<288x4xbf16>, vector<4x128xbf16>, vector<288x128xf32> -> vector<288x128xf32>
    %50 = arith.addf %44, %49 : vector<288x128xf32>
    %51 = vector.extract_strided_slice %3 {offsets = [2, 2, 0], sizes = [18, 16, 4], strides = [1, 1, 1]} : vector<20x18x4xbf16> to vector<18x16x4xbf16>
    %52 = vector.shape_cast %51 : vector<18x16x4xbf16> to vector<288x4xbf16>
    %c8 = arith.constant 8 : index
    %c0_28 = arith.constant 0 : index
    %c0_29 = arith.constant 0 : index
    %53 = vector.load %arg6[%c8, %c0_28, %c0_29] : memref<9x4x128xbf16, #tpu.memory_space<vmem>>, vector<1x4x128xbf16>
    %54 = vector.shape_cast %53 : vector<1x4x128xbf16> to vector<4x128xbf16>
    %cst_30 = arith.constant dense<0.000000e+00> : vector<288x128xf32>
    %55 = tpu.matmul %52, %54, %cst_30 {dimension_numbers = #tpu.dot_dimension_numbers<[1], [0], [0], [1], [0, 0, 1, 1], [], []>} : vector<288x4xbf16>, vector<4x128xbf16>, vector<288x128xf32> -> vector<288x128xf32>
    %56 = arith.addf %50, %55 : vector<288x128xf32>
    %c0_31 = arith.constant 0 : index
    %c0_32 = arith.constant 0 : index
    %57 = vector.load %arg7[%c0_31, %c0_32] : memref<1x128xf32, #tpu.memory_space<vmem>>, vector<1x128xf32>
    %58 = vector.broadcast %57 : vector<1x128xf32> to vector<288x128xf32>
    %59 = arith.addf %56, %58 : vector<288x128xf32>
    %cst_33 = arith.constant 0.000000e+00 : f32
    %60 = vector.broadcast %cst_33 : f32 to vector<288x128xf32>
    %61 = arith.maximumf %59, %60 : vector<288x128xf32>
    %62 = vector.shape_cast %61 : vector<288x128xf32> to vector<18x16x128xf32>
    %c16_i32 = arith.constant 16 : i32
    %63 = arith.muli %arg1, %c16_i32 : i32
    %c1_i32 = arith.constant 1 : i32
    %64 = arith.subi %63, %c1_i32 : i32
    %65 = tpu.iota {dimensions = array<i32: 0>} : vector<18x1x1xi32>
    %66 = vector.broadcast %64 : i32 to vector<18x1x1xi32>
    %67 = arith.addi %66, %65 : vector<18x1x1xi32>
    %c0_i32 = arith.constant 0 : i32
    %68 = vector.broadcast %c0_i32 : i32 to vector<18x1x1xi32>
    %69 = arith.cmpi sge, %67, %68 : vector<18x1x1xi32>
    %c16_i32_34 = arith.constant 16 : i32
    %70 = vector.broadcast %c16_i32_34 : i32 to vector<18x1x1xi32>
    %71 = arith.cmpi slt, %67, %70 : vector<18x1x1xi32>
    %72 = arith.andi %69, %71 : vector<18x1x1xi1>
    %cst_35 = arith.constant 0.000000e+00 : f32
    %73 = vector.shape_cast %72 : vector<18x1x1xi1> to vector<18x1x1xi1>
    %74 = vector.broadcast %73 : vector<18x1x1xi1> to vector<18x16x128xi1>
    %75 = vector.broadcast %cst_35 : f32 to vector<18x16x128xf32>
    %76 = arith.select %74, %62, %75 : vector<18x16x128xi1>, vector<18x16x128xf32>
    %77 = arith.truncf %76 : vector<18x16x128xf32> to vector<18x16x128xbf16>
    %cst_36 = arith.constant 0.000000e+00 : bf16
    %78 = vector.broadcast %cst_36 : bf16 to vector<18x1x128xbf16>
    %79 = tpu.concatenate %78, %77, %78 in 1 : vector<18x1x128xbf16>, vector<18x16x128xbf16>, vector<18x1x128xbf16> -> vector<18x18x128xbf16>
    %80 = vector.extract_strided_slice %79 {offsets = [0, 0, 0], sizes = [16, 16, 128], strides = [1, 1, 1]} : vector<18x18x128xbf16> to vector<16x16x128xbf16>
    %81 = vector.shape_cast %80 : vector<16x16x128xbf16> to vector<256x128xbf16>
    %c0_37 = arith.constant 0 : index
    %c0_38 = arith.constant 0 : index
    %c0_39 = arith.constant 0 : index
    %82 = vector.load %arg8[%c0_37, %c0_38, %c0_39] : memref<9x128x256xbf16, #tpu.memory_space<vmem>>, vector<1x128x256xbf16>
    %83 = vector.shape_cast %82 : vector<1x128x256xbf16> to vector<128x256xbf16>
    %cst_40 = arith.constant dense<0.000000e+00> : vector<256x256xf32>
    %84 = tpu.matmul %81, %83, %cst_40 {dimension_numbers = #tpu.dot_dimension_numbers<[1], [0], [0], [1], [0, 0, 1, 1], [], []>} : vector<256x128xbf16>, vector<128x256xbf16>, vector<256x256xf32> -> vector<256x256xf32>
    %85 = vector.extract_strided_slice %79 {offsets = [0, 1, 0], sizes = [16, 16, 128], strides = [1, 1, 1]} : vector<18x18x128xbf16> to vector<16x16x128xbf16>
    %86 = vector.shape_cast %85 : vector<16x16x128xbf16> to vector<256x128xbf16>
    %c1_41 = arith.constant 1 : index
    %c0_42 = arith.constant 0 : index
    %c0_43 = arith.constant 0 : index
    %87 = vector.load %arg8[%c1_41, %c0_42, %c0_43] : memref<9x128x256xbf16, #tpu.memory_space<vmem>>, vector<1x128x256xbf16>
    %88 = vector.shape_cast %87 : vector<1x128x256xbf16> to vector<128x256xbf16>
    %cst_44 = arith.constant dense<0.000000e+00> : vector<256x256xf32>
    %89 = tpu.matmul %86, %88, %cst_44 {dimension_numbers = #tpu.dot_dimension_numbers<[1], [0], [0], [1], [0, 0, 1, 1], [], []>} : vector<256x128xbf16>, vector<128x256xbf16>, vector<256x256xf32> -> vector<256x256xf32>
    %90 = arith.addf %84, %89 : vector<256x256xf32>
    %91 = vector.extract_strided_slice %79 {offsets = [0, 2, 0], sizes = [16, 16, 128], strides = [1, 1, 1]} : vector<18x18x128xbf16> to vector<16x16x128xbf16>
    %92 = vector.shape_cast %91 : vector<16x16x128xbf16> to vector<256x128xbf16>
    %c2_45 = arith.constant 2 : index
    %c0_46 = arith.constant 0 : index
    %c0_47 = arith.constant 0 : index
    %93 = vector.load %arg8[%c2_45, %c0_46, %c0_47] : memref<9x128x256xbf16, #tpu.memory_space<vmem>>, vector<1x128x256xbf16>
    %94 = vector.shape_cast %93 : vector<1x128x256xbf16> to vector<128x256xbf16>
    %cst_48 = arith.constant dense<0.000000e+00> : vector<256x256xf32>
    %95 = tpu.matmul %92, %94, %cst_48 {dimension_numbers = #tpu.dot_dimension_numbers<[1], [0], [0], [1], [0, 0, 1, 1], [], []>} : vector<256x128xbf16>, vector<128x256xbf16>, vector<256x256xf32> -> vector<256x256xf32>
    %96 = arith.addf %90, %95 : vector<256x256xf32>
    %97 = vector.extract_strided_slice %79 {offsets = [1, 0, 0], sizes = [16, 16, 128], strides = [1, 1, 1]} : vector<18x18x128xbf16> to vector<16x16x128xbf16>
    %98 = vector.shape_cast %97 : vector<16x16x128xbf16> to vector<256x128xbf16>
    %c3_49 = arith.constant 3 : index
    %c0_50 = arith.constant 0 : index
    %c0_51 = arith.constant 0 : index
    %99 = vector.load %arg8[%c3_49, %c0_50, %c0_51] : memref<9x128x256xbf16, #tpu.memory_space<vmem>>, vector<1x128x256xbf16>
    %100 = vector.shape_cast %99 : vector<1x128x256xbf16> to vector<128x256xbf16>
    %cst_52 = arith.constant dense<0.000000e+00> : vector<256x256xf32>
    %101 = tpu.matmul %98, %100, %cst_52 {dimension_numbers = #tpu.dot_dimension_numbers<[1], [0], [0], [1], [0, 0, 1, 1], [], []>} : vector<256x128xbf16>, vector<128x256xbf16>, vector<256x256xf32> -> vector<256x256xf32>
    %102 = arith.addf %96, %101 : vector<256x256xf32>
    %103 = vector.extract_strided_slice %79 {offsets = [1, 1, 0], sizes = [16, 16, 128], strides = [1, 1, 1]} : vector<18x18x128xbf16> to vector<16x16x128xbf16>
    %104 = vector.shape_cast %103 : vector<16x16x128xbf16> to vector<256x128xbf16>
    %c4_53 = arith.constant 4 : index
    %c0_54 = arith.constant 0 : index
    %c0_55 = arith.constant 0 : index
    %105 = vector.load %arg8[%c4_53, %c0_54, %c0_55] : memref<9x128x256xbf16, #tpu.memory_space<vmem>>, vector<1x128x256xbf16>
    %106 = vector.shape_cast %105 : vector<1x128x256xbf16> to vector<128x256xbf16>
    %cst_56 = arith.constant dense<0.000000e+00> : vector<256x256xf32>
    %107 = tpu.matmul %104, %106, %cst_56 {dimension_numbers = #tpu.dot_dimension_numbers<[1], [0], [0], [1], [0, 0, 1, 1], [], []>} : vector<256x128xbf16>, vector<128x256xbf16>, vector<256x256xf32> -> vector<256x256xf32>
    %108 = arith.addf %102, %107 : vector<256x256xf32>
    %109 = vector.extract_strided_slice %79 {offsets = [1, 2, 0], sizes = [16, 16, 128], strides = [1, 1, 1]} : vector<18x18x128xbf16> to vector<16x16x128xbf16>
    %110 = vector.shape_cast %109 : vector<16x16x128xbf16> to vector<256x128xbf16>
    %c5_57 = arith.constant 5 : index
    %c0_58 = arith.constant 0 : index
    %c0_59 = arith.constant 0 : index
    %111 = vector.load %arg8[%c5_57, %c0_58, %c0_59] : memref<9x128x256xbf16, #tpu.memory_space<vmem>>, vector<1x128x256xbf16>
    %112 = vector.shape_cast %111 : vector<1x128x256xbf16> to vector<128x256xbf16>
    %cst_60 = arith.constant dense<0.000000e+00> : vector<256x256xf32>
    %113 = tpu.matmul %110, %112, %cst_60 {dimension_numbers = #tpu.dot_dimension_numbers<[1], [0], [0], [1], [0, 0, 1, 1], [], []>} : vector<256x128xbf16>, vector<128x256xbf16>, vector<256x256xf32> -> vector<256x256xf32>
    %114 = arith.addf %108, %113 : vector<256x256xf32>
    %115 = vector.extract_strided_slice %79 {offsets = [2, 0, 0], sizes = [16, 16, 128], strides = [1, 1, 1]} : vector<18x18x128xbf16> to vector<16x16x128xbf16>
    %116 = vector.shape_cast %115 : vector<16x16x128xbf16> to vector<256x128xbf16>
    %c6_61 = arith.constant 6 : index
    %c0_62 = arith.constant 0 : index
    %c0_63 = arith.constant 0 : index
    %117 = vector.load %arg8[%c6_61, %c0_62, %c0_63] : memref<9x128x256xbf16, #tpu.memory_space<vmem>>, vector<1x128x256xbf16>
    %118 = vector.shape_cast %117 : vector<1x128x256xbf16> to vector<128x256xbf16>
    %cst_64 = arith.constant dense<0.000000e+00> : vector<256x256xf32>
    %119 = tpu.matmul %116, %118, %cst_64 {dimension_numbers = #tpu.dot_dimension_numbers<[1], [0], [0], [1], [0, 0, 1, 1], [], []>} : vector<256x128xbf16>, vector<128x256xbf16>, vector<256x256xf32> -> vector<256x256xf32>
    %120 = arith.addf %114, %119 : vector<256x256xf32>
    %121 = vector.extract_strided_slice %79 {offsets = [2, 1, 0], sizes = [16, 16, 128], strides = [1, 1, 1]} : vector<18x18x128xbf16> to vector<16x16x128xbf16>
    %122 = vector.shape_cast %121 : vector<16x16x128xbf16> to vector<256x128xbf16>
    %c7_65 = arith.constant 7 : index
    %c0_66 = arith.constant 0 : index
    %c0_67 = arith.constant 0 : index
    %123 = vector.load %arg8[%c7_65, %c0_66, %c0_67] : memref<9x128x256xbf16, #tpu.memory_space<vmem>>, vector<1x128x256xbf16>
    %124 = vector.shape_cast %123 : vector<1x128x256xbf16> to vector<128x256xbf16>
    %cst_68 = arith.constant dense<0.000000e+00> : vector<256x256xf32>
    %125 = tpu.matmul %122, %124, %cst_68 {dimension_numbers = #tpu.dot_dimension_numbers<[1], [0], [0], [1], [0, 0, 1, 1], [], []>} : vector<256x128xbf16>, vector<128x256xbf16>, vector<256x256xf32> -> vector<256x256xf32>
    %126 = arith.addf %120, %125 : vector<256x256xf32>
    %127 = vector.extract_strided_slice %79 {offsets = [2, 2, 0], sizes = [16, 16, 128], strides = [1, 1, 1]} : vector<18x18x128xbf16> to vector<16x16x128xbf16>
    %128 = vector.shape_cast %127 : vector<16x16x128xbf16> to vector<256x128xbf16>
    %c8_69 = arith.constant 8 : index
    %c0_70 = arith.constant 0 : index
    %c0_71 = arith.constant 0 : index
    %129 = vector.load %arg8[%c8_69, %c0_70, %c0_71] : memref<9x128x256xbf16, #tpu.memory_space<vmem>>, vector<1x128x256xbf16>
    %130 = vector.shape_cast %129 : vector<1x128x256xbf16> to vector<128x256xbf16>
    %cst_72 = arith.constant dense<0.000000e+00> : vector<256x256xf32>
    %131 = tpu.matmul %128, %130, %cst_72 {dimension_numbers = #tpu.dot_dimension_numbers<[1], [0], [0], [1], [0, 0, 1, 1], [], []>} : vector<256x128xbf16>, vector<128x256xbf16>, vector<256x256xf32> -> vector<256x256xf32>
    %132 = arith.addf %126, %131 : vector<256x256xf32>
    %c0_73 = arith.constant 0 : index
    %c0_74 = arith.constant 0 : index
    %133 = vector.load %arg9[%c0_73, %c0_74] : memref<1x256xf32, #tpu.memory_space<vmem>>, vector<1x256xf32>
    %134 = vector.broadcast %133 : vector<1x256xf32> to vector<256x256xf32>
    %135 = arith.addf %132, %134 : vector<256x256xf32>
    %136 = vector.extract_strided_slice %135 {offsets = [0, 0], sizes = [256, 4], strides = [1, 1]} : vector<256x256xf32> to vector<256x4xf32>
    %137 = vector.extract_strided_slice %135 {offsets = [0, 128], sizes = [256, 4], strides = [1, 1]} : vector<256x256xf32> to vector<256x4xf32>
    %c0_75 = arith.constant 0 : index
    %c0_76 = arith.constant 0 : index
    %c0_77 = arith.constant 0 : index
    %c0_78 = arith.constant 0 : index
    %138 = vector.load %arg3[%c0_75, %c0_76, %c0_77, %c0_78] : memref<1x16x16x4xf32, #tpu.memory_space<vmem>>, vector<1x16x16x4xf32>
    %139 = vector.shape_cast %138 : vector<1x16x16x4xf32> to vector<16x16x4xf32>
    %140 = vector.shape_cast %139 : vector<16x16x4xf32> to vector<256x4xf32>
    %c0_79 = arith.constant 0 : index
    %c0_80 = arith.constant 0 : index
    %c0_81 = arith.constant 0 : index
    %141 = vector.load %arg4[%c0_79, %c0_80, %c0_81] : memref<1x1x4xf32, #tpu.memory_space<vmem>>, vector<1x1x4xf32>
    %142 = vector.shape_cast %141 : vector<1x1x4xf32> to vector<1x4xf32>
    %143 = vector.broadcast %142 : vector<1x4xf32> to vector<256x4xf32>
    %144 = arith.subf %140, %143 : vector<256x4xf32>
    %c0_82 = arith.constant 0 : index
    %c0_83 = arith.constant 0 : index
    %c0_84 = arith.constant 0 : index
    %145 = vector.load %arg5[%c0_82, %c0_83, %c0_84] : memref<1x1x4xf32, #tpu.memory_space<vmem>>, vector<1x1x4xf32>
    %146 = vector.shape_cast %145 : vector<1x1x4xf32> to vector<1x4xf32>
    %147 = vector.broadcast %146 : vector<1x4xf32> to vector<256x4xf32>
    %148 = arith.mulf %144, %147 : vector<256x4xf32>
    %cst_85 = arith.constant 1.000000e+00 : f32
    %149 = vector.broadcast %cst_85 : f32 to vector<256x4xf32>
    %150 = arith.addf %149, %136 : vector<256x4xf32>
    %151 = arith.mulf %148, %150 : vector<256x4xf32>
    %152 = arith.addf %151, %137 : vector<256x4xf32>
    %153 = vector.shape_cast %152 : vector<256x4xf32> to vector<16x16x4xf32>
    %c0_86 = arith.constant 0 : index
    %c0_87 = arith.constant 0 : index
    %c0_88 = arith.constant 0 : index
    %c0_89 = arith.constant 0 : index
    %154 = vector.load %arg10[%c0_86, %c0_87, %c0_88, %c0_89] : memref<1x16x16x4xf32, #tpu.memory_space<vmem>>, vector<1x16x16x4xf32>
    %155 = vector.shape_cast %154 : vector<1x16x16x4xf32> to vector<16x16x4xf32>
    %156 = vector.shape_cast %153 : vector<16x16x4xf32> to vector<1x16x16x4xf32>
    tpu.vector_store %arg10[%c0_86, %c0_87, %c0_88, %c0_89], %156 {strides = array<i32>} : memref<1x16x16x4xf32, #tpu.memory_space<vmem>>, vector<1x16x16x4xf32>,
    return
  }
  func.func @transform_0(%arg0: i32, %arg1: i32) -> (i32, i32, i32, i32) {
    %c1_i32 = arith.constant 1 : i32
    %0 = arith.muli %arg0, %c1_i32 : i32
    %1 = arith.addi %0, %arg1 : i32
    %c0_i32 = arith.constant 0 : i32
    %c0_i32_0 = arith.constant 0 : i32
    %c0_i32_1 = arith.constant 0 : i32
    %c0_i32_2 = arith.constant 0 : i32
    return %1, %c0_i32, %c0_i32_0, %c0_i32_1 : i32, i32, i32, i32
  }
  func.func @transform_1(%arg0: i32, %arg1: i32) -> (i32, i32, i32, i32) {
    %c0_i32 = arith.constant 0 : i32
    %c0_i32_0 = arith.constant 0 : i32
    %c0_i32_1 = arith.constant 0 : i32
    return %arg0, %arg1, %c0_i32, %c0_i32_0 : i32, i32, i32, i32
  }
  func.func @transform_2(%arg0: i32, %arg1: i32) -> (i32, i32, i32) {
    %c0_i32 = arith.constant 0 : i32
    %c0_i32_0 = arith.constant 0 : i32
    %c0_i32_1 = arith.constant 0 : i32
    return %arg0, %c0_i32, %c0_i32_0 : i32, i32, i32
  }
  func.func @transform_3(%arg0: i32, %arg1: i32) -> (i32, i32, i32) {
    %c0_i32 = arith.constant 0 : i32
    %c0_i32_0 = arith.constant 0 : i32
    %c0_i32_1 = arith.constant 0 : i32
    return %arg0, %c0_i32, %c0_i32_0 : i32, i32, i32
  }
  func.func @transform_4(%arg0: i32, %arg1: i32) -> (i32, i32, i32) {
    %c0_i32 = arith.constant 0 : i32
    %c0_i32_0 = arith.constant 0 : i32
    %c0_i32_1 = arith.constant 0 : i32
    %c0_i32_2 = arith.constant 0 : i32
    return %c0_i32, %c0_i32_0, %c0_i32_1 : i32, i32, i32
  }
  func.func @transform_5(%arg0: i32, %arg1: i32) -> (i32, i32) {
    %c0_i32 = arith.constant 0 : i32
    %c0_i32_0 = arith.constant 0 : i32
    %c0_i32_1 = arith.constant 0 : i32
    return %c0_i32, %c0_i32_0 : i32, i32
  }
  func.func @transform_6(%arg0: i32, %arg1: i32) -> (i32, i32, i32) {
    %c0_i32 = arith.constant 0 : i32
    %c0_i32_0 = arith.constant 0 : i32
    %c0_i32_1 = arith.constant 0 : i32
    %c0_i32_2 = arith.constant 0 : i32
    return %c0_i32, %c0_i32_0, %c0_i32_1 : i32, i32, i32
  }
  func.func @transform_7(%arg0: i32, %arg1: i32) -> (i32, i32) {
    %c0_i32 = arith.constant 0 : i32
    %c0_i32_0 = arith.constant 0 : i32
    %c0_i32_1 = arith.constant 0 : i32
    return %c0_i32, %c0_i32_0 : i32, i32
  }
  func.func @transform_8(%arg0: i32, %arg1: i32) -> (i32, i32, i32, i32) {
    %c0_i32 = arith.constant 0 : i32
    %c0_i32_0 = arith.constant 0 : i32
    %c0_i32_1 = arith.constant 0 : i32
    return %arg0, %arg1, %c0_i32, %c0_i32_0 : i32, i32, i32, i32
  }
}

</mosaic_0001>

<bundles_post_ra>
// kernel: spade_forward.2
= control target key start
LH: loop header
LB: loop body
LE: loop exit
PB: predicated region body
PF: predicated region fallthrough
CT: control target
= control target key end

     0   :  { %s663_s9 = smov 0   ;;  %s665_s10 = smov 0   ;;  %s969_s0 = inlined_call_operand.vmem [shape: f32[2,16,16,4], index: 0, kind: input, shape index: {}]   ;;  %s970_s1 = inlined_call_operand.vmem [shape: f32[2,1,4], index: 1, kind: output, shape index: {0}]   ;;  %s971_s2 = inlined_call_operand.vmem [shape: f32[2,1,4], index: 2, kind: output, shape index: {1}]  }
   0x1   :  { %s667_s11 = smov 0  }
   0x2 LB: > { %s25_s12 = sadd.s32 1, %s642_s10  ;;  %p592_p0 = scmp.ge.s32.totalorder %s646_s11, 1  ;;  %s646_s11 = sphi %s667_s11, %s13_s11   ;;  %s642_s10 = sphi %s665_s10, %s973_s10   ;;  %s638_s9 = sphi %s663_s9, %s972_s9  }
   0x3   : > { %p27_p1 = scmp.ge.s32.totalorder %s25_s12, 2  ;;  %p135_p2 = scmp.lt.s32.totalorder %s646_s11, 3 }
   0x5   : > { %s975_s12 = smov (%p27_p1, %s25_s12), 0  ;;  %p136_p3 = pnand %p592_p0, %p135_p2 }
   0x6   : > { %p164_p4 = scmp.lt.s32.totalorder (!%p136_p3), %s638_s9, 1 }
   0x7   : > { %139 = sbr.rel (%p136_p3) target bundleno = 203 (0xcb), region = 24 }
   0xc   : > { %s977_s9 = smov (!%p164_p4, %s638_s9), 1  ;;  %vm212_vm0 = vcmask 31744   ;;  %vm420_vm1 = vcmask 24576  }
   0xd   : > { %s597_s13 = sshll.u32 %s977_s9, 8  ;;  %s176_s19 = scalar_lea.vmem %s970_s1, %s977_s9 }
   0xe   : > { %s687_s16 = scalar_lea.vmem %s969_s0, %s597_s13  ;;  %s179_s22 = scalar_lea.vmem %s971_s2, %s977_s9 }
   0xf   : > { %v690_v0 = vld [vmem:[%s687_s16] sm:$0xff]  ;;  %v693_v1 = vld [vmem:[%s687_s16 + $0x8] sm:$0xff]  ;;  %v696_v2 = vld [vmem:[%s687_s16 + $0x10] sm:$0xff] }
  0x10   : > { %v699_v3 = vld [vmem:[%s687_s16 + $0x18] sm:$0xff]  ;;  %v213_v4 = vsel %vm212_vm0, %v690_v0, 0.0  ;;  %v214_v5 = vsel %vm212_vm0, %v693_v1, 0.0  ;;  %v216_v6 = vsel %vm212_vm0, %v696_v2, 0.0  ;;  %v708_v7 = vld [vmem:[%s687_s16 + $0x20] sm:$0xff]  ;;  %v713_v10 = vld [vmem:[%s687_s16 + $0x28] sm:$0xff] }
  0x11   : > { %v215_v8 = vadd.f32 %v214_v5, %v213_v4  ;;  %v218_v9 = vsel %vm212_vm0, %v699_v3, 0.0  ;;  %v220_v12 = vsel %vm212_vm0, %v708_v7, 0.0  ;;  %v718_v13 = vld [vmem:[%s687_s16 + $0x30] sm:$0xff]  ;;  %v222_v15 = vsel %vm212_vm0, %v713_v10, 0.0  ;;  %v723_v16 = vld [vmem:[%s687_s16 + $0x38] sm:$0xff]  ;;  %v728_v19 = vld [vmem:[%s687_s16 + $0x40] sm:$0xff] }
  0x12   : > { %v224_v18 = vsel %vm212_vm0, %v718_v13, 0.0  ;;  %v226_v21 = vsel %vm212_vm0, %v723_v16, 0.0  ;;  %v733_v22 = vld [vmem:[%s687_s16 + $0x48] sm:$0xff]  ;;  %v228_v24 = vsel %vm212_vm0, %v728_v19, 0.0  ;;  %v738_v25 = vld [vmem:[%s687_s16 + $0x50] sm:$0xff]  ;;  %v743_v28 = vld [vmem:[%s687_s16 + $0x58] sm:$0xff] }
  0x13   : > { %v217_v11 = vadd.f32 %v216_v6, %v215_v8  ;;  %v230_v27 = vsel %vm212_vm0, %v733_v22, 0.0  ;;  %v232_v30 = vsel %vm212_vm0, %v738_v25, 0.0  ;;  %v748_v31 = vld [vmem:[%s687_s16 + $0x60] sm:$0xff]  ;;  %v234_v33 = vsel %vm212_vm0, %v743_v28, 0.0  ;;  %v753_v34 = vld [vmem:[%s687_s16 + $0x68] sm:$0xff]  ;;  %v758_v37 = vld [vmem:[%s687_s16 + $0x70] sm:$0xff] }
  0x14   : > { %v236_v36 = vsel %vm212_vm0, %v748_v31, 0.0  ;;  %v238_v39 = vsel %vm212_vm0, %v753_v34, 0.0  ;;  %v763_v40 = vld [vmem:[%s687_s16 + $0x78] sm:$0xff]  ;;  %v240_v42 = vsel %vm212_vm0, %v758_v37, 0.0  ;;  %v768_v43 = vld [vmem:[%s687_s16 + $0x80] sm:$0xff]  ;;  %v773_v46 = vld [vmem:[%s687_s16 + $0x88] sm:$0xff] }
  0x15   : > { %v219_v14 = vadd.f32 %v218_v9, %v217_v11  ;;  %v242_v45 = vsel %vm212_vm0, %v763_v40, 0.0  ;;  %v244_v48 = vsel %vm212_vm0, %v768_v43, 0.0  ;;  %v778_v49 = vld [vmem:[%s687_s16 + $0x90] sm:$0xff]  ;;  %v246_v51 = vsel %vm212_vm0, %v773_v46, 0.0  ;;  %v783_v52 = vld [vmem:[%s687_s16 + $0x98] sm:$0xff]  ;;  %v788_v55 = vld [vmem:[%s687_s16 + $0xa0] sm:$0xff] }
  0x16   : > { %v248_v54 = vsel %vm212_vm0, %v778_v49, 0.0  ;;  %v250_v57 = vsel %vm212_vm0, %v783_v52, 0.0  ;;  %v793_v58 = vld [vmem:[%s687_s16 + $0xa8] sm:$0xff]  ;;  %v252_v60 = vsel %vm212_vm0, %v788_v55, 0.0  ;;  %v798_v61 = vld [vmem:[%s687_s16 + $0xb0] sm:$0xff]  ;;  %v803_v4 = vld [vmem:[%s687_s16 + $0xb8] sm:$0xff] }
  0x17   : > { %v221_v17 = vadd.f32 %v220_v12, %v219_v14  ;;  %v254_v63 = vsel %vm212_vm0, %v793_v58, 0.0  ;;  %v256_v6 = vsel %vm212_vm0, %v798_v61, 0.0  ;;  %v808_v8 = vld [vmem:[%s687_s16 + $0xc0] sm:$0xff]  ;;  %v258_v11 = vsel %vm212_vm0, %v803_v4, 0.0  ;;  %v813_v12 = vld [vmem:[%s687_s16 + $0xc8] sm:$0xff] }
  0x19   : > { %v223_v20 = vadd.f32 %v222_v15, %v221_v17  ;;  %v260_v15 = vsel %vm212_vm0, %v808_v8, 0.0  ;;  %v818_v17 = vld [vmem:[%s687_s16 + $0xd0] sm:$0xff] }
  0x1b   : > { %v225_v23 = vadd.f32 %v224_v18, %v223_v20  ;;  %v262_v20 = vsel %vm212_vm0, %v813_v12, 0.0 }
  0x1d   : > { %v227_v26 = vadd.f32 %v226_v21, %v225_v23  ;;  %v823_v21 = vld [vmem:[%s687_s16 + $0xd8] sm:$0xff] }
  0x1f   : > { %v229_v29 = vadd.f32 %v228_v24, %v227_v26  ;;  %v264_v24 = vsel %vm212_vm0, %v818_v17, 0.0  ;;  %v828_v26 = vld [vmem:[%s687_s16 + $0xe0] sm:$0xff] }
  0x21   : > { %v231_v32 = vadd.f32 %v230_v27, %v229_v29  ;;  %v266_v29 = vsel %vm212_vm0, %v823_v21, 0.0 }
  0x23   : > { %v233_v35 = vadd.f32 %v232_v30, %v231_v32  ;;  %v833_v30 = vld [vmem:[%s687_s16 + $0xe8] sm:$0xff] }
  0x25   : > { %v235_v38 = vadd.f32 %v234_v33, %v233_v35  ;;  %v268_v33 = vsel %vm212_vm0, %v828_v26, 0.0  ;;  %v838_v35 = vld [vmem:[%s687_s16 + $0xf0] sm:$0xff] }
  0x27   : > { %v237_v41 = vadd.f32 %v236_v36, %v235_v38  ;;  %v270_v38 = vsel %vm212_vm0, %v833_v30, 0.0 }
  0x29   : > { %v239_v44 = vadd.f32 %v238_v39, %v237_v41  ;;  %v843_v39 = vld [vmem:[%s687_s16 + $0xf8] sm:$0xff] }
  0x2b   : > { %v241_v47 = vadd.f32 %v240_v42, %v239_v44  ;;  %v272_v42 = vsel %vm212_vm0, %v838_v35, 0.0 }
  0x2d   : > { %v243_v50 = vadd.f32 %v242_v45, %v241_v47  ;;  %v274_v45 = vsel %vm212_vm0, %v843_v39, 0.0 }
  0x2f   : > { %v245_v53 = vadd.f32 %v244_v48, %v243_v50 }
  0x31   : > { %v247_v56 = vadd.f32 %v246_v51, %v245_v53 }
  0x33   : > { %v249_v59 = vadd.f32 %v248_v54, %v247_v56 }
  0x35   : > { %v251_v62 = vadd.f32 %v250_v57, %v249_v59 }
  0x37   : > { %v253_v5 = vadd.f32 %v252_v60, %v251_v62 }
  0x39   : > { %v255_v9 = vadd.f32 %v254_v63, %v253_v5 }
  0x3b   : > { %v257_v14 = vadd.f32 %v256_v6, %v255_v9 }
  0x3d   : > { %v259_v18 = vadd.f32 %v258_v11, %v257_v14 }
  0x3f   : > { %v261_v23 = vadd.f32 %v260_v15, %v259_v18 }
  0x41   : > { %v263_v27 = vadd.f32 %v262_v20, %v261_v23 }
  0x43   : > { %v265_v32 = vadd.f32 %v264_v24, %v263_v27 }
  0x45   : > { %v267_v36 = vadd.f32 %v266_v29, %v265_v32 }
  0x47   : > { %v269_v41 = vadd.f32 %v268_v33, %v267_v36 }
  0x49   : > { %v271_v44 = vadd.f32 %v270_v38, %v269_v41 }
  0x4b   : > { %v273_v47 = vadd.f32 %v272_v42, %v271_v44 }
  0x4d   : > { %v275_v48 = vadd.f32 %v274_v45, %v273_v47 }
  0x4f   : > { %v276_v50 = vrot.slane %v275_v48, 4 }
  0x51   : > { %v277_v51 = vadd.f32 %v276_v50, %v275_v48 }
  0x53   : > { %v278_v53 = vrot.slane %v277_v51, 2 }
  0x55   : > { %v279_v54 = vadd.f32 %v278_v53, %v277_v51 }
  0x57   : > { %v280_v56 = vrot.slane %v279_v54, 1 }
  0x59   : > { %v281_v57 = vadd.f32 %v280_v56, %v279_v54 }
  0x5b   : > { %v849_v59 = vmul.f32 0.00390625, %v281_v57 }
  0x5d   : > { %v283_v60 = vsub.f32 %v690_v0, %v849_v59  ;;  %v284_v62 = vsub.f32 %v693_v1, %v849_v59  ;;  %v285_v63 = vsub.f32 %v696_v2, %v849_v59  ;;  %v286_v5 = vsub.f32 %v699_v3, %v849_v59  ;;  %421 = vst.msk [vmem:[#allocation2] sm:$0x1] %vm420_vm1, %v849_v59 }
  0x5e   : > { %v287_v6 = vsub.f32 %v708_v7, %v849_v59  ;;  %v288_v15 = vsub.f32 %v713_v10, %v849_v59  ;;  %v289_v0 = vsub.f32 %v718_v13, %v849_v59  ;;  %v290_v7 = vsub.f32 %v723_v16, %v849_v59 }
  0x5f   : > { %v315_v9 = vmul.f32 %v283_v60, %v283_v60  ;;  %v316_v11 = vmul.f32 %v284_v62, %v284_v62  ;;  %v317_v14 = vmul.f32 %v285_v63, %v285_v63  ;;  %v318_v18 = vmul.f32 %v286_v5, %v286_v5 }
  0x60   : > { %v319_v1 = vmul.f32 %v287_v6, %v287_v6  ;;  %v320_v24 = vmul.f32 %v288_v15, %v288_v15  ;;  %v291_v10 = vsub.f32 %v728_v19, %v849_v59  ;;  %v321_v32 = vmul.f32 %v289_v0, %v289_v0 }
  0x61   : > { %v347_v20 = vsel %vm212_vm0, %v315_v9, 0.0  ;;  %v348_v2 = vsel %vm212_vm0, %v316_v11, 0.0  ;;  %v350_v3 = vsel %vm212_vm0, %v317_v14, 0.0  ;;  %v352_v27 = vsel %vm212_vm0, %v318_v18, 0.0 }
  0x62   : > { %v349_v23 = vadd.f32 %v348_v2, %v347_v20  ;;  %v354_v13 = vsel %vm212_vm0, %v319_v1, 0.0  ;;  %v292_v36 = vsub.f32 %v733_v22, %v849_v59  ;;  %v322_v38 = vmul.f32 %v290_v7, %v290_v7 }
  0x63   : > { %v356_v41 = vsel %vm212_vm0, %v320_v24, 0.0  ;;  %v293_v16 = vsub.f32 %v738_v25, %v849_v59  ;;  %v323_v44 = vmul.f32 %v291_v10, %v291_v10  ;;  %v358_v45 = vsel %vm212_vm0, %v321_v32, 0.0 }
  0x64   : > { %v351_v29 = vadd.f32 %v350_v3, %v349_v23  ;;  %v294_v19 = vsub.f32 %v743_v28, %v849_v59  ;;  %v324_v48 = vmul.f32 %v292_v36, %v292_v36  ;;  %v360_v50 = vsel %vm212_vm0, %v322_v38, 0.0 }
  0x65   : > { %v295_v22 = vsub.f32 %v748_v31, %v849_v59  ;;  %v325_v53 = vmul.f32 %v293_v16, %v293_v16  ;;  %v362_v54 = vsel %vm212_vm0, %v323_v44, 0.0  ;;  %v296_v25 = vsub.f32 %v753_v34, %v849_v59 }
  0x66   : > { %v353_v33 = vadd.f32 %v352_v27, %v351_v29  ;;  %v326_v57 = vmul.f32 %v294_v19, %v294_v19  ;;  %v364_v60 = vsel %vm212_vm0, %v324_v48, 0.0  ;;  %v297_v28 = vsub.f32 %v758_v37, %v849_v59 }
  0x67   : > { %v327_v63 = vmul.f32 %v295_v22, %v295_v22  ;;  %v366_v5 = vsel %vm212_vm0, %v325_v53, 0.0  ;;  %v298_v31 = vsub.f32 %v763_v40, %v849_v59  ;;  %v328_v9 = vmul.f32 %v296_v25, %v296_v25 }
  0x68   : > { %v355_v42 = vadd.f32 %v354_v13, %v353_v33  ;;  %v368_v11 = vsel %vm212_vm0, %v326_v57, 0.0  ;;  %v299_v34 = vsub.f32 %v768_v43, %v849_v59  ;;  %v329_v15 = vmul.f32 %v297_v28, %v297_v28 }
  0x69   : > { %v370_v18 = vsel %vm212_vm0, %v327_v63, 0.0  ;;  %v300_v37 = vsub.f32 %v773_v46, %v849_v59  ;;  %v330_v1 = vmul.f32 %v298_v31, %v298_v31  ;;  %v372_v20 = vsel %vm212_vm0, %v328_v9, 0.0 }
  0x6a   : > { %v357_v47 = vadd.f32 %v356_v41, %v355_v42  ;;  %v301_v40 = vsub.f32 %v778_v49, %v849_v59  ;;  %v331_v3 = vmul.f32 %v299_v34, %v299_v34  ;;  %v374_v23 = vsel %vm212_vm0, %v329_v15, 0.0  ;;  %v482_v34 = vld [vmem:[#allocation2] sm:$0x1] }
  0x6b   : > { %v302_v43 = vsub.f32 %v783_v52, %v849_v59  ;;  %v332_v24 = vmul.f32 %v300_v37, %v300_v37  ;;  %v376_v27 = vsel %vm212_vm0, %v330_v1, 0.0  ;;  %v303_v46 = vsub.f32 %v788_v55, %v849_v59  ;;  %484 = vst.msk [vmem:[%s176_s19] sm:$0x1] %vm420_vm1, %v482_v34 }
  0x6c   : > { %v359_v51 = vadd.f32 %v358_v45, %v357_v47  ;;  %v333_v10 = vmul.f32 %v301_v40, %v301_v40  ;;  %v378_v32 = vsel %vm212_vm0, %v331_v3, 0.0  ;;  %v304_v49 = vsub.f32 %v793_v58, %v849_v59 }
  0x6d   : > { %v334_v33 = vmul.f32 %v302_v43, %v302_v43  ;;  %v380_v36 = vsel %vm212_vm0, %v332_v24, 0.0  ;;  %v305_v52 = vsub.f32 %v798_v61, %v849_v59  ;;  %v335_v41 = vmul.f32 %v303_v46, %v303_v46 }
  0x6e   : > { %v361_v56 = vadd.f32 %v360_v50, %v359_v51  ;;  %v382_v42 = vsel %vm212_vm0, %v333_v10, 0.0  ;;  %v306_v55 = vsub.f32 %v803_v4, %v849_v59  ;;  %v336_v44 = vmul.f32 %v304_v49, %v304_v49 }
  0x6f   : > { %v384_v45 = vsel %vm212_vm0, %v334_v33, 0.0  ;;  %v307_v58 = vsub.f32 %v808_v8, %v849_v59  ;;  %v337_v19 = vmul.f32 %v305_v52, %v305_v52  ;;  %v386_v48 = vsel %vm212_vm0, %v335_v41, 0.0 }
  0x70   : > { %v363_v62 = vadd.f32 %v362_v54, %v361_v56  ;;  %v308_v61 = vsub.f32 %v813_v12, %v849_v59  ;;  %v338_v51 = vmul.f32 %v306_v55, %v306_v55  ;;  %v388_v22 = vsel %vm212_vm0, %v336_v44, 0.0 }
  0x71   : > { %v309_v4 = vsub.f32 %v818_v17, %v849_v59  ;;  %v339_v54 = vmul.f32 %v307_v58, %v307_v58  ;;  %v390_v56 = vsel %vm212_vm0, %v337_v19, 0.0  ;;  %v310_v8 = vsub.f32 %v823_v21, %v849_v59 }
  0x72   : > { %v365_v6 = vadd.f32 %v364_v60, %v363_v62  ;;  %v340_v57 = vmul.f32 %v308_v61, %v308_v61  ;;  %v392_v60 = vsel %vm212_vm0, %v338_v51, 0.0  ;;  %v311_v62 = vsub.f32 %v828_v26, %v849_v59 }
  0x73   : > { %v341_v17 = vmul.f32 %v309_v4, %v309_v4  ;;  %v394_v28 = vsel %vm212_vm0, %v339_v54, 0.0  ;;  %v313_v9 = vsub.f32 %v838_v35, %v849_v59  ;;  %v314_v15 = vsub.f32 %v843_v39, %v849_v59 }
  0x74   : > { %v367_v14 = vadd.f32 %v366_v5, %v365_v6  ;;  %v312_v5 = vsub.f32 %v833_v30, %v849_v59  ;;  %v342_v6 = vmul.f32 %v310_v8, %v310_v8  ;;  %v396_v21 = vsel %vm212_vm0, %v340_v57, 0.0 }
  0x75   : > { %v398_v26 = vsel %vm212_vm0, %v341_v17, 0.0  ;;  %v345_v37 = vmul.f32 %v313_v9, %v313_v9 }
  0x76   : > { %v369_v0 = vadd.f32 %v368_v11, %v367_v14  ;;  %v343_v11 = vmul.f32 %v311_v62, %v311_v62  ;;  %v344_v30 = vmul.f32 %v312_v5, %v312_v5 }
  0x77   : > { %v406_v3 = vsel %vm212_vm0, %v345_v37, 0.0 }
  0x78   : > { %v371_v2 = vadd.f32 %v370_v18, %v369_v0  ;;  %v400_v18 = vsel %vm212_vm0, %v342_v6, 0.0  ;;  %v402_v1 = vsel %vm212_vm0, %v343_v11, 0.0  ;;  %v404_v35 = vsel %vm212_vm0, %v344_v30, 0.0 }
  0x7a   : > { %v373_v7 = vadd.f32 %v372_v20, %v371_v2  ;;  %v346_v2 = vmul.f32 %v314_v15, %v314_v15 }
  0x7c   : > { %v375_v29 = vadd.f32 %v374_v23, %v373_v7  ;;  %v408_v7 = vsel %vm212_vm0, %v346_v2, 0.0 }
  0x7e   : > { %v377_v13 = vadd.f32 %v376_v27, %v375_v29 }
  0x80   : > { %v379_v38 = vadd.f32 %v378_v32, %v377_v13 }
  0x82   : > { %v381_v16 = vadd.f32 %v380_v36, %v379_v38 }
  0x84   : > { %v383_v47 = vadd.f32 %v382_v42, %v381_v16 }
  0x86   : > { %v385_v50 = vadd.f32 %v384_v45, %v383_v47 }
  0x88   : > { %v387_v53 = vadd.f32 %v386_v48, %v385_v50 }
  0x8a   : > { %v389_v25 = vadd.f32 %v388_v22, %v387_v53 }
  0x8c   : > { %v391_v12 = vadd.f32 %v390_v56, %v389_v25 }
  0x8e   : > { %v393_v63 = vadd.f32 %v392_v60, %v391_v12 }
  0x90   : > { %v395_v31 = vadd.f32 %v394_v28, %v393_v63 }
  0x92   : > { %v397_v14 = vadd.f32 %v396_v21, %v395_v31 }
  0x94   : > { %v399_v0 = vadd.f32 %v398_v26, %v397_v14 }
  0x96   : > { %v401_v20 = vadd.f32 %v400_v18, %v399_v0 }
  0x98   : > { %v403_v40 = vadd.f32 %v402_v1, %v401_v20 }
  0x9a   : > { %v405_v23 = vadd.f32 %v404_v35, %v403_v40 }
  0x9c   : > { %v407_v39 = vadd.f32 %v406_v3, %v405_v23 }
  0x9e   : > { %v409_v59 = vadd.f32 %v408_v7, %v407_v39 }
  0xa0   : > { %v410_v43 = vrot.slane %v409_v59, 4 }
  0xa2   : > { %v411_v24 = vadd.f32 %v410_v43, %v409_v59 }
  0xa4   : > { %v412_v27 = vrot.slane %v411_v24, 2 }
  0xa6   : > { %v413_v29 = vadd.f32 %v412_v27, %v411_v24 }
  0xa8   : > { %v414_v46 = vrot.slane %v413_v29, 1 }
  0xaa   : > { %v415_v10 = vadd.f32 %v414_v46, %v413_v29 }
  0xac   : > { %422 = vst.msk [vmem:[#allocation3] sm:$0x1] %vm420_vm1, %v415_v10 }
  0xb3   : > { %v485_v32 = vld [vmem:[#allocation3] sm:$0x1] }
  0xb4   : > { %v486_v13 = vmul.f32 0.00390625, %v485_v32 }
  0xb6   : > { %v487_v49 = vadd.f32 1e-05, %v486_v13 }
  0xb8   : > { %622 = vrsqrt.f32 %v487_v49  ;;  %vm494_vm3 = vweird.f32 %v487_v49 }
  0xbe   : > { %v623_v33 = vpop.eup %622 }
  0xbf   : > { %v489_v36 = vmul.f32 %v623_v33, %v487_v49  ;;  %vm495_vm2 = vweird.f32 %v623_v33 }
  0xc0   : > { %vm496_vm4 = vmor %vm494_vm3, %vm495_vm2 }
  0xc1   : > { %v490_v38 = vmul.f32 %v623_v33, %v489_v36 }
  0xc3   : > { %v491_v52 = vmul.f32 0.5, %v490_v38 }
  0xc5   : > { %v492_v41 = vsub.f32 1.5, %v491_v52 }
  0xc7   : > { %v493_v42 = vmul.f32 %v623_v33, %v492_v41 }
  0xc9   : > { %v497_v16 = vsel %vm496_vm4, %v623_v33, %v493_v42 }
  0xca   : > { %498 = vst.msk [vmem:[%s179_s22] sm:$0x1] %vm420_vm1, %v497_v16 }
  0xcb PF: > { %s13_s11 = sadd.s32 1, %s646_s11   ;;  %s972_s9 = smov %s642_s10 }
  0xcc   : > { %p10_p5 = scmp.ge.s32.totalorder %s13_s11, 4   ;;  %s973_s10 = smov %s975_s12 }
  0xce   :  { %12 = sbr.rel (!%p10_p5) target bundleno = 2 (0x2), region = 78 }

// kernel: spade_forward.3
= control target key start
LH: loop header
LB: loop body
LE: loop exit
PB: predicated region body
PF: predicated region fallthrough
CT: control target
= control target key end

     0   :  { %s7935_s27 = smov 0   ;;  %s7937_s28 = smov 0   ;;  %s11933_s0 = inlined_call_operand.vmem [shape: bf16[2,20,16,4], index: 0, kind: input, shape index: {}]   ;;  %s11934_s1 = inlined_call_operand.vmem [shape: f32[2,16,16,4], index: 1, kind: input, shape index: {}]   ;;  %s11935_s2 = inlined_call_operand.vmem [shape: f32[2,1,4], index: 2, kind: input, shape index: {}]   ;;  %s11936_s3 = inlined_call_operand.vmem [shape: f32[2,1,4], index: 3, kind: input, shape index: {}]   ;;  %s11937_s4 = inlined_call_operand.vmem [shape: bf16[9,4,128], index: 4, kind: input, shape index: {}]   ;;  %s11938_s5 = inlined_call_operand.vmem [shape: f32[1,128], index: 5, kind: input, shape index: {}]   ;;  %s11939_s6 = inlined_call_operand.vmem [shape: bf16[9,128,256], index: 6, kind: input, shape index: {}]   ;;  %s11940_s7 = inlined_call_operand.vmem [shape: f32[1,256], index: 7, kind: input, shape index: {}]   ;;  %s11941_s8 = inlined_call_operand.vmem [shape: f32[2,16,16,4], index: 8, kind: output, shape index: {}]  }
   0x1   :  { %s7939_s29 = smov 0  }
   0x2 LB: > { %s30_s30 = sadd.s32 1, %s7883_s28  ;;  %p6702_p0 = scmp.ge.s32.totalorder %s7887_s29, 1  ;;  %s7887_s29 = sphi %s7939_s29, %s18_s29   ;;  %s7883_s28 = sphi %s7937_s28, %s12790_s28   ;;  %s7879_s27 = sphi %s7935_s27, %s12789_s27  }
   0x3   : > { %p32_p1 = scmp.ge.s32.totalorder %s30_s30, 2  ;;  %p314_p2 = scmp.lt.s32.totalorder %s7887_s29, 3 }
   0x5   : > { %s12792_s30 = smov (%p32_p1, %s30_s30), 0  ;;  %p315_p3 = pnand %p6702_p0, %p314_p2 }
   0x7   : > { %318 = sbr.rel (%p315_p3) target bundleno = 2329 (0x919), region = 52 }
   0xc   : > { %v6788_v0 = vld [vmem:[%s11937_s4 + $0x2] sm:$0x3]  ;;  %vm1044_vm0 = vcmask 1041408   ;;  %p371_p4 = scmp.lt.s32.totalorder %s7879_s27, 1  ;;  %v769_v2 = vld [vmem:[%s11937_s4] sm:$0x3] }
   0xd   : > { %v1046_v1 = vsel %vm1044_vm0, %v6788_v0, 0  ;;  %v1184_v3 = vsel %vm1044_vm0, %v769_v2, 0  ;;  %vm726_vm1 = vcmask 1040384   ;;  %vm727_vm2 = vsmask.f32 256 }
   0xe   : > { %1055 = vmatpush.bf16.msra.mxu0 %v1046_v1  ;;  %s12794_s27 = smov (!%p371_p4, %s7879_s27), 1  ;;  %7830 = vmatpush.bf16.msra.mxu1 %v1184_v3  ;;  %vm7971_vm3 = vmand %vm726_vm1, %vm727_vm2  ;;  %vm770_vm4 = vsmask.f32 7424  ;;  %vm989_vm5 = vcmask 31744   ;;  %v6825_v26 = vld [vmem:[%s11937_s4 + $0x4] sm:$0x3] }
   0xf   : > { %s7833_s13 = smul.u32 160, %s12794_s27  ;;  %v6844_v27 = vld [vmem:[%s11937_s4 + $0x6] sm:$0x3]  ;;  %v1433_v30 = vsel %vm1044_vm0, %v6825_v26, 0  ;;  %vm1321_vm6 = vcmask 1046528   ;;  %s11415_s24 = scalar_lea.vmem %s11935_s2, %s12794_s27 }
  0x10   : > { %v8003_v31 = vsel %vm1044_vm0, %v6844_v27, 0  ;;  %7831 = vmatpush.bf16.msra.mxu2 %v1433_v30  ;;  %s11423_s9 = scalar_lea.vmem %s11936_s3, %s12794_s27  ;;  %s7664_s10 = sshll.u32 %s12794_s27, 8 }
  0x11   : > { %s7967_s16 = scalar_lea.vmem %s11933_s0, %s7833_s13  ;;  %7832 = vmatpush.bf16.msra.mxu3 %v8003_v31  ;;  %s11560_s13 = scalar_lea.vmem %s11934_s1, %s7664_s10 }
  0x12   : > { %1193 = vmatpush.bf16.msrb.mxu0 %v1184_v3  ;;  %v7666_v4 = vld [vmem:[%s7967_s16] sm:$0xff]  ;;  %v7667_v5 = vld [vmem:[%s7967_s16 + $0x8] sm:$0xff]  ;;  %v7668_v24 = vld [vmem:[%s7967_s16 + $0x10] sm:$0xff]  ;;  %s11596_s18 = scalar_lea.vmem %s11941_s8, %s7664_s10 }
  0x13   : > { %v547_v6 = vshrl.u32 %v7666_v4, 16  ;;  %v550_v7 = vshll.u32 %v7666_v4, 16  ;;  %v554_v8 = vshrl.u32 %v7667_v5, 16  ;;  %v557_v14 = vshll.u32 %v7667_v5, 16  ;;  %v7669_v28 = vld [vmem:[%s7967_s16 + $0x18] sm:$0xff]  ;;  %v7670_v32 = vld [vmem:[%s7967_s16 + $0x20] sm:$0xff] }
  0x14   : > { %v561_v34 = vshrl.u32 %v7668_v24, 16  ;;  %v568_v35 = vshrl.u32 %v7669_v28, 16  ;;  %v571_v36 = vshll.u32 %v7669_v28, 16  ;;  %v575_v37 = vshrl.u32 %v7670_v32, 16  ;;  %v7671_v59 = vld [vmem:[%s7967_s16 + $0x28] sm:$0xff] }
  0x15   : > { %v549_v9 = vrot.slane %v547_v6, 7  ;;  %v556_v13 = vrot.slane %v554_v8, 7  ;;  %v578_v38 = vshll.u32 %v7670_v32, 16  ;;  %v564_v45 = vshll.u32 %v7668_v24, 16 }
  0x16   : > { %v570_v39 = vrot.slane %v568_v35, 7  ;;  %v577_v43 = vrot.slane %v575_v37, 7  ;;  %v563_v44 = vrot.slane %v561_v34, 7  ;;  %v582_v63 = vshrl.u32 %v7671_v59, 16 }
  0x17   : > { %v552_v11 = vor.u32 %v550_v7, %v549_v9  ;;  %v7977_v12 = vsel %vm7971_vm3, %v549_v9, 0  ;;  %v559_v19 = vor.u32 %v557_v14, %v556_v13  ;;  %v8008_v33 = vsel %vm7971_vm3, %v556_v13, 0 }
  0x18   : > { %v779_v15 = vshll.u32 %v7977_v12, 16  ;;  %v791_v42 = vshll.u32 %v8008_v33, 16  ;;  %v573_v46 = vor.u32 %v571_v36, %v570_v39  ;;  %v752_v47 = vsel %vm7971_vm3, %v570_v39, 0  ;;  %v7673_v36 = vld [vmem:[%s7967_s16 + $0x38] sm:$0xff] }
  0x19   : > { %v7982_v16 = vsel %vm7971_vm3, 0, %v552_v11  ;;  %v7988_v23 = vsel %vm7971_vm3, 0, %v559_v19  ;;  %v1332_v48 = vrot.slane %v752_v47, 1  ;;  %v580_v49 = vor.u32 %v578_v38, %v577_v43 }
  0x1a   : > { %v772_v17 = vshrl.u32 %v7982_v16, 16  ;;  %v774_v18 = vshll.u32 %v7982_v16, 16  ;;  %v781_v21 = vrot.slane %v779_v15, 1  ;;  %v786_v29 = vshll.u32 %v7988_v23, 16  ;;  %v7672_v15 = vld [vmem:[%s7967_s16 + $0x30] sm:$0xff] }
  0x1b   : > { %v784_v40 = vshrl.u32 %v7988_v23, 16  ;;  %v8017_v50 = vsel %vm7971_vm3, 0, %v573_v46  ;;  %v793_v52 = vrot.slane %v791_v42, 1  ;;  %v8022_v54 = vsel %vm7971_vm3, 0, %v580_v49 }
  0x1c   : > { %v776_v20 = vrot.slane %v774_v18, 1  ;;  %v788_v41 = vrot.slane %v786_v29, 1  ;;  %v1331_v53 = vrot.slane %v8017_v50, 1  ;;  %6810 = vmatmul.msk.bf16.vlgmr.msra.gmra.mxu1 %vm989_vm5, %v8017_v50  ;;  %v566_v55 = vor.u32 %v564_v45, %v563_v44  ;;  %6848 = vmatmul.msk.bf16.vlgmr.msra.gmra.mxu3 %vm989_vm5, %v8022_v54 }
  0x1d   : > { %v8045_v60 = vsel %vm7971_vm3, %v563_v44, 0  ;;  %v753_v62 = vsel %vm7971_vm3, %v577_v43, 0  ;;  %v585_v0 = vshll.u32 %v7671_v59, 16  ;;  %v584_v2 = vrot.slane %v582_v63, 7 }
  0x1e   : > { %v777_v22 = vor.u32 %v776_v20, %v772_v17  ;;  %v789_v51 = vor.u32 %v788_v41, %v784_v40  ;;  %v8029_v56 = vsel %vm1321_vm6, %v1331_v53, %v1332_v48  ;;  %v8038_v58 = vsel %vm7971_vm3, 0, %v566_v55  ;;  %v7674_v55 = vld [vmem:[%s7967_s16 + $0x40] sm:$0xff] }
  0x1f   : > { %6829 = vmatmul.msk.bf16.vlgmr.msra.gmra.mxu2 %vm989_vm5, %v8029_v56  ;;  %v798_v61 = vshll.u32 %v8038_v58, 16  ;;  %v803_v1 = vshll.u32 %v8045_v60, 16  ;;  %v796_v3 = vshrl.u32 %v8038_v58, 16  ;;  %v1334_v5 = vrot.slane %v8022_v54, 1 }
  0x20   : > { %v782_v25 = vsel %vm770_vm4, %v777_v22, %v781_v21  ;;  %v8034_v57 = vsel %vm770_vm4, %v789_v51, %v793_v52  ;;  %v1335_v6 = vrot.slane %v753_v62, 1  ;;  %v587_v7 = vor.u32 %v585_v0, %v584_v2 }
  0x21   : > { %6789 = vmatmul.msk.bf16.vlgmr.msra.gmra.mxu0 %vm989_vm5, %v782_v25  ;;  %v800_v4 = vrot.slane %v798_v61, 1  ;;  %v805_v11 = vrot.slane %v803_v1, 1  ;;  %v810_v17 = vshll.u32 %v8017_v50, 16  ;;  %v754_v18 = vsel %vm7971_vm3, %v584_v2, 0 }
  0x22   : > { %1442 = vmatpush.bf16.msra.mxu0 %v1433_v30  ;;  %v8055_v8 = vsel %vm7971_vm3, 0, %v587_v7  ;;  %v8058_v13 = vsel %vm1321_vm6, %v1334_v5, %v1335_v6  ;;  %v589_v19 = vshrl.u32 %v7672_v15, 16  ;;  %v592_v20 = vshll.u32 %v7672_v15, 16 }
  0x23   : > { %v801_v9 = vor.u32 %v800_v4, %v796_v3  ;;  %v815_v21 = vshll.u32 %v752_v47, 16  ;;  %v808_v24 = vshrl.u32 %v8017_v50, 16  ;;  %v812_v25 = vrot.slane %v810_v17, 1 }
  0x24   : > { %v591_v22 = vrot.slane %v589_v19, 7  ;;  %v1337_v26 = vrot.slane %v8055_v8, 1  ;;  %v1338_v27 = vrot.slane %v754_v18, 1  ;;  %v822_v37 = vshll.u32 %v8022_v54, 16 }
  0x25   : > { %v8067_v14 = vsel %vm770_vm4, %v801_v9, %v805_v11  ;;  %v813_v30 = vor.u32 %v812_v25, %v808_v24  ;;  %v817_v32 = vrot.slane %v815_v21, 1  ;;  %v596_v39 = vshrl.u32 %v7673_v36, 16 }
  0x26   : > { %v594_v28 = vor.u32 %v592_v20, %v591_v22  ;;  %v8082_v34 = vsel %vm1321_vm6, %v1337_v26, %v1338_v27  ;;  %v755_v38 = vsel %vm7971_vm3, %v591_v22, 0  ;;  %v599_v40 = vshll.u32 %v7673_v36, 16  ;;  %v7675_v26 = vld [vmem:[%s7967_s16 + $0x48] sm:$0xff] }
  0x27   : > { %v8091_v35 = vsel %vm770_vm4, %v813_v30, %v817_v32  ;;  %v820_v41 = vshrl.u32 %v8022_v54, 16  ;;  %v598_v42 = vrot.slane %v596_v39, 7  ;;  %v824_v43 = vrot.slane %v822_v37, 1 }
  0x28   : > { %v8079_v29 = vsel %vm7971_vm3, 0, %v594_v28  ;;  %v827_v44 = vshll.u32 %v753_v62, 16  ;;  %v1341_v46 = vrot.slane %v755_v38, 1  ;;  %v834_v59 = vshll.u32 %v8055_v8, 16 }
  0x29   : > { %v1340_v45 = vrot.slane %v8079_v29, 1  ;;  %v601_v47 = vor.u32 %v599_v40, %v598_v42  ;;  %v825_v49 = vor.u32 %v824_v43, %v820_v41  ;;  %v756_v61 = vsel %vm7971_vm3, %v598_v42, 0 }
  0x2a   : > { %v829_v51 = vrot.slane %v827_v44, 1  ;;  %v603_v62 = vshrl.u32 %v7674_v55, 16  ;;  %v606_v63 = vshll.u32 %v7674_v55, 16  ;;  %v832_v0 = vshrl.u32 %v8055_v8, 16 }
  0x2b   : > { %v8103_v48 = vsel %vm7971_vm3, 0, %v601_v47  ;;  %v8106_v52 = vsel %vm1321_vm6, %v1340_v45, %v1341_v46  ;;  %v836_v2 = vrot.slane %v834_v59, 1  ;;  %v839_v3 = vshll.u32 %v754_v18, 16  ;;  %v7676_v47 = vld [vmem:[%s7967_s16 + $0x50] sm:$0xff] }
  0x2c   : > { %6811 = vmatmul.msk.bf16.gmra.mxu1 %vm989_vm5, %v8022_v54  ;;  %6849 = vmatmul.msk.bf16.gmra.mxu3 %vm989_vm5, %v8055_v8  ;;  %v8115_v53 = vsel %vm770_vm4, %v825_v49, %v829_v51  ;;  %v605_v1 = vrot.slane %v603_v62, 7  ;;  %v1343_v4 = vrot.slane %v8103_v48, 1  ;;  %v1344_v5 = vrot.slane %v756_v61, 1 }
  0x2d   : > { %v837_v9 = vor.u32 %v836_v2, %v832_v0  ;;  %v841_v11 = vrot.slane %v839_v3, 1  ;;  %v846_v18 = vshll.u32 %v8079_v29, 16  ;;  %v851_v20 = vshll.u32 %v755_v38, 16 }
  0x2e   : > { %v608_v6 = vor.u32 %v606_v63, %v605_v1  ;;  %v8130_v15 = vsel %vm1321_vm6, %v1343_v4, %v1344_v5  ;;  %v757_v19 = vsel %vm7971_vm3, %v605_v1, 0  ;;  %v844_v21 = vshrl.u32 %v8079_v29, 16 }
  0x2f   : > { %6830 = vmatmul.msk.bf16.gmra.mxu2 %vm989_vm5, %v8058_v13  ;;  %v8139_v17 = vsel %vm770_vm4, %v837_v9, %v841_v11  ;;  %v848_v22 = vrot.slane %v846_v18, 1  ;;  %v1347_v25 = vrot.slane %v757_v19, 1  ;;  %v610_v27 = vshrl.u32 %v7675_v26, 16  ;;  %v7677_v18 = vld [vmem:[%s7967_s16 + $0x58] sm:$0xff] }
  0x30   : > { %v8127_v7 = vsel %vm7971_vm3, 0, %v608_v6  ;;  %v853_v28 = vrot.slane %v851_v20, 1  ;;  %v613_v37 = vshll.u32 %v7675_v26, 16  ;;  %v858_v41 = vshll.u32 %v8103_v48, 16 }
  0x31   : > { %6790 = vmatmul.msk.bf16.gmra.mxu0 %vm989_vm5, %v8034_v57  ;;  %12073 = vst [vmem:[#allocation2_spill] sm:$0xff] %v8127_v7  ;;  %v1346_v24 = vrot.slane %v8127_v7, 1  ;;  %v849_v30 = vor.u32 %v848_v22, %v844_v21  ;;  %v612_v36 = vrot.slane %v610_v27, 7  ;;  %v863_v42 = vshll.u32 %v756_v61, 16 }
  0x32   : > { %v856_v43 = vshrl.u32 %v8103_v48, 16  ;;  %v860_v44 = vrot.slane %v858_v41, 1  ;;  %v617_v51 = vshrl.u32 %v7676_v47, 16  ;;  %v620_v0 = vshll.u32 %v7676_v47, 16  ;;  %v7678_v47 = vld [vmem:[%s7967_s16 + $0x60] sm:$0xff] }
  0x33   : > { %v8150_v32 = vsel %vm1321_vm6, %v1346_v24, %v1347_v25  ;;  %v615_v38 = vor.u32 %v613_v37, %v612_v36  ;;  %v8157_v39 = vsel %vm770_vm4, %v849_v30, %v853_v28  ;;  %v758_v45 = vsel %vm7971_vm3, %v612_v36, 0 }
  0x34   : > { %12074 = vst [vmem:[#allocation3_spill] sm:$0xff] %v8150_v32  ;;  %v1350_v49 = vrot.slane %v758_v45, 1  ;;  %v865_v55 = vrot.slane %v863_v42, 1  ;;  %v861_v59 = vor.u32 %v860_v44, %v856_v43  ;;  %v619_v63 = vrot.slane %v617_v51, 7 }
  0x35   : > { %v8161_v40 = vsel %vm7971_vm3, 0, %v615_v38  ;;  %v870_v3 = vshll.u32 %v8127_v7, 16  ;;  %v868_v4 = vshrl.u32 %v8127_v7, 16  ;;  %v875_v6 = vshll.u32 %v757_v19, 16 }
  0x36   : > { %12075 = vst [vmem:[#allocation4_spill] sm:$0xff] %v8161_v40  ;;  %v1349_v46 = vrot.slane %v8161_v40, 1  ;;  %v622_v61 = vor.u32 %v620_v0, %v619_v63  ;;  %v8181_v1 = vsel %vm770_vm4, %v861_v59, %v865_v55  ;;  %v759_v9 = vsel %vm7971_vm3, %v619_v63, 0 }
  0x37   : > { %v872_v5 = vrot.slane %v870_v3, 1  ;;  %v1353_v20 = vrot.slane %v759_v9, 1  ;;  %v624_v21 = vshrl.u32 %v7677_v18, 16  ;;  %v877_v24 = vrot.slane %v875_v6, 1 }
  0x38   : > { %v8174_v62 = vsel %vm1321_vm6, %v1349_v46, %v1350_v49  ;;  %v8185_v2 = vsel %vm7971_vm3, 0, %v622_v61  ;;  %v627_v27 = vshll.u32 %v7677_v18, 16  ;;  %v882_v37 = vshll.u32 %v8161_v40, 16 }
  0x39   : > { %12076 = vst [vmem:[#allocation5_spill] sm:$0xff] %v8174_v62  ;;  %v1352_v11 = vrot.slane %v8185_v2, 1  ;;  %v873_v22 = vor.u32 %v872_v5, %v868_v4  ;;  %v626_v26 = vrot.slane %v624_v21, 7  ;;  %v880_v38 = vshrl.u32 %v8161_v40, 16 }
  0x3a   : > { %12077 = vst [vmem:[#allocation6_spill] sm:$0xff] %v8185_v2  ;;  %v884_v41 = vrot.slane %v882_v37, 1  ;;  %v887_v43 = vshll.u32 %v758_v45, 16  ;;  %v631_v51 = vshrl.u32 %v7678_v47, 16  ;;  %v634_v61 = vshll.u32 %v7678_v47, 16 }
  0x3b   : > { %v8198_v25 = vsel %vm1321_vm6, %v1352_v11, %v1353_v20  ;;  %v629_v19 = vor.u32 %v627_v27, %v626_v26  ;;  %v8205_v30 = vsel %vm770_vm4, %v873_v22, %v877_v24  ;;  %v760_v44 = vsel %vm7971_vm3, %v626_v26, 0 }
  0x3c   : > { %6812 = vmatmul.msk.bf16.gmra.mxu1 %vm989_vm5, %v8055_v8  ;;  %6850 = vmatmul.msk.bf16.gmra.mxu3 %vm989_vm5, %v8079_v29  ;;  %12078 = vst [vmem:[#allocation7_spill] sm:$0xff] %v8198_v25  ;;  %v1356_v49 = vrot.slane %v760_v44, 1  ;;  %v885_v55 = vor.u32 %v884_v41, %v880_v38  ;;  %v889_v59 = vrot.slane %v887_v43, 1  ;;  %v633_v0 = vrot.slane %v631_v51, 7 }
  0x3d   : > { %12079 = vst [vmem:[#allocation8_spill] sm:$0xff] %v8205_v30  ;;  %v8209_v36 = vsel %vm7971_vm3, 0, %v629_v19  ;;  %v894_v18 = vshll.u32 %v8185_v2, 16  ;;  %v892_v21 = vshrl.u32 %v8185_v2, 16  ;;  %v899_v24 = vshll.u32 %v759_v9, 16  ;;  %v7679_v19 = vld [vmem:[%s7967_s16 + $0x68] sm:$0xff] }
  0x3e   : > { %12080 = vst [vmem:[#allocation9_spill] sm:$0xff] %v8209_v36  ;;  %v1355_v46 = vrot.slane %v8209_v36, 1  ;;  %v636_v3 = vor.u32 %v634_v61, %v633_v0  ;;  %v8231_v4 = vsel %vm770_vm4, %v885_v55, %v889_v59  ;;  %v638_v37 = vshrl.u32 %v7679_v19, 16 }
  0x3f   : > { %6831 = vmatmul.msk.bf16.gmra.mxu2 %vm989_vm5, %v8082_v34  ;;  %12082 = vst [vmem:[#allocation11_spill] sm:$0xff] %v8231_v4  ;;  %v896_v22 = vrot.slane %v894_v18, 1  ;;  %v901_v41 = vrot.slane %v899_v24, 1  ;;  %v761_v43 = vsel %vm7971_vm3, %v633_v0, 0  ;;  %v641_v9 = vshll.u32 %v7679_v19, 16 }
  0x40   : > { %v8222_v63 = vsel %vm1321_vm6, %v1355_v46, %v1356_v49  ;;  %v8235_v6 = vsel %vm7971_vm3, 0, %v636_v3  ;;  %v1359_v47 = vrot.slane %v761_v43, 1  ;;  %v640_v49 = vrot.slane %v638_v37, 7 }
  0x41   : > { %6791 = vmatmul.msk.bf16.gmra.mxu0 %vm989_vm5, %v8067_v14  ;;  %12081 = vst [vmem:[#allocation10_spill] sm:$0xff] %v8222_v63  ;;  %v897_v38 = vor.u32 %v896_v22, %v892_v21  ;;  %v1358_v46 = vrot.slane %v8235_v6, 1  ;;  %v906_v21 = vshll.u32 %v8209_v36, 16  ;;  %v904_v24 = vshrl.u32 %v8209_v36, 16 }
  0x42   : > { %v643_v55 = vor.u32 %v641_v9, %v640_v49  ;;  %v911_v37 = vshll.u32 %v760_v44, 16 }
  0x43   : > { %v8258_v51 = vsel %vm1321_vm6, %v1358_v46, %v1359_v47  ;;  %v8265_v0 = vsel %vm770_vm4, %v897_v38, %v901_v41  ;;  %v908_v19 = vrot.slane %v906_v21, 1  ;;  %v7680_v46 = vld [vmem:[%s7967_s16 + $0x70] sm:$0xff] }
  0x44   : > { %12084 = vst [vmem:[#allocation13_spill] sm:$0xff] %v8258_v51  ;;  %v8271_v3 = vsel %vm7971_vm3, 0, %v643_v55  ;;  %v645_v9 = vshrl.u32 %v7680_v46, 16 }
  0x45   : > { %12086 = vst [vmem:[#allocation15_spill] sm:$0xff] %v8265_v0  ;;  %v909_v55 = vor.u32 %v908_v19, %v904_v24 }
  0x46   : > { %v647_v21 = vrot.slane %v645_v9, 7 }
  0x4c   : > { %6813 = vmatmul.msk.bf16.gmra.mxu1 %vm989_vm5, %v8079_v29  ;;  %6851 = vmatmul.msk.bf16.gmra.mxu3 %vm989_vm5, %v8103_v48 }
  0x4f   : > { %6832 = vmatmul.msk.bf16.gmra.mxu2 %vm989_vm5, %v8106_v52 }
  0x51   : > { %6792 = vmatmul.msk.bf16.gmra.mxu0 %vm989_vm5, %v8091_v35 }
  0x5c   : > { %6814 = vmatmul.msk.bf16.gmra.mxu1 %vm989_vm5, %v8103_v48  ;;  %6852 = vmatmul.msk.bf16.gmra.mxu3 %vm989_vm5, %v8127_v7 }
  0x5f   : > { %6833 = vmatmul.msk.bf16.gmra.mxu2 %vm989_vm5, %v8130_v15 }
  0x61   : > { %6793 = vmatmul.msk.bf16.gmra.mxu0 %vm989_vm5, %v8115_v53 }
  0x6c   : > { %6815 = vmatmul.msk.bf16.gmra.mxu1 %vm989_vm5, %v8127_v7  ;;  %6853 = vmatmul.msk.bf16.gmra.mxu3 %vm989_vm5, %v8161_v40 }
  0x6f   : > { %6834 = vmatmul.msk.bf16.gmra.mxu2 %vm989_vm5, %v8150_v32 }
  0x71   : > { %6794 = vmatmul.msk.bf16.gmra.mxu0 %vm989_vm5, %v8139_v17 }
  0x7c   : > { %6816 = vmatmul.msk.bf16.gmra.mxu1 %vm989_vm5, %v8161_v40  ;;  %6854 = vmatmul.msk.bf16.gmra.mxu3 %vm989_vm5, %v8185_v2  ;;  %v648_v40 = vshll.u32 %v7680_v46, 16 }
  0x7e   : > { %v650_v24 = vor.u32 %v648_v40, %v647_v21 }
  0x7f   : > { %6835 = vmatmul.msk.bf16.gmra.mxu2 %vm989_vm5, %v8174_v62 }
  0x80   : > { %v8312_v46 = vsel %vm7971_vm3, 0, %v650_v24  ;;  %v916_v24 = vshrl.u32 %v8235_v6, 16 }
  0x81   : > { %6795 = vmatmul.msk.bf16.gmra.mxu0 %vm989_vm5, %v8157_v39 }
  0x8c   : > { %6817 = vmatmul.msk.bf16.gmra.mxu1 %vm989_vm5, %v8185_v2  ;;  %6855 = vmatmul.msk.bf16.gmra.mxu3 %vm989_vm5, %v8209_v36  ;;  %v913_v2 = vrot.slane %v911_v37, 1 }
  0x8f   : > { %6836 = vmatmul.msk.bf16.gmra.mxu2 %vm989_vm5, %v8198_v25 }
  0x91   : > { %6796 = vmatmul.msk.bf16.gmra.mxu0 %vm989_vm5, %v8181_v1 }
  0x99   : > { %v1210_v5 = vpop.f32.mrf.mxu1 }
  0x9c   : > { %6818 = vmatmul.msk.bf16.gmra.mxu1 %vm989_vm5, %v8209_v36  ;;  %6856 = vmatmul.msk.bf16.gmra.mxu3 %vm989_vm5, %v8235_v6  ;;  %v1361_v36 = vrot.slane %v8271_v3, 1 }
  0x9e   : > { %v1057_v28 = vpop.f32.mrf.mxu0 }
  0x9f   : > { %6837 = vmatmul.msk.bf16.gmra.mxu2 %vm989_vm5, %v8222_v63  ;;  %v1602_v20 = vpop.f32.mrf.mxu3 }
  0xa1   : > { %6797 = vmatmul.msk.bf16.gmra.mxu0 %vm989_vm5, %v8205_v30  ;;  %v8245_v27 = vpop.f32.mrf.mxu1  ;;  %v7681_v30 = vld [vmem:[%s7967_s16 + $0x78] sm:$0xff] }
  0xa2   : > { %v1459_v11 = vpop.f32.mrf.mxu2 }
  0xa6   : > { %v1059_v42 = vpop.f32.mrf.mxu0 }
  0xa7   : > { %v8250_v42 = vpop.f32.mrf.mxu3 }
  0xa9   : > { %v8267_v61 = vpop.f32.mrf.mxu1 }
  0xaa   : > { %v8248_v28 = vpop.f32.mrf.mxu2 }
  0xac   : > { %6819 = vmatmul.msk.bf16.gmra.mxu1 %vm989_vm5, %v8235_v6  ;;  %6857 = vmatmul.msk.bf16.gmra.mxu3 %vm989_vm5, %v8271_v3 }
  0xae   : > { %v8228_v45 = vpop.f32.mrf.mxu0 }
  0xaf   : > { %6838 = vmatmul.msk.bf16.gmra.mxu2 %vm989_vm5, %v8258_v51  ;;  %v8280_v22 = vpop.f32.mrf.mxu3 }
  0xb1   : > { %6798 = vmatmul.msk.bf16.gmra.mxu0 %vm989_vm5, %v8231_v4  ;;  %v8285_v41 = vpop.f32.mrf.mxu1 }
  0xb2   : > { %v8275_v18 = vpop.f32.mrf.mxu2 }
  0xb6   : > { %v8243_v26 = vpop.f32.mrf.mxu0 }
  0xb7   : > { %12083 = vst [vmem:[#allocation12_spill] sm:$0xff] %v8243_v26  ;;  %v8290_v4 = vpop.f32.mrf.mxu3 }
  0xb9   : > { %v8308_v37 = vpop.f32.mrf.mxu1 }
  0xba   : > { %v8288_v47 = vpop.f32.mrf.mxu2 }
  0xbc   : > { %6820 = vmatmul.msk.bf16.gmra.mxu1 %vm989_vm5, %v8271_v3  ;;  %6858 = vmatmul.msk.bf16.gmra.mxu3 %vm989_vm5, %v8312_v46 }
  0xbe   : > { %v8262_v59 = vpop.f32.mrf.mxu0 }
  0xbf   : > { %12085 = vst [vmem:[#allocation14_spill] sm:$0xff] %v8262_v59 }
  0xc1   : > { %6799 = vmatmul.msk.bf16.gmra.mxu0 %vm989_vm5, %v8265_v0  ;;  %v8294_v0 = vsel %vm7971_vm3, %v640_v49, 0  ;;  %v8306_v49 = vsel %vm770_vm4, %v909_v55, %v913_v2  ;;  %v918_v2 = vshll.u32 %v8235_v6, 16  ;;  %v8321_v55 = vpop.f32.mrf.mxu3 }
  0xc2   : > { %v1362_v44 = vrot.slane %v8294_v0, 1  ;;  %12089 = vst [vmem:[#allocation18_spill] sm:$0xff] %v8306_v49 }
  0xc4   : > { %v8301_v51 = vsel %vm1321_vm6, %v1361_v36, %v1362_v44  ;;  %v8316_v36 = vpop.f32.mrf.mxu2 }
  0xc5   : > { %12088 = vst [vmem:[#allocation17_spill] sm:$0xff] %v8301_v51  ;;  %6839 = vmatmul.msk.bf16.gmra.mxu2 %vm989_vm5, %v8301_v51  ;;  %v923_v51 = vshll.u32 %v761_v43, 16  ;;  %v1364_v43 = vrot.slane %v8312_v46, 1 }
  0xc6   : > { %v8283_v38 = vpop.f32.mrf.mxu0 }
  0xc7   : > { %12087 = vst [vmem:[#allocation16_spill] sm:$0xff] %v8283_v38  ;;  %v920_v38 = vrot.slane %v918_v2, 1  ;;  %v925_v59 = vrot.slane %v923_v51, 1 }
  0xc9   : > { %v921_v63 = vor.u32 %v920_v38, %v916_v24  ;;  %v8333_v26 = vpop.f32.mrf.mxu3 }
  0xca   : > { %12092 = vst [vmem:[#allocation21_spill] sm:$0xff] %v8333_v26 }
  0xcb   : > { %v8352_v38 = vsel %vm770_vm4, %v921_v63, %v925_v59  ;;  %v930_v63 = vshll.u32 %v8271_v3, 16 }
  0xcc   : > { %6821 = vmatmul.msk.bf16.gmra.mxu1 %vm989_vm5, %v8312_v46 }
  0xce   : > { %v1072_v19 = vpop.f32.mrf.mxu0 }
  0xcf   : > { %v1211_v9 = vadd.f32 %v1210_v5, %v1072_v19  ;;  %v8326_v19 = vpop.f32.mrf.mxu1 }
  0xd1   : > { %v1540_v40 = vadd.f32 %v1459_v11, %v1211_v9  ;;  %6800 = vmatmul.msk.bf16.gmra.mxu0 %vm989_vm5, %v8306_v49  ;;  %v8330_v11 = vpop.f32.mrf.mxu2  ;;  %v652_v9 = vshrl.u32 %v7681_v30, 16  ;;  %v8369_v59 = vpop.f32.mrf.mxu3 }
  0xd2   : > { %12091 = vst [vmem:[#allocation20_spill] sm:$0xff] %v8330_v11 }
  0xd3   : > { %v8323_v44 = vadd.f32 %v1602_v20, %v1540_v40  ;;  %v8337_v20 = vsel %vm7971_vm3, %v647_v21, 0  ;;  %v654_v2 = vrot.slane %v652_v9, 7  ;;  %v932_v9 = vrot.slane %v930_v63, 1 }
  0xd4   : > { %v1365_v40 = vrot.slane %v8337_v20, 1 }
  0xd5   : > { %12090 = vst [vmem:[#allocation19_spill] sm:$0xff] %v8323_v44  ;;  %v655_v44 = vshll.u32 %v7681_v30, 16 }
  0xd6   : > { %v1074_v5 = vpop.f32.mrf.mxu0 }
  0xd7   : > { %v1213_v7 = vadd.f32 %v8245_v27, %v1074_v5  ;;  %v8354_v21 = vpop.f32.mrf.mxu1  ;;  %v935_v5 = vshll.u32 %v8294_v0, 16  ;;  %v764_v0 = vsel %vm7971_vm3, %v654_v2, 0 }
  0xd8   : > { %v1368_v63 = vrot.slane %v764_v0, 1 }
  0xd9   : > { %v1541_v49 = vadd.f32 %v8248_v28, %v1213_v7  ;;  %v8347_v7 = vsel %vm1321_vm6, %v1364_v43, %v1365_v40  ;;  %v657_v28 = vor.u32 %v655_v44, %v654_v2 }
  0xda   : > { %12094 = vst [vmem:[#allocation23_spill] sm:$0xff] %v8347_v7  ;;  %6840 = vmatmul.msk.bf16.gmra.mxu2 %vm989_vm5, %v8347_v7 }
  0xdb   : > { %v8344_v27 = vadd.f32 %v8250_v42, %v1541_v49  ;;  %v8358_v30 = vsel %vm7971_vm3, 0, %v657_v28  ;;  %v8363_v49 = vpop.f32.mrf.mxu2  ;;  %v7682_v28 = vld [vmem:[%s7967_s16 + $0x80] sm:$0xff] }
  0xdc   : > { %6859 = vmatmul.msk.bf16.gmra.mxu3 %vm989_vm5, %v8358_v30  ;;  %6822 = vmatmul.msk.bf16.gmra.mxu1 %vm989_vm5, %v8358_v30 }
  0xdd   : > { %12093 = vst [vmem:[#allocation22_spill] sm:$0xff] %v8344_v27  ;;  %v937_v27 = vrot.slane %v935_v5, 1 }
  0xde   : > { %v1077_v51 = vpop.f32.mrf.mxu0 }
  0xdf   : > { %v1216_v42 = vadd.f32 %v8267_v61, %v1077_v51  ;;  %v928_v61 = vshrl.u32 %v8271_v3, 16  ;;  %v8376_v40 = vpop.f32.mrf.mxu1 }
  0xe0   : > { %12096 = vst [vmem:[#allocation25_spill] sm:$0xff] %v8376_v40  ;;  %v662_v40 = vshll.u32 %v7682_v28, 16 }
  0xe1   : > { %v1542_v44 = vadd.f32 %v8275_v18, %v1216_v42  ;;  %6801 = vmatmul.msk.bf16.gmra.mxu0 %vm989_vm5, %v8352_v38  ;;  %v659_v42 = vshrl.u32 %v7682_v28, 16  ;;  %v933_v11 = vor.u32 %v932_v9, %v928_v61 }
  0xe3   : > { %v8372_v24 = vadd.f32 %v8280_v22, %v1542_v44  ;;  %v8380_v51 = vpop.f32.mrf.mxu2  ;;  %v8383_v22 = vpop.f32.mrf.mxu3  ;;  %v1367_v44 = vrot.slane %v8358_v30, 1  ;;  %v8399_v2 = vsel %vm770_vm4, %v933_v11, %v937_v27  ;;  %v942_v11 = vshll.u32 %v8312_v46, 16 }
  0xe4   : > { %12097 = vst [vmem:[#allocation26_spill] sm:$0xff] %v8380_v51 }
  0xe5   : > { %12095 = vst [vmem:[#allocation24_spill] sm:$0xff] %v8372_v24  ;;  %v661_v24 = vrot.slane %v659_v42, 7  ;;  %v940_v42 = vshrl.u32 %v8312_v46, 16 }
  0xe6   : > { %v1079_v43 = vpop.f32.mrf.mxu0  ;;  %12098 = vst [vmem:[#allocation27_spill] sm:$0xff] %v8383_v22 }
  0xe7   : > { %v1218_v18 = vadd.f32 %v8285_v41, %v1079_v43  ;;  %v664_v5 = vor.u32 %v662_v40, %v661_v24  ;;  %v1230_v9 = vpop.f32.mrf.mxu1 }
  0xe9   : > { %v1543_v26 = vadd.f32 %v8288_v47, %v1218_v18  ;;  %v8394_v47 = vsel %vm1321_vm6, %v1367_v44, %v1368_v63  ;;  %v8403_v43 = vsel %vm7971_vm3, 0, %v664_v5  ;;  %v947_v18 = vshll.u32 %v8337_v20, 16  ;;  %v7683_v5 = vld [vmem:[%s7967_s16 + $0x88] sm:$0xff] }
  0xea   : > { %12100 = vst [vmem:[#allocation29_spill] sm:$0xff] %v8394_v47  ;;  %6841 = vmatmul.msk.bf16.gmra.mxu2 %vm989_vm5, %v8394_v47  ;;  %v1370_v20 = vrot.slane %v8403_v43, 1 }
  0xeb   : > { %v8391_v41 = vadd.f32 %v8290_v4, %v1543_v26  ;;  %v1479_v26 = vpop.f32.mrf.mxu2  ;;  %v1622_v27 = vpop.f32.mrf.mxu3  ;;  %v949_v51 = vrot.slane %v947_v18, 1 }
  0xec   : > { %6860 = vmatmul.msk.bf16.gmra.mxu3 %vm989_vm5, %v8403_v43  ;;  %6823 = vmatmul.msk.bf16.gmra.mxu1 %vm989_vm5, %v8403_v43 }
  0xed   : > { %12099 = vst [vmem:[#allocation28_spill] sm:$0xff] %v8391_v41 }
  0xee   : > { %v1082_v61 = vpop.f32.mrf.mxu0 }
  0xef   : > { %v1221_v4 = vadd.f32 %v8308_v37, %v1082_v61  ;;  %v944_v37 = vrot.slane %v942_v11, 1  ;;  %v8417_v63 = vpop.f32.mrf.mxu1 }
  0xf0   : > { %12102 = vst [vmem:[#allocation31_spill] sm:$0xff] %v8417_v63 }
  0xf1   : > { %v1544_v40 = vadd.f32 %v8316_v36, %v1221_v4  ;;  %6802 = vmatmul.msk.bf16.gmra.mxu0 %vm989_vm5, %v8399_v2  ;;  %v666_v4 = vshrl.u32 %v7683_v5, 16  ;;  %v945_v22 = vor.u32 %v944_v37, %v940_v42 }
  0xf3   : > { %v8413_v28 = vadd.f32 %v8321_v55, %v1544_v40  ;;  %v8423_v61 = vpop.f32.mrf.mxu2  ;;  %v8425_v41 = vpop.f32.mrf.mxu3  ;;  %v765_v55 = vsel %vm7971_vm3, %v661_v24, 0  ;;  %v668_v11 = vrot.slane %v666_v4, 7  ;;  %v8438_v42 = vsel %vm770_vm4, %v945_v22, %v949_v51 }
  0xf4   : > { %12104 = vst [vmem:[#allocation33_spill] sm:$0xff] %v8423_v61  ;;  %v1371_v40 = vrot.slane %v765_v55, 1 }
  0xf5   : > { %12101 = vst [vmem:[#allocation30_spill] sm:$0xff] %v8413_v28  ;;  %v669_v28 = vshll.u32 %v7683_v5, 16 }
  0xf6   : > { %v1084_v44 = vpop.f32.mrf.mxu0  ;;  %12105 = vst [vmem:[#allocation34_spill] sm:$0xff] %v8425_v41 }
  0xf7   : > { %v8421_v36 = vadd.f32 %v8326_v19, %v1084_v44  ;;  %v8433_v19 = vsel %vm1321_vm6, %v1370_v20, %v1371_v40  ;;  %v671_v44 = vor.u32 %v669_v28, %v668_v11  ;;  %v1235_v24 = vpop.f32.mrf.mxu1  ;;  %v954_v20 = vshll.u32 %v8358_v30, 16 }
  0xf8   : > { %12106 = vst [vmem:[#allocation35_spill] sm:$0xff] %v8433_v19 }
  0xf9   : > { %12103 = vst [vmem:[#allocation32_spill] sm:$0xff] %v8421_v36  ;;  %v8442_v37 = vsel %vm7971_vm3, 0, %v671_v44  ;;  %v952_v44 = vshrl.u32 %v8358_v30, 16 }
  0xfa   : > { %6842 = vmatmul.msk.bf16.gmra.mxu2 %vm989_vm5, %v8433_v19 }
  0xfb   : > { %v1484_v4 = vpop.f32.mrf.mxu2  ;;  %v1627_v51 = vpop.f32.mrf.mxu3 }
  0xfc   : > { %6861 = vmatmul.msk.bf16.gmra.mxu3 %vm989_vm5, %v8442_v37  ;;  %6824 = vmatmul.msk.bf16.gmra.mxu1 %vm989_vm5, %v8442_v37 }
  0xfe   : > { %v1087_v18 = vpop.f32.mrf.mxu0 }
  0xff   : > { %v1226_v5 = vadd.f32 %v8354_v21, %v1087_v18  ;;  %v956_v21 = vrot.slane %v954_v20, 1  ;;  %v959_v18 = vshll.u32 %v764_v0, 16  ;;  %v8457_v41 = vpop.f32.mrf.mxu1  ;;  %v966_v20 = vshll.u32 %v8403_v43, 16 }
 0x100   : > { %12109 = vst [vmem:[#allocation38_spill] sm:$0xff] %v8457_v41  ;;  %v971_v41 = vshll.u32 %v765_v55, 16  ;;  %v978_v55 = vshll.u32 %v8442_v37, 16 }
 0x101   : > { %v1546_v28 = vadd.f32 %v8363_v49, %v1226_v5  ;;  %6803 = vmatmul.msk.bf16.gmra.mxu0 %vm989_vm5, %v8438_v42  ;;  %v957_v49 = vor.u32 %v956_v21, %v952_v44  ;;  %v961_v5 = vrot.slane %v959_v18, 1 }
 0x103   : > { %v8452_v22 = vadd.f32 %v8369_v59, %v1546_v28  ;;  %v8459_v61 = vpop.f32.mrf.mxu2  ;;  %v8461_v63 = vpop.f32.mrf.mxu3  ;;  %v8466_v59 = vsel %vm770_vm4, %v957_v49, %v961_v5 }
 0x104   : > { %12110 = vst [vmem:[#allocation39_spill] sm:$0xff] %v8459_v61  ;;  %v968_v61 = vrot.slane %v966_v20, 1 }
 0x105   : > { %12107 = vst [vmem:[#allocation36_spill] sm:$0xff] %v8452_v22 }
 0x106   : > { %v8454_v40 = vpop.f32.mrf.mxu0  ;;  %12111 = vst [vmem:[#allocation40_spill] sm:$0xff] %v8461_v63  ;;  %v964_v63 = vshrl.u32 %v8403_v43, 16 }
 0x107   : > { %12108 = vst [vmem:[#allocation37_spill] sm:$0xff] %v8454_v40  ;;  %v1240_v28 = vpop.f32.mrf.mxu1 }
 0x108   : > { %12112 = vst [vmem:[#allocation41_spill] sm:$0xff] %v8466_v59  ;;  %v969_v5 = vor.u32 %v968_v61, %v964_v63 }
 0x10b   : > { %v1489_v0 = vpop.f32.mrf.mxu2  ;;  %v1632_v21 = vpop.f32.mrf.mxu3 }
 0x10e   : > { %v1092_v36 = vpop.f32.mrf.mxu0 }
 0x10f   : > { %v1231_v22 = vadd.f32 %v1230_v9, %v1092_v36  ;;  %v8476_v49 = vpop.f32.mrf.mxu1  ;;  %v973_v9 = vrot.slane %v971_v41, 1  ;;  %v8492_v41 = vsel %vm7971_vm3, %v668_v11, 0 }
 0x110   : > { %12115 = vst [vmem:[#allocation44_spill] sm:$0xff] %v8476_v49 }
 0x111   : > { %v1548_v40 = vadd.f32 %v1479_v26, %v1231_v22  ;;  %6804 = vmatmul.msk.bf16.gmra.mxu0 %vm989_vm5, %v8466_v59  ;;  %v8483_v59 = vsel %vm770_vm4, %v969_v5, %v973_v9  ;;  %v976_v5 = vshrl.u32 %v8442_v37, 16  ;;  %v980_v9 = vrot.slane %v978_v55, 1 }
 0x113   : > { %v8471_v44 = vadd.f32 %v1622_v27, %v1548_v40  ;;  %v8478_v26 = vpop.f32.mrf.mxu2  ;;  %v8480_v36 = vpop.f32.mrf.mxu3 }
 0x114   : > { %12116 = vst [vmem:[#allocation45_spill] sm:$0xff] %v8478_v26 }
 0x115   : > { %12113 = vst [vmem:[#allocation42_spill] sm:$0xff] %v8471_v44 }
 0x116   : > { %v8473_v18 = vpop.f32.mrf.mxu0  ;;  %12117 = vst [vmem:[#allocation46_spill] sm:$0xff] %v8480_v36 }
 0x117   : > { %12114 = vst [vmem:[#allocation43_spill] sm:$0xff] %v8473_v18  ;;  %v1245_v27 = vpop.f32.mrf.mxu1 }
 0x11b   : > { %v1494_v63 = vpop.f32.mrf.mxu2 }
 0x11e   : > { %v1097_v22 = vpop.f32.mrf.mxu0 }
 0x11f   : > { %v1236_v40 = vadd.f32 %v1235_v24, %v1097_v22  ;;  %v983_v24 = vshll.u32 %v8492_v41, 16  ;;  %v1637_v22 = vpop.f32.mrf.mxu3 }
 0x121   : > { %v1550_v44 = vadd.f32 %v1484_v4, %v1236_v40  ;;  %6805 = vmatmul.msk.bf16.gmra.mxu0 %vm989_vm5, %v8483_v59  ;;  %v8498_v4 = vpop.f32.mrf.mxu1  ;;  %v981_v40 = vor.u32 %v980_v9, %v976_v5  ;;  %v985_v36 = vrot.slane %v983_v24, 1 }
 0x122   : > { %12120 = vst [vmem:[#allocation49_spill] sm:$0xff] %v8498_v4 }
 0x123   : > { %v8488_v20 = vadd.f32 %v1627_v51, %v1550_v44  ;;  %v8501_v51 = vsel %vm770_vm4, %v981_v40, %v985_v36  ;;  %v8503_v49 = vpop.f32.mrf.mxu2 }
 0x124   : > { %12121 = vst [vmem:[#allocation50_spill] sm:$0xff] %v8503_v49 }
 0x125   : > { %12118 = vst [vmem:[#allocation47_spill] sm:$0xff] %v8488_v20 }
 0x126   : > { %v8494_v61 = vpop.f32.mrf.mxu0 }
 0x127   : > { %12119 = vst [vmem:[#allocation48_spill] sm:$0xff] %v8494_v61  ;;  %v8507_v55 = vpop.f32.mrf.mxu3 }
 0x128   : > { %12122 = vst [vmem:[#allocation51_spill] sm:$0xff] %v8507_v55 }
 0x129   : > { %v1250_v44 = vpop.f32.mrf.mxu1 }
 0x12b   : > { %v1499_v9 = vpop.f32.mrf.mxu2 }
 0x12e   : > { %v1102_v26 = vpop.f32.mrf.mxu0 }
 0x12f   : > { %v1241_v11 = vadd.f32 %v1240_v28, %v1102_v26  ;;  %v1642_v24 = vpop.f32.mrf.mxu3 }
 0x131   : > { %v1552_v20 = vadd.f32 %v1489_v0, %v1241_v11  ;;  %6806 = vmatmul.msk.bf16.gmra.mxu0 %vm989_vm5, %v8501_v51  ;;  %v8513_v5 = vpop.f32.mrf.mxu1 }
 0x132   : > { %12123 = vst [vmem:[#allocation52_spill] sm:$0xff] %v8513_v5 }
 0x133   : > { %v8509_v61 = vadd.f32 %v1632_v21, %v1552_v20  ;;  %v8520_v26 = vpop.f32.mrf.mxu2 }
 0x134   : > { %12125 = vst [vmem:[#allocation54_spill] sm:$0xff] %v8520_v26 }
 0x136   : > { %v8511_v4 = vpop.f32.mrf.mxu0 }
 0x137   : > { %v8522_v21 = vpop.f32.mrf.mxu3 }
 0x138   : > { %12126 = vst [vmem:[#allocation55_spill] sm:$0xff] %v8522_v21 }
 0x139   : > { %v1255_v40 = vpop.f32.mrf.mxu1 }
 0x13b   : > { %v1504_v5 = vpop.f32.mrf.mxu2 }
 0x13e   : > { %v1107_v36 = vpop.f32.mrf.mxu0 }
 0x13f   : > { %v1246_v18 = vadd.f32 %v1245_v27, %v1107_v36 }
 0x141   : > { %v1554_v28 = vadd.f32 %v1494_v63, %v1246_v18  ;;  %6807 = vmatmul.msk.bf16.vlgmr.msrb.gmra.mxu0 %vm989_vm5, %v7982_v16  ;;  %v8526_v11 = vpop.f32.mrf.mxu1  ;;  %v1647_v18 = vpop.f32.mrf.mxu3 }
 0x142   : > { %1585 = vmatpush.bf16.msrb.mxu0 %v8003_v31  ;;  %12128 = vst [vmem:[#allocation57_spill] sm:$0xff] %v8526_v11 }
 0x143   : > { %v8518_v0 = vadd.f32 %v1637_v22, %v1554_v28  ;;  %v8536_v28 = vpop.f32.mrf.mxu2 }
 0x144   : > { %12130 = vst [vmem:[#allocation59_spill] sm:$0xff] %v8536_v28 }
 0x145   : > { %12124 = vst [vmem:[#allocation53_spill] sm:$0xff] %v8518_v0 }
 0x146   : > { %v8524_v20 = vpop.f32.mrf.mxu0 }
 0x147   : > { %12127 = vst [vmem:[#allocation56_spill] sm:$0xff] %v8524_v20 }
 0x149   : > { %v1260_v49 = vpop.f32.mrf.mxu1  ;;  %v8538_v21 = vpop.f32.mrf.mxu3 }
 0x14a   : > { %12131 = vst [vmem:[#allocation60_spill] sm:$0xff] %v8538_v21 }
 0x14e   : > { %v1112_v55 = vpop.f32.mrf.mxu0 }
 0x14f   : > { %v1251_v27 = vadd.f32 %v1250_v44, %v1112_v55  ;;  %v1509_v44 = vpop.f32.mrf.mxu2  ;;  %v6901_v55 = vld [vmem:[%s11937_s4 + $0xc] sm:$0x3] }
 0x151   : > { %v1556_v63 = vadd.f32 %v1499_v9, %v1251_v27  ;;  %6808 = vmatmul.msk.bf16.gmra.mxu0 %vm989_vm5, %v7988_v23  ;;  %v8534_v36 = vpop.f32.mrf.mxu1  ;;  %v2021_v9 = vsel %vm1044_vm0, %v6901_v55, 0  ;;  %v1652_v27 = vpop.f32.mrf.mxu3  ;;  %v1322_v55 = vrot.slane %v7982_v16, 1 }
 0x152   : > { %12129 = vst [vmem:[#allocation58_spill] sm:$0xff] %v8534_v36  ;;  %2030 = vmatpush.bf16.msrb.mxu2 %v2021_v9  ;;  %v1326_v36 = vrot.slane %v8008_v33, 1 }
 0x153   : > { %v8530_v31 = vadd.f32 %v1642_v24, %v1556_v63  ;;  %v6920_v63 = vld [vmem:[%s11937_s4 + $0xe] sm:$0x3] }
 0x156   : > { %v8532_v22 = vpop.f32.mrf.mxu0 }
 0x159   : > { %v1265_v26 = vpop.f32.mrf.mxu1 }
 0x15e   : > { %v1117_v11 = vpop.f32.mrf.mxu0 }
 0x15f   : > { %v1256_v0 = vadd.f32 %v1255_v40, %v1117_v11  ;;  %v1325_v11 = vrot.slane %v7988_v23, 1 }
 0x161   : > { %v1558_v20 = vadd.f32 %v1504_v5, %v1256_v0  ;;  %6809 = vmatmul.msk.bf16.gmra.mxu0 %vm989_vm5, %v8038_v58  ;;  %v2175_v5 = vsel %vm1044_vm0, %v6920_v63, 0  ;;  %v8554_v0 = vpop.f32.mrf.mxu1  ;;  %v8564_v63 = vpop.f32.mrf.mxu2 }
 0x162   : > { %2184 = vmatpush.bf16.msrb.mxu3 %v2175_v5  ;;  %12134 = vst [vmem:[#allocation63_spill] sm:$0xff] %v8554_v0  ;;  %v8566_v5 = vpop.f32.mrf.mxu3  ;;  %v1327_v0 = vsel %vm1321_vm6, %v1325_v11, %v1326_v36  ;;  %v1328_v36 = vrot.slane %v8038_v58, 1  ;;  %v1329_v11 = vrot.slane %v8045_v60, 1  ;;  %v6863_v60 = vld [vmem:[%s11937_s4 + $0x8] sm:$0x3] }
 0x163   : > { %v8546_v24 = vadd.f32 %v1647_v18, %v1558_v20  ;;  %v6882_v20 = vld [vmem:[%s11937_s4 + $0xa] sm:$0x3]  ;;  %v1323_v18 = vrot.slane %v7977_v12, 1  ;;  %12135 = vst [vmem:[#allocation64_spill] sm:$0xff] %v8566_v5 }
 0x164   : > { %v1878_v9 = vsel %vm1044_vm0, %v6882_v20, 0 }
 0x165   : > { %12132 = vst [vmem:[#allocation61_spill] sm:$0xff] %v8546_v24  ;;  %1887 = vmatpush.bf16.msrb.mxu1 %v1878_v9  ;;  %v1324_v33 = vsel %vm1321_vm6, %v1322_v55, %v1323_v18  ;;  %v8581_v18 = vsel %vm1321_vm6, %v1328_v36, %v1329_v11 }
 0x166   : > { %v8552_v40 = vpop.f32.mrf.mxu0 }
 0x167   : > { %12133 = vst [vmem:[#allocation62_spill] sm:$0xff] %v8552_v40 }
 0x168   : > { %6883 = vmatmul.msk.bf16.vlgmr.msrb.gmra.mxu1 %vm989_vm5, %v1327_v0 }
 0x169   : > { %v1270_v28 = vpop.f32.mrf.mxu1  ;;  %v1514_v16 = vpop.f32.mrf.mxu2 }
 0x16a   : > { %v1657_v5 = vpop.f32.mrf.mxu3 }
 0x16e   : > { %v1122_v21 = vpop.f32.mrf.mxu0 }
 0x16f   : > { %v1261_v24 = vadd.f32 %v1260_v49, %v1122_v21 }
 0x171   : > { %v1560_v40 = vadd.f32 %v1509_v44, %v1261_v24  ;;  %6826 = vmatmul.msk.bf16.vlgmr.msra.gmra.mxu0 %vm989_vm5, %v1324_v33  ;;  %v8576_v9 = vpop.f32.mrf.mxu1  ;;  %v8585_v44 = vpop.f32.mrf.mxu2 }
 0x172   : > { %12136 = vst [vmem:[#allocation65_spill] sm:$0xff] %v8576_v9 }
 0x173   : > { %v8572_v12 = vadd.f32 %v1652_v27, %v1560_v40  ;;  %12137 = vst [vmem:[#allocation66_spill] sm:$0xff] %v8585_v44  ;;  %v8588_v27 = vpop.f32.mrf.mxu3  ;;  %v1730_v40 = vsel %vm1044_vm0, %v6863_v60, 0 }
 0x174   : > { %12138 = vst [vmem:[#allocation67_spill] sm:$0xff] %v8588_v27  ;;  %1739 = vmatpush.bf16.msra.mxu0 %v1730_v40  ;;  %v7684_v27 = vld [vmem:[%s7967_s16 + $0x90] sm:$0xff] }
 0x175   : > { %v673_v44 = vshrl.u32 %v7684_v27, 16 }
 0x176   : > { %v8574_v20 = vpop.f32.mrf.mxu0 }
 0x178   : > { %6884 = vmatmul.msk.bf16.gmra.mxu1 %vm989_vm5, %v8581_v18 }
 0x179   : > { %v1275_v49 = vpop.f32.mrf.mxu1  ;;  %v1519_v11 = vpop.f32.mrf.mxu2 }
 0x17e   : > { %v1127_v55 = vpop.f32.mrf.mxu0 }
 0x17f   : > { %v1266_v21 = vadd.f32 %v1265_v26, %v1127_v55 }
 0x181   : > { %v1562_v24 = vadd.f32 %v1514_v16, %v1266_v21  ;;  %6827 = vmatmul.msk.bf16.gmra.mxu0 %vm989_vm5, %v1327_v0  ;;  %v8598_v26 = vpop.f32.mrf.mxu1  ;;  %v1662_v16 = vpop.f32.mrf.mxu3 }
 0x182   : > { %12140 = vst [vmem:[#allocation69_spill] sm:$0xff] %v8598_v26 }
 0x183   : > { %v8594_v33 = vadd.f32 %v1657_v5, %v1562_v24  ;;  %v8606_v24 = vpop.f32.mrf.mxu2 }
 0x185   : > { %12139 = vst [vmem:[#allocation68_spill] sm:$0xff] %v8594_v33  ;;  %v1373_v33 = vrot.slane %v8442_v37, 1 }
 0x186   : > { %v8596_v36 = vpop.f32.mrf.mxu0 }
 0x188   : > { %6885 = vmatmul.msk.bf16.gmra.mxu1 %vm989_vm5, %v8029_v56 }
 0x189   : > { %v1280_v0 = vpop.f32.mrf.mxu1  ;;  %v8608_v60 = vpop.f32.mrf.mxu3 }
 0x18a   : > { %12141 = vst [vmem:[#allocation70_spill] sm:$0xff] %v8608_v60  ;;  %v1374_v0 = vrot.slane %v8492_v41, 1 }
 0x18e   : > { %v1132_v55 = vpop.f32.mrf.mxu0 }
 0x18f   : > { %v1271_v21 = vadd.f32 %v1270_v28, %v1132_v55  ;;  %v8615_v28 = vrot.slane %v673_v44, 7 }
 0x191   : > { %v1564_v9 = vadd.f32 %v1519_v11, %v1271_v21  ;;  %6828 = vmatmul.msk.bf16.gmra.mxu0 %vm989_vm5, %v8581_v18  ;;  %v1282_v26 = vpop.f32.mrf.mxu1  ;;  %v676_v11 = vshll.u32 %v7684_v27, 16  ;;  %v1524_v21 = vpop.f32.mrf.mxu2 }
 0x192   : > { %v1667_v60 = vpop.f32.mrf.mxu3 }
 0x193   : > { %v8604_v5 = vadd.f32 %v1662_v16, %v1564_v9  ;;  %v8618_v9 = vsel %vm1321_vm6, %v1373_v33, %v1374_v0  ;;  %v678_v16 = vor.u32 %v676_v11, %v8615_v28 }
 0x194   : > { %12142 = vst [vmem:[#allocation71_spill] sm:$0xff] %v8618_v9  ;;  %6843 = vmatmul.msk.bf16.gmra.mxu2 %vm989_vm5, %v8618_v9 }
 0x195   : > { %v8627_v41 = vsel %vm7971_vm3, 0, %v678_v16 }
 0x196   : > { %v8610_v40 = vpop.f32.mrf.mxu0  ;;  %6862 = vmatmul.msk.bf16.gmra.mxu3 %vm989_vm5, %v8627_v41 }
 0x198   : > { %6886 = vmatmul.msk.bf16.gmra.mxu1 %vm989_vm5, %v8058_v13 }
 0x19e   : > { %v1137_v55 = vpop.f32.mrf.mxu0 }
 0x19f   : > { %v1276_v26 = vadd.f32 %v1275_v49, %v1137_v55 }
 0x1a1   : > { %v1566_v44 = vadd.f32 %v1524_v21, %v1276_v26  ;;  %6845 = vmatmul.msk.bf16.vlgmr.msrb.gmra.mxu0 %vm989_vm5, %v7988_v23  ;;  %v6939_v23 = vld [vmem:[%s11937_s4 + $0x10] sm:$0x3] }
 0x1a3   : > { %v8633_v27 = vadd.f32 %v1667_v60, %v1566_v44  ;;  %v2323_v60 = vsel %vm1044_vm0, %v6939_v23, 0 }
 0x1a4   : > { %6902 = vmatmul.msk.bf16.vlgmr.msrb.gmra.mxu2 %vm989_vm5, %v8038_v58  ;;  %2332 = vmatpush.bf16.msrb.mxu0 %v2323_v60 }
 0x1a6   : > { %v8635_v33 = vpop.f32.mrf.mxu0  ;;  %6921 = vmatmul.msk.bf16.vlgmr.msrb.gmra.mxu3 %vm989_vm5, %v8067_v14 }
 0x1a8   : > { %6887 = vmatmul.msk.bf16.gmra.mxu1 %vm989_vm5, %v8082_v34 }
 0x1ae   : > { %v1142_v49 = vpop.f32.mrf.mxu0 }
 0x1b1   : > { %6846 = vmatmul.msk.bf16.gmra.mxu0 %vm989_vm5, %v8038_v58 }
 0x1b4   : > { %6903 = vmatmul.msk.bf16.gmra.mxu2 %vm989_vm5, %v8017_v50 }
 0x1b6   : > { %v1144_v0 = vpop.f32.mrf.mxu0  ;;  %6922 = vmatmul.msk.bf16.gmra.mxu3 %vm989_vm5, %v8091_v35 }
 0x1b7   : > { %v12144_v0 = vld [vmem:[#allocation14_spill] sm:$0xff] }
 0x1b8   : > { %6888 = vmatmul.msk.bf16.gmra.mxu1 %vm989_vm5, %v8106_v52 }
 0x1be   : > { %v1195_v11 = vpop.f32.mrf.mxu0 }
 0x1c1   : > { %6847 = vmatmul.msk.bf16.gmra.mxu0 %vm989_vm5, %v8017_v50 }
 0x1c4   : > { %6904 = vmatmul.msk.bf16.gmra.mxu2 %vm989_vm5, %v8022_v54 }
 0x1c6   : > { %v1197_v58 = vpop.f32.mrf.mxu0  ;;  %6923 = vmatmul.msk.bf16.gmra.mxu3 %vm989_vm5, %v8115_v53 }
 0x1c7   : > { %v12145_v58 = vld [vmem:[#allocation10_spill] sm:$0xff] }
 0x1c8   : > { %6889 = vmatmul.msk.bf16.gmra.mxu1 %vm989_vm5, %v8130_v15 }
 0x1ce   : > { %v1200_v55 = vpop.f32.mrf.mxu0 }
 0x1cf   : > { %v1201_v26 = vadd.f32 %v1200_v55, %v8228_v45 }
 0x1d1   : > { %6864 = vmatmul.msk.bf16.vlgmr.msra.gmra.mxu0 %vm989_vm5, %v8034_v57 }
 0x1d4   : > { %6905 = vmatmul.msk.bf16.gmra.mxu2 %vm989_vm5, %v8055_v8 }
 0x1d6   : > { %v1202_v21 = vpop.f32.mrf.mxu0  ;;  %6924 = vmatmul.msk.bf16.gmra.mxu3 %vm989_vm5, %v8139_v17 }
 0x1d8   : > { %6890 = vmatmul.msk.bf16.gmra.mxu1 %vm989_vm5, %v8150_v32 }
 0x1de   : > { %v1205_v16 = vpop.f32.mrf.mxu0 }
 0x1df   : > { %v1206_v45 = vadd.f32 %v1205_v16, %v12144_v0  ;;  %v8703_v16 = vpop.f32.mrf.mxu3 }
 0x1e0   : > { %12150 = vst [vmem:[#allocation14_spill] sm:$0xff] %v8703_v16 }
 0x1e1   : > { %6865 = vmatmul.msk.bf16.gmra.mxu0 %vm989_vm5, %v8067_v14 }
 0x1e4   : > { %6906 = vmatmul.msk.bf16.gmra.mxu2 %vm989_vm5, %v8079_v29  ;;  %v12143_v29 = vld [vmem:[#allocation12_spill] sm:$0xff] }
 0x1e5   : > { %v1889_v54 = vpop.f32.mrf.mxu1 }
 0x1e6   : > { %v1207_v50 = vpop.f32.mrf.mxu0  ;;  %6925 = vmatmul.msk.bf16.gmra.mxu3 %vm989_vm5, %v8157_v39  ;;  %v12146_v54 = vld [vmem:[#allocation2_spill] sm:$0xff] }
 0x1e8   : > { %6891 = vmatmul.msk.bf16.gmra.mxu1 %vm989_vm5, %v8174_v62 }
 0x1ed   : > { %v1891_v8 = vpop.f32.mrf.mxu1 }
 0x1ee   : > { %v1444_v57 = vpop.f32.mrf.mxu0 }
 0x1f1   : > { %6866 = vmatmul.msk.bf16.gmra.mxu0 %vm989_vm5, %v8091_v35  ;;  %v1203_v35 = vadd.f32 %v1202_v21, %v12143_v29  ;;  %v12152_v29 = vld [vmem:[#allocation4_spill] sm:$0xff] }
 0x1f4   : > { %6907 = vmatmul.msk.bf16.gmra.mxu2 %vm989_vm5, %v8103_v48  ;;  %v12147_v48 = vld [vmem:[#allocation8_spill] sm:$0xff] }
 0x1f6   : > { %v1446_v14 = vpop.f32.mrf.mxu0  ;;  %6926 = vmatmul.msk.bf16.gmra.mxu3 %vm989_vm5, %v8181_v1 }
 0x1f7   : > { %v8701_v14 = vpop.f32.mrf.mxu2 }
 0x1f8   : > { %6892 = vmatmul.msk.bf16.gmra.mxu1 %vm989_vm5, %v8198_v25  ;;  %12149 = vst [vmem:[#allocation12_spill] sm:$0xff] %v8701_v14 }
 0x1fe   : > { %v1449_v44 = vpop.f32.mrf.mxu0 }
 0x1ff   : > { %v1536_v49 = vadd.f32 %v1449_v44, %v1201_v26  ;;  %v12151_v44 = vld [vmem:[#allocation13_spill] sm:$0xff] }
 0x201   : > { %6867 = vmatmul.msk.bf16.gmra.mxu0 %vm989_vm5, %v8115_v53  ;;  %v12148_v53 = vld [vmem:[#allocation16_spill] sm:$0xff] }
 0x202   : > { %v1208_v21 = vadd.f32 %v1207_v50, %v12148_v53 }
 0x204   : > { %6908 = vmatmul.msk.bf16.gmra.mxu2 %vm989_vm5, %v12146_v54  ;;  %v12154_v54 = vld [vmem:[#allocation17_spill] sm:$0xff] }
 0x206   : > { %v1451_v23 = vpop.f32.mrf.mxu0  ;;  %6927 = vmatmul.msk.bf16.gmra.mxu3 %vm989_vm5, %v12147_v48 }
 0x207   : > { %v1537_v60 = vadd.f32 %v1451_v23, %v1203_v35 }
 0x208   : > { %6893 = vmatmul.msk.bf16.gmra.mxu1 %vm989_vm5, %v12145_v58 }
 0x20e   : > { %v1454_v11 = vpop.f32.mrf.mxu0 }
 0x20f   : > { %v1538_v55 = vadd.f32 %v1454_v11, %v1206_v45 }
 0x211   : > { %6868 = vmatmul.msk.bf16.gmra.mxu0 %vm989_vm5, %v8139_v17  ;;  %v12153_v17 = vld [vmem:[#allocation11_spill] sm:$0xff] }
 0x214   : > { %6909 = vmatmul.msk.bf16.gmra.mxu2 %vm989_vm5, %v12152_v29 }
 0x216   : > { %v1456_v57 = vpop.f32.mrf.mxu0  ;;  %6928 = vmatmul.msk.bf16.gmra.mxu3 %vm989_vm5, %v12153_v17 }
 0x217   : > { %v1539_v8 = vadd.f32 %v1456_v57, %v1208_v21  ;;  %v1529_v50 = vpop.f32.mrf.mxu2  ;;  %v12155_v21 = vld [vmem:[#allocation6_spill] sm:$0xff] }
 0x218   : > { %6894 = vmatmul.msk.bf16.gmra.mxu1 %vm989_vm5, %v12151_v44  ;;  %v12157_v44 = vld [vmem:[#allocation9_spill] sm:$0xff] }
 0x219   : > { %v1672_v35 = vpop.f32.mrf.mxu3 }
 0x21e   : > { %v1587_v26 = vpop.f32.mrf.mxu0 }
 0x21f   : > { %v1531_v0 = vpop.f32.mrf.mxu2 }
 0x221   : > { %6869 = vmatmul.msk.bf16.gmra.mxu0 %vm989_vm5, %v8157_v39  ;;  %v1674_v45 = vpop.f32.mrf.mxu3  ;;  %v12156_v39 = vld [vmem:[#allocation15_spill] sm:$0xff] }
 0x224   : > { %6910 = vmatmul.msk.bf16.gmra.mxu2 %vm989_vm5, %v12155_v21 }
 0x226   : > { %v1589_v23 = vpop.f32.mrf.mxu0  ;;  %6929 = vmatmul.msk.bf16.gmra.mxu3 %vm989_vm5, %v12156_v39 }
 0x227   : > { %v2032_v57 = vpop.f32.mrf.mxu2 }
 0x228   : > { %6895 = vmatmul.msk.bf16.gmra.mxu1 %vm989_vm5, %v12154_v54 }
 0x229   : > { %v2186_v26 = vpop.f32.mrf.mxu3 }
 0x22e   : > { %v1592_v11 = vpop.f32.mrf.mxu0 }
 0x22f   : > { %v1679_v53 = vadd.f32 %v1592_v11, %v1536_v49  ;;  %v2034_v35 = vpop.f32.mrf.mxu2  ;;  %v1894_v49 = vpop.f32.mrf.mxu1  ;;  %v12158_v11 = vld [vmem:[#allocation18_spill] sm:$0xff] }
 0x231   : > { %6870 = vmatmul.msk.bf16.gmra.mxu0 %vm989_vm5, %v8181_v1  ;;  %v2188_v23 = vpop.f32.mrf.mxu3 }
 0x234   : > { %6911 = vmatmul.msk.bf16.gmra.mxu2 %vm989_vm5, %v12157_v44 }
 0x236   : > { %v1594_v29 = vpop.f32.mrf.mxu0  ;;  %6930 = vmatmul.msk.bf16.gmra.mxu3 %vm989_vm5, %v12158_v11 }
 0x237   : > { %v1680_v50 = vadd.f32 %v1594_v29, %v1537_v60  ;;  %v2037_v1 = vpop.f32.mrf.mxu2  ;;  %v1896_v60 = vpop.f32.mrf.mxu1 }
 0x238   : > { %6896 = vmatmul.msk.bf16.gmra.mxu1 %vm989_vm5, %v8347_v7 }
 0x239   : > { %v2191_v21 = vpop.f32.mrf.mxu3 }
 0x23e   : > { %v1597_v0 = vpop.f32.mrf.mxu0 }
 0x23f   : > { %v1681_v45 = vadd.f32 %v1597_v0, %v1538_v55  ;;  %v2039_v55 = vpop.f32.mrf.mxu2  ;;  %v1899_v44 = vpop.f32.mrf.mxu1 }
 0x241   : > { %6871 = vmatmul.msk.bf16.gmra.mxu0 %vm989_vm5, %v12147_v48  ;;  %v2193_v29 = vpop.f32.mrf.mxu3  ;;  %v7716_v48 = vld [vmem:[%s11939_s6 + $0xf4] sm:$0xf] }
 0x244   : > { %6912 = vmatmul.msk.bf16.gmra.mxu2 %vm989_vm5, %v8235_v6  ;;  %v7096_v6 = vld [vmem:[%s11939_s6 + $0x70] sm:$0xf] }
 0x246   : > { %v1599_v57 = vpop.f32.mrf.mxu0  ;;  %6931 = vmatmul.msk.bf16.gmra.mxu3 %vm989_vm5, %v8352_v38 }
 0x247   : > { %v8727_v26 = vadd.f32 %v1599_v57, %v1539_v8  ;;  %v7034_v8 = vld [vmem:[%s11939_s6 + $0xf8] sm:$0xf0]  ;;  %v2042_v0 = vpop.f32.mrf.mxu2  ;;  %v1901_v54 = vpop.f32.mrf.mxu1 }
 0x248   : > { %v7037_v23 = vor.u32 %v7716_v48, %v7034_v8  ;;  %6897 = vmatmul.msk.bf16.gmra.mxu1 %vm989_vm5, %v8394_v47  ;;  %v7032_v48 = vld [vmem:[%s11939_s6 + $0xf0] sm:$0xf]  ;;  %v7717_v8 = vld [vmem:[%s11939_s6 + $0xf4] sm:$0xf0] }
 0x249   : > { %v2196_v57 = vpop.f32.mrf.mxu3 }
 0x24a   : > { %3416 = vmatpush.bf16.msra.mxu2 %v7037_v23  ;;  %v7033_v23 = vor.u32 %v7717_v8, %v7032_v48 }
 0x24c   : > { %3327 = vmatpush.bf16.msra.mxu1 %v7033_v23 }
 0x24e   : > { %v1741_v35 = vpop.f32.mrf.mxu0 }
 0x24f   : > { %v2044_v58 = vpop.f32.mrf.mxu2 }
 0x251   : > { %6872 = vmatmul.msk.bf16.gmra.mxu0 %vm989_vm5, %v12153_v17  ;;  %v7701_v17 = vld [vmem:[%s11939_s6 + $0x74] sm:$0xf0]  ;;  %v2198_v25 = vpop.f32.mrf.mxu3 }
 0x252   : > { %v7097_v7 = vor.u32 %v7701_v17, %v7096_v6  ;;  %v1904_v6 = vpop.f32.mrf.mxu1 }
 0x254   : > { %3585 = vmatpush.bf16.msra.mxu3 %v7097_v7  ;;  %6913 = vmatmul.msk.bf16.gmra.mxu2 %vm989_vm5, %v8271_v3 }
 0x256   : > { %v1743_v35 = vpop.f32.mrf.mxu0  ;;  %6932 = vmatmul.msk.bf16.gmra.mxu3 %vm989_vm5, %v8399_v2 }
 0x257   : > { %v2047_v7 = vpop.f32.mrf.mxu2 }
 0x259   : > { %v2201_v16 = vpop.f32.mrf.mxu3 }
 0x25a   : > { %v1906_v32 = vpop.f32.mrf.mxu1  ;;  %6898 = vmatmul.msk.bf16.gmra.mxu1 %vm989_vm5, %v8433_v19 }
 0x25e   : > { %v1746_v62 = vpop.f32.mrf.mxu0 }
 0x25f   : > { %v1833_v35 = vadd.f32 %v1746_v62, %v1679_v53  ;;  %v2049_v3 = vpop.f32.mrf.mxu2 }
 0x261   : > { %v1981_v17 = vadd.f32 %v1894_v49, %v1833_v35  ;;  %6873 = vmatmul.msk.bf16.gmra.mxu0 %vm989_vm5, %v12156_v39  ;;  %v2203_v49 = vpop.f32.mrf.mxu3 }
 0x263   : > { %v2124_v47 = vadd.f32 %v2037_v1, %v1981_v17  ;;  %v1909_v1 = vpop.f32.mrf.mxu1  ;;  %v7699_v17 = vld [vmem:[%s11939_s6 + $0x64] sm:$0xf0] }
 0x264   : > { %6914 = vmatmul.msk.bf16.gmra.mxu2 %vm989_vm5, %v8312_v46  ;;  %v7026_v46 = vld [vmem:[%s11939_s6 + $0xe8] sm:$0xf0] }
 0x265   : > { %v8763_v48 = vadd.f32 %v2191_v21, %v2124_v47 }
 0x266   : > { %v1748_v8 = vpop.f32.mrf.mxu0  ;;  %6933 = vmatmul.msk.bf16.gmra.mxu3 %vm989_vm5, %v8438_v42 }
 0x267   : > { %v1834_v23 = vadd.f32 %v1748_v8, %v1680_v50  ;;  %v2052_v50 = vpop.f32.mrf.mxu2 }
 0x269   : > { %v1982_v62 = vadd.f32 %v1896_v60, %v1834_v23  ;;  %v2206_v60 = vpop.f32.mrf.mxu3 }
 0x26b   : > { %v2125_v53 = vadd.f32 %v2039_v55, %v1982_v62 }
 0x26d   : > { %v8767_v35 = vadd.f32 %v2193_v29, %v2125_v53 }
 0x26e   : > { %v1751_v39 = vpop.f32.mrf.mxu0 }
 0x26f   : > { %v1835_v14 = vadd.f32 %v1751_v39, %v1681_v45  ;;  %v7714_v45 = vld [vmem:[%s11939_s6 + $0xe4] sm:$0xf]  ;;  %v2054_v23 = vpop.f32.mrf.mxu2  ;;  %v7024_v39 = vld [vmem:[%s11939_s6 + $0xe0] sm:$0xf] }
 0x270   : > { %v7029_v29 = vor.u32 %v7714_v45, %v7026_v46  ;;  %v12159_v45 = vld [vmem:[#allocation19_spill] sm:$0xff] }
 0x271   : > { %v1983_v47 = vadd.f32 %v1899_v44, %v1835_v14  ;;  %6874 = vmatmul.msk.bf16.gmra.mxu0 %vm989_vm5, %v12158_v11  ;;  %v1911_v44 = vpop.f32.mrf.mxu1  ;;  %6899 = vmatmul.msk.bf16.gmra.mxu1 %vm989_vm5, %v8618_v9  ;;  %v2208_v53 = vpop.f32.mrf.mxu3 }
 0x272   : > { %3417 = vmatpush.bf16.msra.mxu2 %v7029_v29 }
 0x273   : > { %v2126_v21 = vadd.f32 %v2042_v0, %v1983_v47 }
 0x274   : > { %6915 = vmatmul.msk.bf16.gmra.mxu2 %vm989_vm5, %v8358_v30 }
 0x275   : > { %v8775_v55 = vadd.f32 %v2196_v57, %v2126_v21  ;;  %v7088_v57 = vld [vmem:[%s11939_s6 + $0x60] sm:$0xf] }
 0x276   : > { %v1753_v14 = vpop.f32.mrf.mxu0  ;;  %v7089_v8 = vor.u32 %v7699_v17, %v7088_v57 }
 0x277   : > { %v1836_v11 = vadd.f32 %v1753_v14, %v8727_v26  ;;  %v2057_v29 = vpop.f32.mrf.mxu2 }
 0x278   : > { %3586 = vmatpush.bf16.msra.mxu3 %v7089_v8  ;;  %v12161_v8 = vld [vmem:[#allocation22_spill] sm:$0xff] }
 0x279   : > { %v1984_v0 = vadd.f32 %v1901_v54, %v1836_v11  ;;  %v7715_v54 = vld [vmem:[%s11939_s6 + $0xe4] sm:$0xf0] }
 0x27a   : > { %v7025_v21 = vor.u32 %v7715_v54, %v7024_v39 }
 0x27b   : > { %v2127_v62 = vadd.f32 %v2044_v58, %v1984_v0  ;;  %v1914_v58 = vpop.f32.mrf.mxu1  ;;  %v2211_v0 = vpop.f32.mrf.mxu3 }
 0x27c   : > { %3328 = vmatpush.bf16.msra.mxu1 %v7025_v21 }
 0x27d   : > { %v8792_v26 = vadd.f32 %v2198_v25, %v2127_v62  ;;  %v12160_v25 = vld [vmem:[#allocation41_spill] sm:$0xff] }
 0x27e   : > { %v1756_v47 = vpop.f32.mrf.mxu0  ;;  %6934 = vmatmul.msk.bf16.gmra.mxu3 %vm989_vm5, %v12160_v25 }
 0x27f   : > { %v1837_v46 = vadd.f32 %v1756_v47, %v12159_v45  ;;  %v8812_v54 = vpop.f32.mrf.mxu2  ;;  %v12162_v45 = vld [vmem:[#allocation24_spill] sm:$0xff] }
 0x281   : > { %v1985_v14 = vadd.f32 %v1904_v6, %v1837_v46  ;;  %6875 = vmatmul.msk.bf16.gmra.mxu0 %vm989_vm5, %v8352_v38 }
 0x283   : > { %v2128_v11 = vadd.f32 %v2047_v7, %v1985_v14  ;;  %v8810_v39 = vpop.f32.mrf.mxu1  ;;  %v8814_v47 = vpop.f32.mrf.mxu3 }
 0x284   : > { %6916 = vmatmul.msk.bf16.gmra.mxu2 %vm989_vm5, %v8403_v43  ;;  %v7712_v43 = vld [vmem:[%s11939_s6 + $0xd4] sm:$0xf] }
 0x285   : > { %v8807_v57 = vadd.f32 %v2201_v16, %v2128_v11 }
 0x286   : > { %v1758_v17 = vpop.f32.mrf.mxu0 }
 0x287   : > { %v1838_v62 = vadd.f32 %v1758_v17, %v12161_v8  ;;  %v12163_v17 = vld [vmem:[#allocation28_spill] sm:$0xff] }
 0x289   : > { %v1986_v30 = vadd.f32 %v1906_v32, %v1838_v62  ;;  %v2062_v32 = vpop.f32.mrf.mxu2 }
 0x28b   : > { %v2129_v6 = vadd.f32 %v2049_v3, %v1986_v30  ;;  %v1919_v16 = vpop.f32.mrf.mxu1  ;;  %v2216_v14 = vpop.f32.mrf.mxu3 }
 0x28d   : > { %v8816_v38 = vadd.f32 %v2203_v49, %v2129_v6 }
 0x28e   : > { %v1761_v21 = vpop.f32.mrf.mxu0  ;;  %6935 = vmatmul.msk.bf16.gmra.mxu3 %vm989_vm5, %v8483_v59 }
 0x28f   : > { %v1839_v46 = vadd.f32 %v1761_v21, %v12162_v45  ;;  %v7697_v45 = vld [vmem:[%s11939_s6 + $0x54] sm:$0xf0] }
 0x291   : > { %v1987_v7 = vadd.f32 %v1909_v1, %v1839_v46  ;;  %6876 = vmatmul.msk.bf16.gmra.mxu0 %vm989_vm5, %v8399_v2  ;;  %v7018_v2 = vld [vmem:[%s11939_s6 + $0xd8] sm:$0xf0]  ;;  %v8836_v6 = vpop.f32.mrf.mxu2 }
 0x292   : > { %v7021_v1 = vor.u32 %v7712_v43, %v7018_v2  ;;  %12164 = vst [vmem:[#allocation2_spill] sm:$0xff] %v8836_v6  ;;  %v7016_v43 = vld [vmem:[%s11939_s6 + $0xd0] sm:$0xf] }
 0x293   : > { %v2130_v3 = vadd.f32 %v2052_v50, %v1987_v7  ;;  %v8828_v62 = vpop.f32.mrf.mxu1 }
 0x294   : > { %3418 = vmatpush.bf16.msra.mxu2 %v7021_v1 }
 0x295   : > { %v8825_v11 = vadd.f32 %v2206_v60, %v2130_v3  ;;  %v8838_v60 = vpop.f32.mrf.mxu3  ;;  %v12166_v3 = vld [vmem:[#allocation30_spill] sm:$0xff]  ;;  %6917 = vmatmul.msk.bf16.gmra.mxu2 %vm989_vm5, %v8442_v37  ;;  %v7713_v37 = vld [vmem:[%s11939_s6 + $0xd4] sm:$0xf0] }
 0x296   : > { %v1763_v49 = vpop.f32.mrf.mxu0  ;;  %12165 = vst [vmem:[#allocation8_spill] sm:$0xff] %v8838_v60  ;;  %v7017_v2 = vor.u32 %v7713_v37, %v7016_v43  ;;  %v12173_v43 = vld [vmem:[#allocation37_spill] sm:$0xff] }
 0x297   : > { %v1840_v8 = vadd.f32 %v1763_v49, %v12163_v17  ;;  %v12167_v17 = vld [vmem:[#allocation32_spill] sm:$0xff]  ;;  %v12174_v37 = vld [vmem:[#allocation25_spill] sm:$0xff] }
 0x298   : > { %3329 = vmatpush.bf16.msra.mxu1 %v7017_v2  ;;  %v1228_v2 = vadd.f32 %v12174_v37, %v12173_v43  ;;  %v12177_v43 = vld [vmem:[#allocation27_spill] sm:$0xff] }
 0x299   : > { %v1988_v30 = vadd.f32 %v1911_v44, %v1840_v8  ;;  %v7080_v44 = vld [vmem:[%s11939_s6 + $0x50] sm:$0xf]  ;;  %v2067_v1 = vpop.f32.mrf.mxu2 }
 0x29a   : > { %v7081_v7 = vor.u32 %v7697_v45, %v7080_v44 }
 0x29b   : > { %v2131_v50 = vadd.f32 %v2054_v23, %v1988_v30  ;;  %v1924_v23 = vpop.f32.mrf.mxu1 }
 0x29c   : > { %3587 = vmatpush.bf16.msra.mxu3 %v7081_v7 }
 0x29d   : > { %v8840_v21 = vadd.f32 %v2208_v53, %v2131_v50  ;;  %v12168_v53 = vld [vmem:[#allocation20_spill] sm:$0xff]  ;;  %v2221_v44 = vpop.f32.mrf.mxu3 }
 0x29e   : > { %v1766_v46 = vpop.f32.mrf.mxu0  ;;  %v1545_v8 = vadd.f32 %v12168_v53, %v12167_v17  ;;  %6936 = vmatmul.msk.bf16.gmra.mxu3 %vm989_vm5, %v8501_v51  ;;  %v1715_v17 = vshll.u32 %v8627_v41, 16  ;;  %v8876_v53 = vsel %vm7971_vm3, %v8615_v28, 0 }
 0x29f   : > { %v1841_v49 = vadd.f32 %v1766_v46, %v12166_v3 }
 0x2a1   : > { %v1989_v30 = vadd.f32 %v1914_v58, %v1841_v49  ;;  %6877 = vmatmul.msk.bf16.gmra.mxu0 %vm989_vm5, %v8438_v42  ;;  %v12169_v58 = vld [vmem:[#allocation21_spill] sm:$0xff]  ;;  %v8870_v49 = vpop.f32.mrf.mxu2 }
 0x2a2   : > { %v1688_v45 = vadd.f32 %v12169_v58, %v1545_v8  ;;  %12171 = vst [vmem:[#allocation4_spill] sm:$0xff] %v8870_v49  ;;  %v1713_v8 = vshrl.u32 %v8627_v41, 16 }
 0x2a3   : > { %v2132_v50 = vadd.f32 %v2057_v29, %v1989_v30  ;;  %v8868_v3 = vpop.f32.mrf.mxu1  ;;  %v1720_v30 = vshll.u32 %v8876_v53, 16 }
 0x2a4   : > { %12170 = vst [vmem:[#allocation16_spill] sm:$0xff] %v8868_v3 }
 0x2a5   : > { %v8864_v46 = vadd.f32 %v2211_v0, %v2132_v50  ;;  %v8878_v29 = vpop.f32.mrf.mxu3  ;;  %v1717_v0 = vrot.slane %v1715_v17, 1  ;;  %6918 = vmatmul.msk.bf16.gmra.mxu2 %vm989_vm5, %v8627_v41 }
 0x2a6   : > { %v1768_v42 = vpop.f32.mrf.mxu0  ;;  %12172 = vst [vmem:[#allocation11_spill] sm:$0xff] %v8878_v29  ;;  %v12176_v29 = vld [vmem:[#allocation26_spill] sm:$0xff] }
 0x2a7   : > { %v8866_v7 = vadd.f32 %v1768_v42, %v1688_v45  ;;  %v1718_v58 = vor.u32 %v1717_v0, %v1713_v8  ;;  %v1722_v45 = vrot.slane %v1720_v30, 1  ;;  %v12175_v42 = vld [vmem:[#allocation36_spill] sm:$0xff]  ;;  %v1547_v3 = vadd.f32 %v12176_v29, %v1228_v2 }
 0x2a9   : > { %v8888_v49 = vsel %vm770_vm4, %v1718_v58, %v1722_v45  ;;  %v2072_v8 = vpop.f32.mrf.mxu2  ;;  %v1690_v37 = vadd.f32 %v12177_v43, %v1547_v3  ;;  %v12184_v43 = vld [vmem:[#allocation33_spill] sm:$0xff] }
 0x2ab   : > { %v1929_v28 = vpop.f32.mrf.mxu1 }
 0x2ad   : > { %v2226_v30 = vpop.f32.mrf.mxu3 }
 0x2ae   : > { %v1771_v50 = vpop.f32.mrf.mxu0  ;;  %6937 = vmatmul.msk.bf16.gmra.mxu3 %vm989_vm5, %v8888_v49 }
 0x2af   : > { %v1843_v9 = vadd.f32 %v1771_v50, %v12175_v42 }
 0x2b1   : > { %v1991_v17 = vadd.f32 %v1919_v16, %v1843_v9  ;;  %6878 = vmatmul.msk.bf16.gmra.mxu0 %vm989_vm5, %v12160_v25  ;;  %v8902_v29 = vpop.f32.mrf.mxu2  ;;  %v12181_v25 = vld [vmem:[#allocation43_spill] sm:$0xff] }
 0x2b2   : > { %12179 = vst [vmem:[#allocation15_spill] sm:$0xff] %v8902_v29  ;;  %v12182_v16 = vld [vmem:[#allocation31_spill] sm:$0xff] }
 0x2b3   : > { %v2134_v0 = vadd.f32 %v2062_v32, %v1991_v17  ;;  %v8900_v58 = vpop.f32.mrf.mxu1  ;;  %v1233_v2 = vadd.f32 %v12182_v16, %v12181_v25  ;;  %v7710_v32 = vld [vmem:[%s11939_s6 + $0xc4] sm:$0xf]  ;;  %v7072_v25 = vld [vmem:[%s11939_s6 + $0x40] sm:$0xf]  ;;  %v7695_v16 = vld [vmem:[%s11939_s6 + $0x44] sm:$0xf0] }
 0x2b4   : > { %12178 = vst [vmem:[#allocation6_spill] sm:$0xff] %v8900_v58  ;;  %v12183_v17 = vld [vmem:[#allocation42_spill] sm:$0xff]  ;;  %v7073_v29 = vor.u32 %v7695_v16, %v7072_v25  ;;  %v12191_v16 = vld [vmem:[#allocation47_spill] sm:$0xff] }
 0x2b5   : > { %v8896_v50 = vadd.f32 %v2216_v14, %v2134_v0  ;;  %v8904_v9 = vpop.f32.mrf.mxu3  ;;  %v7010_v14 = vld [vmem:[%s11939_s6 + $0xc8] sm:$0xf0] }
 0x2b6   : > { %v1773_v42 = vpop.f32.mrf.mxu0  ;;  %12180 = vst [vmem:[#allocation9_spill] sm:$0xff] %v8904_v9  ;;  %v7013_v45 = vor.u32 %v7710_v32, %v7010_v14  ;;  %3588 = vmatpush.bf16.msra.mxu3 %v7073_v29  ;;  %v12188_v29 = vld [vmem:[#allocation48_spill] sm:$0xff] }
 0x2b7   : > { %v8898_v60 = vadd.f32 %v1773_v42, %v1690_v37  ;;  %v1549_v37 = vadd.f32 %v12184_v43, %v1233_v2 }
 0x2b8   : > { %3419 = vmatpush.bf16.msra.mxu2 %v7013_v45 }
 0x2b9   : > { %v2077_v14 = vpop.f32.mrf.mxu2 }
 0x2bb   : > { %v1934_v9 = vpop.f32.mrf.mxu1 }
 0x2be   : > { %v1776_v3 = vpop.f32.mrf.mxu0 }
 0x2bf   : > { %v1845_v0 = vadd.f32 %v1776_v3, %v12183_v17  ;;  %v12185_v3 = vld [vmem:[#allocation34_spill] sm:$0xff] }
 0x2c0   : > { %v1692_v45 = vadd.f32 %v12185_v3, %v1549_v37  ;;  %v12189_v37 = vld [vmem:[#allocation38_spill] sm:$0xff] }
 0x2c1   : > { %v1993_v42 = vadd.f32 %v1924_v23, %v1845_v0  ;;  %6879 = vmatmul.msk.bf16.gmra.mxu0 %vm989_vm5, %v8483_v59  ;;  %v7008_v59 = vld [vmem:[%s11939_s6 + $0xc0] sm:$0xf]  ;;  %v7711_v23 = vld [vmem:[%s11939_s6 + $0xc4] sm:$0xf0]  ;;  %v2231_v0 = vpop.f32.mrf.mxu3  ;;  %v8939_v25 = vpop.f32.mrf.mxu2 }
 0x2c2   : > { %v7009_v43 = vor.u32 %v7711_v23, %v7008_v59  ;;  %12190 = vst [vmem:[#allocation41_spill] sm:$0xff] %v8939_v25  ;;  %v12194_v59 = vld [vmem:[#allocation40_spill] sm:$0xff] }
 0x2c3   : > { %v2136_v32 = vadd.f32 %v2067_v1, %v1993_v42  ;;  %v8935_v1 = vpop.f32.mrf.mxu1 }
 0x2c4   : > { %3330 = vmatpush.bf16.msra.mxu1 %v7009_v43  ;;  %12187 = vst [vmem:[#allocation19_spill] sm:$0xff] %v8935_v1 }
 0x2c5   : > { %v8925_v2 = vadd.f32 %v2221_v44, %v2136_v32  ;;  %v1238_v44 = vadd.f32 %v12189_v37, %v12188_v29 }
 0x2c6   : > { %v1778_v17 = vpop.f32.mrf.mxu0 }
 0x2c7   : > { %12186 = vst [vmem:[#allocation18_spill] sm:$0xff] %v8925_v2  ;;  %v8933_v58 = vadd.f32 %v1778_v17, %v1692_v45  ;;  %v12193_v2 = vld [vmem:[#allocation39_spill] sm:$0xff] }
 0x2c8   : > { %v1551_v19 = vadd.f32 %v12193_v2, %v1238_v44 }
 0x2c9   : > { %v8942_v3 = vpop.f32.mrf.mxu3  ;;  %v2082_v25 = vpop.f32.mrf.mxu2 }
 0x2ca   : > { %12192 = vst [vmem:[#allocation22_spill] sm:$0xff] %v8942_v3  ;;  %v1694_v23 = vadd.f32 %v12194_v59, %v1551_v19  ;;  %v7708_v19 = vld [vmem:[%s11939_s6 + $0xb4] sm:$0xf]  ;;  %v7693_v59 = vld [vmem:[%s11939_s6 + $0x34] sm:$0xf0] }
 0x2cb   : > { %v1939_v29 = vpop.f32.mrf.mxu1 }
 0x2ce   : > { %v1781_v42 = vpop.f32.mrf.mxu0 }
 0x2cf   : > { %v1847_v32 = vadd.f32 %v1781_v42, %v12191_v16  ;;  %v12195_v42 = vld [vmem:[#allocation44_spill] sm:$0xff] }
 0x2d0   : > { %v1243_v16 = vadd.f32 %v12195_v42, %v8511_v4 }
 0x2d1   : > { %v1995_v6 = vadd.f32 %v1929_v28, %v1847_v32  ;;  %6880 = vmatmul.msk.bf16.gmra.mxu0 %vm989_vm5, %v8501_v51  ;;  %v2236_v1 = vpop.f32.mrf.mxu3  ;;  %v12196_v51 = vld [vmem:[#allocation45_spill] sm:$0xff]  ;;  %v8966_v4 = vpop.f32.mrf.mxu2 }
 0x2d2   : > { %12197 = vst [vmem:[#allocation24_spill] sm:$0xff] %v8966_v4 }
 0x2d3   : > { %v2138_v45 = vadd.f32 %v2072_v8, %v1995_v6  ;;  %v8955_v2 = vpop.f32.mrf.mxu1  ;;  %v1553_v6 = vadd.f32 %v12196_v51, %v1243_v16 }
 0x2d5   : > { %v8948_v17 = vadd.f32 %v2226_v30, %v2138_v45  ;;  %v7002_v30 = vld [vmem:[%s11939_s6 + $0xb8] sm:$0xf0] }
 0x2d6   : > { %v1783_v43 = vpop.f32.mrf.mxu0  ;;  %v7005_v44 = vor.u32 %v7708_v19, %v7002_v30 }
 0x2d7   : > { %v8950_v37 = vadd.f32 %v1783_v43, %v1694_v23 }
 0x2d8   : > { %3420 = vmatpush.bf16.msra.mxu2 %v7005_v44 }
 0x2d9   : > { %v8968_v32 = vpop.f32.mrf.mxu3  ;;  %v2087_v51 = vpop.f32.mrf.mxu2 }
 0x2da   : > { %12198 = vst [vmem:[#allocation28_spill] sm:$0xff] %v8968_v32  ;;  %v12204_v32 = vld [vmem:[#allocation51_spill] sm:$0xff] }
 0x2db   : > { %v1944_v16 = vpop.f32.mrf.mxu1 }
 0x2de   : > { %v1786_v3 = vpop.f32.mrf.mxu0 }
 0x2df   : > { %v1849_v28 = vadd.f32 %v1786_v3, %v8509_v61  ;;  %v12199_v3 = vld [vmem:[#allocation46_spill] sm:$0xff] }
 0x2e1   : > { %v1997_v8 = vadd.f32 %v1934_v9, %v1849_v28  ;;  %6881 = vmatmul.msk.bf16.gmra.mxu0 %vm989_vm5, %v8888_v49  ;;  %v1696_v9 = vadd.f32 %v12199_v3, %v1553_v6  ;;  %v7064_v49 = vld [vmem:[%s11939_s6 + $0x30] sm:$0xf]  ;;  %v2241_v44 = vpop.f32.mrf.mxu3  ;;  %v8998_v4 = vpop.f32.mrf.mxu2 }
 0x2e2   : > { %v7065_v43 = vor.u32 %v7693_v59, %v7064_v49  ;;  %v12200_v6 = vld [vmem:[#allocation56_spill] sm:$0xff]  ;;  %12205 = vst [vmem:[#allocation30_spill] sm:$0xff] %v8998_v4 }
 0x2e3   : > { %v2140_v61 = vadd.f32 %v2077_v14, %v1997_v8  ;;  %v7000_v14 = vld [vmem:[%s11939_s6 + $0xb0] sm:$0xf]  ;;  %v12201_v8 = vld [vmem:[#allocation49_spill] sm:$0xff] }
 0x2e4   : > { %3589 = vmatpush.bf16.msra.mxu3 %v7065_v43  ;;  %v1248_v19 = vadd.f32 %v12201_v8, %v12200_v6  ;;  %v8993_v43 = vpop.f32.mrf.mxu1 }
 0x2e5   : > { %v8971_v45 = vadd.f32 %v2231_v0, %v2140_v61  ;;  %v7709_v0 = vld [vmem:[%s11939_s6 + $0xb4] sm:$0xf0] }
 0x2e6   : > { %v1788_v23 = vpop.f32.mrf.mxu0  ;;  %v7001_v28 = vor.u32 %v7709_v0, %v7000_v14  ;;  %v12202_v61 = vld [vmem:[#allocation53_spill] sm:$0xff] }
 0x2e7   : > { %v8979_v42 = vadd.f32 %v1788_v23, %v1696_v9  ;;  %v12203_v9 = vld [vmem:[#allocation50_spill] sm:$0xff] }
 0x2e8   : > { %3331 = vmatpush.bf16.msra.mxu1 %v7001_v28  ;;  %v1555_v49 = vadd.f32 %v12203_v9, %v1248_v19  ;;  %v12207_v19 = vld [vmem:[#allocation52_spill] sm:$0xff] }
 0x2e9   : > { %v9002_v8 = vpop.f32.mrf.mxu3 }
 0x2ea   : > { %v1698_v14 = vadd.f32 %v12204_v32, %v1555_v49  ;;  %12206 = vst [vmem:[#allocation32_spill] sm:$0xff] %v9002_v8 }
 0x2ee   : > { %v1791_v30 = vpop.f32.mrf.mxu0 }
 0x2ef   : > { %v1851_v3 = vadd.f32 %v1791_v30, %v12202_v61  ;;  %v1949_v61 = vpop.f32.mrf.mxu1 }
 0x2f1   : > { %v1999_v59 = vadd.f32 %v1939_v29, %v1851_v3  ;;  %6940 = vmatmul.msk.bf16.vlgmr.msrb.gmra.mxu0 %vm989_vm5, %v8581_v18  ;;  %v1253_v29 = vadd.f32 %v12207_v19, %v8532_v22  ;;  %v12208_v3 = vld [vmem:[#allocation54_spill] sm:$0xff] }
 0x2f2   : > { %v7706_v22 = vld [vmem:[%s11939_s6 + $0xa4] sm:$0xf] }
 0x2f3   : > { %v2142_v23 = vadd.f32 %v2082_v25, %v1999_v59  ;;  %v2092_v25 = vpop.f32.mrf.mxu2  ;;  %v1557_v9 = vadd.f32 %v12208_v3, %v1253_v29  ;;  %v12209_v59 = vld [vmem:[#allocation55_spill] sm:$0xff]  ;;  %v12214_v3 = vld [vmem:[#allocation62_spill] sm:$0xff] }
 0x2f5   : > { %v8996_v0 = vadd.f32 %v2236_v1, %v2142_v23  ;;  %v2246_v1 = vpop.f32.mrf.mxu3  ;;  %v1700_v23 = vadd.f32 %v12209_v59, %v1557_v9  ;;  %v12215_v9 = vld [vmem:[#allocation57_spill] sm:$0xff]  ;;  %v7707_v59 = vld [vmem:[%s11939_s6 + $0xa4] sm:$0xf0] }
 0x2f6   : > { %v1793_v28 = vpop.f32.mrf.mxu0 }
 0x2f7   : > { %v9000_v6 = vadd.f32 %v1793_v28, %v1698_v14  ;;  %v9021_v29 = vpop.f32.mrf.mxu1 }
 0x2f8   : > { %12211 = vst [vmem:[#allocation21_spill] sm:$0xff] %v9021_v29 }
 0x2fe   : > { %v1796_v30 = vpop.f32.mrf.mxu0 }
 0x2ff   : > { %v1853_v18 = vadd.f32 %v1796_v30, %v8530_v31  ;;  %v6994_v31 = vld [vmem:[%s11939_s6 + $0xa8] sm:$0xf0] }
 0x300   : > { %v6997_v19 = vor.u32 %v7706_v22, %v6994_v31  ;;  %v12216_v31 = vld [vmem:[#allocation61_spill] sm:$0xff] }
 0x301   : > { %v2001_v32 = vadd.f32 %v1944_v16, %v1853_v18  ;;  %6941 = vmatmul.msk.bf16.gmra.mxu0 %vm989_vm5, %v8029_v56  ;;  %v7056_v56 = vld [vmem:[%s11939_s6 + $0x20] sm:$0xf]  ;;  %v9031_v18 = vpop.f32.mrf.mxu3 }
 0x302   : > { %3421 = vmatpush.bf16.msra.mxu2 %v6997_v19  ;;  %12213 = vst [vmem:[#allocation25_spill] sm:$0xff] %v9031_v18  ;;  %v12217_v19 = vld [vmem:[#allocation59_spill] sm:$0xff]  ;;  %v12218_v18 = vld [vmem:[#allocation60_spill] sm:$0xff] }
 0x303   : > { %v2144_v49 = vadd.f32 %v2087_v51, %v2001_v32  ;;  %v7691_v51 = vld [vmem:[%s11939_s6 + $0x24] sm:$0xf0]  ;;  %v1258_v32 = vadd.f32 %v12215_v9, %v12214_v3 }
 0x304   : > { %v7057_v30 = vor.u32 %v7691_v51, %v7056_v56 }
 0x305   : > { %v9011_v14 = vadd.f32 %v2241_v44, %v2144_v49  ;;  %v9029_v44 = vpop.f32.mrf.mxu2  ;;  %v6992_v49 = vld [vmem:[%s11939_s6 + $0xa0] sm:$0xf]  ;;  %v1559_v56 = vadd.f32 %v12217_v19, %v1258_v32 }
 0x306   : > { %v1798_v28 = vpop.f32.mrf.mxu0  ;;  %12212 = vst [vmem:[#allocation37_spill] sm:$0xff] %v9029_v44  ;;  %3590 = vmatpush.bf16.msra.mxu3 %v7057_v30  ;;  %v6993_v22 = vor.u32 %v7707_v59, %v6992_v49  ;;  %v1954_v30 = vpop.f32.mrf.mxu1  ;;  %v12219_v59 = vld [vmem:[#allocation58_spill] sm:$0xff] }
 0x307   : > { %12210 = vst [vmem:[#allocation20_spill] sm:$0xff] %v9011_v14  ;;  %v9019_v16 = vadd.f32 %v1798_v28, %v1700_v23  ;;  %v1702_v44 = vadd.f32 %v12218_v18, %v1559_v56  ;;  %v1263_v32 = vadd.f32 %v12219_v59, %v8574_v20 }
 0x308   : > { %3332 = vmatpush.bf16.msra.mxu1 %v6993_v22 }
 0x309   : > { %v2251_v4 = vpop.f32.mrf.mxu3  ;;  %v1561_v18 = vadd.f32 %v8564_v63, %v1263_v32  ;;  %v6986_v63 = vld [vmem:[%s11939_s6 + $0x98] sm:$0xf0] }
 0x30d   : > { %v2097_v9 = vpop.f32.mrf.mxu2 }
 0x30e   : > { %v1801_v23 = vpop.f32.mrf.mxu0  ;;  %v9050_v49 = vpop.f32.mrf.mxu1 }
 0x30f   : > { %v1855_v28 = vadd.f32 %v1801_v23, %v12216_v31 }
 0x311   : > { %v2003_v51 = vadd.f32 %v1949_v61, %v1855_v28  ;;  %6942 = vmatmul.msk.bf16.gmra.mxu0 %vm989_vm5, %v8058_v13 }
 0x313   : > { %v2146_v3 = vadd.f32 %v2092_v25, %v2003_v51  ;;  %v9057_v25 = vpop.f32.mrf.mxu3 }
 0x315   : > { %v9046_v29 = vadd.f32 %v2246_v1, %v2146_v3  ;;  %v9054_v23 = vpop.f32.mrf.mxu2  ;;  %v7048_v3 = vld [vmem:[%s11939_s6 + $0x10] sm:$0xf] }
 0x316   : > { %v1803_v8 = vpop.f32.mrf.mxu0  ;;  %v1959_v20 = vpop.f32.mrf.mxu1 }
 0x317   : > { %v9048_v14 = vadd.f32 %v1803_v8, %v1702_v44  ;;  %v12220_v44 = vld [vmem:[#allocation64_spill] sm:$0xff] }
 0x318   : > { %v1704_v22 = vadd.f32 %v12220_v44, %v1561_v18 }
 0x31b   : > { %v2256_v51 = vpop.f32.mrf.mxu3 }
 0x31d   : > { %v2102_v56 = vpop.f32.mrf.mxu2 }
 0x31e   : > { %v1806_v61 = vpop.f32.mrf.mxu0  ;;  %v9082_v18 = vpop.f32.mrf.mxu1 }
 0x31f   : > { %v1857_v13 = vadd.f32 %v1806_v61, %v8572_v12  ;;  %v7704_v12 = vld [vmem:[%s11939_s6 + $0x94] sm:$0xf] }
 0x320   : > { %v12222_v61 = vld [vmem:[#allocation68_spill] sm:$0xff] }
 0x321   : > { %v2005_v1 = vadd.f32 %v1954_v30, %v1857_v13  ;;  %6943 = vmatmul.msk.bf16.gmra.mxu0 %vm989_vm5, %v8082_v34  ;;  %v6989_v34 = vor.u32 %v7704_v12, %v6986_v63  ;;  %v12221_v30 = vld [vmem:[#allocation63_spill] sm:$0xff] }
 0x323   : > { %v2148_v8 = vadd.f32 %v2097_v9, %v2005_v1  ;;  %3422 = vmatpush.bf16.msra.mxu2 %v6989_v34  ;;  %v7689_v9 = vld [vmem:[%s11939_s6 + $0x14] sm:$0xf0]  ;;  %v12223_v1 = vld [vmem:[#allocation66_spill] sm:$0xff]  ;;  %v9095_v34 = vpop.f32.mrf.mxu3 }
 0x324   : > { %v7049_v32 = vor.u32 %v7689_v9, %v7048_v3 }
 0x325   : > { %v9063_v31 = vadd.f32 %v2251_v4, %v2148_v8  ;;  %v1268_v4 = vadd.f32 %v12221_v30, %v8596_v36  ;;  %v6984_v36 = vld [vmem:[%s11939_s6 + $0x90] sm:$0xf]  ;;  %v12224_v30 = vld [vmem:[#allocation67_spill] sm:$0xff] }
 0x326   : > { %v1808_v28 = vpop.f32.mrf.mxu0  ;;  %3591 = vmatpush.bf16.msra.mxu3 %v7049_v32  ;;  %v1964_v9 = vpop.f32.mrf.mxu1  ;;  %v12225_v32 = vld [vmem:[#allocation65_spill] sm:$0xff] }
 0x327   : > { %v9065_v19 = vadd.f32 %v1808_v28, %v1704_v22  ;;  %v1563_v8 = vadd.f32 %v12223_v1, %v1268_v4  ;;  %v7705_v22 = vld [vmem:[%s11939_s6 + $0x94] sm:$0xf0]  ;;  %v9093_v28 = vpop.f32.mrf.mxu2 }
 0x328   : > { %v6985_v12 = vor.u32 %v7705_v22, %v6984_v36  ;;  %v12226_v22 = vld [vmem:[#allocation70_spill] sm:$0xff] }
 0x32a   : > { %3333 = vmatpush.bf16.msra.mxu1 %v6985_v12 }
 0x32b   : > { %v2261_v1 = vpop.f32.mrf.mxu3 }
 0x32e   : > { %v1811_v59 = vpop.f32.mrf.mxu0 }
 0x32f   : > { %v1859_v13 = vadd.f32 %v1811_v59, %v12222_v61  ;;  %v2107_v59 = vpop.f32.mrf.mxu2  ;;  %v1273_v61 = vadd.f32 %v12225_v32, %v8610_v40 }
 0x331   : > { %v2007_v44 = vadd.f32 %v1959_v20, %v1859_v13  ;;  %6944 = vmatmul.msk.bf16.gmra.mxu0 %vm989_vm5, %v8106_v52  ;;  %v1706_v20 = vadd.f32 %v12224_v30, %v1563_v8  ;;  %v9108_v8 = vpop.f32.mrf.mxu1 }
 0x333   : > { %v2150_v63 = vadd.f32 %v2102_v56, %v2007_v44  ;;  %v1565_v56 = vadd.f32 %v8606_v24, %v1273_v61  ;;  %v6978_v24 = vld [vmem:[%s11939_s6 + $0x88] sm:$0xf0] }
 0x335   : > { %v9098_v4 = vadd.f32 %v2256_v51, %v2150_v63  ;;  %v1708_v12 = vadd.f32 %v12226_v22, %v1565_v56 }
 0x336   : > { %v1813_v52 = vpop.f32.mrf.mxu0 }
 0x337   : > { %v9100_v3 = vadd.f32 %v1813_v52, %v1706_v20  ;;  %v9113_v40 = vpop.f32.mrf.mxu2  ;;  %v9123_v52 = vpop.f32.mrf.mxu3 }
 0x338   : > { %12228 = vst [vmem:[#allocation26_spill] sm:$0xff] %v9113_v40 }
 0x339   : > { %12229 = vst [vmem:[#allocation27_spill] sm:$0xff] %v9123_v52  ;;  %v7889_v52 = vmov 0.0|0.0  }
 0x33e   : > { %v1816_v13 = vpop.f32.mrf.mxu0 }
 0x33f   : > { %v1861_v36 = vadd.f32 %v1816_v13, %v8604_v5  ;;  %v7702_v5 = vld [vmem:[%s11939_s6 + $0x84] sm:$0xf]  ;;  %v2112_v40 = vpop.f32.mrf.mxu2 }
 0x341   : > { %v2009_v44 = vadd.f32 %v1964_v9, %v1861_v36  ;;  %6945 = vmatmul.msk.bf16.gmra.mxu0 %vm989_vm5, %v8130_v15  ;;  %v6981_v15 = vor.u32 %v7702_v5, %v6978_v24  ;;  %v7685_v9 = vld [vmem:[%s7967_s16 + $0x98] sm:$0xff]  ;;  %v12232_v5 = vld [vmem:[#allocation3_spill] sm:$0xff]  ;;  %v7040_v24 = vld [vmem:[%s11939_s6] sm:$0xf] }
 0x342   : > { %v680_v61 = vshrl.u32 %v7685_v9, 16  ;;  %v683_v56 = vshll.u32 %v7685_v9, 16 }
 0x343   : > { %v2152_v51 = vadd.f32 %v2107_v59, %v2009_v44  ;;  %3423 = vmatpush.bf16.msra.mxu2 %v6981_v15  ;;  %v12230_v59 = vld [vmem:[#allocation69_spill] sm:$0xff]  ;;  %v2266_v15 = vpop.f32.mrf.mxu3 }
 0x344   : > { %v1278_v32 = vadd.f32 %v12230_v59, %v8635_v33  ;;  %v682_v36 = vrot.slane %v680_v61, 7  ;;  %v7687_v33 = vld [vmem:[%s11939_s6 + $0x4] sm:$0xf0] }
 0x345   : > { %v9111_v63 = vadd.f32 %v2261_v1, %v2152_v51  ;;  %v1969_v1 = vpop.f32.mrf.mxu1  ;;  %v12231_v51 = vld [vmem:[#allocation12_spill] sm:$0xff]  ;;  %v7041_v9 = vor.u32 %v7687_v33, %v7040_v24  ;;  %v7703_v59 = vld [vmem:[%s11939_s6 + $0x84] sm:$0xf0] }
 0x346   : > { %v1818_v30 = vpop.f32.mrf.mxu0  ;;  %v1567_v22 = vadd.f32 %v12231_v51, %v1278_v32  ;;  %v9154_v51 = vsel %vm7971_vm3, %v682_v36, 0 }
 0x347   : > { %12227 = vst [vmem:[#allocation36_spill] sm:$0xff] %v9111_v63  ;;  %v9121_v20 = vadd.f32 %v1818_v30, %v1708_v12  ;;  %v685_v12 = vor.u32 %v683_v56, %v682_v36  ;;  %v12233_v56 = vld [vmem:[#allocation14_spill] sm:$0xff]  ;;  %3592 = vmatpush.bf16.msra.mxu3 %v7041_v9 }
 0x349   : > { %v9146_v32 = vsel %vm7971_vm3, 0, %v685_v12 }
 0x34a   : > { %6919 = vmatmul.msk.bf16.gmra.mxu2 %vm989_vm5, %v9146_v32  ;;  %v2158_v12 = vshrl.u32 %v9146_v32, 16 }
 0x34e   : > { %v1821_v13 = vpop.f32.mrf.mxu0 }
 0x34f   : > { %v1863_v44 = vadd.f32 %v1821_v13, %v8633_v27  ;;  %v6976_v27 = vld [vmem:[%s11939_s6 + $0x80] sm:$0xf] }
 0x350   : > { %v6977_v13 = vor.u32 %v7703_v59, %v6976_v27 }
 0x351   : > { %v2011_v30 = vadd.f32 %v1969_v1, %v1863_v44  ;;  %6946 = vmatmul.msk.bf16.gmra.mxu0 %vm989_vm5, %v12232_v5  ;;  %v2160_v1 = vshll.u32 %v9146_v32, 16  ;;  %v1710_v44 = vadd.f32 %v12233_v56, %v1567_v22  ;;  %v2754_v22 = vunpack.c.l.b16 %v7889_v52 }
 0x352   : > { %3334 = vmatpush.bf16.msra.mxu1 %v6977_v13 }
 0x353   : > { %v2154_v61 = vadd.f32 %v2112_v40, %v2011_v30  ;;  %v2162_v24 = vrot.slane %v2160_v1, 1  ;;  %v2165_v40 = vshll.u32 %v9154_v51, 16  ;;  %v2790_v56 = vpack.c.b16 %v2754_v22, %v2754_v22 }
 0x354   : > { %v1869_v1 = vrot.slane %v8627_v41, 1 }
 0x355   : > { %v9156_v5 = vadd.f32 %v2266_v15, %v2154_v61  ;;  %v2163_v27 = vor.u32 %v2162_v24, %v2158_v12  ;;  %v2167_v59 = vrot.slane %v2165_v40, 1  ;;  %v2809_v36 = vshrl.u32 %v2790_v56, 16  ;;  %v12235_v12 = vld [vmem:[#allocation5_spill] sm:$0xff] }
 0x356   : > { %v1823_v30 = vpop.f32.mrf.mxu0  ;;  %v2812_v61 = vshll.u32 %v2790_v56, 16 }
 0x357   : > { %12234 = vst [vmem:[#allocation43_spill] sm:$0xff] %v9156_v5  ;;  %v9160_v33 = vadd.f32 %v1823_v30, %v1710_v44  ;;  %v2168_v9 = vsel %vm770_vm4, %v2163_v27, %v2167_v59  ;;  %v2811_v15 = vrot.slane %v2809_v36, 7  ;;  %v1870_v5 = vrot.slane %v8876_v53, 1  ;;  %v7176_v36 = vld [vmem:[%s11939_s6 + $0x170] sm:$0xf] }
 0x358   : > { %6938 = vmatmul.msk.bf16.gmra.mxu3 %vm989_vm5, %v2168_v9  ;;  %v12239_v9 = vld [vmem:[#allocation7_spill] sm:$0xff] }
 0x359   : > { %v2814_v63 = vor.u32 %v2812_v61, %v2811_v15  ;;  %v9167_v44 = vsel %vm1321_vm6, %v1869_v1, %v1870_v5  ;;  %v9180_v41 = vsel %vm7971_vm3, %v2811_v15, 0  ;;  %v7733_v15 = vld [vmem:[%s11939_s6 + $0x174] sm:$0xf0]  ;;  %v7732_v61 = vld [vmem:[%s11939_s6 + $0x174] sm:$0xf] }
 0x35a   : > { %6900 = vmatmul.msk.bf16.gmra.mxu1 %vm989_vm5, %v9167_v44  ;;  %12237 = vst [vmem:[#allocation42_spill] sm:$0xff] %v9180_v41  ;;  %v3030_v40 = vshll.u32 %v9180_v41, 16  ;;  %v7178_v1 = vld [vmem:[%s11939_s6 + $0x178] sm:$0xf0] }
 0x35b   : > { %v9175_v52 = vsel %vm7971_vm3, 0, %v2814_v63 }
 0x35c   : > { %12236 = vst [vmem:[#allocation31_spill] sm:$0xff] %v9175_v52  ;;  %v3025_v24 = vshll.u32 %v9175_v52, 16  ;;  %v3023_v53 = vshrl.u32 %v9175_v52, 16  ;;  %v3032_v59 = vrot.slane %v3030_v40, 1  ;;  %v12240_v40 = vld [vmem:[#allocation10_spill] sm:$0xff] }
 0x35e   : > { %v1826_v13 = vpop.f32.mrf.mxu0  ;;  %v3027_v5 = vrot.slane %v3025_v24, 1 }
 0x35f   : > { %v7177_v13 = vor.u32 %v7733_v15, %v7176_v36 }
 0x360   : > { %v3028_v27 = vor.u32 %v3027_v5, %v3023_v53  ;;  %v9208_v5 = vld [vmem:[%s11938_s5] ss:$0 sm:$0xff] }
 0x361   : > { %6947 = vmatmul.msk.bf16.gmra.mxu0 %vm989_vm5, %v12235_v12  ;;  %v7181_v12 = vor.u32 %v7732_v61, %v7178_v1  ;;  %3956 = vmatpush.bf16.msrb.mxu2 %v7177_v13 }
 0x362   : > { %v9185_v22 = vsel %vm770_vm4, %v3028_v27, %v3032_v59 }
 0x363   : > { %12238 = vst [vmem:[#allocation33_spill] sm:$0xff] %v9185_v22  ;;  %3424 = vmatmul.bf16.vlgmr.msra.gmra.mxu2 %v9185_v22  ;;  %4045 = vmatpush.bf16.msrb.mxu3 %v7181_v12 }
 0x366   : > { %v1828_v30 = vpop.f32.mrf.mxu0 }
 0x368   : > { %3593 = vmatmul.bf16.vlgmr.msra.gmra.mxu3 %v9175_v52 }
 0x36a   : > { %3335 = vmatmul.bf16.vlgmr.msra.gmra.mxu1 %v9185_v22 }
 0x36e   : > { %v2334_v63 = vpop.f32.mrf.mxu0 }
 0x371   : > { %6948 = vmatmul.msk.bf16.gmra.mxu0 %vm989_vm5, %v12239_v9 }
 0x376   : > { %v2336_v56 = vpop.f32.mrf.mxu0 }
 0x377   : > { %v7098_v56 = vld [vmem:[%s11939_s6 + $0x78] sm:$0xf0] }
 0x37e   : > { %v2339_v24 = vpop.f32.mrf.mxu0 }
 0x37f   : > { %v2426_v53 = vadd.f32 %v2339_v24, %v8763_v48  ;;  %v7700_v48 = vld [vmem:[%s11939_s6 + $0x74] sm:$0xf] }
 0x380   : > { %v7101_v36 = vor.u32 %v7700_v48, %v7098_v56 }
 0x381   : > { %6949 = vmatmul.msk.bf16.gmra.mxu0 %vm989_vm5, %v12240_v40  ;;  %v2466_v30 = vadd.f32 %v9208_v5, %v2426_v53  ;;  %v12241_v40 = vld [vmem:[#allocation13_spill] sm:$0xff] }
 0x382   : > { %3674 = vmatpush.bf16.msrb.mxu1 %v7101_v36 }
 0x383   : > { %v2502_v59 = vmax.f32 %v2466_v30, 0.0 }
 0x385   : > { %v2684_v15 = vpack.c.bf16 %v2502_v59, %v2502_v59 }
 0x386   : > { %v2341_v27 = vpop.f32.mrf.mxu0 }
 0x387   : > { %v2427_v63 = vadd.f32 %v2341_v27, %v8767_v35  ;;  %v2756_v12 = vunpack.c.l.b16 %v2684_v15  ;;  %v7168_v15 = vld [vmem:[%s11939_s6 + $0x160] sm:$0xf] }
 0x389   : > { %v2467_v9 = vadd.f32 %v9208_v5, %v2427_v63 }
 0x38b   : > { %v2503_v61 = vmax.f32 %v2467_v9, 0.0 }
 0x38d   : > { %v2685_v13 = vpack.c.bf16 %v2503_v61, %v2503_v61 }
 0x38e   : > { %v2344_v1 = vpop.f32.mrf.mxu0 }
 0x38f   : > { %v2757_v24 = vunpack.c.l.b16 %v2685_v13  ;;  %v2428_v35 = vadd.f32 %v2344_v1, %v8775_v55  ;;  %v7730_v13 = vld [vmem:[%s11939_s6 + $0x164] sm:$0xf] }
 0x391   : > { %v2791_v53 = vpack.c.b16 %v2757_v24, %v2756_v12  ;;  %6950 = vmatmul.msk.bf16.gmra.mxu0 %vm989_vm5, %v12241_v40  ;;  %v2468_v27 = vadd.f32 %v9208_v5, %v2428_v35  ;;  %v7170_v24 = vld [vmem:[%s11939_s6 + $0x168] sm:$0xf0] }
 0x392   : > { %v7173_v40 = vor.u32 %v7730_v13, %v7170_v24 }
 0x393   : > { %v2816_v30 = vshrl.u32 %v2791_v53, 16  ;;  %v2819_v22 = vshll.u32 %v2791_v53, 16  ;;  %v2504_v59 = vmax.f32 %v2468_v27, 0.0 }
 0x394   : > { %4046 = vmatpush.bf16.msrb.mxu3 %v7173_v40  ;;  %v7698_v40 = vld [vmem:[%s11939_s6 + $0x64] sm:$0xf] }
 0x395   : > { %v2818_v63 = vrot.slane %v2816_v30, 7  ;;  %v2686_v1 = vpack.c.bf16 %v2504_v59, %v2504_v59 }
 0x396   : > { %v2346_v41 = vpop.f32.mrf.mxu0 }
 0x397   : > { %v2821_v48 = vor.u32 %v2819_v22, %v2818_v63  ;;  %v2429_v9 = vadd.f32 %v2346_v41, %v8792_v26  ;;  %v9228_v56 = vsel %vm7971_vm3, %v2818_v63, 0  ;;  %v7731_v22 = vld [vmem:[%s11939_s6 + $0x164] sm:$0xf0] }
 0x398   : > { %12242 = vst [vmem:[#allocation34_spill] sm:$0xff] %v9228_v56  ;;  %v3042_v41 = vshll.u32 %v9228_v56, 16  ;;  %v7169_v61 = vor.u32 %v7731_v22, %v7168_v15  ;;  %v12245_v56 = vld [vmem:[#allocation17_spill] sm:$0xff] }
 0x399   : > { %v2469_v55 = vadd.f32 %v9208_v5, %v2429_v9  ;;  %v9233_v36 = vsel %vm7971_vm3, 0, %v2821_v48  ;;  %v2758_v9 = vunpack.c.l.b16 %v2686_v1 }
 0x39a   : > { %12243 = vst [vmem:[#allocation48_spill] sm:$0xff] %v9233_v36  ;;  %3598 = vmatmul.bf16.gmra.mxu3 %v9233_v36  ;;  %v3037_v26 = vshll.u32 %v9233_v36, 16  ;;  %v3035_v35 = vshrl.u32 %v9233_v36, 16  ;;  %3957 = vmatpush.bf16.msrb.mxu2 %v7169_v61  ;;  %v3044_v48 = vrot.slane %v3042_v41, 1 }
 0x39b   : > { %v2505_v12 = vmax.f32 %v2469_v55, 0.0 }
 0x39c   : > { %v3039_v53 = vrot.slane %v3037_v26, 1 }
 0x39d   : > { %v2687_v30 = vpack.c.bf16 %v2505_v12, %v2505_v12 }
 0x39e   : > { %v2349_v27 = vpop.f32.mrf.mxu0  ;;  %v3040_v63 = vor.u32 %v3039_v53, %v3035_v35 }
 0x39f   : > { %v2759_v15 = vunpack.c.l.b16 %v2687_v30  ;;  %v2430_v22 = vadd.f32 %v2349_v27, %v8807_v57  ;;  %v7090_v30 = vld [vmem:[%s11939_s6 + $0x68] sm:$0xf0] }
 0x3a0   : > { %v9253_v59 = vsel %vm770_vm4, %v3040_v63, %v3044_v48  ;;  %v7093_v63 = vor.u32 %v7698_v40, %v7090_v30 }
 0x3a1   : > { %12244 = vst [vmem:[#allocation38_spill] sm:$0xff] %v9253_v59  ;;  %v2792_v55 = vpack.c.b16 %v2759_v15, %v2758_v9  ;;  %6951 = vmatmul.msk.bf16.gmra.mxu0 %vm989_vm5, %v12245_v56  ;;  %3340 = vmatmul.bf16.gmra.mxu1 %v9253_v59  ;;  %v2470_v61 = vadd.f32 %v9208_v5, %v2430_v22 }
 0x3a2   : > { %3429 = vmatmul.bf16.gmra.mxu2 %v9253_v59  ;;  %3675 = vmatpush.bf16.msrb.mxu1 %v7093_v63 }
 0x3a3   : > { %v2823_v26 = vshrl.u32 %v2792_v55, 16  ;;  %v2826_v13 = vshll.u32 %v2792_v55, 16  ;;  %v2506_v24 = vmax.f32 %v2470_v61, 0.0 }
 0x3a5   : > { %v2825_v41 = vrot.slane %v2823_v26, 7  ;;  %v2688_v48 = vpack.c.bf16 %v2506_v24, %v2506_v24 }
 0x3a6   : > { %v2351_v1 = vpop.f32.mrf.mxu0 }
 0x3a7   : > { %v2828_v12 = vor.u32 %v2826_v13, %v2825_v41  ;;  %v9262_v57 = vsel %vm7971_vm3, %v2825_v41, 0  ;;  %v2431_v35 = vadd.f32 %v2351_v1, %v8816_v38  ;;  %v2760_v13 = vunpack.c.l.b16 %v2688_v48 }
 0x3a8   : > { %12246 = vst [vmem:[#allocation47_spill] sm:$0xff] %v9262_v57  ;;  %v3054_v27 = vshll.u32 %v9262_v57, 16  ;;  %v12249_v57 = vld [vmem:[#allocation23_spill] sm:$0xff] }
 0x3a9   : > { %v9267_v56 = vsel %vm7971_vm3, 0, %v2828_v12  ;;  %v2471_v53 = vadd.f32 %v9208_v5, %v2431_v35 }
 0x3aa   : > { %12247 = vst [vmem:[#allocation39_spill] sm:$0xff] %v9267_v56  ;;  %3603 = vmatmul.bf16.gmra.mxu3 %v9267_v56  ;;  %v3049_v38 = vshll.u32 %v9267_v56, 16  ;;  %v3047_v15 = vshrl.u32 %v9267_v56, 16  ;;  %v3056_v41 = vrot.slane %v3054_v27, 1 }
 0x3ab   : > { %v2507_v9 = vmax.f32 %v2471_v53, 0.0 }
 0x3ac   : > { %v3051_v22 = vrot.slane %v3049_v38, 1 }
 0x3ad   : > { %v2689_v55 = vpack.c.bf16 %v2507_v9, %v2507_v9 }
 0x3ae   : > { %v2354_v26 = vpop.f32.mrf.mxu0  ;;  %v3052_v61 = vor.u32 %v3051_v22, %v3047_v15  ;;  %v7160_v15 = vld [vmem:[%s11939_s6 + $0x150] sm:$0xf] }
 0x3af   : > { %v2761_v1 = vunpack.c.l.b16 %v2689_v55  ;;  %v2432_v12 = vadd.f32 %v2354_v26, %v8825_v11  ;;  %v7728_v26 = vld [vmem:[%s11939_s6 + $0x154] sm:$0xf] }
 0x3b0   : > { %v9282_v35 = vsel %vm770_vm4, %v3052_v61, %v3056_v41 }
 0x3b1   : > { %12248 = vst [vmem:[#allocation40_spill] sm:$0xff] %v9282_v35  ;;  %v2793_v59 = vpack.c.b16 %v2761_v1, %v2760_v13  ;;  %6952 = vmatmul.msk.bf16.gmra.mxu0 %vm989_vm5, %v12249_v57  ;;  %3345 = vmatmul.bf16.gmra.mxu1 %v9282_v35  ;;  %v2472_v53 = vadd.f32 %v9208_v5, %v2432_v12  ;;  %v7162_v13 = vld [vmem:[%s11939_s6 + $0x158] sm:$0xf0] }
 0x3b2   : > { %3434 = vmatmul.bf16.gmra.mxu2 %v9282_v35 }
 0x3b3   : > { %v2830_v24 = vshrl.u32 %v2793_v59, 16  ;;  %v2833_v30 = vshll.u32 %v2793_v59, 16  ;;  %v2508_v63 = vmax.f32 %v2472_v53, 0.0  ;;  %v7729_v59 = vld [vmem:[%s11939_s6 + $0x154] sm:$0xf0]  ;;  %v1990_v53 = vadd.f32 %v8810_v39, %v8866_v7 }
 0x3b4   : > { %v7161_v55 = vor.u32 %v7729_v59, %v7160_v15 }
 0x3b5   : > { %v2832_v40 = vrot.slane %v2830_v24, 7  ;;  %v2690_v61 = vpack.c.bf16 %v2508_v63, %v2508_v63  ;;  %v7165_v24 = vor.u32 %v7728_v26, %v7162_v13  ;;  %v2133_v59 = vadd.f32 %v8812_v54, %v1990_v53  ;;  %v7082_v53 = vld [vmem:[%s11939_s6 + $0x58] sm:$0xf0] }
 0x3b6   : > { %v2356_v27 = vpop.f32.mrf.mxu0  ;;  %3958 = vmatpush.bf16.msrb.mxu2 %v7161_v55  ;;  %v12252_v55 = vld [vmem:[#allocation29_spill] sm:$0xff] }
 0x3b7   : > { %v2835_v38 = vor.u32 %v2833_v30, %v2832_v40  ;;  %v9291_v11 = vsel %vm7971_vm3, %v2832_v40, 0  ;;  %v2433_v48 = vadd.f32 %v2356_v27, %v8840_v21  ;;  %4047 = vmatpush.bf16.msrb.mxu3 %v7165_v24 }
 0x3b8   : > { %v3066_v22 = vshll.u32 %v9291_v11, 16 }
 0x3b9   : > { %v9296_v57 = vsel %vm7971_vm3, 0, %v2835_v38  ;;  %v2473_v9 = vadd.f32 %v9208_v5, %v2433_v48  ;;  %v2762_v48 = vunpack.c.l.b16 %v2690_v61 }
 0x3ba   : > { %12250 = vst [vmem:[#allocation44_spill] sm:$0xff] %v9296_v57  ;;  %3608 = vmatmul.bf16.gmra.mxu3 %v9296_v57  ;;  %v3061_v21 = vshll.u32 %v9296_v57, 16  ;;  %v3059_v1 = vshrl.u32 %v9296_v57, 16  ;;  %v3068_v38 = vrot.slane %v3066_v22, 1  ;;  %v2287_v22 = vadd.f32 %v8814_v47, %v2133_v59  ;;  %v7696_v47 = vld [vmem:[%s11939_s6 + $0x54] sm:$0xf] }
 0x3bb   : > { %v2509_v41 = vmax.f32 %v2473_v9, 0.0  ;;  %v1992_v59 = vadd.f32 %v8828_v62, %v8898_v60  ;;  %v7749_v62 = vld [vmem:[%s11939_s6 + $0x1f4] sm:$0xf0]  ;;  %v12255_v60 = vld [vmem:[#allocation2_spill] sm:$0xff] }
 0x3bc   : > { %v3063_v12 = vrot.slane %v3061_v21, 1 }
 0x3bd   : > { %v2691_v40 = vpack.c.bf16 %v2509_v41, %v2509_v41 }
 0x3be   : > { %v2359_v30 = vpop.f32.mrf.mxu0  ;;  %v3064_v27 = vor.u32 %v3063_v12, %v3059_v1 }
 0x3bf   : > { %v2763_v63 = vunpack.c.l.b16 %v2691_v40  ;;  %v2434_v9 = vadd.f32 %v2359_v30, %v8864_v46 }
 0x3c0   : > { %v9319_v15 = vsel %vm770_vm4, %v3064_v27, %v3068_v38  ;;  %v7085_v27 = vor.u32 %v7696_v47, %v7082_v53  ;;  %v12256_v47 = vld [vmem:[#allocation35_spill] sm:$0xff] }
 0x3c1   : > { %12251 = vst [vmem:[#allocation45_spill] sm:$0xff] %v9319_v15  ;;  %v2794_v21 = vpack.c.b16 %v2763_v63, %v2762_v48  ;;  %6953 = vmatmul.msk.bf16.gmra.mxu0 %vm989_vm5, %v12252_v55  ;;  %3350 = vmatmul.bf16.gmra.mxu1 %v9319_v15  ;;  %v2474_v7 = vadd.f32 %v9208_v5, %v2434_v9  ;;  %v9349_v55 = vpop.f32.mrf.mxu2 }
 0x3c2   : > { %3439 = vmatmul.bf16.gmra.mxu2 %v9319_v15  ;;  %3676 = vmatpush.bf16.msrb.mxu1 %v7085_v27  ;;  %v7747_v27 = vld [vmem:[%s11939_s6 + $0x1e4] sm:$0xf0] }
 0x3c3   : > { %v2837_v39 = vshrl.u32 %v2794_v21, 16  ;;  %v2840_v46 = vshll.u32 %v2794_v21, 16  ;;  %v2510_v13 = vmax.f32 %v2474_v7, 0.0 }
 0x3c5   : > { %v2839_v26 = vrot.slane %v2837_v39, 7  ;;  %v2692_v38 = vpack.c.bf16 %v2510_v13, %v2510_v13  ;;  %v7256_v13 = vld [vmem:[%s11939_s6 + $0x1f0] sm:$0xf] }
 0x3c6   : > { %v2361_v61 = vpop.f32.mrf.mxu0 }
 0x3c7   : > { %v2842_v41 = vor.u32 %v2840_v46, %v2839_v26  ;;  %v9330_v54 = vsel %vm7971_vm3, %v2839_v26, 0  ;;  %v2435_v1 = vadd.f32 %v2361_v61, %v2287_v22  ;;  %v2764_v26 = vunpack.c.l.b16 %v2692_v38  ;;  %v12257_v38 = vld [vmem:[#allocation8_spill] sm:$0xff] }
 0x3c8   : > { %v3078_v40 = vshll.u32 %v9330_v54, 16 }
 0x3c9   : > { %v9334_v12 = vsel %vm7971_vm3, 0, %v2842_v41  ;;  %v2475_v24 = vadd.f32 %v9208_v5, %v2435_v1  ;;  %v2135_v1 = vadd.f32 %v12255_v60, %v1992_v59  ;;  %v7745_v60 = vld [vmem:[%s11939_s6 + $0x1d4] sm:$0xf0] }
 0x3ca   : > { %12253 = vst [vmem:[#allocation46_spill] sm:$0xff] %v9334_v12  ;;  %3613 = vmatmul.bf16.gmra.mxu3 %v9334_v12  ;;  %v3073_v30 = vshll.u32 %v9334_v12, 16  ;;  %v3071_v63 = vshrl.u32 %v9334_v12, 16  ;;  %v3080_v22 = vrot.slane %v3078_v40, 1 }
 0x3cb   : > { %v2511_v48 = vmax.f32 %v2475_v24, 0.0 }
 0x3cc   : > { %v3075_v9 = vrot.slane %v3073_v30, 1  ;;  %v7248_v30 = vld [vmem:[%s11939_s6 + $0x1e0] sm:$0xf] }
 0x3cd   : > { %v2693_v21 = vpack.c.bf16 %v2511_v48, %v2511_v48  ;;  %v2289_v48 = vadd.f32 %v12257_v38, %v2135_v1  ;;  %v7726_v38 = vld [vmem:[%s11939_s6 + $0x144] sm:$0xf] }
 0x3ce   : > { %v2364_v39 = vpop.f32.mrf.mxu0  ;;  %v3076_v7 = vor.u32 %v3075_v9, %v3071_v63  ;;  %v9374_v63 = vpop.f32.mrf.mxu1 }
 0x3cf   : > { %v2765_v46 = vunpack.c.l.b16 %v2693_v21  ;;  %v2436_v61 = vadd.f32 %v2364_v39, %v8896_v50  ;;  %v7257_v50 = vor.u32 %v7749_v62, %v7256_v13  ;;  %v9376_v9 = vpop.f32.mrf.mxu3  ;;  %v7249_v39 = vor.u32 %v7747_v27, %v7248_v30  ;;  %v7240_v62 = vld [vmem:[%s11939_s6 + $0x1d0] sm:$0xf] }
 0x3d0   : > { %v9353_v41 = vsel %vm770_vm4, %v3076_v7, %v3080_v22  ;;  %v2117_v22 = vpop.f32.mrf.mxu2 }
 0x3d1   : > { %12254 = vst [vmem:[#allocation56_spill] sm:$0xff] %v9353_v41  ;;  %v2795_v24 = vpack.c.b16 %v2765_v46, %v2764_v26  ;;  %6954 = vmatmul.msk.bf16.gmra.mxu0 %vm989_vm5, %v12256_v47  ;;  %3355 = vmatmul.bf16.gmra.mxu1 %v9353_v41  ;;  %v2476_v40 = vadd.f32 %v9208_v5, %v2436_v61  ;;  %v7152_v47 = vld [vmem:[%s11939_s6 + $0x140] sm:$0xf] }
 0x3d2   : > { %3444 = vmatmul.bf16.gmra.mxu2 %v9353_v41  ;;  %4295 = vmatpush.bf16.msra.mxu0 %v7257_v50  ;;  %v7727_v50 = vld [vmem:[%s11939_s6 + $0x144] sm:$0xf0] }
 0x3d3   : > { %v2844_v53 = vshrl.u32 %v2795_v24, 16  ;;  %v2847_v21 = vshll.u32 %v2795_v24, 16  ;;  %v2512_v61 = vmax.f32 %v2476_v40, 0.0  ;;  %v7153_v27 = vor.u32 %v7727_v50, %v7152_v47 }
 0x3d5   : > { %v2846_v59 = vrot.slane %v2844_v53, 7  ;;  %v7241_v53 = vor.u32 %v7745_v60, %v7240_v62  ;;  %3959 = vmatpush.bf16.msrb.mxu2 %v7153_v27 }
 0x3d6   : > { %v2366_v7 = vpop.f32.mrf.mxu0  ;;  %4296 = vmatpush.bf16.msra.mxu0 %v7249_v39 }
 0x3d7   : > { %v2849_v26 = vor.u32 %v2847_v21, %v2846_v59  ;;  %v9380_v46 = vsel %vm7971_vm3, %v2846_v59, 0  ;;  %v2437_v13 = vadd.f32 %v2366_v7, %v2289_v48  ;;  %v2694_v48 = vpack.c.bf16 %v2512_v61, %v2512_v61  ;;  %v7154_v21 = vld [vmem:[%s11939_s6 + $0x148] sm:$0xf0]  ;;  %v12259_v61 = vld [vmem:[#allocation16_spill] sm:$0xff] }
 0x3d8   : > { %12258 = vst [vmem:[#allocation49_spill] sm:$0xff] %v9380_v46  ;;  %v3090_v40 = vshll.u32 %v9380_v46, 16  ;;  %v7157_v22 = vor.u32 %v7726_v38, %v7154_v21  ;;  %v1994_v62 = vadd.f32 %v12259_v61, %v8933_v58  ;;  %v12260_v21 = vld [vmem:[#allocation18_spill] sm:$0xff]  ;;  %v2119_v35 = vpop.f32.mrf.mxu2  ;;  %v7224_v58 = vld [vmem:[%s11939_s6 + $0x1b0] sm:$0xf]  ;;  %v12264_v61 = vld [vmem:[#allocation11_spill] sm:$0xff] }
 0x3d9   : > { %v9390_v1 = vsel %vm7971_vm3, 0, %v2849_v26  ;;  %v2477_v24 = vadd.f32 %v9208_v5, %v2437_v13  ;;  %v7232_v26 = vld [vmem:[%s11939_s6 + $0x1c0] sm:$0xf]  ;;  %v7743_v13 = vld [vmem:[%s11939_s6 + $0x1c4] sm:$0xf0]  ;;  %v2766_v27 = vunpack.c.l.b16 %v2694_v48 }
 0x3da   : > { %3618 = vmatmul.bf16.gmra.mxu3 %v9390_v1  ;;  %v3085_v30 = vshll.u32 %v9390_v1, 16  ;;  %4297 = vmatpush.bf16.msra.mxu0 %v7241_v53  ;;  %v3083_v39 = vshrl.u32 %v9390_v1, 16  ;;  %v7233_v47 = vor.u32 %v7743_v13, %v7232_v26  ;;  %v3092_v41 = vrot.slane %v3090_v40, 1  ;;  %v12262_v40 = vld [vmem:[#allocation4_spill] sm:$0xff]  ;;  %v12263_v48 = vld [vmem:[#allocation71_spill] sm:$0xff] }
 0x3db   : > { %v2513_v59 = vmax.f32 %v2477_v24, 0.0  ;;  %v2271_v24 = vpop.f32.mrf.mxu3  ;;  %4048 = vmatpush.bf16.msrb.mxu3 %v7157_v22  ;;  %v7216_v26 = vld [vmem:[%s11939_s6 + $0x1a0] sm:$0xf]  ;;  %v7739_v13 = vld [vmem:[%s11939_s6 + $0x1a4] sm:$0xf0] }
 0x3dc   : > { %v3087_v7 = vrot.slane %v3085_v30, 1  ;;  %v1974_v30 = vpop.f32.mrf.mxu1 }
 0x3dd   : > { %v2695_v60 = vpack.c.bf16 %v2513_v59, %v2513_v59  ;;  %v7741_v59 = vld [vmem:[%s11939_s6 + $0x1b4] sm:$0xf0] }
 0x3de   : > { %v2369_v50 = vpop.f32.mrf.mxu0  ;;  %v3088_v53 = vor.u32 %v3087_v7, %v3083_v39  ;;  %4298 = vmatpush.bf16.msra.mxu0 %v7233_v47  ;;  %v2137_v39 = vadd.f32 %v12262_v40, %v1994_v62  ;;  %v7225_v35 = vor.u32 %v7741_v59, %v7224_v58  ;;  %v7208_v58 = vld [vmem:[%s11939_s6 + $0x190] sm:$0xf]  ;;  %v7737_v59 = vld [vmem:[%s11939_s6 + $0x194] sm:$0xf0] }
 0x3df   : > { %v2767_v38 = vunpack.c.l.b16 %v2695_v60  ;;  %v2438_v15 = vadd.f32 %v2369_v50, %v12260_v21  ;;  %v7217_v50 = vor.u32 %v7739_v13, %v7216_v26 }
 0x3e0   : > { %v9419_v46 = vsel %vm770_vm4, %v3088_v53, %v3092_v41  ;;  %v2291_v62 = vadd.f32 %v12264_v61, %v2137_v39 }
 0x3e1   : > { %12261 = vst [vmem:[#allocation53_spill] sm:$0xff] %v9419_v46  ;;  %v2796_v7 = vpack.c.b16 %v2767_v38, %v2766_v27  ;;  %6955 = vmatmul.msk.bf16.gmra.mxu0 %vm989_vm5, %v12263_v48  ;;  %3360 = vmatmul.bf16.gmra.mxu1 %v9419_v46  ;;  %v2478_v22 = vadd.f32 %v9208_v5, %v2438_v15  ;;  %v7074_v48 = vld [vmem:[%s11939_s6 + $0x48] sm:$0xf0] }
 0x3e2   : > { %3449 = vmatmul.bf16.gmra.mxu2 %v9419_v46  ;;  %4299 = vmatpush.bf16.msra.mxu0 %v7225_v35  ;;  %v7209_v35 = vor.u32 %v7737_v59, %v7208_v58 }
 0x3e3   : > { %v2851_v41 = vshrl.u32 %v2796_v7, 16  ;;  %v2854_v24 = vshll.u32 %v2796_v7, 16  ;;  %v2273_v47 = vpop.f32.mrf.mxu3  ;;  %v2514_v38 = vmax.f32 %v2478_v22, 0.0  ;;  %v7694_v7 = vld [vmem:[%s11939_s6 + $0x44] sm:$0xf] }
 0x3e4   : > { %v1976_v30 = vpop.f32.mrf.mxu1  ;;  %v7077_v26 = vor.u32 %v7694_v7, %v7074_v48  ;;  %v7735_v47 = vld [vmem:[%s11939_s6 + $0x184] sm:$0xf0] }
 0x3e5   : > { %v2853_v60 = vrot.slane %v2851_v41, 7  ;;  %v2696_v13 = vpack.c.bf16 %v2514_v38, %v2514_v38 }
 0x3e6   : > { %v2371_v53 = vpop.f32.mrf.mxu0  ;;  %4300 = vmatpush.bf16.msra.mxu0 %v7217_v50  ;;  %3677 = vmatpush.bf16.msrb.mxu1 %v7077_v26  ;;  %v12266_v50 = vld [vmem:[#allocation6_spill] sm:$0xff] }
 0x3e7   : > { %v2856_v27 = vor.u32 %v2854_v24, %v2853_v60  ;;  %v9442_v15 = vsel %vm7971_vm3, %v2853_v60, 0  ;;  %v2439_v21 = vadd.f32 %v2371_v53, %v2291_v62  ;;  %v7200_v24 = vld [vmem:[%s11939_s6 + $0x180] sm:$0xf]  ;;  %v1996_v53 = vadd.f32 %v12266_v50, %v8950_v37 }
 0x3e8   : > { %v3102_v41 = vshll.u32 %v9442_v15, 16  ;;  %v2768_v59 = vunpack.c.l.b16 %v2696_v13  ;;  %v12269_v13 = vld [vmem:[#allocation9_spill] sm:$0xff] }
 0x3e9   : > { %v9452_v40 = vsel %vm7971_vm3, 0, %v2856_v27  ;;  %v2479_v39 = vadd.f32 %v9208_v5, %v2439_v21  ;;  %v7201_v27 = vor.u32 %v7735_v47, %v7200_v24 }
 0x3ea   : > { %12265 = vst [vmem:[#allocation50_spill] sm:$0xff] %v9452_v40  ;;  %3623 = vmatmul.bf16.gmra.mxu3 %v9452_v40  ;;  %v3097_v22 = vshll.u32 %v9452_v40, 16  ;;  %v3095_v62 = vshrl.u32 %v9452_v40, 16  ;;  %4301 = vmatpush.bf16.msra.mxu0 %v7209_v35  ;;  %v3104_v58 = vrot.slane %v3102_v41, 1  ;;  %v12268_v35 = vld [vmem:[#allocation15_spill] sm:$0xff] }
 0x3eb   : > { %v2515_v61 = vmax.f32 %v2479_v39, 0.0 }
 0x3ec   : > { %v3099_v60 = vrot.slane %v3097_v22, 1  ;;  %v2139_v22 = vadd.f32 %v12268_v35, %v1996_v53 }
 0x3ed   : > { %v2697_v30 = vpack.c.bf16 %v2515_v61, %v2515_v61 }
 0x3ee   : > { %v2374_v38 = vpop.f32.mrf.mxu0  ;;  %v3100_v21 = vor.u32 %v3099_v60, %v3095_v62  ;;  %4302 = vmatpush.bf16.msra.mxu0 %v7201_v27  ;;  %v2293_v61 = vadd.f32 %v12269_v13, %v2139_v22  ;;  %v7146_v13 = vld [vmem:[%s11939_s6 + $0x138] sm:$0xf0] }
 0x3ef   : > { %v2769_v39 = vunpack.c.l.b16 %v2697_v30  ;;  %v2440_v7 = vadd.f32 %v2374_v38, %v8948_v17  ;;  %v3336_v30 = vpop.f32.mrf.mxu1  ;;  %v2314_v38 = vrot.slane %v9146_v32, 1  ;;  %v2315_v32 = vrot.slane %v9154_v51, 1  ;;  %v12270_v51 = vld [vmem:[#allocation19_spill] sm:$0xff] }
 0x3f0   : > { %v9475_v48 = vsel %vm770_vm4, %v3100_v21, %v3104_v58 }
 0x3f1   : > { %12267 = vst [vmem:[#allocation51_spill] sm:$0xff] %v9475_v48  ;;  %v2797_v26 = vpack.c.b16 %v2769_v39, %v2768_v59  ;;  %6956 = vmatmul.msk.bf16.gmra.mxu0 %vm989_vm5, %v9167_v44  ;;  %3365 = vmatmul.bf16.gmra.mxu1 %v9475_v48  ;;  %v2480_v41 = vadd.f32 %v9208_v5, %v2440_v7  ;;  %v3594_v44 = vpop.f32.mrf.mxu3  ;;  %v7144_v59 = vld [vmem:[%s11939_s6 + $0x130] sm:$0xf]  ;;  %v7725_v39 = vld [vmem:[%s11939_s6 + $0x134] sm:$0xf0] }
 0x3f2   : > { %3454 = vmatmul.bf16.gmra.mxu2 %v9475_v48  ;;  %v9488_v27 = vadd.f32 %v3594_v44, %v3336_v30  ;;  %v7145_v22 = vor.u32 %v7725_v39, %v7144_v59  ;;  %v2316_v44 = vsel %vm1321_vm6, %v2314_v38, %v2315_v32 }
 0x3f3   : > { %v2858_v37 = vshrl.u32 %v2797_v26, 16  ;;  %v2861_v62 = vshll.u32 %v2797_v26, 16  ;;  %v2516_v50 = vmax.f32 %v2480_v41, 0.0  ;;  %v7724_v26 = vld [vmem:[%s11939_s6 + $0x134] sm:$0xf] }
 0x3f4   : > { %3960 = vmatpush.bf16.msrb.mxu2 %v7145_v22 }
 0x3f5   : > { %v2860_v17 = vrot.slane %v2858_v37, 7  ;;  %v2698_v37 = vpack.c.bf16 %v2516_v50, %v2516_v50 }
 0x3f6   : > { %v2376_v60 = vpop.f32.mrf.mxu0 }
 0x3f7   : > { %v2863_v24 = vor.u32 %v2861_v62, %v2860_v17  ;;  %v9486_v47 = vsel %vm7971_vm3, %v2860_v17, 0  ;;  %v2441_v53 = vadd.f32 %v2376_v60, %v2293_v61  ;;  %v7149_v62 = vor.u32 %v7724_v26, %v7146_v13 }
 0x3f8   : > { %v3114_v7 = vshll.u32 %v9486_v47, 16  ;;  %v1998_v60 = vadd.f32 %v12270_v51, %v8979_v42  ;;  %v2770_v50 = vunpack.c.l.b16 %v2698_v37 }
 0x3f9   : > { %v9493_v21 = vsel %vm7971_vm3, 0, %v2863_v24  ;;  %v2481_v58 = vadd.f32 %v9208_v5, %v2441_v53  ;;  %4049 = vmatpush.bf16.msrb.mxu3 %v7149_v62 }
 0x3fa   : > { %3628 = vmatmul.bf16.gmra.mxu3 %v9493_v21  ;;  %v3109_v35 = vshll.u32 %v9493_v21, 16  ;;  %v3107_v61 = vshrl.u32 %v9493_v21, 16  ;;  %v3116_v59 = vrot.slane %v3114_v7, 1  ;;  %v12273_v7 = vld [vmem:[#allocation22_spill] sm:$0xff] }
 0x3fb   : > { %v2517_v41 = vmax.f32 %v2481_v58, 0.0 }
 0x3fc   : > { %v3111_v17 = vrot.slane %v3109_v35, 1  ;;  %v12272_v35 = vld [vmem:[#allocation41_spill] sm:$0xff] }
 0x3fd   : > { %v2699_v24 = vpack.c.bf16 %v2517_v41, %v2517_v41  ;;  %v2141_v22 = vadd.f32 %v12272_v35, %v1998_v60 }
 0x3fe   : > { %v2379_v53 = vpop.f32.mrf.mxu0  ;;  %v3112_v30 = vor.u32 %v3111_v17, %v3107_v61 }
 0x3ff   : > { %v2771_v58 = vunpack.c.l.b16 %v2699_v24  ;;  %v2442_v39 = vadd.f32 %v2379_v53, %v8971_v45  ;;  %v2295_v32 = vadd.f32 %v12273_v7, %v2141_v22  ;;  %v7692_v24 = vld [vmem:[%s11939_s6 + $0x34] sm:$0xf]  ;;  %v7066_v53 = vld [vmem:[%s11939_s6 + $0x38] sm:$0xf0]  ;;  %v2000_v22 = vadd.f32 %v8955_v2, %v9000_v6  ;;  %v9555_v6 = vpop.f32.mrf.mxu2 }
 0x400   : > { %v9518_v48 = vsel %vm770_vm4, %v3112_v30, %v3116_v59  ;;  %v7069_v59 = vor.u32 %v7692_v24, %v7066_v53  ;;  %v9558_v24 = vpop.f32.mrf.mxu3  ;;  %v12279_v53 = vld [vmem:[#allocation28_spill] sm:$0xff] }
 0x401   : > { %12271 = vst [vmem:[#allocation52_spill] sm:$0xff] %v9518_v48  ;;  %v2798_v26 = vpack.c.b16 %v2771_v58, %v2770_v50  ;;  %6957 = vmatmul.msk.bf16.gmra.mxu0 %vm989_vm5, %v2316_v44  ;;  %3370 = vmatmul.bf16.gmra.mxu1 %v9518_v48  ;;  %v2482_v38 = vadd.f32 %v9208_v5, %v2442_v39 }
 0x402   : > { %3459 = vmatmul.bf16.gmra.mxu2 %v9518_v48  ;;  %3678 = vmatpush.bf16.msrb.mxu1 %v7069_v59  ;;  %12277 = vst [vmem:[#allocation62_spill] sm:$0xff] %v9558_v24 }
 0x403   : > { %v2865_v42 = vshrl.u32 %v2798_v26, 16  ;;  %v2868_v41 = vshll.u32 %v2798_v26, 16  ;;  %v2518_v17 = vmax.f32 %v2482_v38, 0.0 }
 0x405   : > { %v2867_v37 = vrot.slane %v2865_v42, 7  ;;  %v2700_v50 = vpack.c.bf16 %v2518_v17, %v2518_v17 }
 0x406   : > { %v2381_v45 = vpop.f32.mrf.mxu0 }
 0x407   : > { %v2870_v13 = vor.u32 %v2868_v41, %v2867_v37  ;;  %v9528_v61 = vsel %vm7971_vm3, %v2867_v37, 0  ;;  %v2443_v62 = vadd.f32 %v2381_v45, %v2295_v32  ;;  %v2772_v32 = vunpack.c.l.b16 %v2700_v50 }
 0x408   : > { %v3126_v44 = vshll.u32 %v9528_v61, 16 }
 0x409   : > { %v9532_v51 = vsel %vm7971_vm3, 0, %v2870_v13  ;;  %v2483_v60 = vadd.f32 %v9208_v5, %v2443_v62  ;;  %v12276_v13 = vld [vmem:[#allocation24_spill] sm:$0xff] }
 0x40a   : > { %12274 = vst [vmem:[#allocation54_spill] sm:$0xff] %v9532_v51  ;;  %3633 = vmatmul.bf16.gmra.mxu3 %v9532_v51  ;;  %v3121_v30 = vshll.u32 %v9532_v51, 16  ;;  %v3119_v39 = vshrl.u32 %v9532_v51, 16  ;;  %v3128_v7 = vrot.slane %v3126_v44, 1  ;;  %v2143_v17 = vadd.f32 %v12276_v13, %v2000_v22  ;;  %v7722_v13 = vld [vmem:[%s11939_s6 + $0x124] sm:$0xf] }
 0x40b   : > { %v2519_v58 = vmax.f32 %v2483_v60, 0.0 }
 0x40c   : > { %v3123_v35 = vrot.slane %v3121_v30, 1  ;;  %v2297_v44 = vadd.f32 %v12279_v53, %v2143_v17 }
 0x40d   : > { %v2701_v26 = vpack.c.bf16 %v2519_v58, %v2519_v58 }
 0x40e   : > { %v2384_v42 = vpop.f32.mrf.mxu0  ;;  %v3124_v38 = vor.u32 %v3123_v35, %v3119_v39 }
 0x40f   : > { %v2773_v37 = vunpack.c.l.b16 %v2701_v26  ;;  %v2444_v41 = vadd.f32 %v2384_v42, %v8996_v0  ;;  %v9560_v0 = vpop.f32.mrf.mxu1 }
 0x410   : > { %v9549_v45 = vsel %vm770_vm4, %v3124_v38, %v3128_v7  ;;  %12278 = vst [vmem:[#allocation57_spill] sm:$0xff] %v9560_v0  ;;  %v7136_v38 = vld [vmem:[%s11939_s6 + $0x120] sm:$0xf]  ;;  %v7723_v7 = vld [vmem:[%s11939_s6 + $0x124] sm:$0xf0]  ;;  %v12281_v0 = vld [vmem:[#allocation20_spill] sm:$0xff] }
 0x411   : > { %12275 = vst [vmem:[#allocation55_spill] sm:$0xff] %v9549_v45  ;;  %v2799_v62 = vpack.c.b16 %v2773_v37, %v2772_v32  ;;  %3375 = vmatmul.bf16.gmra.mxu1 %v9549_v45  ;;  %4303 = vmatmul.bf16.vlgmr.msra.gmra.mxu0 %v9233_v36  ;;  %v2484_v60 = vadd.f32 %v9208_v5, %v2444_v41 }
 0x412   : > { %3464 = vmatmul.bf16.gmra.mxu2 %v9549_v45  ;;  %v7137_v41 = vor.u32 %v7723_v7, %v7136_v38 }
 0x413   : > { %v2872_v2 = vshrl.u32 %v2799_v62, 16  ;;  %v2875_v59 = vshll.u32 %v2799_v62, 16  ;;  %v2520_v35 = vmax.f32 %v2484_v60, 0.0 }
 0x414   : > { %3961 = vmatpush.bf16.msrb.mxu2 %v7137_v41  ;;  %v12283_v41 = vld [vmem:[#allocation30_spill] sm:$0xff] }
 0x415   : > { %v2874_v30 = vrot.slane %v2872_v2, 7  ;;  %v2702_v17 = vpack.c.bf16 %v2520_v35, %v2520_v35  ;;  %v7138_v2 = vld [vmem:[%s11939_s6 + $0x128] sm:$0xf0] }
 0x416   : > { %v2386_v50 = vpop.f32.mrf.mxu0 }
 0x417   : > { %v2877_v58 = vor.u32 %v2875_v59, %v2874_v30  ;;  %v9565_v39 = vsel %vm7971_vm3, %v2874_v30, 0  ;;  %v2445_v22 = vadd.f32 %v2386_v50, %v2297_v44  ;;  %v7141_v44 = vor.u32 %v7722_v13, %v7138_v2  ;;  %v9590_v59 = vpop.f32.mrf.mxu2 }
 0x418   : > { %v3138_v32 = vshll.u32 %v9565_v39, 16  ;;  %v2002_v30 = vadd.f32 %v8993_v43, %v9019_v16  ;;  %v2774_v7 = vunpack.c.l.b16 %v2702_v17  ;;  %v12284_v17 = vld [vmem:[#allocation32_spill] sm:$0xff] }
 0x419   : > { %v9569_v26 = vsel %vm7971_vm3, 0, %v2877_v58  ;;  %v2485_v42 = vadd.f32 %v9208_v5, %v2445_v22  ;;  %4050 = vmatpush.bf16.msrb.mxu3 %v7141_v44 }
 0x41a   : > { %12280 = vst [vmem:[#allocation61_spill] sm:$0xff] %v9569_v26  ;;  %3638 = vmatmul.bf16.gmra.mxu3 %v9569_v26  ;;  %v3133_v37 = vshll.u32 %v9569_v26, 16  ;;  %v3131_v60 = vshrl.u32 %v9569_v26, 16  ;;  %v2145_v43 = vadd.f32 %v12283_v41, %v2002_v30 }
 0x41b   : > { %v2521_v62 = vmax.f32 %v2485_v42, 0.0  ;;  %v3140_v42 = vrot.slane %v3138_v32, 1 }
 0x41c   : > { %v3135_v53 = vrot.slane %v3133_v37, 1 }
 0x41d   : > { %v2703_v50 = vpack.c.bf16 %v2521_v62, %v2521_v62  ;;  %v3599_v58 = vpop.f32.mrf.mxu3  ;;  %v2299_v62 = vadd.f32 %v12284_v17, %v2145_v43 }
 0x41e   : > { %v2389_v22 = vpop.f32.mrf.mxu0  ;;  %v3341_v38 = vpop.f32.mrf.mxu1  ;;  %v3136_v35 = vor.u32 %v3135_v53, %v3131_v60 }
 0x41f   : > { %v2775_v24 = vunpack.c.l.b16 %v2703_v50  ;;  %v2446_v45 = vadd.f32 %v2389_v22, %v12281_v0  ;;  %v9593_v48 = vadd.f32 %v3599_v58, %v3341_v38 }
 0x420   : > { %v9596_v37 = vsel %vm770_vm4, %v3136_v35, %v3140_v42  ;;  %v7690_v42 = vld [vmem:[%s11939_s6 + $0x24] sm:$0xf] }
 0x421   : > { %12282 = vst [vmem:[#allocation59_spill] sm:$0xff] %v9596_v37  ;;  %v2800_v16 = vpack.c.b16 %v2775_v24, %v2774_v7  ;;  %3380 = vmatmul.bf16.gmra.mxu1 %v9596_v37  ;;  %4308 = vmatmul.bf16.gmra.mxu0 %v9267_v56  ;;  %v2486_v13 = vadd.f32 %v9208_v5, %v2446_v45  ;;  %v7058_v7 = vld [vmem:[%s11939_s6 + $0x28] sm:$0xf0] }
 0x422   : > { %3469 = vmatmul.bf16.gmra.mxu2 %v9596_v37 }
 0x423   : > { %v2879_v32 = vshrl.u32 %v2800_v16, 16  ;;  %v2882_v2 = vshll.u32 %v2800_v16, 16  ;;  %v2522_v58 = vmax.f32 %v2486_v13, 0.0  ;;  %v7061_v16 = vor.u32 %v7690_v42, %v7058_v7  ;;  %v12290_v7 = vld [vmem:[#allocation37_spill] sm:$0xff] }
 0x425   : > { %v2881_v0 = vrot.slane %v2879_v32, 7  ;;  %v9604_v60 = vpop.f32.mrf.mxu2  ;;  %v3601_v53 = vpop.f32.mrf.mxu3  ;;  %v2704_v32 = vpack.c.bf16 %v2522_v58, %v2522_v58  ;;  %3679 = vmatpush.bf16.msrb.mxu1 %v7061_v16 }
 0x426   : > { %v2391_v44 = vpop.f32.mrf.mxu0  ;;  %v3343_v50 = vpop.f32.mrf.mxu1 }
 0x427   : > { %v2884_v30 = vor.u32 %v2882_v2, %v2881_v0  ;;  %v9608_v24 = vsel %vm7971_vm3, %v2881_v0, 0  ;;  %v2447_v22 = vadd.f32 %v2391_v44, %v2299_v62  ;;  %v9610_v38 = vadd.f32 %v3601_v53, %v3343_v50  ;;  %v12287_v0 = vld [vmem:[#allocation21_spill] sm:$0xff] }
 0x428   : > { %12285 = vst [vmem:[#allocation60_spill] sm:$0xff] %v9608_v24  ;;  %v3150_v41 = vshll.u32 %v9608_v24, 16  ;;  %v2004_v2 = vadd.f32 %v12287_v0, %v9048_v14 }
 0x429   : > { %12286 = vst [vmem:[#allocation58_spill] sm:$0xff] %v9610_v38  ;;  %v9614_v45 = vsel %vm7971_vm3, 0, %v2884_v30  ;;  %v2487_v35 = vadd.f32 %v9208_v5, %v2447_v22  ;;  %v2776_v38 = vunpack.c.l.b16 %v2704_v32  ;;  %v12291_v32 = vld [vmem:[#allocation25_spill] sm:$0xff] }
 0x42a   : > { %3643 = vmatmul.bf16.gmra.mxu3 %v9614_v45  ;;  %v3145_v43 = vshll.u32 %v9614_v45, 16  ;;  %v3143_v17 = vshrl.u32 %v9614_v45, 16  ;;  %v3152_v46 = vrot.slane %v3150_v41, 1 }
 0x42b   : > { %v2523_v13 = vmax.f32 %v2487_v35, 0.0 }
 0x42c   : > { %v3147_v62 = vrot.slane %v3145_v43, 1  ;;  %v2147_v43 = vadd.f32 %v12290_v7, %v2004_v2  ;;  %v7721_v7 = vld [vmem:[%s11939_s6 + $0x114] sm:$0xf0] }
 0x42d   : > { %v2705_v53 = vpack.c.bf16 %v2523_v13, %v2523_v13  ;;  %v9629_v44 = vpop.f32.mrf.mxu2  ;;  %v3604_v50 = vpop.f32.mrf.mxu3 }
 0x42e   : > { %v2394_v30 = vpop.f32.mrf.mxu0  ;;  %v3346_v22 = vpop.f32.mrf.mxu1  ;;  %v3148_v37 = vor.u32 %v3147_v62, %v3143_v17  ;;  %v2301_v13 = vadd.f32 %v12291_v32, %v2147_v43 }
 0x42f   : > { %v2777_v24 = vunpack.c.l.b16 %v2705_v53  ;;  %v2448_v58 = vadd.f32 %v2394_v30, %v9046_v29  ;;  %v9632_v35 = vadd.f32 %v3604_v50, %v3346_v22 }
 0x430   : > { %v9635_v42 = vsel %vm770_vm4, %v3148_v37, %v3152_v46 }
 0x431   : > { %12288 = vst [vmem:[#allocation64_spill] sm:$0xff] %v9632_v35  ;;  %v2801_v14 = vpack.c.b16 %v2777_v24, %v2776_v38  ;;  %3385 = vmatmul.bf16.gmra.mxu1 %v9635_v42  ;;  %4313 = vmatmul.bf16.gmra.mxu0 %v9296_v57  ;;  %v2488_v41 = vadd.f32 %v9208_v5, %v2448_v58  ;;  %v7128_v58 = vld [vmem:[%s11939_s6 + $0x110] sm:$0xf] }
 0x432   : > { %12289 = vst [vmem:[#allocation63_spill] sm:$0xff] %v9635_v42  ;;  %3474 = vmatmul.bf16.gmra.mxu2 %v9635_v42 }
 0x433   : > { %v2886_v16 = vshrl.u32 %v2801_v14, 16  ;;  %v2889_v17 = vshll.u32 %v2801_v14, 16  ;;  %v2524_v38 = vmax.f32 %v2488_v41, 0.0  ;;  %v7720_v41 = vld [vmem:[%s11939_s6 + $0x114] sm:$0xf] }
 0x435   : > { %v2888_v29 = vrot.slane %v2886_v16, 7  ;;  %v9643_v62 = vpop.f32.mrf.mxu2  ;;  %v3606_v46 = vpop.f32.mrf.mxu3  ;;  %v7129_v16 = vor.u32 %v7721_v7, %v7128_v58 }
 0x436   : > { %v2396_v37 = vpop.f32.mrf.mxu0  ;;  %v3348_v0 = vpop.f32.mrf.mxu1 }
 0x437   : > { %v2891_v2 = vor.u32 %v2889_v17, %v2888_v29  ;;  %v9647_v24 = vsel %vm7971_vm3, %v2888_v29, 0  ;;  %v2449_v53 = vadd.f32 %v2396_v37, %v2301_v13  ;;  %v9649_v50 = vadd.f32 %v3606_v46, %v3348_v0  ;;  %v7130_v13 = vld [vmem:[%s11939_s6 + $0x118] sm:$0xf0]  ;;  %3962 = vmatpush.bf16.msrb.mxu2 %v7129_v16  ;;  %v9689_v16 = vld [vmem:[%s11938_s5] ss:$0 sm:$0xff] }
 0x438   : > { %12292 = vst [vmem:[#allocation68_spill] sm:$0xff] %v9647_v24  ;;  %v3162_v43 = vshll.u32 %v9647_v24, 16  ;;  %v7133_v46 = vor.u32 %v7720_v41, %v7130_v13  ;;  %v2006_v37 = vadd.f32 %v9050_v49, %v9065_v19 }
 0x439   : > { %12293 = vst [vmem:[#allocation66_spill] sm:$0xff] %v9649_v50  ;;  %v9653_v30 = vsel %vm7971_vm3, 0, %v2891_v2  ;;  %v2489_v22 = vadd.f32 %v9208_v5, %v2449_v53  ;;  %v2706_v5 = vpack.c.bf16 %v2524_v38, %v2524_v38 }
 0x43a   : > { %3648 = vmatmul.bf16.gmra.mxu3 %v9653_v30  ;;  %v3157_v14 = vshll.u32 %v9653_v30, 16  ;;  %v3155_v29 = vshrl.u32 %v9653_v30, 16  ;;  %v2149_v49 = vadd.f32 %v9054_v23, %v2006_v37 }
 0x43b   : > { %v2525_v32 = vmax.f32 %v2489_v22, 0.0  ;;  %v3164_v22 = vrot.slane %v3162_v43, 1  ;;  %4051 = vmatpush.bf16.msrb.mxu3 %v7133_v46  ;;  %v2778_v42 = vunpack.c.l.b16 %v2706_v5 }
 0x43c   : > { %v3159_v17 = vrot.slane %v3157_v14, 1  ;;  %v2303_v41 = vadd.f32 %v9057_v25, %v2149_v49 }
 0x43d   : > { %v2707_v0 = vpack.c.bf16 %v2525_v32, %v2525_v32  ;;  %v9674_v2 = vpop.f32.mrf.mxu2  ;;  %v3609_v53 = vpop.f32.mrf.mxu3 }
 0x43e   : > { %v2399_v58 = vpop.f32.mrf.mxu0  ;;  %v3351_v7 = vpop.f32.mrf.mxu1  ;;  %v3160_v38 = vor.u32 %v3159_v17, %v3155_v29 }
 0x43f   : > { %v2779_v50 = vunpack.c.l.b16 %v2707_v0  ;;  %v2450_v24 = vadd.f32 %v2399_v58, %v9063_v31  ;;  %v9677_v35 = vadd.f32 %v3609_v53, %v3351_v7  ;;  %v7688_v53 = vld [vmem:[%s11939_s6 + $0x14] sm:$0xf]  ;;  %v7050_v58 = vld [vmem:[%s11939_s6 + $0x18] sm:$0xf0] }
 0x440   : > { %v9680_v14 = vsel %vm770_vm4, %v3160_v38, %v3164_v22  ;;  %v7053_v22 = vor.u32 %v7688_v53, %v7050_v58 }
 0x441   : > { %12294 = vst [vmem:[#allocation67_spill] sm:$0xff] %v9680_v14  ;;  %v2802_v19 = vpack.c.b16 %v2779_v50, %v2778_v42  ;;  %3390 = vmatmul.bf16.gmra.mxu1 %v9680_v14  ;;  %4318 = vmatmul.bf16.gmra.mxu0 %v9334_v12  ;;  %v2490_v31 = vadd.f32 %v9689_v16, %v2450_v24 }
 0x442   : > { %3479 = vmatmul.bf16.gmra.mxu2 %v9680_v14  ;;  %3680 = vmatpush.bf16.msrb.mxu1 %v7053_v22 }
 0x443   : > { %v2893_v43 = vshrl.u32 %v2802_v19, 16  ;;  %v2896_v32 = vshll.u32 %v2802_v19, 16  ;;  %v2526_v46 = vmax.f32 %v2490_v31, 0.0 }
 0x445   : > { %v2895_v5 = vrot.slane %v2893_v43, 7  ;;  %v9693_v23 = vpop.f32.mrf.mxu2  ;;  %v3611_v42 = vpop.f32.mrf.mxu3  ;;  %v2708_v49 = vpack.c.bf16 %v2526_v46, %v2526_v46 }
 0x446   : > { %v2401_v50 = vpop.f32.mrf.mxu0  ;;  %v3353_v13 = vpop.f32.mrf.mxu1 }
 0x447   : > { %v2898_v29 = vor.u32 %v2896_v32, %v2895_v5  ;;  %v9697_v17 = vsel %vm7971_vm3, %v2895_v5, 0  ;;  %v2451_v37 = vadd.f32 %v2401_v50, %v2303_v41  ;;  %v9699_v0 = vadd.f32 %v3611_v42, %v3353_v13 }
 0x448   : > { %v3174_v7 = vshll.u32 %v9697_v17, 16  ;;  %v2008_v41 = vadd.f32 %v9082_v18, %v9100_v3  ;;  %v2780_v14 = vunpack.c.l.b16 %v2708_v49 }
 0x449   : > { %12295 = vst [vmem:[#allocation65_spill] sm:$0xff] %v9699_v0  ;;  %v9703_v24 = vsel %vm7971_vm3, 0, %v2898_v29  ;;  %v2491_v25 = vadd.f32 %v9689_v16, %v2451_v37 }
 0x44a   : > { %3653 = vmatmul.bf16.gmra.mxu3 %v9703_v24  ;;  %v3169_v38 = vshll.u32 %v9703_v24, 16  ;;  %v3167_v43 = vshrl.u32 %v9703_v24, 16  ;;  %v3176_v37 = vrot.slane %v3174_v7, 1  ;;  %v2151_v58 = vadd.f32 %v9093_v28, %v2008_v41 }
 0x44b   : > { %v2527_v19 = vmax.f32 %v2491_v25, 0.0 }
 0x44c   : > { %v3171_v31 = vrot.slane %v3169_v38, 1  ;;  %v2305_v38 = vadd.f32 %v9095_v34, %v2151_v58  ;;  %v7718_v58 = vld [vmem:[%s11939_s6 + $0x104] sm:$0xf] }
 0x44d   : > { %v2709_v5 = vpack.c.bf16 %v2527_v19, %v2527_v19  ;;  %v9718_v32 = vpop.f32.mrf.mxu2  ;;  %v3614_v42 = vpop.f32.mrf.mxu3 }
 0x44e   : > { %v2404_v50 = vpop.f32.mrf.mxu0  ;;  %v3356_v13 = vpop.f32.mrf.mxu1  ;;  %v3172_v29 = vor.u32 %v3171_v31, %v3167_v43 }
 0x44f   : > { %v2781_v0 = vunpack.c.l.b16 %v2709_v5  ;;  %v2452_v46 = vadd.f32 %v2404_v50, %v9098_v4  ;;  %v9721_v25 = vadd.f32 %v3614_v42, %v3356_v13  ;;  %v7120_v50 = vld [vmem:[%s11939_s6 + $0x100] sm:$0xf]  ;;  %v7719_v13 = vld [vmem:[%s11939_s6 + $0x104] sm:$0xf0] }
 0x450   : > { %v9724_v53 = vsel %vm770_vm4, %v3172_v29, %v3176_v37 }
 0x451   : > { %12296 = vst [vmem:[#allocation70_spill] sm:$0xff] %v9721_v25  ;;  %v2803_v18 = vpack.c.b16 %v2781_v0, %v2780_v14  ;;  %3395 = vmatmul.bf16.gmra.mxu1 %v9724_v53  ;;  %4323 = vmatmul.bf16.gmra.mxu0 %v9390_v1  ;;  %v2492_v7 = vadd.f32 %v9689_v16, %v2452_v46 }
 0x452   : > { %12297 = vst [vmem:[#allocation69_spill] sm:$0xff] %v9724_v53  ;;  %3484 = vmatmul.bf16.gmra.mxu2 %v9724_v53  ;;  %v7121_v46 = vor.u32 %v7719_v13, %v7120_v50 }
 0x453   : > { %v2900_v3 = vshrl.u32 %v2803_v18, 16  ;;  %v2903_v22 = vshll.u32 %v2803_v18, 16  ;;  %v2528_v0 = vmax.f32 %v2492_v7, 0.0  ;;  %v7122_v7 = vld [vmem:[%s11939_s6 + $0x108] sm:$0xf0] }
 0x454   : > { %3963 = vmatpush.bf16.msrb.mxu2 %v7121_v46  ;;  %v12302_v46 = vld [vmem:[#allocation26_spill] sm:$0xff] }
 0x455   : > { %v2902_v4 = vrot.slane %v2900_v3, 7  ;;  %v9732_v49 = vpop.f32.mrf.mxu2  ;;  %v3616_v19 = vpop.f32.mrf.mxu3  ;;  %v2710_v18 = vpack.c.bf16 %v2528_v0, %v2528_v0 }
 0x456   : > { %v2406_v43 = vpop.f32.mrf.mxu0  ;;  %v3358_v31 = vpop.f32.mrf.mxu1 }
 0x457   : > { %v2905_v28 = vor.u32 %v2903_v22, %v2902_v4  ;;  %v9736_v14 = vsel %vm7971_vm3, %v2902_v4, 0  ;;  %v2453_v41 = vadd.f32 %v2406_v43, %v2305_v38  ;;  %v9738_v5 = vadd.f32 %v3616_v19, %v3358_v31 }
 0x458   : > { %12298 = vst [vmem:[#allocation12_spill] sm:$0xff] %v9736_v14  ;;  %v3186_v29 = vshll.u32 %v9736_v14, 16  ;;  %v7125_v22 = vor.u32 %v7718_v58, %v7122_v7  ;;  %v2010_v19 = vadd.f32 %v9108_v8, %v9121_v20  ;;  %v2782_v13 = vunpack.c.l.b16 %v2710_v18  ;;  %v12303_v18 = vld [vmem:[#allocation27_spill] sm:$0xff] }
 0x459   : > { %12299 = vst [vmem:[#allocation3_spill] sm:$0xff] %v9738_v5  ;;  %v9742_v42 = vsel %vm7971_vm3, 0, %v2905_v28  ;;  %v2493_v34 = vadd.f32 %v9689_v16, %v2453_v41  ;;  %v12300_v5 = vld [vmem:[#allocation36_spill] sm:$0xff] }
 0x45a   : > { %3658 = vmatmul.bf16.gmra.mxu3 %v9742_v42  ;;  %v3181_v37 = vshll.u32 %v9742_v42, 16  ;;  %v3179_v38 = vshrl.u32 %v9742_v42, 16  ;;  %v2153_v8 = vadd.f32 %v12302_v46, %v2010_v19 }
 0x45b   : > { %v2529_v3 = vmax.f32 %v2493_v34, 0.0  ;;  %v3188_v34 = vrot.slane %v3186_v29, 1  ;;  %4052 = vmatpush.bf16.msrb.mxu3 %v7125_v22 }
 0x45c   : > { %v3183_v4 = vrot.slane %v3181_v37, 1 }
 0x45d   : > { %v2711_v43 = vpack.c.bf16 %v2529_v3, %v2529_v3  ;;  %v9763_v31 = vpop.f32.mrf.mxu2  ;;  %v3619_v28 = vpop.f32.mrf.mxu3  ;;  %v2307_v3 = vadd.f32 %v12303_v18, %v2153_v8 }
 0x45e   : > { %v2409_v41 = vpop.f32.mrf.mxu0  ;;  %v3361_v50 = vpop.f32.mrf.mxu1  ;;  %v3184_v0 = vor.u32 %v3183_v4, %v3179_v38 }
 0x45f   : > { %v2783_v53 = vunpack.c.l.b16 %v2711_v43  ;;  %v2454_v14 = vadd.f32 %v2409_v41, %v12300_v5  ;;  %v9766_v25 = vadd.f32 %v3619_v28, %v3361_v50  ;;  %v7042_v50 = vld [vmem:[%s11939_s6 + $0x8] sm:$0xf0] }
 0x460   : > { %v9769_v37 = vsel %vm770_vm4, %v3184_v0, %v3188_v34 }
 0x461   : > { %12301 = vst [vmem:[#allocation14_spill] sm:$0xff] %v9769_v37  ;;  %v2804_v20 = vpack.c.b16 %v2783_v53, %v2782_v13  ;;  %3400 = vmatmul.bf16.gmra.mxu1 %v9769_v37  ;;  %4328 = vmatmul.bf16.gmra.mxu0 %v9452_v40  ;;  %v2494_v58 = vadd.f32 %v9689_v16, %v2454_v14  ;;  %v7686_v14 = vld [vmem:[%s11939_s6 + $0x4] sm:$0xf] }
 0x462   : > { %3489 = vmatmul.bf16.gmra.mxu2 %v9769_v37  ;;  %v7045_v34 = vor.u32 %v7686_v14, %v7042_v50 }
 0x463   : > { %v2907_v29 = vshrl.u32 %v2804_v20, 16  ;;  %v2910_v7 = vshll.u32 %v2804_v20, 16  ;;  %v2530_v28 = vmax.f32 %v2494_v58, 0.0 }
 0x464   : > { %3681 = vmatpush.bf16.msrb.mxu1 %v7045_v34 }
 0x465   : > { %v2909_v5 = vrot.slane %v2907_v29, 7  ;;  %v9777_v38 = vpop.f32.mrf.mxu2  ;;  %v3621_v4 = vpop.f32.mrf.mxu3  ;;  %v2712_v29 = vpack.c.bf16 %v2530_v28, %v2530_v28 }
 0x466   : > { %v2411_v22 = vpop.f32.mrf.mxu0  ;;  %v3363_v43 = vpop.f32.mrf.mxu1 }
 0x467   : > { %v2912_v19 = vor.u32 %v2910_v7, %v2909_v5  ;;  %v9781_v53 = vsel %vm7971_vm3, %v2909_v5, 0  ;;  %v2455_v41 = vadd.f32 %v2411_v22, %v2307_v3  ;;  %v9789_v0 = vadd.f32 %v3621_v4, %v3363_v43 }
 0x468   : > { %v3198_v8 = vshll.u32 %v9781_v53, 16  ;;  %v2012_v5 = vadd.f32 %v9374_v63, %v9160_v33  ;;  %v2784_v50 = vunpack.c.l.b16 %v2712_v29  ;;  %v7336_v63 = vld [vmem:[%s11939_s6 + $0x270] sm:$0xf] }
 0x469   : > { %12304 = vst [vmem:[#allocation5_spill] sm:$0xff] %v9789_v0  ;;  %v9793_v13 = vsel %vm7971_vm3, 0, %v2912_v19  ;;  %v2495_v46 = vadd.f32 %v9689_v16, %v2455_v41  ;;  %v12305_v0 = vld [vmem:[#allocation43_spill] sm:$0xff] }
 0x46a   : > { %3663 = vmatmul.bf16.gmra.mxu3 %v9793_v13  ;;  %v3193_v20 = vshll.u32 %v9793_v13, 16  ;;  %v3191_v18 = vshrl.u32 %v9793_v13, 16  ;;  %v3200_v14 = vrot.slane %v3198_v8, 1 }
 0x46b   : > { %v2531_v58 = vmax.f32 %v2495_v46, 0.0 }
 0x46c   : > { %v3195_v3 = vrot.slane %v3193_v20, 1  ;;  %v2155_v20 = vadd.f32 %v9349_v55, %v2012_v5 }
 0x46d   : > { %v2713_v7 = vpack.c.bf16 %v2531_v58, %v2531_v58  ;;  %v9802_v4 = vpop.f32.mrf.mxu2  ;;  %v3624_v22 = vpop.f32.mrf.mxu3 }
 0x46e   : > { %v2414_v43 = vpop.f32.mrf.mxu0  ;;  %v3366_v19 = vpop.f32.mrf.mxu1  ;;  %v3196_v41 = vor.u32 %v3195_v3, %v3191_v18  ;;  %v2309_v55 = vadd.f32 %v9376_v9, %v2155_v20  ;;  %v7748_v20 = vld [vmem:[%s11939_s6 + $0x1f4] sm:$0xf] }
 0x46f   : > { %v2785_v37 = vunpack.c.l.b16 %v2713_v7  ;;  %v2456_v34 = vadd.f32 %v2414_v43, %v12305_v0  ;;  %v9805_v28 = vadd.f32 %v3624_v22, %v3366_v19  ;;  %v7765_v0 = vld [vmem:[%s11939_s6 + $0x274] sm:$0xf0]  ;;  %v7764_v7 = vld [vmem:[%s11939_s6 + $0x274] sm:$0xf]  ;;  %v7338_v22 = vld [vmem:[%s11939_s6 + $0x278] sm:$0xf0] }
 0x470   : > { %v9808_v46 = vsel %vm770_vm4, %v3196_v41, %v3200_v14  ;;  %v7337_v58 = vor.u32 %v7765_v0, %v7336_v63  ;;  %v7341_v41 = vor.u32 %v7764_v7, %v7338_v22 }
 0x471   : > { %12306 = vst [vmem:[#allocation7_spill] sm:$0xff] %v9808_v46  ;;  %v2805_v33 = vpack.c.b16 %v2785_v37, %v2784_v50  ;;  %3405 = vmatmul.bf16.gmra.mxu1 %v9808_v46  ;;  %4333 = vmatmul.bf16.gmra.mxu0 %v9493_v21  ;;  %v2496_v29 = vadd.f32 %v9689_v16, %v2456_v34 }
 0x472   : > { %3494 = vmatmul.bf16.gmra.mxu2 %v9808_v46  ;;  %4736 = vmatpush.bf16.msra.mxu3 %v7341_v41 }
 0x473   : > { %v2914_v8 = vshrl.u32 %v2805_v33, 16  ;;  %v2917_v18 = vshll.u32 %v2805_v33, 16  ;;  %4647 = vmatpush.bf16.msra.mxu2 %v7337_v58  ;;  %v2532_v50 = vmax.f32 %v2496_v29, 0.0  ;;  %v7258_v33 = vld [vmem:[%s11939_s6 + $0x1f8] sm:$0xf0] }
 0x474   : > { %v7261_v0 = vor.u32 %v7748_v20, %v7258_v33 }
 0x475   : > { %v2916_v37 = vrot.slane %v2914_v8, 7  ;;  %v9822_v3 = vpop.f32.mrf.mxu2  ;;  %v3626_v5 = vpop.f32.mrf.mxu3 }
 0x476   : > { %v2416_v43 = vpop.f32.mrf.mxu0  ;;  %v3368_v19 = vpop.f32.mrf.mxu1  ;;  %4384 = vmatpush.bf16.msra.mxu1 %v7261_v0  ;;  %v3795_v0 = vrot.slane %v9175_v52, 1 }
 0x477   : > { %v2919_v14 = vor.u32 %v2917_v18, %v2916_v37  ;;  %v9832_v9 = vsel %vm7971_vm3, %v2916_v37, 0  ;;  %v2457_v34 = vadd.f32 %v2416_v43, %v2309_v55  ;;  %v9840_v63 = vadd.f32 %v3626_v5, %v3368_v19 }
 0x478   : > { %v3210_v29 = vshll.u32 %v9832_v9, 16  ;;  %v2714_v37 = vpack.c.bf16 %v2532_v50, %v2532_v50 }
 0x479   : > { %12307 = vst [vmem:[#allocation10_spill] sm:$0xff] %v9840_v63  ;;  %v9844_v8 = vsel %vm7971_vm3, 0, %v2919_v14  ;;  %v2497_v58 = vadd.f32 %v9689_v16, %v2457_v34 }
 0x47a   : > { %3668 = vmatmul.bf16.gmra.mxu3 %v9844_v8  ;;  %v3205_v55 = vshll.u32 %v9844_v8, 16  ;;  %v3203_v5 = vshrl.u32 %v9844_v8, 16  ;;  %v3212_v16 = vrot.slane %v3210_v29, 1  ;;  %v2786_v34 = vunpack.c.l.b16 %v2714_v37 }
 0x47b   : > { %v2533_v18 = vmax.f32 %v2497_v58, 0.0  ;;  %v12309_v58 = vld [vmem:[#allocation42_spill] sm:$0xff] }
 0x47c   : > { %v3207_v7 = vrot.slane %v3205_v55, 1  ;;  %v3796_v55 = vrot.slane %v12309_v58, 1 }
 0x47d   : > { %v2715_v22 = vpack.c.bf16 %v2533_v18, %v2533_v18  ;;  %v9851_v43 = vpop.f32.mrf.mxu2  ;;  %v3629_v19 = vpop.f32.mrf.mxu3 }
 0x47e   : > { %v2419_v41 = vpop.f32.mrf.mxu0  ;;  %v3371_v14 = vpop.f32.mrf.mxu1  ;;  %v3208_v20 = vor.u32 %v3207_v7, %v3203_v5 }
 0x47f   : > { %v2787_v33 = vunpack.c.l.b16 %v2715_v22  ;;  %v9853_v46 = vadd.f32 %v3629_v19, %v3371_v14  ;;  %v9870_v22 = vsel %vm1321_vm6, %v3795_v0, %v3796_v55 }
 0x480   : > { %v9856_v63 = vsel %vm770_vm4, %v3208_v20, %v3212_v16  ;;  %12310 = vst [vmem:[#allocation17_spill] sm:$0xff] %v9870_v22 }
 0x481   : > { %12308 = vst [vmem:[#allocation13_spill] sm:$0xff] %v9856_v63  ;;  %v9858_v50 = vpack.c.b16 %v2787_v33, %v2786_v34  ;;  %3410 = vmatmul.bf16.gmra.mxu1 %v9856_v63  ;;  %4338 = vmatmul.bf16.gmra.mxu0 %v9532_v51  ;;  %v7328_v34 = vld [vmem:[%s11939_s6 + $0x260] sm:$0xf]  ;;  %v7763_v33 = vld [vmem:[%s11939_s6 + $0x264] sm:$0xf0] }
 0x482   : > { %3499 = vmatmul.bf16.gmra.mxu2 %v9856_v63  ;;  %v7329_v0 = vor.u32 %v7763_v33, %v7328_v34  ;;  %v12315_v34 = vld [vmem:[#allocation34_spill] sm:$0xff]  ;;  %v7250_v63 = vld [vmem:[%s11939_s6 + $0x1e8] sm:$0xf0] }
 0x483   : > { %v3799_v33 = vrot.slane %v12315_v34, 1 }
 0x484   : > { %4648 = vmatpush.bf16.msra.mxu2 %v7329_v0  ;;  %v7746_v0 = vld [vmem:[%s11939_s6 + $0x1e4] sm:$0xf] }
 0x485   : > { %v9865_v29 = vpop.f32.mrf.mxu2  ;;  %v3631_v37 = vpop.f32.mrf.mxu3 }
 0x486   : > { %v2421_v18 = vpop.f32.mrf.mxu0  ;;  %v3373_v5 = vpop.f32.mrf.mxu1 }
 0x487   : > { %v9867_v7 = vadd.f32 %v3631_v37, %v3373_v5  ;;  %v3798_v37 = vrot.slane %v9233_v36, 1  ;;  %v7762_v18 = vld [vmem:[%s11939_s6 + $0x264] sm:$0xf]  ;;  %v7330_v5 = vld [vmem:[%s11939_s6 + $0x268] sm:$0xf0] }
 0x48a   : > { %4053 = vmatmul.bf16.vlgmr.msrb.gmra.mxu3 %v9870_v22 }
 0x48d   : > { %v9873_v19 = vpop.f32.mrf.mxu2  ;;  %v3634_v41 = vpop.f32.mrf.mxu3 }
 0x48e   : > { %v3376_v14 = vpop.f32.mrf.mxu1  ;;  %v9875_v20 = vpop.f32.mrf.mxu0 }
 0x48f   : > { %12311 = vst [vmem:[#allocation23_spill] sm:$0xff] %v9875_v20  ;;  %v9877_v16 = vadd.f32 %v3634_v41, %v3376_v14  ;;  %v7253_v20 = vor.u32 %v7746_v0, %v7250_v63  ;;  %v12322_v0 = vld [vmem:[#allocation47_spill] sm:$0xff] }
 0x491   : > { %12312 = vst [vmem:[#allocation29_spill] sm:$0xff] %v9877_v16  ;;  %3682 = vmatmul.bf16.vlgmr.msrb.gmra.mxu1 %v9175_v52  ;;  %4343 = vmatmul.bf16.gmra.mxu0 %v9569_v26  ;;  %v9909_v16 = vsel %vm1321_vm6, %v3798_v37, %v3799_v33  ;;  %v3801_v37 = vrot.slane %v9267_v56, 1 }
 0x492   : > { %3964 = vmatmul.bf16.vlgmr.msrb.gmra.mxu2 %v9870_v22  ;;  %v7333_v22 = vor.u32 %v7762_v18, %v7330_v5  ;;  %12316 = vst [vmem:[#allocation8_spill] sm:$0xff] %v9909_v16  ;;  %4385 = vmatpush.bf16.msra.mxu1 %v7253_v20 }
 0x494   : > { %4737 = vmatpush.bf16.msra.mxu3 %v7333_v22 }
 0x495   : > { %v9888_v58 = vpop.f32.mrf.mxu2  ;;  %v3636_v55 = vpop.f32.mrf.mxu3 }
 0x496   : > { %v3378_v41 = vpop.f32.mrf.mxu1  ;;  %v9897_v14 = vpop.f32.mrf.mxu0 }
 0x497   : > { %12313 = vst [vmem:[#allocation2_spill] sm:$0xff] %v9897_v14  ;;  %v9899_v52 = vadd.f32 %v3636_v55, %v3378_v41  ;;  %v3802_v14 = vrot.slane %v12322_v0, 1 }
 0x499   : > { %12314 = vst [vmem:[#allocation35_spill] sm:$0xff] %v9899_v52 }
 0x49a   : > { %4058 = vmatmul.bf16.gmra.mxu3 %v9909_v16 }
 0x49d   : > { %v9912_v55 = vpop.f32.mrf.mxu2  ;;  %v3639_v18 = vpop.f32.mrf.mxu3 }
 0x49e   : > { %12317 = vst [vmem:[#allocation16_spill] sm:$0xff] %v9912_v55  ;;  %v3381_v5 = vpop.f32.mrf.mxu1  ;;  %v9914_v41 = vpop.f32.mrf.mxu0 }
 0x49f   : > { %12318 = vst [vmem:[#allocation18_spill] sm:$0xff] %v9914_v41  ;;  %v9916_v34 = vadd.f32 %v3639_v18, %v3381_v5  ;;  %v9930_v18 = vsel %vm1321_vm6, %v3801_v37, %v3802_v14  ;;  %v7320_v14 = vld [vmem:[%s11939_s6 + $0x250] sm:$0xf] }
 0x4a0   : > { %12324 = vst [vmem:[#allocation15_spill] sm:$0xff] %v9930_v18 }
 0x4a1   : > { %12319 = vst [vmem:[#allocation4_spill] sm:$0xff] %v9916_v34  ;;  %3687 = vmatmul.bf16.gmra.mxu1 %v9233_v36  ;;  %4348 = vmatmul.bf16.gmra.mxu0 %v9614_v45 }
 0x4a2   : > { %3969 = vmatmul.bf16.gmra.mxu2 %v9909_v16 }
 0x4a5   : > { %v9921_v63 = vpop.f32.mrf.mxu2  ;;  %v3641_v22 = vpop.f32.mrf.mxu3 }
 0x4a6   : > { %12320 = vst [vmem:[#allocation71_spill] sm:$0xff] %v9921_v63  ;;  %v3383_v20 = vpop.f32.mrf.mxu1  ;;  %v9924_v33 = vpop.f32.mrf.mxu0 }
 0x4a7   : > { %12321 = vst [vmem:[#allocation11_spill] sm:$0xff] %v9924_v33  ;;  %v9927_v52 = vadd.f32 %v3641_v22, %v3383_v20  ;;  %v7761_v22 = vld [vmem:[%s11939_s6 + $0x254] sm:$0xf0] }
 0x4a8   : > { %v7321_v37 = vor.u32 %v7761_v22, %v7320_v14  ;;  %v3805_v14 = vrot.slane %v9291_v11, 1 }
 0x4a9   : > { %12323 = vst [vmem:[#allocation6_spill] sm:$0xff] %v9927_v52 }
 0x4aa   : > { %4063 = vmatmul.bf16.gmra.mxu3 %v9930_v18  ;;  %4649 = vmatpush.bf16.msra.mxu2 %v7321_v37  ;;  %v7744_v37 = vld [vmem:[%s11939_s6 + $0x1d4] sm:$0xf] }
 0x4ad   : > { %v9933_v5 = vpop.f32.mrf.mxu2  ;;  %v3644_v41 = vpop.f32.mrf.mxu3 }
 0x4ae   : > { %12325 = vst [vmem:[#allocation9_spill] sm:$0xff] %v9933_v5  ;;  %v3386_v34 = vpop.f32.mrf.mxu1  ;;  %v9935_v63 = vpop.f32.mrf.mxu0 }
 0x4af   : > { %12326 = vst [vmem:[#allocation19_spill] sm:$0xff] %v9935_v63  ;;  %v9937_v55 = vadd.f32 %v3644_v41, %v3386_v34  ;;  %v3804_v41 = vrot.slane %v9296_v57, 1  ;;  %v7760_v34 = vld [vmem:[%s11939_s6 + $0x254] sm:$0xf]  ;;  %v7322_v63 = vld [vmem:[%s11939_s6 + $0x258] sm:$0xf0] }
 0x4b0   : > { %v7325_v52 = vor.u32 %v7760_v34, %v7322_v63 }
 0x4b1   : > { %12327 = vst [vmem:[#allocation41_spill] sm:$0xff] %v9937_v55  ;;  %3692 = vmatmul.bf16.gmra.mxu1 %v9267_v56  ;;  %4353 = vmatmul.bf16.gmra.mxu0 %v9653_v30  ;;  %v9969_v56 = vsel %vm1321_vm6, %v3804_v41, %v3805_v14  ;;  %v3807_v41 = vrot.slane %v9334_v12, 1 }
 0x4b2   : > { %3974 = vmatmul.bf16.gmra.mxu2 %v9930_v18  ;;  %4738 = vmatpush.bf16.msra.mxu3 %v7325_v52  ;;  %12331 = vst [vmem:[#allocation20_spill] sm:$0xff] %v9969_v56 }
 0x4b5   : > { %v9948_v20 = vpop.f32.mrf.mxu2  ;;  %v3646_v0 = vpop.f32.mrf.mxu3 }
 0x4b6   : > { %12328 = vst [vmem:[#allocation22_spill] sm:$0xff] %v9948_v20  ;;  %v3388_v33 = vpop.f32.mrf.mxu1  ;;  %v9957_v55 = vpop.f32.mrf.mxu0  ;;  %v7242_v20 = vld [vmem:[%s11939_s6 + $0x1d8] sm:$0xf0] }
 0x4b7   : > { %12329 = vst [vmem:[#allocation24_spill] sm:$0xff] %v9957_v55  ;;  %v9960_v22 = vadd.f32 %v3646_v0, %v3388_v33  ;;  %v7245_v5 = vor.u32 %v7744_v37, %v7242_v20  ;;  %v3808_v37 = vrot.slane %v9330_v54, 1  ;;  %v7781_v54 = vld [vmem:[%s11939_s6 + $0x2f4] sm:$0xf0] }
 0x4b9   : > { %12330 = vst [vmem:[#allocation28_spill] sm:$0xff] %v9960_v22  ;;  %4386 = vmatpush.bf16.msra.mxu1 %v7245_v5 }
 0x4ba   : > { %4068 = vmatmul.bf16.gmra.mxu3 %v9969_v56 }
 0x4bd   : > { %v9972_v63 = vpop.f32.mrf.mxu2  ;;  %v3649_v11 = vpop.f32.mrf.mxu3 }
 0x4be   : > { %12332 = vst [vmem:[#allocation30_spill] sm:$0xff] %v9972_v63  ;;  %v3391_v33 = vpop.f32.mrf.mxu1  ;;  %v9974_v0 = vpop.f32.mrf.mxu0 }
 0x4bf   : > { %12333 = vst [vmem:[#allocation32_spill] sm:$0xff] %v9974_v0  ;;  %v9976_v34 = vadd.f32 %v3649_v11, %v3391_v33  ;;  %v9990_v11 = vsel %vm1321_vm6, %v3807_v41, %v3808_v37 }
 0x4c0   : > { %12338 = vst [vmem:[#allocation26_spill] sm:$0xff] %v9990_v11 }
 0x4c1   : > { %12334 = vst [vmem:[#allocation21_spill] sm:$0xff] %v9976_v34  ;;  %3697 = vmatmul.bf16.gmra.mxu1 %v9296_v57  ;;  %4358 = vmatmul.bf16.gmra.mxu0 %v9703_v24  ;;  %v7234_v57 = vld [vmem:[%s11939_s6 + $0x1c8] sm:$0xf0] }
 0x4c2   : > { %3979 = vmatmul.bf16.gmra.mxu2 %v9969_v56 }
 0x4c5   : > { %v9981_v52 = vpop.f32.mrf.mxu2  ;;  %v3651_v20 = vpop.f32.mrf.mxu3 }
 0x4c6   : > { %12335 = vst [vmem:[#allocation37_spill] sm:$0xff] %v9981_v52  ;;  %v3393_v5 = vpop.f32.mrf.mxu1  ;;  %v9984_v14 = vpop.f32.mrf.mxu0 }
 0x4c7   : > { %12336 = vst [vmem:[#allocation25_spill] sm:$0xff] %v9984_v14  ;;  %v9987_v55 = vadd.f32 %v3651_v20, %v3393_v5  ;;  %v7416_v14 = vld [vmem:[%s11939_s6 + $0x2f0] sm:$0xf]  ;;  %v7408_v5 = vld [vmem:[%s11939_s6 + $0x2e0] sm:$0xf] }
 0x4c8   : > { %v7417_v20 = vor.u32 %v7781_v54, %v7416_v14  ;;  %v7779_v14 = vld [vmem:[%s11939_s6 + $0x2e4] sm:$0xf0] }
 0x4c9   : > { %12337 = vst [vmem:[#allocation36_spill] sm:$0xff] %v9987_v55 }
 0x4ca   : > { %4073 = vmatmul.bf16.gmra.mxu3 %v9990_v11  ;;  %4992 = vmatpush.bf16.msrb.mxu0 %v7417_v20  ;;  %v7314_v20 = vld [vmem:[%s11939_s6 + $0x248] sm:$0xf0] }
 0x4cd   : > { %v9993_v33 = vpop.f32.mrf.mxu2  ;;  %v3654_v0 = vpop.f32.mrf.mxu3 }
 0x4ce   : > { %12339 = vst [vmem:[#allocation27_spill] sm:$0xff] %v9993_v33  ;;  %v3396_v34 = vpop.f32.mrf.mxu1  ;;  %v9995_v52 = vpop.f32.mrf.mxu0 }
 0x4cf   : > { %12340 = vst [vmem:[#allocation43_spill] sm:$0xff] %v9995_v52  ;;  %v9997_v22 = vadd.f32 %v3654_v0, %v3396_v34  ;;  %v7312_v0 = vld [vmem:[%s11939_s6 + $0x240] sm:$0xf]  ;;  %v7759_v34 = vld [vmem:[%s11939_s6 + $0x244] sm:$0xf0]  ;;  %v3810_v52 = vrot.slane %v9390_v1, 1 }
 0x4d0   : > { %v7313_v41 = vor.u32 %v7759_v34, %v7312_v0  ;;  %v7409_v0 = vor.u32 %v7779_v14, %v7408_v5  ;;  %v7400_v5 = vld [vmem:[%s11939_s6 + $0x2d0] sm:$0xf] }
 0x4d1   : > { %12341 = vst [vmem:[#allocation42_spill] sm:$0xff] %v9997_v22  ;;  %3702 = vmatmul.bf16.gmra.mxu1 %v9334_v12  ;;  %4363 = vmatmul.bf16.gmra.mxu0 %v9742_v42  ;;  %v7758_v22 = vld [vmem:[%s11939_s6 + $0x244] sm:$0xf]  ;;  %v12344_v12 = vld [vmem:[#allocation49_spill] sm:$0xff] }
 0x4d2   : > { %3984 = vmatmul.bf16.gmra.mxu2 %v9990_v11  ;;  %v7317_v33 = vor.u32 %v7758_v22, %v7314_v20  ;;  %v3811_v63 = vrot.slane %v12344_v12, 1  ;;  %4993 = vmatpush.bf16.msrb.mxu0 %v7409_v0  ;;  %v7777_v12 = vld [vmem:[%s11939_s6 + $0x2d4] sm:$0xf0] }
 0x4d3   : > { %4650 = vmatpush.bf16.msra.mxu2 %v7313_v41  ;;  %v7742_v41 = vld [vmem:[%s11939_s6 + $0x1c4] sm:$0xf]  ;;  %v7401_v14 = vor.u32 %v7777_v12, %v7400_v5  ;;  %v7376_v12 = vld [vmem:[%s11939_s6 + $0x2a0] sm:$0xf] }
 0x4d4   : > { %4739 = vmatpush.bf16.msra.mxu3 %v7317_v33  ;;  %v7237_v36 = vor.u32 %v7742_v41, %v7234_v57  ;;  %v10047_v22 = vsel %vm1321_vm6, %v3810_v52, %v3811_v63  ;;  %v7392_v57 = vld [vmem:[%s11939_s6 + $0x2c0] sm:$0xf]  ;;  %v7775_v33 = vld [vmem:[%s11939_s6 + $0x2c4] sm:$0xf0]  ;;  %v7773_v41 = vld [vmem:[%s11939_s6 + $0x2b4] sm:$0xf0] }
 0x4d5   : > { %v10020_v37 = vpop.f32.mrf.mxu2  ;;  %v3656_v54 = vpop.f32.mrf.mxu3  ;;  %12345 = vst [vmem:[#allocation49_spill] sm:$0xff] %v10047_v22  ;;  %v7393_v0 = vor.u32 %v7775_v33, %v7392_v57 }
 0x4d6   : > { %12342 = vst [vmem:[#allocation34_spill] sm:$0xff] %v10020_v37  ;;  %v3398_v34 = vpop.f32.mrf.mxu1  ;;  %v10029_v55 = vpop.f32.mrf.mxu0  ;;  %4387 = vmatpush.bf16.msra.mxu1 %v7237_v36  ;;  %4994 = vmatpush.bf16.msrb.mxu0 %v7401_v14  ;;  %v7384_v36 = vld [vmem:[%s11939_s6 + $0x2b0] sm:$0xf]  ;;  %v7771_v14 = vld [vmem:[%s11939_s6 + $0x2a4] sm:$0xf0] }
 0x4d7   : > { %12343 = vst [vmem:[#allocation47_spill] sm:$0xff] %v10029_v55  ;;  %v10032_v37 = vadd.f32 %v3656_v54, %v3398_v34  ;;  %v7385_v5 = vor.u32 %v7773_v41, %v7384_v36  ;;  %v3814_v36 = vrot.slane %v9442_v15, 1  ;;  %v7769_v55 = vld [vmem:[%s11939_s6 + $0x294] sm:$0xf0]  ;;  %v7360_v15 = vld [vmem:[%s11939_s6 + $0x280] sm:$0xf] }
 0x4da   : > { %4078 = vmatmul.bf16.gmra.mxu3 %v10047_v22  ;;  %4995 = vmatpush.bf16.msrb.mxu0 %v7393_v0  ;;  %v7377_v0 = vor.u32 %v7771_v14, %v7376_v12  ;;  %v7767_v14 = vld [vmem:[%s11939_s6 + $0x284] sm:$0xf0] }
 0x4dd   : > { %v10056_v54 = vpop.f32.mrf.mxu2  ;;  %v3659_v20 = vpop.f32.mrf.mxu3 }
 0x4de   : > { %v3401_v34 = vpop.f32.mrf.mxu1  ;;  %v10058_v63 = vpop.f32.mrf.mxu0  ;;  %4996 = vmatpush.bf16.msrb.mxu0 %v7385_v5  ;;  %v7368_v5 = vld [vmem:[%s11939_s6 + $0x290] sm:$0xf] }
 0x4df   : > { %12346 = vst [vmem:[#allocation72_spill] sm:$0xff] %v10058_v63  ;;  %v10060_v52 = vadd.f32 %v3659_v20, %v3401_v34  ;;  %v3813_v20 = vrot.slane %v9452_v40, 1  ;;  %v7369_v12 = vor.u32 %v7769_v55, %v7368_v5  ;;  %v7304_v55 = vld [vmem:[%s11939_s6 + $0x230] sm:$0xf] }
 0x4e1   : > { %12347 = vst [vmem:[#allocation73_spill] sm:$0xff] %v10060_v52  ;;  %3707 = vmatmul.bf16.gmra.mxu1 %v9390_v1  ;;  %4368 = vmatmul.bf16.gmra.mxu0 %v9793_v13  ;;  %v10092_v52 = vsel %vm1321_vm6, %v3813_v20, %v3814_v36  ;;  %v7757_v36 = vld [vmem:[%s11939_s6 + $0x234] sm:$0xf0] }
 0x4e2   : > { %3989 = vmatmul.bf16.gmra.mxu2 %v10047_v22  ;;  %4997 = vmatpush.bf16.msrb.mxu0 %v7377_v0  ;;  %12351 = vst [vmem:[#allocation77_spill] sm:$0xff] %v10092_v52  ;;  %v7305_v5 = vor.u32 %v7757_v36, %v7304_v55  ;;  %v3817_v55 = vrot.slane %v9486_v47, 1  ;;  %v2924_v47 = vshll.u32 %v9858_v50, 16 }
 0x4e4   : > { %4651 = vmatpush.bf16.msra.mxu2 %v7305_v5  ;;  %v7740_v5 = vld [vmem:[%s11939_s6 + $0x1b4] sm:$0xf] }
 0x4e5   : > { %v10077_v57 = vpop.f32.mrf.mxu2  ;;  %v3661_v33 = vpop.f32.mrf.mxu3 }
 0x4e6   : > { %12348 = vst [vmem:[#allocation74_spill] sm:$0xff] %v10077_v57  ;;  %v3403_v34 = vpop.f32.mrf.mxu1  ;;  %v10080_v63 = vpop.f32.mrf.mxu0  ;;  %4998 = vmatpush.bf16.msrb.mxu0 %v7369_v12  ;;  %v2921_v12 = vshrl.u32 %v9858_v50, 16 }
 0x4e7   : > { %12349 = vst [vmem:[#allocation75_spill] sm:$0xff] %v10080_v63  ;;  %v10083_v41 = vadd.f32 %v3661_v33, %v3403_v34  ;;  %v7361_v34 = vor.u32 %v7767_v14, %v7360_v15  ;;  %v3816_v14 = vrot.slane %v9493_v21, 1 }
 0x4e9   : > { %12350 = vst [vmem:[#allocation76_spill] sm:$0xff] %v10083_v41  ;;  %v10140_v57 = vsel %vm1321_vm6, %v3816_v14, %v3817_v55 }
 0x4ea   : > { %4083 = vmatmul.bf16.gmra.mxu3 %v10092_v52  ;;  %4999 = vmatpush.bf16.msrb.mxu0 %v7361_v34  ;;  %12358 = vst [vmem:[#allocation84_spill] sm:$0xff] %v10140_v57 }
 0x4ed   : > { %v10101_v33 = vpop.f32.mrf.mxu2  ;;  %v3664_v0 = vpop.f32.mrf.mxu3 }
 0x4ee   : > { %12352 = vst [vmem:[#allocation78_spill] sm:$0xff] %v10101_v33  ;;  %v3406_v63 = vpop.f32.mrf.mxu1  ;;  %v10103_v41 = vpop.f32.mrf.mxu0  ;;  %v10137_v33 = vrot.slane %v2921_v12, 7 }
 0x4ef   : > { %12353 = vst [vmem:[#allocation79_spill] sm:$0xff] %v10103_v41  ;;  %v10105_v20 = vadd.f32 %v3664_v0, %v3406_v63  ;;  %v7756_v41 = vld [vmem:[%s11939_s6 + $0x234] sm:$0xf] }
 0x4f1   : > { %12354 = vst [vmem:[#allocation80_spill] sm:$0xff] %v10105_v20  ;;  %3712 = vmatmul.bf16.gmra.mxu1 %v9452_v40  ;;  %4373 = vmatmul.bf16.gmra.mxu0 %v9844_v8  ;;  %v7306_v20 = vld [vmem:[%s11939_s6 + $0x238] sm:$0xf0] }
 0x4f2   : > { %3994 = vmatmul.bf16.gmra.mxu2 %v10092_v52 }
 0x4f5   : > { %v10117_v63 = vpop.f32.mrf.mxu2  ;;  %v3666_v15 = vpop.f32.mrf.mxu3 }
 0x4f6   : > { %12355 = vst [vmem:[#allocation81_spill] sm:$0xff] %v10117_v63  ;;  %v3408_v0 = vpop.f32.mrf.mxu1  ;;  %v10120_v34 = vpop.f32.mrf.mxu0  ;;  %v7309_v63 = vor.u32 %v7756_v41, %v7306_v20  ;;  %v2926_v41 = vor.u32 %v2924_v47, %v10137_v33 }
 0x4f7   : > { %12356 = vst [vmem:[#allocation82_spill] sm:$0xff] %v10120_v34  ;;  %v10129_v36 = vadd.f32 %v3666_v15, %v3408_v0  ;;  %v7226_v34 = vld [vmem:[%s11939_s6 + $0x1b8] sm:$0xf0] }
 0x4f8   : > { %v7229_v40 = vor.u32 %v7740_v5, %v7226_v34  ;;  %4740 = vmatpush.bf16.msra.mxu3 %v7309_v63  ;;  %v10153_v14 = vsel %vm7971_vm3, 0, %v2926_v41  ;;  %v3819_v63 = vrot.slane %v9532_v51, 1  ;;  %v3820_v5 = vrot.slane %v9528_v61, 1 }
 0x4f9   : > { %12357 = vst [vmem:[#allocation83_spill] sm:$0xff] %v10129_v36 }
 0x4fa   : > { %4088 = vmatmul.bf16.gmra.mxu3 %v10140_v57  ;;  %4388 = vmatpush.bf16.msra.mxu1 %v7229_v40  ;;  %v10167_v41 = vsel %vm1321_vm6, %v3819_v63, %v3820_v5  ;;  %v7755_v63 = vld [vmem:[%s11939_s6 + $0x224] sm:$0xf0] }
 0x4fb   : > { %12363 = vst [vmem:[#allocation89_spill] sm:$0xff] %v10167_v41 }
 0x4fd   : > { %v10145_v20 = vpop.f32.mrf.mxu2  ;;  %v3669_v15 = vpop.f32.mrf.mxu3 }
 0x4fe   : > { %v3411_v0 = vpop.f32.mrf.mxu1  ;;  %v10147_v36 = vpop.f32.mrf.mxu0 }
 0x4ff   : > { %12359 = vst [vmem:[#allocation85_spill] sm:$0xff] %v10147_v36  ;;  %v10149_v12 = vadd.f32 %v3669_v15, %v3411_v0 }
 0x501   : > { %12360 = vst [vmem:[#allocation86_spill] sm:$0xff] %v10149_v12  ;;  %3717 = vmatmul.bf16.gmra.mxu1 %v9493_v21  ;;  %4378 = vmatmul.bf16.gmra.mxu0 %v10153_v14 }
 0x502   : > { %3999 = vmatmul.bf16.gmra.mxu2 %v10140_v57 }
 0x505   : > { %v10158_v40 = vpop.f32.mrf.mxu2  ;;  %v3671_v50 = vpop.f32.mrf.mxu3 }
 0x506   : > { %12361 = vst [vmem:[#allocation87_spill] sm:$0xff] %v10158_v40  ;;  %v3413_v34 = vpop.f32.mrf.mxu1  ;;  %v10161_v55 = vpop.f32.mrf.mxu0 }
 0x507   : > { %12362 = vst [vmem:[#allocation88_spill] sm:$0xff] %v10161_v55  ;;  %v10164_v47 = vadd.f32 %v3671_v50, %v3413_v34  ;;  %v7296_v50 = vld [vmem:[%s11939_s6 + $0x220] sm:$0xf]  ;;  %v7298_v55 = vld [vmem:[%s11939_s6 + $0x228] sm:$0xf0] }
 0x508   : > { %v7297_v34 = vor.u32 %v7755_v63, %v7296_v50  ;;  %v3823_v50 = vrot.slane %v9565_v39, 1 }
 0x50a   : > { %4093 = vmatmul.bf16.gmra.mxu3 %v10167_v41  ;;  %4652 = vmatpush.bf16.msra.mxu2 %v7297_v34  ;;  %v7218_v34 = vld [vmem:[%s11939_s6 + $0x1a8] sm:$0xf0] }
 0x50d   : > { %v10170_v15 = vpop.f32.mrf.mxu2  ;;  %v4054_v0 = vpop.f32.mrf.mxu3 }
 0x50e   : > { %v3683_v36 = vpop.f32.mrf.mxu1  ;;  %v10172_v12 = vpop.f32.mrf.mxu0 }
 0x50f   : > { %12364 = vst [vmem:[#allocation90_spill] sm:$0xff] %v10172_v12  ;;  %v3684_v40 = vadd.f32 %v3683_v36, %v9555_v6  ;;  %v3822_v6 = vrot.slane %v9569_v26, 1 }
 0x511   : > { %3722 = vmatmul.bf16.gmra.mxu1 %v9532_v51  ;;  %5000 = vmatmul.bf16.vlgmr.msrb.gmra.mxu0 %v9909_v16  ;;  %v10177_v61 = vadd.f32 %v4054_v0, %v3684_v40  ;;  %v7754_v16 = vld [vmem:[%s11939_s6 + $0x224] sm:$0xf] }
 0x512   : > { %4004 = vmatmul.bf16.gmra.mxu2 %v10167_v41 }
 0x513   : > { %12365 = vst [vmem:[#allocation91_spill] sm:$0xff] %v10177_v61  ;;  %v7301_v61 = vor.u32 %v7754_v16, %v7298_v55 }
 0x515   : > { %v3965_v5 = vpop.f32.mrf.mxu2  ;;  %v4056_v12 = vpop.f32.mrf.mxu3  ;;  %4741 = vmatpush.bf16.msra.mxu3 %v7301_v61 }
 0x516   : > { %v10188_v36 = vadd.f32 %v3965_v5, %v9488_v27  ;;  %v3685_v40 = vpop.f32.mrf.mxu1  ;;  %v10190_v0 = vpop.f32.mrf.mxu0  ;;  %v7738_v27 = vld [vmem:[%s11939_s6 + $0x1a4] sm:$0xf] }
 0x517   : > { %12367 = vst [vmem:[#allocation93_spill] sm:$0xff] %v10190_v0  ;;  %v3686_v63 = vadd.f32 %v3685_v40, %v9590_v59  ;;  %v7221_v5 = vor.u32 %v7738_v27, %v7218_v34  ;;  %v10207_v0 = vsel %vm1321_vm6, %v3822_v6, %v3823_v50  ;;  %v3825_v50 = vrot.slane %v9614_v45, 1 }
 0x518   : > { %12366 = vst [vmem:[#allocation92_spill] sm:$0xff] %v10188_v36 }
 0x519   : > { %12368 = vst [vmem:[#allocation94_spill] sm:$0xff] %v10207_v0  ;;  %v10209_v36 = vadd.f32 %v4056_v12, %v3686_v63  ;;  %4389 = vmatpush.bf16.msra.mxu1 %v7221_v5  ;;  %v12373_v5 = vld [vmem:[#allocation60_spill] sm:$0xff] }
 0x51a   : > { %4098 = vmatmul.bf16.gmra.mxu3 %v10207_v0 }
 0x51d   : > { %v10212_v39 = vpop.f32.mrf.mxu2  ;;  %v4059_v59 = vpop.f32.mrf.mxu3 }
 0x51e   : > { %12369 = vst [vmem:[#allocation95_spill] sm:$0xff] %v10212_v39  ;;  %v3688_v16 = vpop.f32.mrf.mxu1  ;;  %v10214_v55 = vpop.f32.mrf.mxu0 }
 0x51f   : > { %12370 = vst [vmem:[#allocation96_spill] sm:$0xff] %v10214_v55  ;;  %v3689_v40 = vadd.f32 %v3688_v16, %v9604_v60  ;;  %v3826_v60 = vrot.slane %v12373_v5, 1 }
 0x521   : > { %3727 = vmatmul.bf16.gmra.mxu1 %v9569_v26  ;;  %5005 = vmatmul.bf16.gmra.mxu0 %v9930_v18  ;;  %v10219_v6 = vadd.f32 %v4059_v59, %v3689_v40  ;;  %v10231_v55 = vsel %vm1321_vm6, %v3825_v50, %v3826_v60  ;;  %v12379_v60 = vld [vmem:[#allocation64_spill] sm:$0xff] }
 0x522   : > { %4009 = vmatmul.bf16.gmra.mxu2 %v10207_v0  ;;  %12374 = vst [vmem:[#allocation60_spill] sm:$0xff] %v10231_v55 }
 0x523   : > { %12371 = vst [vmem:[#allocation97_spill] sm:$0xff] %v10219_v6  ;;  %v12375_v6 = vld [vmem:[#allocation58_spill] sm:$0xff] }
 0x525   : > { %v3970_v12 = vpop.f32.mrf.mxu2  ;;  %v4061_v61 = vpop.f32.mrf.mxu3 }
 0x526   : > { %v10224_v63 = vadd.f32 %v3970_v12, %v9593_v48  ;;  %v3690_v27 = vpop.f32.mrf.mxu1  ;;  %v10226_v34 = vpop.f32.mrf.mxu0 }
 0x527   : > { %12372 = vst [vmem:[#allocation98_spill] sm:$0xff] %v10226_v34  ;;  %v3691_v16 = vadd.f32 %v3690_v27, %v9629_v44 }
 0x529   : > { %v10233_v59 = vadd.f32 %v4061_v61, %v3691_v16  ;;  %v7288_v61 = vld [vmem:[%s11939_s6 + $0x210] sm:$0xf] }
 0x52a   : > { %4103 = vmatmul.bf16.gmra.mxu3 %v10231_v55 }
 0x52d   : > { %v3972_v40 = vpop.f32.mrf.mxu2  ;;  %v4064_v18 = vpop.f32.mrf.mxu3 }
 0x52e   : > { %v10237_v39 = vadd.f32 %v3972_v40, %v12375_v6  ;;  %v3693_v48 = vpop.f32.mrf.mxu1  ;;  %v10239_v12 = vpop.f32.mrf.mxu0  ;;  %v7753_v6 = vld [vmem:[%s11939_s6 + $0x214] sm:$0xf0]  ;;  %v7752_v40 = vld [vmem:[%s11939_s6 + $0x214] sm:$0xf] }
 0x52f   : > { %12377 = vst [vmem:[#allocation99_spill] sm:$0xff] %v10239_v12  ;;  %v3694_v34 = vadd.f32 %v3693_v48, %v9643_v62  ;;  %v7289_v50 = vor.u32 %v7753_v6, %v7288_v61  ;;  %v3828_v62 = vrot.slane %v9653_v30, 1  ;;  %v7290_v48 = vld [vmem:[%s11939_s6 + $0x218] sm:$0xf0]  ;;  %v12382_v61 = vld [vmem:[#allocation68_spill] sm:$0xff] }
 0x530   : > { %12376 = vst [vmem:[#allocation58_spill] sm:$0xff] %v10237_v39  ;;  %v3829_v6 = vrot.slane %v12382_v61, 1 }
 0x531   : > { %3732 = vmatmul.bf16.gmra.mxu1 %v9614_v45  ;;  %5010 = vmatmul.bf16.gmra.mxu0 %v9969_v56  ;;  %v10244_v44 = vadd.f32 %v4064_v18, %v3694_v34  ;;  %v7293_v56 = vor.u32 %v7752_v40, %v7290_v48  ;;  %v12384_v40 = vld [vmem:[#allocation66_spill] sm:$0xff] }
 0x532   : > { %4014 = vmatmul.bf16.gmra.mxu2 %v10231_v55 }
 0x533   : > { %12378 = vst [vmem:[#allocation100_spill] sm:$0xff] %v10244_v44  ;;  %4653 = vmatpush.bf16.msra.mxu2 %v7289_v50  ;;  %v7736_v50 = vld [vmem:[%s11939_s6 + $0x194] sm:$0xf]  ;;  %4742 = vmatpush.bf16.msra.mxu3 %v7293_v56 }
 0x535   : > { %v3975_v27 = vpop.f32.mrf.mxu2  ;;  %v4066_v5 = vpop.f32.mrf.mxu3 }
 0x536   : > { %v10255_v16 = vadd.f32 %v3975_v27, %v12379_v60  ;;  %v3695_v18 = vpop.f32.mrf.mxu1  ;;  %v10257_v34 = vpop.f32.mrf.mxu0  ;;  %v7210_v27 = vld [vmem:[%s11939_s6 + $0x198] sm:$0xf0] }
 0x537   : > { %12381 = vst [vmem:[#allocation101_spill] sm:$0xff] %v10257_v34  ;;  %v3696_v12 = vadd.f32 %v3695_v18, %v9674_v2  ;;  %v7213_v60 = vor.u32 %v7736_v50, %v7210_v27  ;;  %v10274_v34 = vsel %vm1321_vm6, %v3828_v62, %v3829_v6  ;;  %v3831_v62 = vrot.slane %v9703_v24, 1 }
 0x538   : > { %12380 = vst [vmem:[#allocation64_spill] sm:$0xff] %v10255_v16 }
 0x539   : > { %12383 = vst [vmem:[#allocation68_spill] sm:$0xff] %v10274_v34  ;;  %v10276_v16 = vadd.f32 %v4066_v5, %v3696_v12  ;;  %4390 = vmatpush.bf16.msra.mxu1 %v7213_v60 }
 0x53a   : > { %4108 = vmatmul.bf16.gmra.mxu3 %v10274_v34 }
 0x53d   : > { %v3977_v2 = vpop.f32.mrf.mxu2  ;;  %v4069_v18 = vpop.f32.mrf.mxu3 }
 0x53e   : > { %v10280_v48 = vadd.f32 %v3977_v2, %v12384_v40  ;;  %v3698_v61 = vpop.f32.mrf.mxu1  ;;  %v10282_v44 = vpop.f32.mrf.mxu0 }
 0x53f   : > { %12385 = vst [vmem:[#allocation66_spill] sm:$0xff] %v10282_v44  ;;  %v3699_v39 = vadd.f32 %v3698_v61, %v9693_v23  ;;  %v3832_v23 = vrot.slane %v9697_v17, 1  ;;  %v12388_v61 = vld [vmem:[#allocation65_spill] sm:$0xff] }
 0x541   : > { %3737 = vmatmul.bf16.gmra.mxu1 %v9653_v30  ;;  %5015 = vmatmul.bf16.gmra.mxu0 %v9990_v11  ;;  %v10287_v56 = vadd.f32 %v4069_v18, %v3699_v39  ;;  %v10299_v2 = vsel %vm1321_vm6, %v3831_v62, %v3832_v23 }
 0x542   : > { %4019 = vmatmul.bf16.gmra.mxu2 %v10274_v34  ;;  %12387 = vst [vmem:[#allocation103_spill] sm:$0xff] %v10299_v2 }
 0x545   : > { %v3980_v12 = vpop.f32.mrf.mxu2  ;;  %v4071_v5 = vpop.f32.mrf.mxu3 }
 0x546   : > { %v10292_v6 = vadd.f32 %v3980_v12, %v9677_v35  ;;  %v3700_v50 = vpop.f32.mrf.mxu1  ;;  %v10294_v27 = vpop.f32.mrf.mxu0 }
 0x547   : > { %12386 = vst [vmem:[#allocation102_spill] sm:$0xff] %v10294_v27  ;;  %v3701_v60 = vadd.f32 %v3700_v50, %v9718_v32  ;;  %v7280_v32 = vld [vmem:[%s11939_s6 + $0x200] sm:$0xf] }
 0x549   : > { %v10301_v39 = vadd.f32 %v4071_v5, %v3701_v60  ;;  %v7751_v5 = vld [vmem:[%s11939_s6 + $0x204] sm:$0xf0]  ;;  %v12391_v60 = vld [vmem:[#allocation70_spill] sm:$0xff] }
 0x54a   : > { %4113 = vmatmul.bf16.gmra.mxu3 %v10299_v2  ;;  %v7281_v62 = vor.u32 %v7751_v5, %v7280_v32  ;;  %v12394_v32 = vld [vmem:[#allocation12_spill] sm:$0xff] }
 0x54b   : > { %v3835_v5 = vrot.slane %v12394_v32, 1 }
 0x54c   : > { %4654 = vmatpush.bf16.msra.mxu2 %v7281_v62  ;;  %v7734_v62 = vld [vmem:[%s11939_s6 + $0x184] sm:$0xf] }
 0x54d   : > { %v3982_v18 = vpop.f32.mrf.mxu2  ;;  %v4074_v40 = vpop.f32.mrf.mxu3 }
 0x54e   : > { %v10305_v44 = vadd.f32 %v3982_v18, %v12388_v61  ;;  %v3703_v35 = vpop.f32.mrf.mxu1  ;;  %v10307_v12 = vpop.f32.mrf.mxu0  ;;  %v7750_v61 = vld [vmem:[%s11939_s6 + $0x204] sm:$0xf] }
 0x54f   : > { %12389 = vst [vmem:[#allocation65_spill] sm:$0xff] %v10307_v12  ;;  %v3704_v27 = vadd.f32 %v3703_v35, %v9732_v49  ;;  %v3834_v49 = vrot.slane %v9742_v42, 1  ;;  %v7282_v35 = vld [vmem:[%s11939_s6 + $0x208] sm:$0xf0] }
 0x551   : > { %3742 = vmatmul.bf16.gmra.mxu1 %v9703_v24  ;;  %5020 = vmatmul.bf16.gmra.mxu0 %v10047_v22  ;;  %v10312_v17 = vadd.f32 %v4074_v40, %v3704_v27  ;;  %v7285_v22 = vor.u32 %v7750_v61, %v7282_v35  ;;  %v12396_v61 = vld [vmem:[#allocation3_spill] sm:$0xff] }
 0x552   : > { %4024 = vmatmul.bf16.gmra.mxu2 %v10299_v2 }
 0x553   : > { %12390 = vst [vmem:[#allocation104_spill] sm:$0xff] %v10312_v17  ;;  %4743 = vmatpush.bf16.msra.mxu3 %v7285_v22 }
 0x555   : > { %v3985_v50 = vpop.f32.mrf.mxu2  ;;  %v4076_v23 = vpop.f32.mrf.mxu3 }
 0x556   : > { %v10323_v18 = vadd.f32 %v3985_v50, %v12391_v60  ;;  %v3705_v27 = vpop.f32.mrf.mxu1  ;;  %v10325_v40 = vpop.f32.mrf.mxu0  ;;  %v7202_v50 = vld [vmem:[%s11939_s6 + $0x188] sm:$0xf0] }
 0x557   : > { %12393 = vst [vmem:[#allocation105_spill] sm:$0xff] %v10325_v40  ;;  %v3706_v12 = vadd.f32 %v3705_v27, %v9763_v31  ;;  %v7205_v60 = vor.u32 %v7734_v62, %v7202_v50  ;;  %v10342_v40 = vsel %vm1321_vm6, %v3834_v49, %v3835_v5  ;;  %v3837_v49 = vrot.slane %v9793_v13, 1 }
 0x558   : > { %12392 = vst [vmem:[#allocation70_spill] sm:$0xff] %v10323_v18 }
 0x559   : > { %12395 = vst [vmem:[#allocation12_spill] sm:$0xff] %v10342_v40  ;;  %v10344_v11 = vadd.f32 %v4076_v23, %v3706_v12  ;;  %4391 = vmatpush.bf16.msra.mxu1 %v7205_v60 }
 0x55a   : > { %4118 = vmatmul.bf16.gmra.mxu3 %v10342_v40 }
 0x55d   : > { %v3987_v31 = vpop.f32.mrf.mxu2  ;;  %v4079_v27 = vpop.f32.mrf.mxu3 }
 0x55e   : > { %v10348_v35 = vadd.f32 %v3987_v31, %v12396_v61  ;;  %v3708_v32 = vpop.f32.mrf.mxu1  ;;  %v10350_v18 = vpop.f32.mrf.mxu0 }
 0x55f   : > { %12397 = vst [vmem:[#allocation3_spill] sm:$0xff] %v10350_v18  ;;  %v3709_v17 = vadd.f32 %v3708_v32, %v9777_v38  ;;  %v3838_v38 = vrot.slane %v9781_v53, 1  ;;  %v12400_v32 = vld [vmem:[#allocation5_spill] sm:$0xff] }
 0x561   : > { %3747 = vmatmul.bf16.gmra.mxu1 %v9742_v42  ;;  %5025 = vmatmul.bf16.gmra.mxu0 %v10092_v52  ;;  %v10355_v22 = vadd.f32 %v4079_v27, %v3709_v17  ;;  %v10367_v31 = vsel %vm1321_vm6, %v3837_v49, %v3838_v38 }
 0x562   : > { %4029 = vmatmul.bf16.gmra.mxu2 %v10342_v40  ;;  %12399 = vst [vmem:[#allocation107_spill] sm:$0xff] %v10367_v31 }
 0x565   : > { %v3990_v12 = vpop.f32.mrf.mxu2  ;;  %v4081_v23 = vpop.f32.mrf.mxu3 }
 0x566   : > { %v10360_v5 = vadd.f32 %v3990_v12, %v9766_v25  ;;  %v3710_v62 = vpop.f32.mrf.mxu1  ;;  %v10362_v50 = vpop.f32.mrf.mxu0 }
 0x567   : > { %12398 = vst [vmem:[#allocation106_spill] sm:$0xff] %v10362_v50  ;;  %v3711_v60 = vadd.f32 %v3710_v62, %v9802_v4  ;;  %v7496_v4 = vld [vmem:[%s11939_s6 + $0x370] sm:$0xf] }
 0x569   : > { %v10369_v17 = vadd.f32 %v4081_v23, %v3711_v60  ;;  %v7797_v23 = vld [vmem:[%s11939_s6 + $0x374] sm:$0xf0] }
 0x56a   : > { %4123 = vmatmul.bf16.gmra.mxu3 %v10367_v31  ;;  %v7497_v49 = vor.u32 %v7797_v23, %v7496_v4 }
 0x56c   : > { %5331 = vmatpush.bf16.msrb.mxu2 %v7497_v49  ;;  %v7418_v49 = vld [vmem:[%s11939_s6 + $0x2f8] sm:$0xf0] }
 0x56d   : > { %v3992_v27 = vpop.f32.mrf.mxu2  ;;  %v4084_v61 = vpop.f32.mrf.mxu3 }
 0x56e   : > { %v10373_v18 = vadd.f32 %v3992_v27, %v12400_v32  ;;  %v3713_v25 = vpop.f32.mrf.mxu1  ;;  %v10375_v12 = vpop.f32.mrf.mxu0  ;;  %v7498_v32 = vld [vmem:[%s11939_s6 + $0x378] sm:$0xf0] }
 0x56f   : > { %12401 = vst [vmem:[#allocation5_spill] sm:$0xff] %v10375_v12  ;;  %v3714_v50 = vadd.f32 %v3713_v25, %v9822_v3  ;;  %v3840_v3 = vrot.slane %v9844_v8, 1  ;;  %v3841_v25 = vrot.slane %v9832_v9, 1 }
 0x571   : > { %3752 = vmatmul.bf16.gmra.mxu1 %v9793_v13  ;;  %5030 = vmatmul.bf16.gmra.mxu0 %v10140_v57  ;;  %v10380_v53 = vadd.f32 %v4084_v61, %v3714_v50  ;;  %v7796_v61 = vld [vmem:[%s11939_s6 + $0x374] sm:$0xf] }
 0x572   : > { %4034 = vmatmul.bf16.gmra.mxu2 %v10367_v31  ;;  %v7501_v23 = vor.u32 %v7796_v61, %v7498_v32 }
 0x574   : > { %5420 = vmatpush.bf16.msrb.mxu3 %v7501_v23 }
 0x575   : > { %v3995_v62 = vpop.f32.mrf.mxu2  ;;  %v4086_v38 = vpop.f32.mrf.mxu3 }
 0x576   : > { %v10391_v60 = vadd.f32 %v3995_v62, %v9805_v28  ;;  %v3715_v50 = vpop.f32.mrf.mxu1  ;;  %v10393_v27 = vpop.f32.mrf.mxu0  ;;  %v7780_v28 = vld [vmem:[%s11939_s6 + $0x2f4] sm:$0xf] }
 0x577   : > { %12402 = vst [vmem:[#allocation108_spill] sm:$0xff] %v10393_v27  ;;  %v3716_v4 = vadd.f32 %v3715_v50, %v9851_v43  ;;  %v7421_v62 = vor.u32 %v7780_v28, %v7418_v49  ;;  %v10410_v27 = vsel %vm1321_vm6, %v3840_v3, %v3841_v25  ;;  %v12404_v50 = vld [vmem:[#allocation10_spill] sm:$0xff] }
 0x578   : > { %12403 = vst [vmem:[#allocation109_spill] sm:$0xff] %v10410_v27 }
 0x579   : > { %v10412_v12 = vadd.f32 %v4086_v38, %v3716_v4  ;;  %5081 = vmatpush.bf16.msrb.mxu1 %v7421_v62 }
 0x57a   : > { %4128 = vmatmul.bf16.gmra.mxu3 %v10410_v27 }
 0x57d   : > { %v3997_v9 = vpop.f32.mrf.mxu2  ;;  %v4089_v43 = vpop.f32.mrf.mxu3 }
 0x57e   : > { %v10416_v61 = vadd.f32 %v3997_v9, %v12404_v50  ;;  %v3718_v32 = vpop.f32.mrf.mxu1  ;;  %v10418_v57 = vpop.f32.mrf.mxu0 }
 0x57f   : > { %12405 = vst [vmem:[#allocation10_spill] sm:$0xff] %v10418_v57  ;;  %v3719_v52 = vadd.f32 %v3718_v32, %v9865_v29  ;;  %v12407_v29 = vld [vmem:[#allocation38_spill] sm:$0xff] }
 0x581   : > { %3757 = vmatmul.bf16.gmra.mxu1 %v9844_v8  ;;  %5035 = vmatmul.bf16.gmra.mxu0 %v10167_v41  ;;  %v10423_v3 = vadd.f32 %v4089_v43, %v3719_v52  ;;  %v12418_v41 = vld [vmem:[#allocation35_spill] sm:$0xff] }
 0x582   : > { %4039 = vmatmul.bf16.gmra.mxu2 %v10410_v27 }
 0x585   : > { %v4000_v38 = vpop.f32.mrf.mxu2  ;;  %v4091_v25 = vpop.f32.mrf.mxu3 }
 0x586   : > { %v10427_v4 = vadd.f32 %v4000_v38, %v9853_v46  ;;  %v3720_v23 = vpop.f32.mrf.mxu1  ;;  %v10429_v28 = vpop.f32.mrf.mxu0  ;;  %v12410_v38 = vld [vmem:[#allocation48_spill] sm:$0xff] }
 0x587   : > { %12406 = vst [vmem:[#allocation110_spill] sm:$0xff] %v10429_v28  ;;  %v3721_v49 = vadd.f32 %v3720_v23, %v9873_v19  ;;  %v7488_v19 = vld [vmem:[%s11939_s6 + $0x360] sm:$0xf] }
 0x589   : > { %v10432_v62 = vadd.f32 %v4091_v25, %v3721_v49 }
 0x58a   : > { %4744 = vmatmul.bf16.vlgmr.msra.gmra.mxu3 %v12407_v29 }
 0x58d   : > { %v4002_v9 = vpop.f32.mrf.mxu2  ;;  %v4094_v50 = vpop.f32.mrf.mxu3 }
 0x58e   : > { %v10436_v52 = vadd.f32 %v4002_v9, %v9867_v7  ;;  %v3723_v43 = vpop.f32.mrf.mxu1  ;;  %v10438_v32 = vpop.f32.mrf.mxu0  ;;  %v7795_v7 = vld [vmem:[%s11939_s6 + $0x364] sm:$0xf0] }
 0x58f   : > { %12409 = vst [vmem:[#allocation111_spill] sm:$0xff] %v10438_v32  ;;  %v3724_v46 = vadd.f32 %v3723_v43, %v9888_v58  ;;  %v7489_v25 = vor.u32 %v7795_v7, %v7488_v19  ;;  %v12412_v58 = vld [vmem:[#allocation29_spill] sm:$0xff]  ;;  %v7778_v7 = vld [vmem:[%s11939_s6 + $0x2e4] sm:$0xf] }
 0x590   : > { %12408 = vst [vmem:[#allocation38_spill] sm:$0xff] %v10436_v52  ;;  %v12433_v52 = vld [vmem:[#allocation22_spill] sm:$0xff] }
 0x591   : > { %4392 = vmatmul.bf16.vlgmr.msra.gmra.mxu1 %v12410_v38  ;;  %5040 = vmatmul.bf16.gmra.mxu0 %v10207_v0  ;;  %v10443_v28 = vadd.f32 %v4094_v50, %v3724_v46  ;;  %v7490_v46 = vld [vmem:[%s11939_s6 + $0x368] sm:$0xf0]  ;;  %v12415_v38 = vld [vmem:[#allocation16_spill] sm:$0xff] }
 0x592   : > { %4655 = vmatmul.bf16.vlgmr.msra.gmra.mxu2 %v12407_v29  ;;  %v7794_v29 = vld [vmem:[%s11939_s6 + $0x364] sm:$0xf] }
 0x593   : > { %12411 = vst [vmem:[#allocation48_spill] sm:$0xff] %v10443_v28  ;;  %5332 = vmatpush.bf16.msrb.mxu2 %v7489_v25  ;;  %v7493_v19 = vor.u32 %v7794_v29, %v7490_v46  ;;  %v7410_v25 = vld [vmem:[%s11939_s6 + $0x2e8] sm:$0xf0] }
 0x594   : > { %v12422_v28 = vld [vmem:[#allocation39_spill] sm:$0xff] }
 0x595   : > { %v4005_v23 = vpop.f32.mrf.mxu2  ;;  %v4096_v49 = vpop.f32.mrf.mxu3  ;;  %5421 = vmatpush.bf16.msrb.mxu3 %v7493_v19 }
 0x596   : > { %v10453_v9 = vadd.f32 %v4005_v23, %v12412_v58  ;;  %v3725_v43 = vpop.f32.mrf.mxu1  ;;  %v10455_v50 = vpop.f32.mrf.mxu0  ;;  %v7413_v23 = vor.u32 %v7778_v7, %v7410_v25  ;;  %v12424_v7 = vld [vmem:[#allocation4_spill] sm:$0xff] }
 0x597   : > { %12414 = vst [vmem:[#allocation112_spill] sm:$0xff] %v10455_v50  ;;  %v3726_v32 = vadd.f32 %v3725_v43, %v12415_v38  ;;  %v12417_v50 = vld [vmem:[#allocation40_spill] sm:$0xff]  ;;  %v12421_v38 = vld [vmem:[#allocation71_spill] sm:$0xff] }
 0x598   : > { %12413 = vst [vmem:[#allocation29_spill] sm:$0xff] %v10453_v9  ;;  %5082 = vmatpush.bf16.msrb.mxu1 %v7413_v23  ;;  %v12427_v23 = vld [vmem:[#allocation9_spill] sm:$0xff] }
 0x599   : > { %v10470_v58 = vadd.f32 %v4096_v49, %v3726_v32 }
 0x59a   : > { %4749 = vmatmul.bf16.gmra.mxu3 %v12417_v50 }
 0x59b   : > { %12416 = vst [vmem:[#allocation16_spill] sm:$0xff] %v10470_v58 }
 0x59d   : > { %v4007_v0 = vpop.f32.mrf.mxu2  ;;  %v4099_v57 = vpop.f32.mrf.mxu3 }
 0x59e   : > { %v10474_v43 = vadd.f32 %v4007_v0, %v12418_v41  ;;  %v3728_v29 = vpop.f32.mrf.mxu1  ;;  %v10476_v46 = vpop.f32.mrf.mxu0 }
 0x59f   : > { %12420 = vst [vmem:[#allocation113_spill] sm:$0xff] %v10476_v46  ;;  %v3729_v9 = vadd.f32 %v3728_v29, %v12421_v38  ;;  %v12429_v29 = vld [vmem:[#allocation45_spill] sm:$0xff] }
 0x5a0   : > { %12419 = vst [vmem:[#allocation35_spill] sm:$0xff] %v10474_v43 }
 0x5a1   : > { %4397 = vmatmul.bf16.gmra.mxu1 %v12422_v28  ;;  %5045 = vmatmul.bf16.gmra.mxu0 %v10231_v55  ;;  %v10481_v19 = vadd.f32 %v4099_v57, %v3729_v9  ;;  %v12430_v57 = vld [vmem:[#allocation6_spill] sm:$0xff] }
 0x5a2   : > { %4660 = vmatmul.bf16.gmra.mxu2 %v12417_v50 }
 0x5a3   : > { %12423 = vst [vmem:[#allocation71_spill] sm:$0xff] %v10481_v19 }
 0x5a5   : > { %v4010_v32 = vpop.f32.mrf.mxu2  ;;  %v4101_v49 = vpop.f32.mrf.mxu3 }
 0x5a6   : > { %v10485_v25 = vadd.f32 %v4010_v32, %v12424_v7  ;;  %v3730_v41 = vpop.f32.mrf.mxu1  ;;  %v10487_v0 = vpop.f32.mrf.mxu0  ;;  %v12434_v7 = vld [vmem:[#allocation44_spill] sm:$0xff] }
 0x5a7   : > { %12426 = vst [vmem:[#allocation4_spill] sm:$0xff] %v10487_v0  ;;  %v3731_v46 = vadd.f32 %v3730_v41, %v12427_v23 }
 0x5a8   : > { %12425 = vst [vmem:[#allocation39_spill] sm:$0xff] %v10485_v25 }
 0x5a9   : > { %v10490_v43 = vadd.f32 %v4101_v49, %v3731_v46  ;;  %v7480_v46 = vld [vmem:[%s11939_s6 + $0x350] sm:$0xf]  ;;  %v7793_v49 = vld [vmem:[%s11939_s6 + $0x354] sm:$0xf0] }
 0x5aa   : > { %4754 = vmatmul.bf16.gmra.mxu3 %v12429_v29  ;;  %v7481_v41 = vor.u32 %v7793_v49, %v7480_v46  ;;  %v7776_v49 = vld [vmem:[%s11939_s6 + $0x2d4] sm:$0xf] }
 0x5ab   : > { %12428 = vst [vmem:[#allocation9_spill] sm:$0xff] %v10490_v43  ;;  %v12442_v43 = vld [vmem:[#allocation28_spill] sm:$0xff] }
 0x5ac   : > { %5333 = vmatpush.bf16.msrb.mxu2 %v7481_v41  ;;  %v7402_v41 = vld [vmem:[%s11939_s6 + $0x2d8] sm:$0xf0] }
 0x5ad   : > { %v4012_v38 = vpop.f32.mrf.mxu2  ;;  %v4104_v55 = vpop.f32.mrf.mxu3 }
 0x5ae   : > { %v10494_v9 = vadd.f32 %v4012_v38, %v12430_v57  ;;  %v3733_v19 = vpop.f32.mrf.mxu1  ;;  %v10496_v58 = vpop.f32.mrf.mxu0 }
 0x5af   : > { %12432 = vst [vmem:[#allocation114_spill] sm:$0xff] %v10496_v58  ;;  %v3734_v32 = vadd.f32 %v3733_v19, %v12433_v52  ;;  %v12436_v52 = vld [vmem:[#allocation41_spill] sm:$0xff] }
 0x5b0   : > { %12431 = vst [vmem:[#allocation6_spill] sm:$0xff] %v10494_v9  ;;  %v7482_v58 = vld [vmem:[%s11939_s6 + $0x358] sm:$0xf0] }
 0x5b1   : > { %4402 = vmatmul.bf16.gmra.mxu1 %v12434_v7  ;;  %5050 = vmatmul.bf16.gmra.mxu0 %v10274_v34  ;;  %v10501_v0 = vadd.f32 %v4104_v55, %v3734_v32  ;;  %v7792_v32 = vld [vmem:[%s11939_s6 + $0x354] sm:$0xf]  ;;  %v12439_v34 = vld [vmem:[#allocation30_spill] sm:$0xff] }
 0x5b2   : > { %4665 = vmatmul.bf16.gmra.mxu2 %v12429_v29  ;;  %v7485_v46 = vor.u32 %v7792_v32, %v7482_v58  ;;  %v12445_v32 = vld [vmem:[#allocation37_spill] sm:$0xff]  ;;  %v12446_v7 = vld [vmem:[#allocation46_spill] sm:$0xff] }
 0x5b3   : > { %12435 = vst [vmem:[#allocation22_spill] sm:$0xff] %v10501_v0 }
 0x5b4   : > { %5422 = vmatpush.bf16.msrb.mxu3 %v7485_v46 }
 0x5b5   : > { %v4015_v23 = vpop.f32.mrf.mxu2  ;;  %v4106_v38 = vpop.f32.mrf.mxu3 }
 0x5b6   : > { %v10511_v19 = vadd.f32 %v4015_v23, %v12436_v52  ;;  %v3735_v57 = vpop.f32.mrf.mxu1  ;;  %v10513_v55 = vpop.f32.mrf.mxu0  ;;  %v7405_v23 = vor.u32 %v7776_v49, %v7402_v41  ;;  %v12448_v49 = vld [vmem:[#allocation21_spill] sm:$0xff] }
 0x5b7   : > { %12438 = vst [vmem:[#allocation115_spill] sm:$0xff] %v10513_v55  ;;  %v3736_v0 = vadd.f32 %v3735_v57, %v12439_v34  ;;  %v12441_v55 = vld [vmem:[#allocation56_spill] sm:$0xff] }
 0x5b8   : > { %12437 = vst [vmem:[#allocation41_spill] sm:$0xff] %v10511_v19  ;;  %5083 = vmatpush.bf16.msrb.mxu1 %v7405_v23  ;;  %v12450_v23 = vld [vmem:[#allocation27_spill] sm:$0xff] }
 0x5b9   : > { %v10528_v52 = vadd.f32 %v4106_v38, %v3736_v0 }
 0x5ba   : > { %4759 = vmatmul.bf16.gmra.mxu3 %v12441_v55 }
 0x5bb   : > { %12440 = vst [vmem:[#allocation30_spill] sm:$0xff] %v10528_v52 }
 0x5bd   : > { %v4017_v19 = vpop.f32.mrf.mxu2  ;;  %v4109_v9 = vpop.f32.mrf.mxu3 }
 0x5be   : > { %v10532_v34 = vadd.f32 %v4017_v19, %v12442_v43  ;;  %v3738_v58 = vpop.f32.mrf.mxu1  ;;  %v10534_v57 = vpop.f32.mrf.mxu0 }
 0x5bf   : > { %12444 = vst [vmem:[#allocation116_spill] sm:$0xff] %v10534_v57  ;;  %v3739_v25 = vadd.f32 %v3738_v58, %v12445_v32  ;;  %v12451_v58 = vld [vmem:[#allocation53_spill] sm:$0xff] }
 0x5c0   : > { %12443 = vst [vmem:[#allocation28_spill] sm:$0xff] %v10532_v34 }
 0x5c1   : > { %4407 = vmatmul.bf16.gmra.mxu1 %v12446_v7  ;;  %5055 = vmatmul.bf16.gmra.mxu0 %v10299_v2  ;;  %v10539_v46 = vadd.f32 %v4109_v9, %v3739_v25  ;;  %v12452_v25 = vld [vmem:[#allocation36_spill] sm:$0xff]  ;;  %v12454_v7 = vld [vmem:[#allocation34_spill] sm:$0xff] }
 0x5c2   : > { %4670 = vmatmul.bf16.gmra.mxu2 %v12441_v55 }
 0x5c3   : > { %12447 = vst [vmem:[#allocation37_spill] sm:$0xff] %v10539_v46 }
 0x5c5   : > { %v4020_v0 = vpop.f32.mrf.mxu2  ;;  %v4111_v38 = vpop.f32.mrf.mxu3 }
 0x5c6   : > { %v10543_v41 = vadd.f32 %v4020_v0, %v12448_v49  ;;  %v3740_v43 = vpop.f32.mrf.mxu1  ;;  %v10545_v19 = vpop.f32.mrf.mxu0  ;;  %v7576_v49 = vld [vmem:[%s11939_s6 + $0x3f0] sm:$0xf] }
 0x5c7   : > { %12449 = vst [vmem:[#allocation21_spill] sm:$0xff] %v10545_v19  ;;  %v3741_v57 = vadd.f32 %v3740_v43, %v12450_v23 }
 0x5c9   : > { %v10548_v34 = vadd.f32 %v4111_v38, %v3741_v57  ;;  %v7813_v57 = vld [vmem:[%s11939_s6 + $0x3f4] sm:$0xf0] }
 0x5ca   : > { %4764 = vmatmul.bf16.gmra.mxu3 %v12451_v58  ;;  %v7577_v38 = vor.u32 %v7813_v57, %v7576_v49  ;;  %v12456_v57 = vld [vmem:[#allocation42_spill] sm:$0xff] }
 0x5cc   : > { %5683 = vmatpush.bf16.msra.mxu0 %v7577_v38  ;;  %v7790_v38 = vld [vmem:[%s11939_s6 + $0x344] sm:$0xf] }
 0x5cd   : > { %v4022_v32 = vpop.f32.mrf.mxu2  ;;  %v4114_v2 = vpop.f32.mrf.mxu3 }
 0x5ce   : > { %v10552_v9 = vadd.f32 %v4022_v32, %v12452_v25  ;;  %v3743_v46 = vpop.f32.mrf.mxu1  ;;  %v10554_v52 = vpop.f32.mrf.mxu0  ;;  %v7568_v32 = vld [vmem:[%s11939_s6 + $0x3e0] sm:$0xf] }
 0x5cf   : > { %12453 = vst [vmem:[#allocation27_spill] sm:$0xff] %v10554_v52  ;;  %v3744_v0 = vadd.f32 %v3743_v46, %v12454_v7  ;;  %v7472_v7 = vld [vmem:[%s11939_s6 + $0x340] sm:$0xf]  ;;  %v7791_v46 = vld [vmem:[%s11939_s6 + $0x344] sm:$0xf0] }
 0x5d0   : > { %v7473_v23 = vor.u32 %v7791_v46, %v7472_v7  ;;  %v7474_v7 = vld [vmem:[%s11939_s6 + $0x348] sm:$0xf0] }
 0x5d1   : > { %4412 = vmatmul.bf16.gmra.mxu1 %v9390_v1  ;;  %5060 = vmatmul.bf16.gmra.mxu0 %v10342_v40  ;;  %v10565_v43 = vadd.f32 %v4114_v2, %v3744_v0  ;;  %v7811_v2 = vld [vmem:[%s11939_s6 + $0x3e4] sm:$0xf0] }
 0x5d2   : > { %4675 = vmatmul.bf16.gmra.mxu2 %v12451_v58  ;;  %v7569_v49 = vor.u32 %v7811_v2, %v7568_v32  ;;  %v7394_v32 = vld [vmem:[%s11939_s6 + $0x2c8] sm:$0xf0] }
 0x5d3   : > { %12455 = vst [vmem:[#allocation36_spill] sm:$0xff] %v10565_v43  ;;  %5334 = vmatpush.bf16.msrb.mxu2 %v7473_v23  ;;  %v7477_v43 = vor.u32 %v7790_v38, %v7474_v7  ;;  %v7774_v23 = vld [vmem:[%s11939_s6 + $0x2c4] sm:$0xf]  ;;  %v7552_v38 = vld [vmem:[%s11939_s6 + $0x3c0] sm:$0xf] }
 0x5d4   : > { %5684 = vmatpush.bf16.msra.mxu0 %v7569_v49  ;;  %v7397_v2 = vor.u32 %v7774_v23, %v7394_v32  ;;  %v12460_v49 = vld [vmem:[#allocation51_spill] sm:$0xff] }
 0x5d5   : > { %v4025_v25 = vpop.f32.mrf.mxu2  ;;  %v4116_v0 = vpop.f32.mrf.mxu3  ;;  %5423 = vmatpush.bf16.msrb.mxu3 %v7477_v43  ;;  %v7807_v7 = vld [vmem:[%s11939_s6 + $0x3c4] sm:$0xf0] }
 0x5d6   : > { %v10581_v52 = vadd.f32 %v4025_v25, %v12456_v57  ;;  %v3745_v40 = vpop.f32.mrf.mxu1  ;;  %v10583_v19 = vpop.f32.mrf.mxu0  ;;  %v7560_v25 = vld [vmem:[%s11939_s6 + $0x3d0] sm:$0xf]  ;;  %v7809_v57 = vld [vmem:[%s11939_s6 + $0x3d4] sm:$0xf0]  ;;  %5084 = vmatpush.bf16.msrb.mxu1 %v7397_v2 }
 0x5d7   : > { %12458 = vst [vmem:[#allocation42_spill] sm:$0xff] %v10583_v19  ;;  %v3746_v46 = vadd.f32 %v3745_v40, %v10056_v54  ;;  %v7561_v54 = vor.u32 %v7809_v57, %v7560_v25  ;;  %v7553_v19 = vor.u32 %v7807_v7, %v7552_v38  ;;  %v12463_v25 = vld [vmem:[#allocation74_spill] sm:$0xff]  ;;  %v7544_v57 = vld [vmem:[%s11939_s6 + $0x3b0] sm:$0xf]  ;;  %v7803_v7 = vld [vmem:[%s11939_s6 + $0x3a4] sm:$0xf0] }
 0x5d8   : > { %12457 = vst [vmem:[#allocation34_spill] sm:$0xff] %v10581_v52 }
 0x5d9   : > { %v10604_v40 = vadd.f32 %v4116_v0, %v3746_v46  ;;  %5685 = vmatpush.bf16.msra.mxu0 %v7561_v54  ;;  %v7805_v54 = vld [vmem:[%s11939_s6 + $0x3b4] sm:$0xf0] }
 0x5da   : > { %4769 = vmatmul.bf16.gmra.mxu3 %v12460_v49 }
 0x5db   : > { %12459 = vst [vmem:[#allocation117_spill] sm:$0xff] %v10604_v40  ;;  %v12464_v40 = vld [vmem:[#allocation50_spill] sm:$0xff] }
 0x5dd   : > { %v4027_v23 = vpop.f32.mrf.mxu2  ;;  %v4119_v32 = vpop.f32.mrf.mxu3  ;;  %5686 = vmatpush.bf16.msra.mxu0 %v7553_v19  ;;  %v7536_v19 = vld [vmem:[%s11939_s6 + $0x3a0] sm:$0xf] }
 0x5de   : > { %v10614_v43 = vadd.f32 %v4027_v23, %v10032_v37  ;;  %v3748_v0 = vpop.f32.mrf.mxu1  ;;  %v10616_v46 = vpop.f32.mrf.mxu0  ;;  %v7545_v37 = vor.u32 %v7805_v54, %v7544_v57 }
 0x5df   : > { %12462 = vst [vmem:[#allocation119_spill] sm:$0xff] %v10616_v46  ;;  %v3749_v2 = vadd.f32 %v3748_v0, %v12463_v25  ;;  %v7537_v25 = vor.u32 %v7803_v7, %v7536_v19  ;;  %v12466_v46 = vld [vmem:[#allocation73_spill] sm:$0xff]  ;;  %v12470_v19 = vld [vmem:[#allocation52_spill] sm:$0xff]  ;;  %v7799_v7 = vld [vmem:[%s11939_s6 + $0x384] sm:$0xf0] }
 0x5e0   : > { %12461 = vst [vmem:[#allocation118_spill] sm:$0xff] %v10614_v43 }
 0x5e1   : > { %4417 = vmatmul.bf16.gmra.mxu1 %v12464_v40  ;;  %5065 = vmatmul.bf16.gmra.mxu0 %v10367_v31  ;;  %v10627_v38 = vadd.f32 %v4119_v32, %v3749_v2  ;;  %v12467_v32 = vld [vmem:[#allocation78_spill] sm:$0xff]  ;;  %v7801_v31 = vld [vmem:[%s11939_s6 + $0x394] sm:$0xf0] }
 0x5e2   : > { %4680 = vmatmul.bf16.gmra.mxu2 %v12460_v49  ;;  %5687 = vmatpush.bf16.msra.mxu0 %v7545_v37  ;;  %v7528_v37 = vld [vmem:[%s11939_s6 + $0x390] sm:$0xf] }
 0x5e3   : > { %12465 = vst [vmem:[#allocation74_spill] sm:$0xff] %v10627_v38  ;;  %v7529_v38 = vor.u32 %v7801_v31, %v7528_v37 }
 0x5e5   : > { %v4030_v23 = vpop.f32.mrf.mxu2  ;;  %v4121_v0 = vpop.f32.mrf.mxu3 }
 0x5e6   : > { %v10637_v43 = vadd.f32 %v4030_v23, %v12466_v46  ;;  %v3750_v57 = vpop.f32.mrf.mxu1  ;;  %5688 = vmatpush.bf16.msra.mxu0 %v7537_v25  ;;  %v10640_v54 = vpop.f32.mrf.mxu0  ;;  %v7520_v46 = vld [vmem:[%s11939_s6 + $0x380] sm:$0xf] }
 0x5e7   : > { %v3751_v2 = vadd.f32 %v3750_v57, %v12467_v32  ;;  %12468 = vst [vmem:[#allocation50_spill] sm:$0xff] %v10640_v54  ;;  %v7521_v57 = vor.u32 %v7799_v7, %v7520_v46  ;;  %v12471_v32 = vld [vmem:[#allocation76_spill] sm:$0xff]  ;;  %v7789_v7 = vld [vmem:[%s11939_s6 + $0x334] sm:$0xf0] }
 0x5e8   : > { %v7464_v46 = vld [vmem:[%s11939_s6 + $0x330] sm:$0xf] }
 0x5e9   : > { %v10648_v52 = vadd.f32 %v4121_v0, %v3751_v2  ;;  %v12473_v0 = vld [vmem:[#allocation81_spill] sm:$0xff] }
 0x5ea   : > { %4774 = vmatmul.bf16.gmra.mxu3 %v12470_v19  ;;  %5689 = vmatpush.bf16.msra.mxu0 %v7529_v38 }
 0x5eb   : > { %12469 = vst [vmem:[#allocation73_spill] sm:$0xff] %v10648_v52 }
 0x5ed   : > { %v4032_v23 = vpop.f32.mrf.mxu2  ;;  %v4124_v25 = vpop.f32.mrf.mxu3 }
 0x5ee   : > { %v10658_v54 = vadd.f32 %v4032_v23, %v12471_v32  ;;  %v3753_v31 = vpop.f32.mrf.mxu1  ;;  %5690 = vmatpush.bf16.msra.mxu0 %v7521_v57  ;;  %v10665_v37 = vpop.f32.mrf.mxu0  ;;  %v7465_v23 = vor.u32 %v7789_v7, %v7464_v46  ;;  %v7772_v46 = vld [vmem:[%s11939_s6 + $0x2b4] sm:$0xf]  ;;  %v7386_v7 = vld [vmem:[%s11939_s6 + $0x2b8] sm:$0xf0] }
 0x5ef   : > { %v3754_v2 = vadd.f32 %v3753_v31, %v12473_v0  ;;  %12475 = vst [vmem:[#allocation81_spill] sm:$0xff] %v10665_v37  ;;  %v12476_v31 = vld [vmem:[#allocation80_spill] sm:$0xff]  ;;  %v7466_v37 = vld [vmem:[%s11939_s6 + $0x338] sm:$0xf0] }
 0x5f0   : > { %12472 = vst [vmem:[#allocation78_spill] sm:$0xff] %v10658_v54  ;;  %5335 = vmatpush.bf16.msrb.mxu2 %v7465_v23  ;;  %v7389_v23 = vor.u32 %v7772_v46, %v7386_v7  ;;  %v12481_v54 = vld [vmem:[#allocation83_spill] sm:$0xff] }
 0x5f1   : > { %4422 = vmatmul.bf16.gmra.mxu1 %v9493_v21  ;;  %5070 = vmatmul.bf16.gmra.mxu0 %v10410_v27  ;;  %v10663_v38 = vadd.f32 %v4124_v25, %v3754_v2  ;;  %v7788_v2 = vld [vmem:[%s11939_s6 + $0x334] sm:$0xf] }
 0x5f2   : > { %4685 = vmatmul.bf16.gmra.mxu2 %v12470_v19  ;;  %5085 = vmatpush.bf16.msrb.mxu1 %v7389_v23 }
 0x5f3   : > { %12474 = vst [vmem:[#allocation76_spill] sm:$0xff] %v10663_v38  ;;  %v7469_v38 = vor.u32 %v7788_v2, %v7466_v37 }
 0x5f5   : > { %v4035_v57 = vpop.f32.mrf.mxu2  ;;  %v4126_v32 = vpop.f32.mrf.mxu3  ;;  %5424 = vmatpush.bf16.msrb.mxu3 %v7469_v38 }
 0x5f6   : > { %v10675_v0 = vadd.f32 %v4035_v57, %v12476_v31  ;;  %v3755_v25 = vpop.f32.mrf.mxu1  ;;  %v12479_v31 = vld [vmem:[#allocation55_spill] sm:$0xff]  ;;  %v10698_v37 = vpop.f32.mrf.mxu0 }
 0x5f7   : > { %v3756_v27 = vadd.f32 %v3755_v25, %v10145_v20  ;;  %v10696_v20 = vsel %vm7971_vm3, %v10137_v33, 0  ;;  %12480 = vst [vmem:[#allocation121_spill] sm:$0xff] %v10698_v37  ;;  %v4891_v25 = vrot.slane %v10153_v14, 1 }
 0x5f8   : > { %12477 = vst [vmem:[#allocation80_spill] sm:$0xff] %v10675_v0 }
 0x5f9   : > { %v10690_v57 = vadd.f32 %v4126_v32, %v3756_v27  ;;  %v4892_v27 = vrot.slane %v10696_v20, 1  ;;  %v12483_v32 = vld [vmem:[#allocation87_spill] sm:$0xff] }
 0x5fa   : > { %4779 = vmatmul.bf16.gmra.mxu3 %v12479_v31 }
 0x5fb   : > { %12478 = vst [vmem:[#allocation120_spill] sm:$0xff] %v10690_v57  ;;  %v10707_v7 = vsel %vm1321_vm6, %v4891_v25, %v4892_v27  ;;  %v12490_v27 = vld [vmem:[#allocation59_spill] sm:$0xff] }
 0x5fc   : > { %12484 = vst [vmem:[#allocation87_spill] sm:$0xff] %v10707_v7 }
 0x5fd   : > { %v4037_v2 = vpop.f32.mrf.mxu2  ;;  %v4129_v0 = vpop.f32.mrf.mxu3 }
 0x5fe   : > { %v10702_v52 = vadd.f32 %v4037_v2, %v12481_v54  ;;  %v3758_v38 = vpop.f32.mrf.mxu1  ;;  %v10714_v54 = vpop.f32.mrf.mxu0  ;;  %v12487_v2 = vld [vmem:[#allocation86_spill] sm:$0xff] }
 0x5ff   : > { %v3759_v46 = vadd.f32 %v3758_v38, %v12483_v32  ;;  %12486 = vst [vmem:[#allocation123_spill] sm:$0xff] %v10714_v54  ;;  %v7786_v54 = vld [vmem:[%s11939_s6 + $0x324] sm:$0xf] }
 0x600   : > { %12482 = vst [vmem:[#allocation83_spill] sm:$0xff] %v10702_v52 }
 0x601   : > { %4427 = vmatmul.bf16.gmra.mxu1 %v9532_v51  ;;  %5075 = vmatmul.bf16.gmra.mxu0 %v10707_v7  ;;  %v10711_v10 = vadd.f32 %v4129_v0, %v3759_v46 }
 0x602   : > { %4690 = vmatmul.bf16.gmra.mxu2 %v12479_v31 }
 0x603   : > { %12485 = vst [vmem:[#allocation122_spill] sm:$0xff] %v10711_v10  ;;  %v12492_v10 = vld [vmem:[#allocation91_spill] sm:$0xff] }
 0x605   : > { %v4040_v33 = vpop.f32.mrf.mxu2  ;;  %v4131_v23 = vpop.f32.mrf.mxu3 }
 0x606   : > { %v10717_v37 = vadd.f32 %v4040_v33, %v12487_v2  ;;  %v3760_v52 = vpop.f32.mrf.mxu1  ;;  %v10727_v51 = vpop.f32.mrf.mxu0 }
 0x607   : > { %v3761_v38 = vadd.f32 %v3760_v52, %v10170_v15  ;;  %12493 = vst [vmem:[#allocation91_spill] sm:$0xff] %v10727_v51  ;;  %v7456_v15 = vld [vmem:[%s11939_s6 + $0x320] sm:$0xf] }
 0x608   : > { %12488 = vst [vmem:[#allocation86_spill] sm:$0xff] %v10717_v37  ;;  %v12504_v37 = vld [vmem:[#allocation97_spill] sm:$0xff] }
 0x609   : > { %v10720_v25 = vadd.f32 %v4131_v23, %v3761_v38  ;;  %v12496_v23 = vld [vmem:[#allocation23_spill] sm:$0xff] }
 0x60a   : > { %4784 = vmatmul.bf16.gmra.mxu3 %v12490_v27 }
 0x60b   : > { %12489 = vst [vmem:[#allocation124_spill] sm:$0xff] %v10720_v25 }
 0x60d   : > { %v4042_v32 = vpop.f32.mrf.mxu2  ;;  %v4745_v7 = vpop.f32.mrf.mxu3 }
 0x60e   : > { %v10724_v0 = vadd.f32 %v4042_v32, %v10164_v47  ;;  %v4393_v46 = vpop.f32.mrf.mxu1  ;;  %v7787_v47 = vld [vmem:[%s11939_s6 + $0x324] sm:$0xf0] }
 0x60f   : > { %v4474_v57 = vadd.f32 %v4393_v46, %v12492_v10  ;;  %v7457_v52 = vor.u32 %v7787_v47, %v7456_v15  ;;  %v12495_v10 = vld [vmem:[#allocation92_spill] sm:$0xff]  ;;  %v12497_v46 = vld [vmem:[#allocation57_spill] sm:$0xff]  ;;  %v7458_v15 = vld [vmem:[%s11939_s6 + $0x328] sm:$0xf0] }
 0x610   : > { %12491 = vst [vmem:[#allocation125_spill] sm:$0xff] %v10724_v0  ;;  %v4473_v2 = vadd.f32 %v12496_v23, %v12495_v10  ;;  %v7461_v10 = vor.u32 %v7786_v54, %v7458_v15  ;;  %v7378_v23 = vld [vmem:[%s11939_s6 + $0x2a8] sm:$0xf0] }
 0x611   : > { %4432 = vmatmul.bf16.gmra.mxu1 %v9569_v26  ;;  %5691 = vmatmul.bf16.vlgmr.msra.gmra.mxu0 %v12417_v50  ;;  %v10731_v33 = vadd.f32 %v4745_v7, %v4474_v57  ;;  %v12498_v57 = vld [vmem:[#allocation62_spill] sm:$0xff] }
 0x612   : > { %4695 = vmatmul.bf16.gmra.mxu2 %v12490_v27  ;;  %v3597_v7 = vadd.f32 %v12498_v57, %v12497_v46  ;;  %5425 = vmatpush.bf16.msrb.mxu3 %v7461_v10 }
 0x613   : > { %12494 = vst [vmem:[#allocation126_spill] sm:$0xff] %v10731_v33  ;;  %5336 = vmatpush.bf16.msrb.mxu2 %v7457_v52  ;;  %v7770_v52 = vld [vmem:[%s11939_s6 + $0x2a4] sm:$0xf]  ;;  %v12502_v33 = vld [vmem:[#allocation63_spill] sm:$0xff] }
 0x614   : > { %v7381_v46 = vor.u32 %v7770_v52, %v7378_v23 }
 0x615   : > { %v4656_v38 = vpop.f32.mrf.mxu2  ;;  %v4747_v32 = vpop.f32.mrf.mxu3 }
 0x616   : > { %v10744_v50 = vadd.f32 %v4656_v38, %v4473_v2  ;;  %v4395_v51 = vpop.f32.mrf.mxu1  ;;  %v12500_v2 = vld [vmem:[#allocation95_spill] sm:$0xff]  ;;  %5086 = vmatpush.bf16.msrb.mxu1 %v7381_v46 }
 0x617   : > { %v4476_v47 = vadd.f32 %v4395_v51, %v10209_v36  ;;  %v4136_v38 = vadd.f32 %v12500_v2, %v3597_v7  ;;  %v12503_v51 = vld [vmem:[#allocation2_spill] sm:$0xff]  ;;  %v12507_v46 = vld [vmem:[#allocation67_spill] sm:$0xff] }
 0x618   : > { %12499 = vst [vmem:[#allocation92_spill] sm:$0xff] %v10744_v50  ;;  %v10762_v50 = vpop.f32.mrf.mxu0 }
 0x619   : > { %v10760_v57 = vadd.f32 %v4747_v32, %v4476_v47  ;;  %12501 = vst [vmem:[#allocation23_spill] sm:$0xff] %v10762_v50  ;;  %v4475_v36 = vadd.f32 %v12503_v51, %v4136_v38  ;;  %v12506_v47 = vld [vmem:[#allocation18_spill] sm:$0xff]  ;;  %v12509_v51 = vld [vmem:[#allocation11_spill] sm:$0xff] }
 0x61a   : > { %4789 = vmatmul.bf16.gmra.mxu3 %v12502_v33  ;;  %v4477_v10 = vadd.f32 %v12506_v47, %v10224_v63  ;;  %v12511_v47 = vld [vmem:[#allocation100_spill] sm:$0xff] }
 0x61d   : > { %v4658_v54 = vpop.f32.mrf.mxu2  ;;  %v4750_v15 = vpop.f32.mrf.mxu3 }
 0x61e   : > { %v10766_v0 = vadd.f32 %v4658_v54, %v4475_v36  ;;  %v4398_v25 = vpop.f32.mrf.mxu1 }
 0x61f   : > { %v4478_v26 = vadd.f32 %v4398_v25, %v12504_v37 }
 0x620   : > { %v10774_v7 = vpop.f32.mrf.mxu0 }
 0x621   : > { %4437 = vmatmul.bf16.gmra.mxu1 %v9614_v45  ;;  %5696 = vmatmul.bf16.gmra.mxu0 %v12429_v29  ;;  %v10771_v32 = vadd.f32 %v4750_v15, %v4478_v26  ;;  %12505 = vst [vmem:[#allocation57_spill] sm:$0xff] %v10774_v7  ;;  %v12508_v26 = vld [vmem:[#allocation58_spill] sm:$0xff] }
 0x622   : > { %4700 = vmatmul.bf16.gmra.mxu2 %v12502_v33  ;;  %v4479_v36 = vadd.f32 %v12509_v51, %v12508_v26  ;;  %v12513_v26 = vld [vmem:[#allocation19_spill] sm:$0xff] }
 0x625   : > { %v4661_v52 = vpop.f32.mrf.mxu2  ;;  %v4752_v23 = vpop.f32.mrf.mxu3 }
 0x626   : > { %v10778_v2 = vadd.f32 %v4661_v52, %v4477_v10  ;;  %v4400_v38 = vpop.f32.mrf.mxu1  ;;  %v7448_v52 = vld [vmem:[%s11939_s6 + $0x310] sm:$0xf] }
 0x627   : > { %v4480_v37 = vadd.f32 %v4400_v38, %v10233_v59 }
 0x628   : > { %v10786_v29 = vpop.f32.mrf.mxu0 }
 0x629   : > { %v10781_v25 = vadd.f32 %v4752_v23, %v4480_v37  ;;  %12510 = vst [vmem:[#allocation62_spill] sm:$0xff] %v10786_v29  ;;  %v7785_v23 = vld [vmem:[%s11939_s6 + $0x314] sm:$0xf0]  ;;  %v12512_v37 = vld [vmem:[#allocation64_spill] sm:$0xff] }
 0x62a   : > { %4794 = vmatmul.bf16.gmra.mxu3 %v12507_v46  ;;  %v7449_v38 = vor.u32 %v7785_v23, %v7448_v52  ;;  %v4481_v51 = vadd.f32 %v12513_v26, %v12512_v37  ;;  %v7768_v23 = vld [vmem:[%s11939_s6 + $0x294] sm:$0xf] }
 0x62c   : > { %5337 = vmatpush.bf16.msrb.mxu2 %v7449_v38  ;;  %v7370_v38 = vld [vmem:[%s11939_s6 + $0x298] sm:$0xf0] }
 0x62d   : > { %v4663_v54 = vpop.f32.mrf.mxu2  ;;  %v4755_v15 = vpop.f32.mrf.mxu3  ;;  %v7373_v26 = vor.u32 %v7768_v23, %v7370_v38 }
 0x62e   : > { %v10788_v7 = vadd.f32 %v4663_v54, %v4479_v36  ;;  %v4403_v63 = vpop.f32.mrf.mxu1 }
 0x62f   : > { %v4482_v10 = vadd.f32 %v4403_v63, %v12511_v47  ;;  %v7784_v47 = vld [vmem:[%s11939_s6 + $0x314] sm:$0xf]  ;;  %5087 = vmatpush.bf16.msrb.mxu1 %v7373_v26 }
 0x630   : > { %v10819_v37 = vpop.f32.mrf.mxu0 }
 0x631   : > { %4442 = vmatmul.bf16.gmra.mxu1 %v9653_v30  ;;  %5701 = vmatmul.bf16.gmra.mxu0 %v12441_v55  ;;  %v10793_v59 = vadd.f32 %v4755_v15, %v4482_v10  ;;  %v7450_v10 = vld [vmem:[%s11939_s6 + $0x318] sm:$0xf0]  ;;  %12515 = vst [vmem:[#allocation2_spill] sm:$0xff] %v10819_v37 }
 0x632   : > { %4705 = vmatmul.bf16.gmra.mxu2 %v12507_v46  ;;  %v7453_v52 = vor.u32 %v7784_v47, %v7450_v10 }
 0x634   : > { %5426 = vmatpush.bf16.msrb.mxu3 %v7453_v52 }
 0x635   : > { %v4666_v36 = vpop.f32.mrf.mxu2  ;;  %v4757_v54 = vpop.f32.mrf.mxu3 }
 0x636   : > { %v10804_v63 = vadd.f32 %v4666_v36, %v4481_v51  ;;  %v4405_v15 = vpop.f32.mrf.mxu1  ;;  %v12516_v36 = vld [vmem:[#allocation69_spill] sm:$0xff] }
 0x637   : > { %v4484_v55 = vadd.f32 %v4405_v15, %v10276_v16  ;;  %v12517_v16 = vld [vmem:[#allocation24_spill] sm:$0xff] }
 0x638   : > { %12514 = vst [vmem:[#allocation95_spill] sm:$0xff] %v10804_v63  ;;  %v4483_v15 = vadd.f32 %v12517_v16, %v10280_v48 }
 0x639   : > { %v10821_v51 = vadd.f32 %v4757_v54, %v4484_v55  ;;  %v10833_v55 = vpop.f32.mrf.mxu0  ;;  %v12519_v54 = vld [vmem:[#allocation32_spill] sm:$0xff] }
 0x63a   : > { %4799 = vmatmul.bf16.gmra.mxu3 %v12516_v36  ;;  %12518 = vst [vmem:[#allocation97_spill] sm:$0xff] %v10833_v55  ;;  %v4485_v48 = vadd.f32 %v12519_v54, %v10292_v6  ;;  %v12523_v54 = vld [vmem:[#allocation104_spill] sm:$0xff] }
 0x63d   : > { %v4668_v47 = vpop.f32.mrf.mxu2  ;;  %v4760_v10 = vpop.f32.mrf.mxu3 }
 0x63e   : > { %v10826_v29 = vadd.f32 %v4668_v47, %v4483_v15  ;;  %v4408_v50 = vpop.f32.mrf.mxu1  ;;  %v12520_v15 = vld [vmem:[#allocation14_spill] sm:$0xff]  ;;  %v12522_v47 = vld [vmem:[#allocation25_spill] sm:$0xff] }
 0x63f   : > { %v4486_v63 = vadd.f32 %v4408_v50, %v10287_v56 }
 0x641   : > { %4447 = vmatmul.bf16.gmra.mxu1 %v9703_v24  ;;  %5706 = vmatmul.bf16.gmra.mxu0 %v12451_v58  ;;  %v10831_v52 = vadd.f32 %v4760_v10, %v4486_v63  ;;  %v10844_v63 = vpop.f32.mrf.mxu0  ;;  %v4487_v10 = vadd.f32 %v12522_v47, %v10305_v44  ;;  %v7783_v44 = vld [vmem:[%s11939_s6 + $0x304] sm:$0xf0] }
 0x642   : > { %4710 = vmatmul.bf16.gmra.mxu2 %v12516_v36  ;;  %12521 = vst [vmem:[#allocation18_spill] sm:$0xff] %v10844_v63 }
 0x645   : > { %v4671_v23 = vpop.f32.mrf.mxu2  ;;  %v4762_v38 = vpop.f32.mrf.mxu3 }
 0x646   : > { %v10838_v26 = vadd.f32 %v4671_v23, %v4485_v48  ;;  %v4410_v16 = vpop.f32.mrf.mxu1  ;;  %v7440_v23 = vld [vmem:[%s11939_s6 + $0x300] sm:$0xf] }
 0x647   : > { %v4488_v56 = vadd.f32 %v4410_v16, %v10301_v39  ;;  %v12526_v16 = vld [vmem:[#allocation43_spill] sm:$0xff] }
 0x649   : > { %v10841_v50 = vadd.f32 %v4762_v38, %v4488_v56  ;;  %v12525_v38 = vld [vmem:[#allocation70_spill] sm:$0xff] }
 0x64a   : > { %4804 = vmatmul.bf16.gmra.mxu3 %v12520_v15  ;;  %v4489_v56 = vadd.f32 %v12526_v16, %v12525_v38  ;;  %v7362_v38 = vld [vmem:[%s11939_s6 + $0x288] sm:$0xf0] }
 0x64d   : > { %v4673_v58 = vpop.f32.mrf.mxu2  ;;  %v4765_v55 = vpop.f32.mrf.mxu3 }
 0x64e   : > { %v10848_v37 = vadd.f32 %v4673_v58, %v4487_v10  ;;  %v4413_v6 = vpop.f32.mrf.mxu1  ;;  %v7441_v58 = vor.u32 %v7783_v44, %v7440_v23 }
 0x64f   : > { %v4490_v48 = vadd.f32 %v4413_v6, %v12523_v54  ;;  %v10864_v6 = vpop.f32.mrf.mxu0 }
 0x650   : > { %5338 = vmatpush.bf16.msrb.mxu2 %v7441_v58  ;;  %12527 = vst [vmem:[#allocation11_spill] sm:$0xff] %v10864_v6  ;;  %v7766_v58 = vld [vmem:[%s11939_s6 + $0x284] sm:$0xf]  ;;  %v12530_v6 = vld [vmem:[#allocation47_spill] sm:$0xff] }
 0x651   : > { %4452 = vmatmul.bf16.gmra.mxu1 %v9742_v42  ;;  %5711 = vmatmul.bf16.gmra.mxu0 %v12460_v49  ;;  %v10853_v39 = vadd.f32 %v4765_v55, %v4490_v48  ;;  %v7782_v48 = vld [vmem:[%s11939_s6 + $0x304] sm:$0xf]  ;;  %v7442_v49 = vld [vmem:[%s11939_s6 + $0x308] sm:$0xf0]  ;;  %v7365_v16 = vor.u32 %v7766_v58, %v7362_v38  ;;  %v4491_v63 = vadd.f32 %v12530_v6, %v10348_v35 }
 0x652   : > { %4715 = vmatmul.bf16.gmra.mxu2 %v12520_v15  ;;  %v7445_v44 = vor.u32 %v7782_v48, %v7442_v49 }
 0x653   : > { %12524 = vst [vmem:[#allocation58_spill] sm:$0xff] %v10853_v39  ;;  %5088 = vmatpush.bf16.msrb.mxu1 %v7365_v16 }
 0x654   : > { %5427 = vmatpush.bf16.msrb.mxu3 %v7445_v44 }
 0x655   : > { %v4676_v47 = vpop.f32.mrf.mxu2  ;;  %v4767_v10 = vpop.f32.mrf.mxu3 }
 0x656   : > { %v10866_v55 = vadd.f32 %v4676_v47, %v4489_v56  ;;  %v4415_v54 = vpop.f32.mrf.mxu1  ;;  %v12529_v47 = vld [vmem:[#allocation7_spill] sm:$0xff] }
 0x657   : > { %v4492_v23 = vadd.f32 %v4415_v54, %v10344_v11  ;;  %v10889_v39 = vpop.f32.mrf.mxu0 }
 0x658   : > { %12528 = vst [vmem:[#allocation100_spill] sm:$0xff] %v10866_v55 }
 0x659   : > { %v10881_v56 = vadd.f32 %v4767_v10, %v4492_v23  ;;  %12531 = vst [vmem:[#allocation64_spill] sm:$0xff] %v10889_v39  ;;  %v12532_v23 = vld [vmem:[#allocation72_spill] sm:$0xff] }
 0x65a   : > { %4809 = vmatmul.bf16.gmra.mxu3 %v12529_v47  ;;  %v4493_v35 = vadd.f32 %v12532_v23, %v10360_v5  ;;  %v4540_v5 = vshll.u32 %v10153_v14, 16  ;;  %v7828_v39 = vld [vmem:[%s11939_s6 + $0x474] sm:$0xf] }
 0x65d   : > { %v4678_v11 = vpop.f32.mrf.mxu2  ;;  %v4770_v49 = vpop.f32.mrf.mxu3 }
 0x65e   : > { %v10886_v54 = vadd.f32 %v4678_v11, %v4491_v63  ;;  %v4418_v48 = vpop.f32.mrf.mxu1  ;;  %v12534_v11 = vld [vmem:[#allocation13_spill] sm:$0xff] }
 0x65f   : > { %v4494_v55 = vadd.f32 %v4418_v48, %v10355_v22  ;;  %v10903_v16 = vpop.f32.mrf.mxu0 }
 0x660   : > { %12533 = vst [vmem:[#allocation19_spill] sm:$0xff] %v10903_v16 }
 0x661   : > { %4457 = vmatmul.bf16.gmra.mxu1 %v9793_v13  ;;  %5716 = vmatmul.bf16.gmra.mxu0 %v12470_v19  ;;  %v10893_v10 = vadd.f32 %v4770_v49, %v4494_v55  ;;  %v12535_v55 = vld [vmem:[#allocation75_spill] sm:$0xff] }
 0x662   : > { %4720 = vmatmul.bf16.gmra.mxu2 %v12529_v47  ;;  %v4495_v49 = vadd.f32 %v12535_v55, %v10373_v18  ;;  %v7656_v18 = vld [vmem:[%s11939_s6 + $0x470] sm:$0xf] }
 0x665   : > { %v4681_v6 = vpop.f32.mrf.mxu2  ;;  %v4772_v44 = vpop.f32.mrf.mxu3 }
 0x666   : > { %v10898_v63 = vadd.f32 %v4681_v6, %v4493_v35  ;;  %v4420_v58 = vpop.f32.mrf.mxu1 }
 0x667   : > { %v4496_v22 = vadd.f32 %v4420_v58, %v10369_v17  ;;  %v4542_v17 = vrot.slane %v4540_v5, 1  ;;  %v7829_v58 = vld [vmem:[%s11939_s6 + $0x474] sm:$0xf0] }
 0x668   : > { %v7657_v55 = vor.u32 %v7829_v58, %v7656_v18 }
 0x669   : > { %v10901_v38 = vadd.f32 %v4772_v44, %v4496_v22  ;;  %v4538_v22 = vshrl.u32 %v10153_v14, 16 }
 0x66a   : > { %4814 = vmatmul.bf16.gmra.mxu3 %v12534_v11  ;;  %6028 = vmatpush.bf16.msra.mxu2 %v7657_v55 }
 0x66d   : > { %v4683_v48 = vpop.f32.mrf.mxu2  ;;  %v4775_v19 = vpop.f32.mrf.mxu3 }
 0x66e   : > { %v10909_v23 = vadd.f32 %v4683_v48, %v4495_v49  ;;  %v4423_v35 = vpop.f32.mrf.mxu1  ;;  %v10925_v49 = vpop.f32.mrf.mxu0 }
 0x66f   : > { %v4498_v6 = vadd.f32 %v4423_v35, %v10380_v53  ;;  %v4545_v53 = vshll.u32 %v10696_v20, 16  ;;  %12536 = vst [vmem:[#allocation24_spill] sm:$0xff] %v10925_v49  ;;  %v7658_v20 = vld [vmem:[%s11939_s6 + $0x478] sm:$0xf0] }
 0x670   : > { %v7661_v49 = vor.u32 %v7828_v39, %v7658_v20 }
 0x671   : > { %4462 = vmatmul.bf16.gmra.mxu1 %v9844_v8  ;;  %5721 = vmatmul.bf16.gmra.mxu0 %v12479_v31  ;;  %v10914_v44 = vadd.f32 %v4775_v19, %v4498_v6  ;;  %v12537_v19 = vld [vmem:[#allocation79_spill] sm:$0xff]  ;;  %v4543_v6 = vor.u32 %v4542_v17, %v4538_v22  ;;  %v4547_v58 = vrot.slane %v4545_v53, 1  ;;  %v7578_v17 = vld [vmem:[%s11939_s6 + $0x3f8] sm:$0xf0] }
 0x672   : > { %4725 = vmatmul.bf16.gmra.mxu2 %v12534_v11  ;;  %v4497_v48 = vadd.f32 %v12537_v19, %v10391_v60  ;;  %v7812_v60 = vld [vmem:[%s11939_s6 + $0x3f4] sm:$0xf]  ;;  %6117 = vmatpush.bf16.msra.mxu3 %v7661_v49 }
 0x673   : > { %v7581_v22 = vor.u32 %v7812_v60, %v7578_v17  ;;  %v10945_v55 = vsel %vm770_vm4, %v4543_v6, %v4547_v58 }
 0x674   : > { %12538 = vst [vmem:[#allocation32_spill] sm:$0xff] %v10945_v55 }
 0x675   : > { %v4686_v5 = vpop.f32.mrf.mxu2  ;;  %v4777_v35 = vpop.f32.mrf.mxu3  ;;  %5772 = vmatpush.bf16.msra.mxu1 %v7581_v22 }
 0x676   : > { %v10929_v31 = vadd.f32 %v4686_v5, %v4497_v48  ;;  %v4425_v16 = vpop.f32.mrf.mxu1  ;;  %v10952_v48 = vpop.f32.mrf.mxu0 }
 0x677   : > { %v4500_v18 = vadd.f32 %v4425_v16, %v10412_v12  ;;  %v12539_v12 = vld [vmem:[#allocation82_spill] sm:$0xff]  ;;  %12540 = vst [vmem:[#allocation25_spill] sm:$0xff] %v10952_v48 }
 0x678   : > { %v4499_v39 = vadd.f32 %v12539_v12, %v10416_v61 }
 0x679   : > { %v10947_v19 = vadd.f32 %v4777_v35, %v4500_v18  ;;  %v12541_v35 = vld [vmem:[#allocation85_spill] sm:$0xff] }
 0x67a   : > { %4819 = vmatmul.bf16.gmra.mxu3 %v10945_v55  ;;  %v4501_v61 = vadd.f32 %v12541_v35, %v10427_v4  ;;  %v12547_v35 = vld [vmem:[#allocation48_spill] sm:$0xff] }
 0x67d   : > { %v4688_v16 = vpop.f32.mrf.mxu2  ;;  %v4780_v53 = vpop.f32.mrf.mxu3 }
 0x67e   : > { %v10954_v5 = vadd.f32 %v4688_v16, %v4499_v39  ;;  %v4428_v20 = vpop.f32.mrf.mxu1  ;;  %v10967_v12 = vpop.f32.mrf.mxu0  ;;  %v12544_v39 = vld [vmem:[#allocation38_spill] sm:$0xff]  ;;  %v12545_v16 = vld [vmem:[#allocation88_spill] sm:$0xff] }
 0x67f   : > { %v4502_v60 = vadd.f32 %v4428_v20, %v10423_v3  ;;  %12542 = vst [vmem:[#allocation104_spill] sm:$0xff] %v10967_v12  ;;  %v12558_v12 = vld [vmem:[#allocation35_spill] sm:$0xff] }
 0x681   : > { %4467 = vmatmul.bf16.gmra.mxu1 %v10153_v14  ;;  %5726 = vmatmul.bf16.gmra.mxu0 %v12490_v27  ;;  %v10959_v49 = vadd.f32 %v4780_v53, %v4502_v60  ;;  %v4503_v53 = vadd.f32 %v12545_v16, %v12544_v39  ;;  %v12551_v16 = vld [vmem:[#allocation29_spill] sm:$0xff] }
 0x682   : > { %4730 = vmatmul.bf16.gmra.mxu2 %v10945_v55 }
 0x685   : > { %v4691_v6 = vpop.f32.mrf.mxu2  ;;  %v4782_v18 = vpop.f32.mrf.mxu3 }
 0x686   : > { %v10964_v58 = vadd.f32 %v4691_v6, %v4501_v61  ;;  %v4430_v17 = vpop.f32.mrf.mxu1  ;;  %v12548_v6 = vld [vmem:[#allocation8_spill] sm:$0xff] }
 0x687   : > { %v4504_v22 = vadd.f32 %v4430_v17, %v10432_v62  ;;  %v7648_v17 = vld [vmem:[%s11939_s6 + $0x460] sm:$0xf] }
 0x689   : > { %v10969_v3 = vadd.f32 %v4782_v18, %v4504_v22  ;;  %v10981_v18 = vpop.f32.mrf.mxu0  ;;  %v7827_v22 = vld [vmem:[%s11939_s6 + $0x464] sm:$0xf0] }
 0x68a   : > { %5428 = vmatmul.bf16.vlgmr.msrb.gmra.mxu3 %v12422_v28  ;;  %12550 = vst [vmem:[#allocation72_spill] sm:$0xff] %v10981_v18  ;;  %v7649_v39 = vor.u32 %v7827_v22, %v7648_v17  ;;  %v7810_v22 = vld [vmem:[%s11939_s6 + $0x3e4] sm:$0xf] }
 0x68b   : > { %12543 = vst [vmem:[#allocation70_spill] sm:$0xff] %v10969_v3  ;;  %v12562_v3 = vld [vmem:[#allocation15_spill] sm:$0xff] }
 0x68c   : > { %6029 = vmatpush.bf16.msra.mxu2 %v7649_v39  ;;  %v7570_v39 = vld [vmem:[%s11939_s6 + $0x3e8] sm:$0xf0] }
 0x68d   : > { %v4693_v20 = vpop.f32.mrf.mxu2  ;;  %v4785_v60 = vpop.f32.mrf.mxu3 }
 0x68e   : > { %v10974_v27 = vadd.f32 %v4693_v20, %v4503_v53  ;;  %v4433_v4 = vpop.f32.mrf.mxu1  ;;  %v12552_v53 = vld [vmem:[#allocation90_spill] sm:$0xff] }
 0x68f   : > { %v4506_v61 = vadd.f32 %v4433_v4, %v12547_v35  ;;  %v4505_v20 = vadd.f32 %v12552_v53, %v12551_v16  ;;  %v7573_v16 = vor.u32 %v7810_v22, %v7570_v39 }
 0x690   : > { %12546 = vst [vmem:[#allocation43_spill] sm:$0xff] %v10974_v27 }
 0x691   : > { %5089 = vmatmul.bf16.vlgmr.msrb.gmra.mxu1 %v12548_v6  ;;  %5731 = vmatmul.bf16.gmra.mxu0 %v12502_v33  ;;  %v10979_v62 = vadd.f32 %v4785_v60, %v4506_v61  ;;  %v7650_v6 = vld [vmem:[%s11939_s6 + $0x468] sm:$0xf0]  ;;  %v12554_v33 = vld [vmem:[#allocation16_spill] sm:$0xff] }
 0x692   : > { %5339 = vmatmul.bf16.vlgmr.msrb.gmra.mxu2 %v12422_v28  ;;  %v7826_v28 = vld [vmem:[%s11939_s6 + $0x464] sm:$0xf]  ;;  %5773 = vmatpush.bf16.msra.mxu1 %v7573_v16 }
 0x693   : > { %12549 = vst [vmem:[#allocation47_spill] sm:$0xff] %v10979_v62  ;;  %v7653_v17 = vor.u32 %v7826_v28, %v7650_v6  ;;  %v12561_v62 = vld [vmem:[#allocation71_spill] sm:$0xff] }
 0x695   : > { %v4696_v4 = vpop.f32.mrf.mxu2  ;;  %v4787_v35 = vpop.f32.mrf.mxu3  ;;  %6118 = vmatpush.bf16.msra.mxu3 %v7653_v17  ;;  %v12565_v17 = vld [vmem:[#allocation96_spill] sm:$0xff] }
 0x696   : > { %v10992_v60 = vadd.f32 %v4696_v4, %v4505_v20  ;;  %v4435_v61 = vpop.f32.mrf.mxu1  ;;  %v12556_v20 = vld [vmem:[#allocation44_spill] sm:$0xff]  ;;  %v11010_v4 = vpop.f32.mrf.mxu0 }
 0x697   : > { %v4508_v18 = vadd.f32 %v4435_v61, %v12554_v33  ;;  %12557 = vst [vmem:[#allocation82_spill] sm:$0xff] %v11010_v4  ;;  %v12559_v33 = vld [vmem:[#allocation93_spill] sm:$0xff]  ;;  %v12569_v4 = vld [vmem:[#allocation46_spill] sm:$0xff] }
 0x698   : > { %12553 = vst [vmem:[#allocation75_spill] sm:$0xff] %v10992_v60  ;;  %v4507_v61 = vadd.f32 %v12559_v33, %v12558_v12 }
 0x699   : > { %v11007_v53 = vadd.f32 %v4787_v35, %v4508_v18  ;;  %v12564_v35 = vld [vmem:[#allocation39_spill] sm:$0xff] }
 0x69a   : > { %5433 = vmatmul.bf16.gmra.mxu3 %v12556_v20  ;;  %v4509_v22 = vadd.f32 %v12565_v17, %v12564_v35  ;;  %v12573_v17 = vld [vmem:[#allocation22_spill] sm:$0xff] }
 0x69b   : > { %12555 = vst [vmem:[#allocation79_spill] sm:$0xff] %v11007_v53 }
 0x69d   : > { %v4698_v28 = vpop.f32.mrf.mxu2  ;;  %v4790_v6 = vpop.f32.mrf.mxu3 }
 0x69e   : > { %v11014_v48 = vadd.f32 %v4698_v28, %v4507_v61  ;;  %v4438_v60 = vpop.f32.mrf.mxu1  ;;  %v11024_v16 = vpop.f32.mrf.mxu0  ;;  %v12567_v28 = vld [vmem:[#allocation9_spill] sm:$0xff] }
 0x69f   : > { %v4510_v27 = vadd.f32 %v4438_v60, %v12561_v62  ;;  %12566 = vst [vmem:[#allocation88_spill] sm:$0xff] %v11024_v16 }
 0x6a0   : > { %12560 = vst [vmem:[#allocation85_spill] sm:$0xff] %v11014_v48 }
 0x6a1   : > { %5094 = vmatmul.bf16.gmra.mxu1 %v12562_v3  ;;  %5736 = vmatmul.bf16.gmra.mxu0 %v12507_v46  ;;  %v11019_v18 = vadd.f32 %v4790_v6, %v4510_v27  ;;  %v12570_v27 = vld [vmem:[#allocation6_spill] sm:$0xff] }
 0x6a2   : > { %5344 = vmatmul.bf16.gmra.mxu2 %v12556_v20  ;;  %v12571_v6 = vld [vmem:[#allocation98_spill] sm:$0xff] }
 0x6a3   : > { %12563 = vst [vmem:[#allocation38_spill] sm:$0xff] %v11019_v18  ;;  %v4511_v46 = vadd.f32 %v12571_v6, %v12570_v27 }
 0x6a5   : > { %v4701_v39 = vpop.f32.mrf.mxu2  ;;  %v4792_v12 = vpop.f32.mrf.mxu3 }
 0x6a6   : > { %v11026_v33 = vadd.f32 %v4701_v39, %v4509_v22  ;;  %v4440_v61 = vpop.f32.mrf.mxu1  ;;  %v11037_v16 = vpop.f32.mrf.mxu0  ;;  %v12575_v22 = vld [vmem:[#allocation20_spill] sm:$0xff] }
 0x6a7   : > { %v4512_v62 = vadd.f32 %v4440_v61, %v12567_v28  ;;  %12574 = vst [vmem:[#allocation29_spill] sm:$0xff] %v11037_v16  ;;  %v12577_v28 = vld [vmem:[#allocation41_spill] sm:$0xff] }
 0x6a9   : > { %v11029_v60 = vadd.f32 %v4792_v12, %v4512_v62  ;;  %v7640_v12 = vld [vmem:[%s11939_s6 + $0x450] sm:$0xf]  ;;  %v12578_v62 = vld [vmem:[#allocation99_spill] sm:$0xff] }
 0x6aa   : > { %5438 = vmatmul.bf16.gmra.mxu3 %v12569_v4  ;;  %v4513_v27 = vadd.f32 %v12578_v62, %v12577_v28 }
 0x6ab   : > { %12568 = vst [vmem:[#allocation48_spill] sm:$0xff] %v11029_v60  ;;  %v12585_v60 = vld [vmem:[#allocation26_spill] sm:$0xff] }
 0x6ad   : > { %v4703_v20 = vpop.f32.mrf.mxu2  ;;  %v4795_v18 = vpop.f32.mrf.mxu3 }
 0x6ae   : > { %v11034_v48 = vadd.f32 %v4703_v20, %v4511_v46  ;;  %v4443_v35 = vpop.f32.mrf.mxu1  ;;  %v7825_v46 = vld [vmem:[%s11939_s6 + $0x454] sm:$0xf0] }
 0x6af   : > { %v4514_v53 = vadd.f32 %v4443_v35, %v12573_v17  ;;  %v7641_v61 = vor.u32 %v7825_v46, %v7640_v12  ;;  %v12580_v17 = vld [vmem:[#allocation30_spill] sm:$0xff]  ;;  %v7808_v46 = vld [vmem:[%s11939_s6 + $0x3d4] sm:$0xf] }
 0x6b0   : > { %12572 = vst [vmem:[#allocation8_spill] sm:$0xff] %v11034_v48 }
 0x6b1   : > { %5099 = vmatmul.bf16.gmra.mxu1 %v12575_v22  ;;  %5741 = vmatmul.bf16.gmra.mxu0 %v12516_v36  ;;  %v11041_v39 = vadd.f32 %v4795_v18, %v4514_v53  ;;  %v7642_v18 = vld [vmem:[%s11939_s6 + $0x458] sm:$0xf0] }
 0x6b2   : > { %5349 = vmatmul.bf16.gmra.mxu2 %v12569_v4  ;;  %v7824_v4 = vld [vmem:[%s11939_s6 + $0x454] sm:$0xf] }
 0x6b3   : > { %12576 = vst [vmem:[#allocation90_spill] sm:$0xff] %v11041_v39  ;;  %6030 = vmatpush.bf16.msra.mxu2 %v7641_v61  ;;  %v7645_v12 = vor.u32 %v7824_v4, %v7642_v18  ;;  %v7562_v61 = vld [vmem:[%s11939_s6 + $0x3d8] sm:$0xf0] }
 0x6b4   : > { %v7565_v28 = vor.u32 %v7808_v46, %v7562_v61  ;;  %v12584_v39 = vld [vmem:[#allocation37_spill] sm:$0xff] }
 0x6b5   : > { %v4706_v6 = vpop.f32.mrf.mxu2  ;;  %v4797_v20 = vpop.f32.mrf.mxu3  ;;  %6119 = vmatpush.bf16.msra.mxu3 %v7645_v12  ;;  %v12587_v12 = vld [vmem:[#allocation66_spill] sm:$0xff] }
 0x6b6   : > { %v11052_v35 = vadd.f32 %v4706_v6, %v4513_v27  ;;  %v4445_v53 = vpop.f32.mrf.mxu1  ;;  %v11069_v27 = vpop.f32.mrf.mxu0  ;;  %5774 = vmatpush.bf16.msra.mxu1 %v7565_v28  ;;  %v12582_v6 = vld [vmem:[#allocation28_spill] sm:$0xff]  ;;  %v4517_v46 = vadd.f32 %v12587_v12, %v10543_v41 }
 0x6b7   : > { %v4516_v36 = vadd.f32 %v4445_v53, %v12580_v17  ;;  %12581 = vst [vmem:[#allocation44_spill] sm:$0xff] %v11069_v27  ;;  %v12583_v53 = vld [vmem:[#allocation101_spill] sm:$0xff]  ;;  %v12591_v12 = vld [vmem:[#allocation36_spill] sm:$0xff] }
 0x6b8   : > { %12579 = vst [vmem:[#allocation16_spill] sm:$0xff] %v11052_v35  ;;  %v4515_v4 = vadd.f32 %v12583_v53, %v12582_v6 }
 0x6b9   : > { %v11067_v62 = vadd.f32 %v4797_v20, %v4516_v36 }
 0x6ba   : > { %5443 = vmatmul.bf16.gmra.mxu3 %v9390_v1 }
 0x6bd   : > { %v4708_v18 = vpop.f32.mrf.mxu2  ;;  %v4800_v17 = vpop.f32.mrf.mxu3 }
 0x6be   : > { %v11074_v16 = vadd.f32 %v4708_v18, %v4515_v4  ;;  %v4448_v35 = vpop.f32.mrf.mxu1  ;;  %v11082_v20 = vpop.f32.mrf.mxu0 }
 0x6bf   : > { %v4518_v48 = vadd.f32 %v4448_v35, %v12584_v39  ;;  %12586 = vst [vmem:[#allocation35_spill] sm:$0xff] %v11082_v20 }
 0x6c1   : > { %5104 = vmatmul.bf16.gmra.mxu1 %v12585_v60  ;;  %5746 = vmatmul.bf16.gmra.mxu0 %v12520_v15  ;;  %v11079_v36 = vadd.f32 %v4800_v17, %v4518_v48  ;;  %v12588_v48 = vld [vmem:[#allocation102_spill] sm:$0xff] }
 0x6c2   : > { %5354 = vmatmul.bf16.gmra.mxu2 %v9390_v1  ;;  %v4519_v4 = vadd.f32 %v12588_v48, %v10552_v9  ;;  %v7632_v9 = vld [vmem:[%s11939_s6 + $0x440] sm:$0xf]  ;;  %v12595_v48 = vld [vmem:[#allocation65_spill] sm:$0xff] }
 0x6c5   : > { %v4711_v61 = vpop.f32.mrf.mxu2  ;;  %v4802_v28 = vpop.f32.mrf.mxu3 }
 0x6c6   : > { %v11086_v6 = vadd.f32 %v4711_v61, %v4517_v46  ;;  %v4450_v53 = vpop.f32.mrf.mxu1  ;;  %v11094_v17 = vpop.f32.mrf.mxu0  ;;  %v12592_v61 = vld [vmem:[#allocation49_spill] sm:$0xff] }
 0x6c7   : > { %v4520_v39 = vadd.f32 %v4450_v53, %v10548_v34  ;;  %12589 = vst [vmem:[#allocation93_spill] sm:$0xff] %v11094_v17 }
 0x6c9   : > { %v11089_v35 = vadd.f32 %v4802_v28, %v4520_v39  ;;  %v7823_v28 = vld [vmem:[%s11939_s6 + $0x444] sm:$0xf0]  ;;  %v12594_v39 = vld [vmem:[#allocation34_spill] sm:$0xff] }
 0x6ca   : > { %5448 = vmatmul.bf16.gmra.mxu3 %v12464_v40  ;;  %v7633_v53 = vor.u32 %v7823_v28, %v7632_v9  ;;  %v7806_v28 = vld [vmem:[%s11939_s6 + $0x3c4] sm:$0xf] }
 0x6cc   : > { %6031 = vmatpush.bf16.msra.mxu2 %v7633_v53  ;;  %v7554_v53 = vld [vmem:[%s11939_s6 + $0x3c8] sm:$0xf0] }
 0x6cd   : > { %v4713_v1 = vpop.f32.mrf.mxu2  ;;  %v4805_v18 = vpop.f32.mrf.mxu3 }
 0x6ce   : > { %v11096_v15 = vadd.f32 %v4713_v1, %v4519_v4  ;;  %v4453_v41 = vpop.f32.mrf.mxu1  ;;  %v4521_v4 = vadd.f32 %v12595_v48, %v12594_v39  ;;  %v11127_v39 = vpop.f32.mrf.mxu0  ;;  %v7557_v48 = vor.u32 %v7806_v28, %v7554_v53 }
 0x6cf   : > { %v4522_v46 = vadd.f32 %v4453_v41, %v12591_v12  ;;  %12598 = vst [vmem:[#allocation96_spill] sm:$0xff] %v11127_v39 }
 0x6d0   : > { %12590 = vst [vmem:[#allocation71_spill] sm:$0xff] %v11096_v15  ;;  %5775 = vmatpush.bf16.msra.mxu1 %v7557_v48  ;;  %v12603_v15 = vld [vmem:[#allocation77_spill] sm:$0xff] }
 0x6d1   : > { %5109 = vmatmul.bf16.gmra.mxu1 %v12592_v61  ;;  %5751 = vmatmul.bf16.gmra.mxu0 %v12529_v47  ;;  %v11101_v34 = vadd.f32 %v4805_v18, %v4522_v46  ;;  %v7634_v46 = vld [vmem:[%s11939_s6 + $0x448] sm:$0xf0]  ;;  %v12597_v47 = vld [vmem:[#allocation117_spill] sm:$0xff] }
 0x6d2   : > { %5359 = vmatmul.bf16.gmra.mxu2 %v12464_v40  ;;  %v7822_v40 = vld [vmem:[%s11939_s6 + $0x444] sm:$0xf] }
 0x6d3   : > { %12593 = vst [vmem:[#allocation15_spill] sm:$0xff] %v11101_v34  ;;  %v7637_v9 = vor.u32 %v7822_v40, %v7634_v46 }
 0x6d5   : > { %v4716_v1 = vpop.f32.mrf.mxu2  ;;  %v4807_v41 = vpop.f32.mrf.mxu3  ;;  %6120 = vmatpush.bf16.msra.mxu3 %v7637_v9 }
 0x6d6   : > { %v11112_v12 = vadd.f32 %v4716_v1, %v4521_v4  ;;  %v4455_v18 = vpop.f32.mrf.mxu1  ;;  %v12599_v1 = vld [vmem:[#allocation118_spill] sm:$0xff] }
 0x6d7   : > { %v4524_v17 = vadd.f32 %v4455_v18, %v12597_v47  ;;  %v12600_v47 = vld [vmem:[#allocation105_spill] sm:$0xff] }
 0x6d8   : > { %12596 = vst [vmem:[#allocation39_spill] sm:$0xff] %v11112_v12  ;;  %v4523_v18 = vadd.f32 %v12600_v47, %v12599_v1  ;;  %v12602_v12 = vld [vmem:[#allocation74_spill] sm:$0xff] }
 0x6d9   : > { %v11129_v4 = vadd.f32 %v4807_v41, %v4524_v17  ;;  %v11141_v17 = vpop.f32.mrf.mxu0  ;;  %v12606_v41 = vld [vmem:[#allocation3_spill] sm:$0xff] }
 0x6da   : > { %5453 = vmatmul.bf16.gmra.mxu3 %v9493_v21  ;;  %12605 = vst [vmem:[#allocation6_spill] sm:$0xff] %v11141_v17  ;;  %v4525_v28 = vadd.f32 %v12606_v41, %v10637_v43  ;;  %v12615_v41 = vld [vmem:[#allocation76_spill] sm:$0xff] }
 0x6dd   : > { %v4718_v40 = vpop.f32.mrf.mxu2  ;;  %v4810_v46 = vpop.f32.mrf.mxu3 }
 0x6de   : > { %v11134_v20 = vadd.f32 %v4718_v40, %v4523_v18  ;;  %v4458_v27 = vpop.f32.mrf.mxu1  ;;  %v12608_v18 = vld [vmem:[#allocation73_spill] sm:$0xff]  ;;  %v12610_v40 = vld [vmem:[#allocation54_spill] sm:$0xff] }
 0x6df   : > { %v4526_v34 = vadd.f32 %v4458_v27, %v12602_v12 }
 0x6e0   : > { %12601 = vst [vmem:[#allocation9_spill] sm:$0xff] %v11134_v20  ;;  %v12630_v20 = vld [vmem:[#allocation89_spill] sm:$0xff] }
 0x6e1   : > { %5114 = vmatmul.bf16.gmra.mxu1 %v12603_v15  ;;  %5756 = vmatmul.bf16.gmra.mxu0 %v12534_v11  ;;  %v11139_v9 = vadd.f32 %v4810_v46, %v4526_v34  ;;  %v11152_v34 = vpop.f32.mrf.mxu0  ;;  %v12612_v46 = vld [vmem:[#allocation78_spill] sm:$0xff] }
 0x6e2   : > { %5364 = vmatmul.bf16.gmra.mxu2 %v9493_v21  ;;  %12611 = vst [vmem:[#allocation20_spill] sm:$0xff] %v11152_v34  ;;  %v12613_v11 = vld [vmem:[#allocation106_spill] sm:$0xff] }
 0x6e3   : > { %12604 = vst [vmem:[#allocation46_spill] sm:$0xff] %v11139_v9  ;;  %v4527_v17 = vadd.f32 %v12613_v11, %v12612_v46  ;;  %v7821_v11 = vld [vmem:[%s11939_s6 + $0x434] sm:$0xf0] }
 0x6e5   : > { %v4721_v53 = vpop.f32.mrf.mxu2  ;;  %v4812_v48 = vpop.f32.mrf.mxu3 }
 0x6e6   : > { %v11146_v1 = vadd.f32 %v4721_v53, %v4525_v28  ;;  %v4460_v47 = vpop.f32.mrf.mxu1  ;;  %v12616_v53 = vld [vmem:[#allocation84_spill] sm:$0xff] }
 0x6e7   : > { %v4528_v27 = vadd.f32 %v4460_v47, %v12608_v18  ;;  %v7624_v47 = vld [vmem:[%s11939_s6 + $0x430] sm:$0xf] }
 0x6e8   : > { %12607 = vst [vmem:[#allocation98_spill] sm:$0xff] %v11146_v1  ;;  %v12618_v18 = vld [vmem:[#allocation80_spill] sm:$0xff] }
 0x6e9   : > { %v11149_v12 = vadd.f32 %v4812_v48, %v4528_v27  ;;  %v12619_v27 = vld [vmem:[#allocation5_spill] sm:$0xff] }
 0x6ea   : > { %5458 = vmatmul.bf16.gmra.mxu3 %v12610_v40  ;;  %v4529_v46 = vadd.f32 %v12619_v27, %v12618_v18  ;;  %v7546_v18 = vld [vmem:[%s11939_s6 + $0x3b8] sm:$0xf0] }
 0x6eb   : > { %12609 = vst [vmem:[#allocation22_spill] sm:$0xff] %v11149_v12 }
 0x6ed   : > { %v4723_v21 = vpop.f32.mrf.mxu2  ;;  %v4815_v39 = vpop.f32.mrf.mxu3 }
 0x6ee   : > { %v11156_v9 = vadd.f32 %v4723_v21, %v4527_v17  ;;  %v4463_v43 = vpop.f32.mrf.mxu1  ;;  %v7625_v17 = vor.u32 %v7821_v11, %v7624_v47  ;;  %v12622_v47 = vld [vmem:[#allocation120_spill] sm:$0xff] }
 0x6ef   : > { %v4530_v28 = vadd.f32 %v4463_v43, %v12615_v41 }
 0x6f0   : > { %12614 = vst [vmem:[#allocation41_spill] sm:$0xff] %v11156_v9  ;;  %6032 = vmatpush.bf16.msra.mxu2 %v7625_v17  ;;  %v7804_v17 = vld [vmem:[%s11939_s6 + $0x3b4] sm:$0xf]  ;;  %v12628_v9 = vld [vmem:[#allocation122_spill] sm:$0xff] }
 0x6f1   : > { %5119 = vmatmul.bf16.gmra.mxu1 %v12616_v53  ;;  %5761 = vmatmul.bf16.gmra.mxu0 %v10945_v55  ;;  %v11161_v48 = vadd.f32 %v4815_v39, %v4530_v28  ;;  %v7626_v28 = vld [vmem:[%s11939_s6 + $0x438] sm:$0xf0]  ;;  %v11180_v55 = vpop.f32.mrf.mxu0  ;;  %v7549_v27 = vor.u32 %v7804_v17, %v7546_v18  ;;  %v12634_v17 = vld [vmem:[#allocation10_spill] sm:$0xff] }
 0x6f2   : > { %5369 = vmatmul.bf16.gmra.mxu2 %v12610_v40  ;;  %v7820_v40 = vld [vmem:[%s11939_s6 + $0x434] sm:$0xf]  ;;  %12621 = vst [vmem:[#allocation28_spill] sm:$0xff] %v11180_v55 }
 0x6f3   : > { %12617 = vst [vmem:[#allocation99_spill] sm:$0xff] %v11161_v48  ;;  %v7629_v34 = vor.u32 %v7820_v40, %v7626_v28  ;;  %5776 = vmatpush.bf16.msra.mxu1 %v7549_v27  ;;  %v12626_v55 = vld [vmem:[#allocation108_spill] sm:$0xff] }
 0x6f5   : > { %v4726_v21 = vpop.f32.mrf.mxu2  ;;  %v4817_v43 = vpop.f32.mrf.mxu3  ;;  %6121 = vmatpush.bf16.msra.mxu3 %v7629_v34  ;;  %v12631_v34 = vld [vmem:[#allocation33_spill] sm:$0xff] }
 0x6f6   : > { %v11172_v41 = vadd.f32 %v4726_v21, %v4529_v46  ;;  %v4465_v39 = vpop.f32.mrf.mxu1  ;;  %v12624_v21 = vld [vmem:[#allocation61_spill] sm:$0xff] }
 0x6f7   : > { %v4532_v11 = vadd.f32 %v4465_v39, %v12622_v47 }
 0x6f8   : > { %12620 = vst [vmem:[#allocation30_spill] sm:$0xff] %v11172_v41  ;;  %v12625_v41 = vld [vmem:[#allocation83_spill] sm:$0xff] }
 0x6f9   : > { %v11189_v46 = vadd.f32 %v4817_v43, %v4532_v11  ;;  %v4531_v48 = vadd.f32 %v12626_v55, %v12625_v41  ;;  %v11197_v1 = vpop.f32.mrf.mxu0  ;;  %v12633_v11 = vld [vmem:[#allocation86_spill] sm:$0xff] }
 0x6fa   : > { %5463 = vmatmul.bf16.gmra.mxu3 %v12624_v21  ;;  %12629 = vst [vmem:[#allocation26_spill] sm:$0xff] %v11197_v1  ;;  %v4533_v55 = vadd.f32 %v12634_v17, %v12633_v11  ;;  %v12636_v1 = vld [vmem:[#allocation125_spill] sm:$0xff]  ;;  %v12638_v11 = vld [vmem:[#allocation126_spill] sm:$0xff] }
 0x6fb   : > { %12623 = vst [vmem:[#allocation101_spill] sm:$0xff] %v11189_v46  ;;  %v12639_v46 = vld [vmem:[#allocation94_spill] sm:$0xff] }
 0x6fd   : > { %v4728_v39 = vpop.f32.mrf.mxu2  ;;  %v4820_v40 = vpop.f32.mrf.mxu3 }
 0x6fe   : > { %v11194_v28 = vadd.f32 %v4728_v39, %v4531_v48  ;;  %v4468_v47 = vpop.f32.mrf.mxu1  ;;  %v12635_v39 = vld [vmem:[#allocation124_spill] sm:$0xff] }
 0x6ff   : > { %v4534_v12 = vadd.f32 %v4468_v47, %v12628_v9 }
 0x700   : > { %12627 = vst [vmem:[#allocation37_spill] sm:$0xff] %v11194_v28 }
 0x701   : > { %5124 = vmatmul.bf16.gmra.mxu1 %v12630_v20  ;;  %5766 = vmatmul.bf16.gmra.mxu0 %v12631_v34  ;;  %v11201_v43 = vadd.f32 %v4820_v40, %v4534_v12  ;;  %v12637_v34 = vld [vmem:[#allocation110_spill] sm:$0xff] }
 0x702   : > { %5374 = vmatmul.bf16.gmra.mxu2 %v12624_v21  ;;  %v4535_v12 = vadd.f32 %v12637_v34, %v12636_v1  ;;  %v7819_v1 = vld [vmem:[%s11939_s6 + $0x424] sm:$0xf0] }
 0x703   : > { %12632 = vst [vmem:[#allocation66_spill] sm:$0xff] %v11201_v43 }
 0x705   : > { %v4731_v41 = vpop.f32.mrf.mxu2  ;;  %v4822_v18 = vpop.f32.mrf.mxu3 }
 0x706   : > { %v11206_v48 = vadd.f32 %v4731_v41, %v4533_v55  ;;  %v4470_v27 = vpop.f32.mrf.mxu1  ;;  %v7616_v41 = vld [vmem:[%s11939_s6 + $0x420] sm:$0xf] }
 0x707   : > { %v4536_v9 = vadd.f32 %v4470_v27, %v12635_v39  ;;  %v7617_v34 = vor.u32 %v7819_v1, %v7616_v41  ;;  %v12642_v27 = vld [vmem:[#allocation111_spill] sm:$0xff]  ;;  %v7802_v41 = vld [vmem:[%s11939_s6 + $0x3a4] sm:$0xf] }
 0x708   : > { %v7538_v1 = vld [vmem:[%s11939_s6 + $0x3a8] sm:$0xf0] }
 0x709   : > { %v11209_v47 = vadd.f32 %v4822_v18, %v4536_v9  ;;  %v12641_v18 = vld [vmem:[#allocation92_spill] sm:$0xff]  ;;  %6033 = vmatpush.bf16.msra.mxu2 %v7617_v34  ;;  %v7541_v34 = vor.u32 %v7802_v41, %v7538_v1 }
 0x70a   : > { %5468 = vmatmul.bf16.gmra.mxu3 %v9614_v45  ;;  %v5170_v39 = vadd.f32 %v12642_v27, %v12641_v18  ;;  %v12644_v27 = vld [vmem:[#allocation112_spill] sm:$0xff] }
 0x70b   : > { %5777 = vmatpush.bf16.msra.mxu1 %v7541_v34 }
 0x70d   : > { %v4733_v40 = vpop.f32.mrf.mxu2  ;;  %v5429_v43 = vpop.f32.mrf.mxu3 }
 0x70e   : > { %v11214_v21 = vadd.f32 %v4733_v40, %v4535_v12  ;;  %v5090_v28 = vpop.f32.mrf.mxu1  ;;  %v7618_v40 = vld [vmem:[%s11939_s6 + $0x428] sm:$0xf0] }
 0x70f   : > { %v5171_v17 = vadd.f32 %v5090_v28, %v12638_v11 }
 0x711   : > { %5129 = vmatmul.bf16.gmra.mxu1 %v12639_v46  ;;  %v11218_v55 = vadd.f32 %v5429_v43, %v5171_v17 }
 0x712   : > { %5379 = vmatmul.bf16.gmra.mxu2 %v9614_v45  ;;  %v7818_v45 = vld [vmem:[%s11939_s6 + $0x424] sm:$0xf] }
 0x713   : > { %12640 = vst [vmem:[#allocation102_spill] sm:$0xff] %v11218_v55  ;;  %v7621_v17 = vor.u32 %v7818_v45, %v7618_v40 }
 0x715   : > { %v5340_v9 = vpop.f32.mrf.mxu2  ;;  %v5431_v28 = vpop.f32.mrf.mxu3  ;;  %6122 = vmatpush.bf16.msra.mxu3 %v7621_v17 }
 0x716   : > { %v11229_v12 = vadd.f32 %v5340_v9, %v5170_v39  ;;  %v5092_v43 = vpop.f32.mrf.mxu1  ;;  %v5172_v39 = vadd.f32 %v12644_v27, %v10766_v0 }
 0x717   : > { %v5173_v11 = vadd.f32 %v5092_v43, %v10760_v57 }
 0x718   : > { %12643 = vst [vmem:[#allocation36_spill] sm:$0xff] %v11229_v12  ;;  %v12645_v12 = vld [vmem:[#allocation60_spill] sm:$0xff] }
 0x719   : > { %v11244_v18 = vadd.f32 %v5431_v28, %v5173_v11  ;;  %v12646_v28 = vld [vmem:[#allocation113_spill] sm:$0xff] }
 0x71a   : > { %5473 = vmatmul.bf16.gmra.mxu3 %v9653_v30  ;;  %v5174_v11 = vadd.f32 %v12646_v28, %v10778_v2 }
 0x71d   : > { %v5342_v57 = vpop.f32.mrf.mxu2  ;;  %v5434_v9 = vpop.f32.mrf.mxu3 }
 0x71e   : > { %v11249_v43 = vadd.f32 %v5342_v57, %v5172_v39  ;;  %v5095_v45 = vpop.f32.mrf.mxu1 }
 0x71f   : > { %v5175_v40 = vadd.f32 %v5095_v45, %v10771_v32  ;;  %v12647_v32 = vld [vmem:[#allocation4_spill] sm:$0xff] }
 0x720   : > { %v5176_v39 = vadd.f32 %v12647_v32, %v10788_v7  ;;  %v7817_v7 = vld [vmem:[%s11939_s6 + $0x414] sm:$0xf0] }
 0x721   : > { %5134 = vmatmul.bf16.gmra.mxu1 %v12645_v12  ;;  %v11253_v55 = vadd.f32 %v5434_v9, %v5175_v40  ;;  %v12648_v40 = vld [vmem:[#allocation68_spill] sm:$0xff] }
 0x722   : > { %5384 = vmatmul.bf16.gmra.mxu2 %v9653_v30 }
 0x725   : > { %v5345_v17 = vpop.f32.mrf.mxu2  ;;  %v5436_v41 = vpop.f32.mrf.mxu3 }
 0x726   : > { %v11258_v1 = vadd.f32 %v5345_v17, %v5174_v11  ;;  %v5097_v0 = vpop.f32.mrf.mxu1  ;;  %v12650_v17 = vld [vmem:[#allocation95_spill] sm:$0xff] }
 0x727   : > { %v5177_v34 = vadd.f32 %v5097_v0, %v10781_v25  ;;  %v7608_v25 = vld [vmem:[%s11939_s6 + $0x410] sm:$0xf] }
 0x728   : > { %v7609_v11 = vor.u32 %v7817_v7, %v7608_v25  ;;  %v7530_v25 = vld [vmem:[%s11939_s6 + $0x398] sm:$0xf0] }
 0x729   : > { %v11261_v27 = vadd.f32 %v5436_v41, %v5177_v34  ;;  %v12651_v41 = vld [vmem:[#allocation114_spill] sm:$0xff] }
 0x72a   : > { %5478 = vmatmul.bf16.gmra.mxu3 %v9703_v24  ;;  %v5178_v0 = vadd.f32 %v12651_v41, %v12650_v17  ;;  %6034 = vmatpush.bf16.msra.mxu2 %v7609_v11  ;;  %v12652_v17 = vld [vmem:[#allocation115_spill] sm:$0xff] }
 0x72b   : > { %v5180_v41 = vadd.f32 %v12652_v17, %v10826_v29 }
 0x72d   : > { %v5347_v57 = vpop.f32.mrf.mxu2  ;;  %v5439_v9 = vpop.f32.mrf.mxu3 }
 0x72e   : > { %v11266_v30 = vadd.f32 %v5347_v57, %v5176_v39  ;;  %v5100_v45 = vpop.f32.mrf.mxu1  ;;  %v7610_v57 = vld [vmem:[%s11939_s6 + $0x418] sm:$0xf0] }
 0x72f   : > { %v5179_v2 = vadd.f32 %v5100_v45, %v10793_v59 }
 0x731   : > { %5139 = vmatmul.bf16.gmra.mxu1 %v12648_v40  ;;  %v11270_v28 = vadd.f32 %v5439_v9, %v5179_v2  ;;  %v7800_v2 = vld [vmem:[%s11939_s6 + $0x394] sm:$0xf] }
 0x732   : > { %5389 = vmatmul.bf16.gmra.mxu2 %v9703_v24  ;;  %v7816_v24 = vld [vmem:[%s11939_s6 + $0x414] sm:$0xf]  ;;  %v7533_v7 = vor.u32 %v7800_v2, %v7530_v25 }
 0x733   : > { %12649 = vst [vmem:[#allocation49_spill] sm:$0xff] %v11270_v28  ;;  %v7613_v45 = vor.u32 %v7816_v24, %v7610_v57  ;;  %v12653_v57 = vld [vmem:[#allocation103_spill] sm:$0xff] }
 0x734   : > { %5778 = vmatpush.bf16.msra.mxu1 %v7533_v7 }
 0x735   : > { %v5350_v34 = vpop.f32.mrf.mxu2  ;;  %v5441_v59 = vpop.f32.mrf.mxu3  ;;  %6123 = vmatpush.bf16.msra.mxu3 %v7613_v45 }
 0x736   : > { %v11281_v32 = vadd.f32 %v5350_v34, %v5178_v0  ;;  %v5102_v39 = vpop.f32.mrf.mxu1 }
 0x737   : > { %v5181_v9 = vadd.f32 %v5102_v39, %v10821_v51 }
 0x739   : > { %v11296_v11 = vadd.f32 %v5441_v59, %v5181_v9  ;;  %v12654_v59 = vld [vmem:[#allocation116_spill] sm:$0xff] }
 0x73a   : > { %5483 = vmatmul.bf16.gmra.mxu3 %v9742_v42  ;;  %v5182_v9 = vadd.f32 %v12654_v59, %v10838_v26  ;;  %v12656_v26 = vld [vmem:[#allocation58_spill] sm:$0xff]  ;;  %v12657_v59 = vld [vmem:[#allocation12_spill] sm:$0xff] }
 0x73d   : > { %v5352_v51 = vpop.f32.mrf.mxu2  ;;  %v5444_v0 = vpop.f32.mrf.mxu3 }
 0x73e   : > { %v11301_v34 = vadd.f32 %v5352_v51, %v5180_v41  ;;  %v5105_v39 = vpop.f32.mrf.mxu1 }
 0x73f   : > { %v5183_v24 = vadd.f32 %v5105_v39, %v10831_v52  ;;  %v12655_v52 = vld [vmem:[#allocation21_spill] sm:$0xff] }
 0x740   : > { %v5184_v41 = vadd.f32 %v12655_v52, %v10848_v37  ;;  %v7815_v37 = vld [vmem:[%s11939_s6 + $0x404] sm:$0xf0] }
 0x741   : > { %5144 = vmatmul.bf16.gmra.mxu1 %v12653_v57  ;;  %v11305_v28 = vadd.f32 %v5444_v0, %v5183_v24 }
 0x742   : > { %5394 = vmatmul.bf16.gmra.mxu2 %v9742_v42 }
 0x745   : > { %v5355_v45 = vpop.f32.mrf.mxu2  ;;  %v5446_v2 = vpop.f32.mrf.mxu3 }
 0x746   : > { %v11310_v25 = vadd.f32 %v5355_v45, %v5182_v9  ;;  %v5107_v29 = vpop.f32.mrf.mxu1 }
 0x747   : > { %v5185_v7 = vadd.f32 %v5107_v29, %v10841_v50  ;;  %v7600_v50 = vld [vmem:[%s11939_s6 + $0x400] sm:$0xf]  ;;  %v12660_v29 = vld [vmem:[#allocation27_spill] sm:$0xff] }
 0x748   : > { %v7601_v45 = vor.u32 %v7815_v37, %v7600_v50  ;;  %v7798_v50 = vld [vmem:[%s11939_s6 + $0x384] sm:$0xf]  ;;  %v7522_v37 = vld [vmem:[%s11939_s6 + $0x388] sm:$0xf0] }
 0x749   : > { %v11313_v17 = vadd.f32 %v5446_v2, %v5185_v7  ;;  %v12659_v2 = vld [vmem:[#allocation100_spill] sm:$0xff] }
 0x74a   : > { %5488 = vmatmul.bf16.gmra.mxu3 %v9793_v13  ;;  %v5186_v7 = vadd.f32 %v12660_v29, %v12659_v2  ;;  %6035 = vmatpush.bf16.msra.mxu2 %v7601_v45  ;;  %v7525_v45 = vor.u32 %v7798_v50, %v7522_v37  ;;  %v12662_v29 = vld [vmem:[#allocation42_spill] sm:$0xff] }
 0x74c   : > { %5779 = vmatpush.bf16.msra.mxu1 %v7525_v45 }
 0x74d   : > { %v5357_v51 = vpop.f32.mrf.mxu2  ;;  %v5449_v0 = vpop.f32.mrf.mxu3 }
 0x74e   : > { %v11318_v42 = vadd.f32 %v5357_v51, %v5184_v41  ;;  %v5110_v39 = vpop.f32.mrf.mxu1 }
 0x74f   : > { %v5187_v24 = vadd.f32 %v5110_v39, %v12656_v26  ;;  %v7602_v39 = vld [vmem:[%s11939_s6 + $0x408] sm:$0xf0] }
 0x751   : > { %5149 = vmatmul.bf16.gmra.mxu1 %v12657_v59  ;;  %v11322_v9 = vadd.f32 %v5449_v0, %v5187_v24 }
 0x752   : > { %5399 = vmatmul.bf16.gmra.mxu2 %v9793_v13  ;;  %v7814_v13 = vld [vmem:[%s11939_s6 + $0x404] sm:$0xf] }
 0x753   : > { %12658 = vst [vmem:[#allocation34_spill] sm:$0xff] %v11322_v9  ;;  %v7605_v24 = vor.u32 %v7814_v13, %v7602_v39  ;;  %v12663_v9 = vld [vmem:[#allocation107_spill] sm:$0xff] }
 0x755   : > { %v5360_v52 = vpop.f32.mrf.mxu2  ;;  %v5451_v41 = vpop.f32.mrf.mxu3  ;;  %6124 = vmatpush.bf16.msra.mxu3 %v7605_v24 }
 0x756   : > { %v11333_v51 = vadd.f32 %v5360_v52, %v5186_v7  ;;  %v5112_v0 = vpop.f32.mrf.mxu1  ;;  %v5188_v7 = vadd.f32 %v12662_v29, %v10886_v54 }
 0x757   : > { %v5189_v26 = vadd.f32 %v5112_v0, %v10881_v56 }
 0x758   : > { %12661 = vst [vmem:[#allocation65_spill] sm:$0xff] %v11333_v51 }
 0x759   : > { %v11348_v2 = vadd.f32 %v5451_v41, %v5189_v26  ;;  %v12664_v41 = vld [vmem:[#allocation119_spill] sm:$0xff] }
 0x75a   : > { %5493 = vmatmul.bf16.gmra.mxu3 %v9844_v8  ;;  %v5190_v26 = vadd.f32 %v12664_v41, %v10898_v63 }
 0x75d   : > { %v5362_v56 = vpop.f32.mrf.mxu2  ;;  %v5454_v52 = vpop.f32.mrf.mxu3 }
 0x75e   : > { %v11353_v0 = vadd.f32 %v5362_v56, %v5188_v7  ;;  %v5115_v13 = vpop.f32.mrf.mxu1 }
 0x75f   : > { %v5191_v39 = vadd.f32 %v5115_v13, %v10893_v10  ;;  %v12665_v10 = vld [vmem:[#allocation50_spill] sm:$0xff] }
 0x760   : > { %v5192_v7 = vadd.f32 %v12665_v10, %v10909_v23 }
 0x761   : > { %5154 = vmatmul.bf16.gmra.mxu1 %v12663_v9  ;;  %v11357_v51 = vadd.f32 %v5454_v52, %v5191_v39  ;;  %v12666_v39 = vld [vmem:[#allocation109_spill] sm:$0xff] }
 0x762   : > { %5404 = vmatmul.bf16.gmra.mxu2 %v9844_v8 }
 0x765   : > { %v5365_v24 = vpop.f32.mrf.mxu2  ;;  %v5456_v50 = vpop.f32.mrf.mxu3 }
 0x766   : > { %v11362_v37 = vadd.f32 %v5365_v24, %v5190_v26  ;;  %v5117_v54 = vpop.f32.mrf.mxu1 }
 0x767   : > { %v5193_v45 = vadd.f32 %v5117_v54, %v10901_v38  ;;  %v12667_v38 = vld [vmem:[#allocation81_spill] sm:$0xff] }
 0x768   : > { %v5194_v26 = vadd.f32 %v12667_v38, %v10929_v31  ;;  %v12671_v38 = vld [vmem:[#allocation87_spill] sm:$0xff] }
 0x769   : > { %v11365_v29 = vadd.f32 %v5456_v50, %v5193_v45 }
 0x76a   : > { %5498 = vmatmul.bf16.gmra.mxu3 %v10153_v14 }
 0x76d   : > { %v5367_v56 = vpop.f32.mrf.mxu2  ;;  %v5459_v52 = vpop.f32.mrf.mxu3 }
 0x76e   : > { %v11370_v8 = vadd.f32 %v5367_v56, %v5192_v7  ;;  %v5120_v13 = vpop.f32.mrf.mxu1  ;;  %v12669_v7 = vld [vmem:[#allocation31_spill] sm:$0xff] }
 0x76f   : > { %v5195_v63 = vadd.f32 %v5120_v13, %v10914_v44  ;;  %v12670_v44 = vld [vmem:[#allocation121_spill] sm:$0xff] }
 0x770   : > { %v5196_v56 = vadd.f32 %v12670_v44, %v10954_v5  ;;  %v12675_v44 = vld [vmem:[#allocation70_spill] sm:$0xff] }
 0x771   : > { %5159 = vmatmul.bf16.gmra.mxu1 %v12666_v39  ;;  %v11374_v41 = vadd.f32 %v5459_v52, %v5195_v63 }
 0x772   : > { %5409 = vmatmul.bf16.gmra.mxu2 %v10153_v14 }
 0x775   : > { %v5370_v24 = vpop.f32.mrf.mxu2  ;;  %v5461_v50 = vpop.f32.mrf.mxu3 }
 0x776   : > { %v11379_v54 = vadd.f32 %v5370_v24, %v5194_v26  ;;  %v5122_v23 = vpop.f32.mrf.mxu1 }
 0x777   : > { %v5197_v45 = vadd.f32 %v5122_v23, %v10947_v19  ;;  %v12673_v19 = vld [vmem:[#allocation123_spill] sm:$0xff] }
 0x778   : > { %v5198_v24 = vadd.f32 %v12673_v19, %v10964_v58  ;;  %v12680_v19 = vld [vmem:[#allocation47_spill] sm:$0xff] }
 0x779   : > { %v11382_v10 = vadd.f32 %v5461_v50, %v5197_v45 }
 0x77a   : > { %5503 = vmatmul.bf16.gmra.mxu3 %v12669_v7 }
 0x77b   : > { %12668 = vst [vmem:[#allocation117_spill] sm:$0xff] %v11382_v10 }
 0x77d   : > { %v5372_v52 = vpop.f32.mrf.mxu2  ;;  %v5464_v13 = vpop.f32.mrf.mxu3 }
 0x77e   : > { %v11387_v14 = vadd.f32 %v5372_v52, %v5196_v56  ;;  %v5125_v63 = vpop.f32.mrf.mxu1 }
 0x77f   : > { %v5199_v31 = vadd.f32 %v5125_v63, %v10959_v49  ;;  %v12677_v49 = vld [vmem:[#allocation43_spill] sm:$0xff] }
 0x781   : > { %5164 = vmatmul.bf16.gmra.mxu1 %v12671_v38  ;;  %v11391_v26 = vadd.f32 %v5464_v13, %v5199_v31  ;;  %v12678_v13 = vld [vmem:[#allocation91_spill] sm:$0xff] }
 0x782   : > { %5414 = vmatmul.bf16.gmra.mxu2 %v12669_v7  ;;  %v5200_v63 = vadd.f32 %v12678_v13, %v12677_v49 }
 0x783   : > { %12672 = vst [vmem:[#allocation118_spill] sm:$0xff] %v11391_v26 }
 0x785   : > { %v5375_v50 = vpop.f32.mrf.mxu2  ;;  %v5466_v23 = vpop.f32.mrf.mxu3 }
 0x786   : > { %v11396_v5 = vadd.f32 %v5375_v50, %v5198_v24  ;;  %v5127_v45 = vpop.f32.mrf.mxu1  ;;  %v12681_v24 = vld [vmem:[#allocation40_spill] sm:$0xff] }
 0x787   : > { %v5201_v56 = vadd.f32 %v5127_v45, %v12675_v44  ;;  %v12684_v45 = vld [vmem:[#allocation23_spill] sm:$0xff] }
 0x788   : > { %12674 = vst [vmem:[#allocation105_spill] sm:$0xff] %v11396_v5  ;;  %v12690_v5 = vld [vmem:[#allocation45_spill] sm:$0xff] }
 0x789   : > { %v11399_v52 = vadd.f32 %v5466_v23, %v5201_v56  ;;  %v12683_v23 = vld [vmem:[#allocation75_spill] sm:$0xff] }
 0x78a   : > { %6125 = vmatmul.bf16.vlgmr.msra.gmra.mxu3 %v12562_v3  ;;  %v5202_v44 = vadd.f32 %v12684_v45, %v12683_v23 }
 0x78b   : > { %12676 = vst [vmem:[#allocation74_spill] sm:$0xff] %v11399_v52  ;;  %v12689_v52 = vld [vmem:[#allocation38_spill] sm:$0xff] }
 0x78d   : > { %v5377_v7 = vpop.f32.mrf.mxu2  ;;  %v5469_v31 = vpop.f32.mrf.mxu3 }
 0x78e   : > { %v11404_v26 = vadd.f32 %v5377_v7, %v5200_v63  ;;  %v5130_v58 = vpop.f32.mrf.mxu1  ;;  %v12685_v63 = vld [vmem:[#allocation79_spill] sm:$0xff] }
 0x78f   : > { %v5203_v10 = vadd.f32 %v5130_v58, %v12680_v19  ;;  %v12688_v58 = vld [vmem:[#allocation57_spill] sm:$0xff] }
 0x790   : > { %12679 = vst [vmem:[#allocation77_spill] sm:$0xff] %v11404_v26 }
 0x791   : > { %5780 = vmatmul.bf16.vlgmr.msra.gmra.mxu1 %v12681_v24  ;;  %v11408_v50 = vadd.f32 %v5469_v31, %v5203_v10  ;;  %v12687_v31 = vld [vmem:[#allocation85_spill] sm:$0xff] }
 0x792   : > { %6036 = vmatmul.bf16.vlgmr.msra.gmra.mxu2 %v12562_v3  ;;  %v5204_v19 = vadd.f32 %v12688_v58, %v12687_v31  ;;  %v12693_v58 = vld [vmem:[#allocation48_spill] sm:$0xff] }
 0x793   : > { %12682 = vst [vmem:[#allocation3_spill] sm:$0xff] %v11408_v50 }
 0x795   : > { %v5380_v56 = vpop.f32.mrf.mxu2  ;;  %v5471_v49 = vpop.f32.mrf.mxu3 }
 0x796   : > { %v11425_v13 = vadd.f32 %v5380_v56, %v5202_v44  ;;  %v5132_v10 = vpop.f32.mrf.mxu1  ;;  %v12692_v56 = vld [vmem:[#allocation62_spill] sm:$0xff] }
 0x797   : > { %v5205_v3 = vadd.f32 %v5132_v10, %v12685_v63 }
 0x799   : > { %v11428_v7 = vadd.f32 %v5471_v49, %v5205_v3  ;;  %v5206_v49 = vadd.f32 %v12692_v56, %v11026_v33  ;;  %v12697_v33 = vld [vmem:[#allocation90_spill] sm:$0xff] }
 0x79a   : > { %6130 = vmatmul.bf16.gmra.mxu3 %v12575_v22 }
 0x79b   : > { %12686 = vst [vmem:[#allocation73_spill] sm:$0xff] %v11428_v7  ;;  %v12698_v7 = vld [vmem:[#allocation56_spill] sm:$0xff] }
 0x79d   : > { %v5382_v24 = vpop.f32.mrf.mxu2  ;;  %v5474_v23 = vpop.f32.mrf.mxu3 }
 0x79e   : > { %v11433_v45 = vadd.f32 %v5382_v24, %v5204_v19  ;;  %v5135_v50 = vpop.f32.mrf.mxu1 }
 0x79f   : > { %v5207_v26 = vadd.f32 %v5135_v50, %v12689_v52  ;;  %v12695_v52 = vld [vmem:[#allocation8_spill] sm:$0xff] }
 0x7a1   : > { %5785 = vmatmul.bf16.gmra.mxu1 %v12690_v5  ;;  %v11437_v44 = vadd.f32 %v5474_v23, %v5207_v26  ;;  %v12696_v5 = vld [vmem:[#allocation2_spill] sm:$0xff] }
 0x7a2   : > { %6041 = vmatmul.bf16.gmra.mxu2 %v12575_v22  ;;  %v5208_v26 = vadd.f32 %v12696_v5, %v12695_v52 }
 0x7a3   : > { %12691 = vst [vmem:[#allocation54_spill] sm:$0xff] %v11437_v44 }
 0x7a5   : > { %v5385_v10 = vpop.f32.mrf.mxu2  ;;  %v5476_v63 = vpop.f32.mrf.mxu3 }
 0x7a6   : > { %v11442_v3 = vadd.f32 %v5385_v10, %v5206_v49  ;;  %v5137_v31 = vpop.f32.mrf.mxu1  ;;  %v12699_v10 = vld [vmem:[#allocation16_spill] sm:$0xff] }
 0x7a7   : > { %v5209_v19 = vadd.f32 %v5137_v31, %v12693_v58 }
 0x7a9   : > { %v11445_v24 = vadd.f32 %v5476_v63, %v5209_v19  ;;  %v12700_v63 = vld [vmem:[#allocation97_spill] sm:$0xff] }
 0x7aa   : > { %6135 = vmatmul.bf16.gmra.mxu3 %v12585_v60  ;;  %v5210_v31 = vadd.f32 %v12700_v63, %v12699_v10  ;;  %v12702_v10 = vld [vmem:[#allocation53_spill] sm:$0xff] }
 0x7ab   : > { %12694 = vst [vmem:[#allocation78_spill] sm:$0xff] %v11445_v24 }
 0x7ad   : > { %v5387_v50 = vpop.f32.mrf.mxu2  ;;  %v5479_v23 = vpop.f32.mrf.mxu3 }
 0x7ae   : > { %v11450_v22 = vadd.f32 %v5387_v50, %v5208_v26  ;;  %v5140_v44 = vpop.f32.mrf.mxu1 }
 0x7af   : > { %v5211_v56 = vadd.f32 %v5140_v44, %v12697_v33 }
 0x7b1   : > { %5790 = vmatmul.bf16.gmra.mxu1 %v12698_v7  ;;  %v11454_v49 = vadd.f32 %v5479_v23, %v5211_v56  ;;  %v12701_v7 = vld [vmem:[#allocation18_spill] sm:$0xff] }
 0x7b2   : > { %6046 = vmatmul.bf16.gmra.mxu2 %v12585_v60  ;;  %v5212_v44 = vadd.f32 %v12701_v7, %v11074_v16 }
 0x7b5   : > { %v5390_v58 = vpop.f32.mrf.mxu2  ;;  %v5481_v19 = vpop.f32.mrf.mxu3 }
 0x7b6   : > { %v11459_v24 = vadd.f32 %v5390_v58, %v5210_v31  ;;  %v5142_v52 = vpop.f32.mrf.mxu1 }
 0x7b7   : > { %v5213_v5 = vadd.f32 %v5142_v52, %v11067_v62  ;;  %v12703_v62 = vld [vmem:[#allocation11_spill] sm:$0xff] }
 0x7b8   : > { %v5214_v31 = vadd.f32 %v12703_v62, %v11086_v6  ;;  %v12707_v6 = vld [vmem:[#allocation15_spill] sm:$0xff] }
 0x7b9   : > { %v11462_v26 = vadd.f32 %v5481_v19, %v5213_v5  ;;  %v12708_v62 = vld [vmem:[#allocation51_spill] sm:$0xff] }
 0x7ba   : > { %6140 = vmatmul.bf16.gmra.mxu3 %v12592_v61 }
 0x7bd   : > { %v5392_v50 = vpop.f32.mrf.mxu2  ;;  %v5484_v23 = vpop.f32.mrf.mxu3 }
 0x7be   : > { %v11467_v60 = vadd.f32 %v5392_v50, %v5212_v44  ;;  %v5145_v33 = vpop.f32.mrf.mxu1  ;;  %v12706_v44 = vld [vmem:[#allocation64_spill] sm:$0xff] }
 0x7bf   : > { %v5215_v56 = vadd.f32 %v5145_v33, %v11079_v36  ;;  %v12705_v36 = vld [vmem:[#allocation71_spill] sm:$0xff] }
 0x7c0   : > { %v5216_v50 = vadd.f32 %v12706_v44, %v12705_v36 }
 0x7c1   : > { %5795 = vmatmul.bf16.gmra.mxu1 %v12702_v10  ;;  %v11471_v63 = vadd.f32 %v5484_v23, %v5215_v56 }
 0x7c2   : > { %6051 = vmatmul.bf16.gmra.mxu2 %v12592_v61 }
 0x7c5   : > { %v5395_v58 = vpop.f32.mrf.mxu2  ;;  %v5486_v19 = vpop.f32.mrf.mxu3 }
 0x7c6   : > { %v11476_v52 = vadd.f32 %v5395_v58, %v5214_v31  ;;  %v5147_v16 = vpop.f32.mrf.mxu1  ;;  %v12711_v58 = vld [vmem:[#allocation19_spill] sm:$0xff] }
 0x7c7   : > { %v5217_v5 = vadd.f32 %v5147_v16, %v11089_v35  ;;  %v12710_v35 = vld [vmem:[#allocation39_spill] sm:$0xff] }
 0x7c9   : > { %v11479_v7 = vadd.f32 %v5486_v19, %v5217_v5  ;;  %v5218_v19 = vadd.f32 %v12711_v58, %v12710_v35  ;;  %v12716_v35 = vld [vmem:[#allocation46_spill] sm:$0xff] }
 0x7ca   : > { %6145 = vmatmul.bf16.gmra.mxu3 %v12603_v15 }
 0x7cb   : > { %12704 = vst [vmem:[#allocation106_spill] sm:$0xff] %v11479_v7 }
 0x7cd   : > { %v5397_v23 = vpop.f32.mrf.mxu2  ;;  %v5489_v33 = vpop.f32.mrf.mxu3 }
 0x7ce   : > { %v11484_v61 = vadd.f32 %v5397_v23, %v5216_v50  ;;  %v5150_v56 = vpop.f32.mrf.mxu1  ;;  %v12713_v23 = vld [vmem:[#allocation9_spill] sm:$0xff] }
 0x7cf   : > { %v5219_v10 = vadd.f32 %v5150_v56, %v12707_v6  ;;  %v12714_v56 = vld [vmem:[#allocation24_spill] sm:$0xff] }
 0x7d1   : > { %5800 = vmatmul.bf16.gmra.mxu1 %v12708_v62  ;;  %v11488_v31 = vadd.f32 %v5489_v33, %v5219_v10  ;;  %v5220_v33 = vadd.f32 %v12714_v56, %v12713_v23  ;;  %v12721_v56 = vld [vmem:[#allocation22_spill] sm:$0xff] }
 0x7d2   : > { %6056 = vmatmul.bf16.gmra.mxu2 %v12603_v15 }
 0x7d3   : > { %12709 = vst [vmem:[#allocation76_spill] sm:$0xff] %v11488_v31  ;;  %v12717_v31 = vld [vmem:[#allocation52_spill] sm:$0xff] }
 0x7d5   : > { %v5400_v16 = vpop.f32.mrf.mxu2  ;;  %v5491_v5 = vpop.f32.mrf.mxu3 }
 0x7d6   : > { %v11493_v7 = vadd.f32 %v5400_v16, %v5218_v19  ;;  %v5152_v36 = vpop.f32.mrf.mxu1  ;;  %v12720_v16 = vld [vmem:[#allocation25_spill] sm:$0xff] }
 0x7d7   : > { %v5221_v44 = vadd.f32 %v5152_v36, %v11129_v4  ;;  %v12719_v4 = vld [vmem:[#allocation98_spill] sm:$0xff] }
 0x7d9   : > { %v11496_v50 = vadd.f32 %v5491_v5, %v5221_v44  ;;  %v5222_v5 = vadd.f32 %v12720_v16, %v12719_v4  ;;  %v12725_v4 = vld [vmem:[#allocation99_spill] sm:$0xff] }
 0x7da   : > { %6150 = vmatmul.bf16.gmra.mxu3 %v12616_v53 }
 0x7db   : > { %12712 = vst [vmem:[#allocation84_spill] sm:$0xff] %v11496_v50 }
 0x7dd   : > { %v5402_v6 = vpop.f32.mrf.mxu2  ;;  %v5494_v10 = vpop.f32.mrf.mxu3 }
 0x7de   : > { %v11501_v15 = vadd.f32 %v5402_v6, %v5220_v33  ;;  %v5155_v62 = vpop.f32.mrf.mxu1 }
 0x7df   : > { %v5223_v58 = vadd.f32 %v5155_v62, %v12716_v35  ;;  %v12723_v62 = vld [vmem:[#allocation41_spill] sm:$0xff] }
 0x7e0   : > { %12715 = vst [vmem:[#allocation80_spill] sm:$0xff] %v11501_v15  ;;  %v12726_v15 = vld [vmem:[#allocation55_spill] sm:$0xff] }
 0x7e1   : > { %5805 = vmatmul.bf16.gmra.mxu1 %v12717_v31  ;;  %v11505_v19 = vadd.f32 %v5494_v10, %v5223_v58  ;;  %v12724_v31 = vld [vmem:[#allocation104_spill] sm:$0xff] }
 0x7e2   : > { %6061 = vmatmul.bf16.gmra.mxu2 %v12616_v53  ;;  %v5224_v10 = vadd.f32 %v12724_v31, %v12723_v62  ;;  %v12731_v31 = vld [vmem:[#allocation101_spill] sm:$0xff] }
 0x7e3   : > { %12718 = vst [vmem:[#allocation5_spill] sm:$0xff] %v11505_v19 }
 0x7e5   : > { %v5405_v36 = vpop.f32.mrf.mxu2  ;;  %v5496_v44 = vpop.f32.mrf.mxu3 }
 0x7e6   : > { %v11510_v50 = vadd.f32 %v5405_v36, %v5222_v5  ;;  %v5157_v23 = vpop.f32.mrf.mxu1  ;;  %v12728_v36 = vld [vmem:[#allocation30_spill] sm:$0xff] }
 0x7e7   : > { %v5225_v33 = vadd.f32 %v5157_v23, %v12721_v56 }
 0x7e9   : > { %v11513_v6 = vadd.f32 %v5496_v44, %v5225_v33  ;;  %v12729_v44 = vld [vmem:[#allocation72_spill] sm:$0xff] }
 0x7ea   : > { %6155 = vmatmul.bf16.gmra.mxu3 %v12630_v20  ;;  %v5226_v23 = vadd.f32 %v12729_v44, %v12728_v36  ;;  %v12736_v44 = vld [vmem:[#allocation66_spill] sm:$0xff] }
 0x7eb   : > { %12722 = vst [vmem:[#allocation120_spill] sm:$0xff] %v11513_v6 }
 0x7ed   : > { %v5407_v35 = vpop.f32.mrf.mxu2  ;;  %v5499_v58 = vpop.f32.mrf.mxu3 }
 0x7ee   : > { %v11518_v53 = vadd.f32 %v5407_v35, %v5224_v10  ;;  %v5160_v19 = vpop.f32.mrf.mxu1 }
 0x7ef   : > { %v5227_v16 = vadd.f32 %v5160_v19, %v12725_v4  ;;  %v12733_v19 = vld [vmem:[#allocation37_spill] sm:$0xff] }
 0x7f1   : > { %5810 = vmatmul.bf16.gmra.mxu1 %v12726_v15  ;;  %v11522_v5 = vadd.f32 %v5499_v58, %v5227_v16  ;;  %v12734_v15 = vld [vmem:[#allocation82_spill] sm:$0xff] }
 0x7f2   : > { %6066 = vmatmul.bf16.gmra.mxu2 %v12630_v20  ;;  %v5228_v58 = vadd.f32 %v12734_v15, %v12733_v19 }
 0x7f3   : > { %12727 = vst [vmem:[#allocation61_spill] sm:$0xff] %v11522_v5 }
 0x7f5   : > { %v5410_v56 = vpop.f32.mrf.mxu2  ;;  %v5501_v33 = vpop.f32.mrf.mxu3 }
 0x7f6   : > { %v11527_v6 = vadd.f32 %v5410_v56, %v5226_v23  ;;  %v5162_v62 = vpop.f32.mrf.mxu1  ;;  %v12737_v23 = vld [vmem:[#allocation59_spill] sm:$0xff] }
 0x7f7   : > { %v5229_v10 = vadd.f32 %v5162_v62, %v12731_v31 }
 0x7f8   : > { %12730 = vst [vmem:[#allocation83_spill] sm:$0xff] %v11527_v6 }
 0x7f9   : > { %v11530_v35 = vadd.f32 %v5501_v33, %v5229_v10  ;;  %v12739_v33 = vld [vmem:[#allocation88_spill] sm:$0xff] }
 0x7fa   : > { %6160 = vmatmul.bf16.gmra.mxu3 %v12639_v46  ;;  %v5230_v62 = vadd.f32 %v12739_v33, %v11206_v48  ;;  %v6340_v33 = vld [vmem:[%s11560_s13] sm:$0xff] }
 0x7fb   : > { %12732 = vst [vmem:[#allocation108_spill] sm:$0xff] %v11530_v35 }
 0x7fd   : > { %v5412_v4 = vpop.f32.mrf.mxu2  ;;  %v5504_v20 = vpop.f32.mrf.mxu3 }
 0x7fe   : > { %v11535_v16 = vadd.f32 %v5412_v4, %v5228_v58  ;;  %v5165_v36 = vpop.f32.mrf.mxu1 }
 0x7ff   : > { %v5231_v5 = vadd.f32 %v5165_v36, %v12736_v44 }
 0x800   : > { %12735 = vst [vmem:[#allocation122_spill] sm:$0xff] %v11535_v16 }
 0x801   : > { %5815 = vmatmul.bf16.gmra.mxu1 %v12737_v23  ;;  %v11539_v56 = vadd.f32 %v5504_v20, %v5231_v5  ;;  %v12742_v5 = vld [vmem:[#allocation29_spill] sm:$0xff]  ;;  %v12744_v23 = vld [vmem:[#allocation63_spill] sm:$0xff] }
 0x802   : > { %6071 = vmatmul.bf16.gmra.mxu2 %v12639_v46  ;;  %v5232_v46 = vadd.f32 %v12742_v5, %v11214_v21  ;;  %v6270_v21 = vld [vmem:[%s11940_s7] sm:$0x3] }
 0x803   : > { %12738 = vst [vmem:[#allocation89_spill] sm:$0xff] %v11539_v56  ;;  %v11574_v5 = vperm.slane %v6270_v21, 0 }
 0x805   : > { %v5415_v31 = vpop.f32.mrf.mxu2  ;;  %v5506_v10 = vpop.f32.mrf.mxu3 }
 0x806   : > { %v11544_v19 = vadd.f32 %v5415_v31, %v5230_v62  ;;  %v5167_v15 = vpop.f32.mrf.mxu1  ;;  %v12745_v62 = vld [vmem:[#allocation102_spill] sm:$0xff] }
 0x807   : > { %v5233_v58 = vadd.f32 %v5167_v15, %v11209_v47  ;;  %v11563_v47 = vld [vmem:[%s11415_s24] ss:$0 sm:$0xff]  ;;  %v12747_v15 = vld [vmem:[#allocation44_spill] sm:$0xff] }
 0x808   : > { %12740 = vst [vmem:[#allocation86_spill] sm:$0xff] %v11544_v19  ;;  %v11580_v19 = vperm.slane %v6270_v21, 1 }
 0x809   : > { %v11547_v4 = vadd.f32 %v5506_v10, %v5233_v58  ;;  %v12746_v10 = vld [vmem:[#allocation36_spill] sm:$0xff] }
 0x80a   : > { %6165 = vmatmul.bf16.gmra.mxu3 %v12645_v12  ;;  %v5861_v58 = vadd.f32 %v12747_v15, %v12746_v10 }
 0x80b   : > { %12741 = vst [vmem:[#allocation10_spill] sm:$0xff] %v11547_v4 }
 0x80d   : > { %v5417_v20 = vpop.f32.mrf.mxu2  ;;  %v6126_v36 = vpop.f32.mrf.mxu3 }
 0x80e   : > { %v11553_v44 = vadd.f32 %v5417_v20, %v5232_v46  ;;  %v5781_v48 = vpop.f32.mrf.mxu1  ;;  %v6376_v46 = vsub.f32 %v6340_v33, %v11563_v47  ;;  %v11578_v20 = vld [vmem:[%s11423_s9] ss:$0 sm:$0xff]  ;;  %v12748_v33 = vld [vmem:[#allocation35_spill] sm:$0xff] }
 0x80f   : > { %v5862_v31 = vadd.f32 %v5781_v48, %v12745_v62  ;;  %v6341_v62 = vld [vmem:[%s11560_s13 + $0x8] sm:$0xff]  ;;  %v5863_v15 = vadd.f32 %v12748_v33, %v11249_v43 }
 0x810   : > { %12743 = vst [vmem:[#allocation124_spill] sm:$0xff] %v11553_v44  ;;  %v6412_v48 = vmul.f32 %v11578_v20, %v6376_v46 }
 0x811   : > { %5820 = vmatmul.bf16.gmra.mxu1 %v12744_v23  ;;  %v6207_v56 = vadd.f32 %v6126_v36, %v5862_v31  ;;  %v6377_v36 = vsub.f32 %v6341_v62, %v11563_v47  ;;  %v12750_v62 = vld [vmem:[#allocation93_spill] sm:$0xff] }
 0x812   : > { %6076 = vmatmul.bf16.gmra.mxu2 %v12645_v12 }
 0x813   : > { %v6277_v16 = vadd.f32 %v11580_v19, %v6207_v56 }
 0x815   : > { %v6037_v23 = vpop.f32.mrf.mxu2  ;;  %v6128_v4 = vpop.f32.mrf.mxu3 }
 0x816   : > { %v6206_v44 = vadd.f32 %v6037_v23, %v5861_v58  ;;  %v5783_v12 = vpop.f32.mrf.mxu1  ;;  %v12749_v23 = vld [vmem:[#allocation67_spill] sm:$0xff] }
 0x817   : > { %v5864_v58 = vadd.f32 %v5783_v12, %v11244_v18  ;;  %v6413_v18 = vmul.f32 %v11578_v20, %v6377_v36  ;;  %v6342_v12 = vld [vmem:[%s11560_s13 + $0x10] sm:$0xff] }
 0x818   : > { %v6276_v35 = vadd.f32 %v11574_v5, %v6206_v44 }
 0x819   : > { %v6209_v56 = vadd.f32 %v6128_v4, %v5864_v58 }
 0x81a   : > { %v6444_v10 = vadd.f32 1.0, %v6276_v35  ;;  %6170 = vmatmul.bf16.gmra.mxu3 %v12648_v40 }
 0x81c   : > { %v6476_v6 = vmul.f32 %v6444_v10, %v6412_v48  ;;  %v6279_v10 = vadd.f32 %v11580_v19, %v6209_v56 }
 0x81d   : > { %v6039_v35 = vpop.f32.mrf.mxu2  ;;  %v6131_v44 = vpop.f32.mrf.mxu3 }
 0x81e   : > { %v6508_v21 = vadd.f32 %v6476_v6, %v6277_v16  ;;  %v6208_v31 = vadd.f32 %v6039_v35, %v5863_v15  ;;  %v5786_v43 = vpop.f32.mrf.mxu1  ;;  %v5865_v6 = vadd.f32 %v12750_v62, %v11258_v1  ;;  %v11607_v16 = vpop.f32.mrf.mxu0  ;;  %v6378_v15 = vsub.f32 %v6342_v12, %v11563_v47 }
 0x81f   : > { %v5866_v33 = vadd.f32 %v5786_v43, %v11253_v55  ;;  %v12751_v55 = vld [vmem:[#allocation96_spill] sm:$0xff] }
 0x820   : > { %6540 = vst.msk [vmem:[%s11596_s18] sm:$0xff] %vm989_vm5, %v6508_v21  ;;  %v6278_v46 = vadd.f32 %v11574_v5, %v6208_v31  ;;  %v6414_v1 = vmul.f32 %v11578_v20, %v6378_v15  ;;  %v5867_v43 = vadd.f32 %v12751_v55, %v11266_v30 }
 0x821   : > { %5825 = vmatmul.bf16.gmra.mxu1 %v12749_v23  ;;  %v6343_v23 = vld [vmem:[%s11560_s13 + $0x18] sm:$0xff] }
 0x822   : > { %v6445_v48 = vadd.f32 1.0, %v6278_v46  ;;  %6081 = vmatmul.bf16.gmra.mxu2 %v12648_v40  ;;  %v6211_v40 = vadd.f32 %v6131_v44, %v5866_v33  ;;  %v6379_v44 = vsub.f32 %v6343_v23, %v11563_v47 }
 0x824   : > { %v6477_v4 = vmul.f32 %v6445_v48, %v6413_v18  ;;  %v6281_v18 = vadd.f32 %v11580_v19, %v6211_v40  ;;  %v12753_v40 = vld [vmem:[#allocation6_spill] sm:$0xff] }
 0x825   : > { %v6042_v58 = vpop.f32.mrf.mxu2  ;;  %v6133_v36 = vpop.f32.mrf.mxu3 }
 0x826   : > { %v6509_v35 = vadd.f32 %v6477_v4, %v6279_v10  ;;  %v6210_v21 = vadd.f32 %v6042_v58, %v5865_v6  ;;  %v5788_v31 = vpop.f32.mrf.mxu1  ;;  %v11623_v10 = vpop.f32.mrf.mxu0 }
 0x827   : > { %v5868_v48 = vadd.f32 %v5788_v31, %v11261_v27  ;;  %v6344_v27 = vld [vmem:[%s11560_s13 + $0x20] sm:$0xff] }
 0x828   : > { %6541 = vst.msk [vmem:[%s11596_s18 + $0x8] sm:$0xff] %vm989_vm5, %v6509_v35  ;;  %v6280_v46 = vadd.f32 %v11574_v5, %v6210_v21  ;;  %v6415_v35 = vmul.f32 %v11578_v20, %v6379_v44  ;;  %v12752_v21 = vld [vmem:[#allocation69_spill] sm:$0xff]  ;;  %v6380_v55 = vsub.f32 %v6344_v27, %v11563_v47 }
 0x829   : > { %v6213_v58 = vadd.f32 %v6133_v36, %v5868_v48 }
 0x82a   : > { %v6446_v56 = vadd.f32 1.0, %v6280_v46  ;;  %6175 = vmatmul.bf16.gmra.mxu3 %v12653_v57  ;;  %v5869_v46 = vadd.f32 %v12753_v40, %v11281_v32 }
 0x82c   : > { %v6478_v12 = vmul.f32 %v6446_v56, %v6414_v1  ;;  %v6283_v1 = vadd.f32 %v11580_v19, %v6213_v58  ;;  %v12754_v56 = vld [vmem:[#allocation49_spill] sm:$0xff] }
 0x82d   : > { %v6044_v62 = vpop.f32.mrf.mxu2  ;;  %v6136_v6 = vpop.f32.mrf.mxu3 }
 0x82e   : > { %v6510_v4 = vadd.f32 %v6478_v12, %v6281_v18  ;;  %v6212_v33 = vadd.f32 %v6044_v62, %v5867_v43  ;;  %v5791_v15 = vpop.f32.mrf.mxu1  ;;  %v11637_v62 = vpop.f32.mrf.mxu0 }
 0x82f   : > { %v5870_v36 = vadd.f32 %v5791_v15, %v12754_v56  ;;  %v12755_v15 = vld [vmem:[#allocation20_spill] sm:$0xff] }
 0x830   : > { %6542 = vst.msk [vmem:[%s11596_s18 + $0x10] sm:$0xff] %vm989_vm5, %v6510_v4  ;;  %v6282_v30 = vadd.f32 %v11574_v5, %v6212_v33  ;;  %v6416_v4 = vmul.f32 %v11578_v20, %v6380_v55  ;;  %v6345_v33 = vld [vmem:[%s11560_s13 + $0x28] sm:$0xff] }
 0x831   : > { %5830 = vmatmul.bf16.gmra.mxu1 %v12752_v21 }
 0x832   : > { %v6447_v31 = vadd.f32 1.0, %v6282_v30  ;;  %6086 = vmatmul.bf16.gmra.mxu2 %v12653_v57  ;;  %v6215_v57 = vadd.f32 %v6136_v6, %v5870_v36  ;;  %v5871_v30 = vadd.f32 %v12755_v15, %v11301_v34  ;;  %v6381_v6 = vsub.f32 %v6345_v33, %v11563_v47  ;;  %v12756_v34 = vld [vmem:[#allocation14_spill] sm:$0xff] }
 0x834   : > { %v6479_v23 = vmul.f32 %v6447_v31, %v6415_v35  ;;  %v6285_v35 = vadd.f32 %v11580_v19, %v6215_v57  ;;  %v6417_v55 = vmul.f32 %v11578_v20, %v6381_v6 }
 0x835   : > { %v6047_v43 = vpop.f32.mrf.mxu2  ;;  %v6138_v18 = vpop.f32.mrf.mxu3 }
 0x836   : > { %v6511_v12 = vadd.f32 %v6479_v23, %v6283_v1  ;;  %v6214_v48 = vadd.f32 %v6047_v43, %v5869_v46  ;;  %v5793_v44 = vpop.f32.mrf.mxu1  ;;  %v6346_v43 = vld [vmem:[%s11560_s13 + $0x30] sm:$0xff] }
 0x837   : > { %v5872_v27 = vadd.f32 %v5793_v44, %v11296_v11 }
 0x838   : > { %6543 = vst.msk [vmem:[%s11596_s18 + $0x18] sm:$0xff] %vm989_vm5, %v6511_v12  ;;  %v6284_v32 = vadd.f32 %v11574_v5, %v6214_v48  ;;  %v11656_v12 = vpop.f32.mrf.mxu0  ;;  %v12757_v48 = vld [vmem:[#allocation28_spill] sm:$0xff] }
 0x839   : > { %v6217_v56 = vadd.f32 %v6138_v18, %v5872_v27  ;;  %v5873_v44 = vadd.f32 %v12757_v48, %v11310_v25  ;;  %v6347_v27 = vld [vmem:[%s11560_s13 + $0x38] sm:$0xff] }
 0x83a   : > { %v6448_v58 = vadd.f32 1.0, %v6284_v32  ;;  %6180 = vmatmul.bf16.gmra.mxu3 %v12657_v59 }
 0x83b   : > { %v6287_v57 = vadd.f32 %v11580_v19, %v6217_v56  ;;  %v6383_v56 = vsub.f32 %v6347_v27, %v11563_v47 }
 0x83c   : > { %v6480_v21 = vmul.f32 %v6448_v58, %v6416_v4  ;;  %v6382_v4 = vsub.f32 %v6346_v43, %v11563_v47 }
 0x83d   : > { %v6049_v31 = vpop.f32.mrf.mxu2  ;;  %v6141_v40 = vpop.f32.mrf.mxu3 }
 0x83e   : > { %v6512_v46 = vadd.f32 %v6480_v21, %v6285_v35  ;;  %v6216_v1 = vadd.f32 %v6049_v31, %v5871_v30  ;;  %v5796_v23 = vpop.f32.mrf.mxu1  ;;  %v6418_v25 = vmul.f32 %v11578_v20, %v6382_v4 }
 0x83f   : > { %v5874_v32 = vadd.f32 %v5796_v23, %v11305_v28  ;;  %v12758_v28 = vld [vmem:[#allocation26_spill] sm:$0xff] }
 0x840   : > { %6544 = vst.msk [vmem:[%s11596_s18 + $0x20] sm:$0xff] %vm989_vm5, %v6512_v46  ;;  %v6286_v36 = vadd.f32 %v11574_v5, %v6216_v1  ;;  %v5875_v31 = vadd.f32 %v12758_v28, %v11318_v42  ;;  %v11672_v46 = vpop.f32.mrf.mxu0 }
 0x841   : > { %5835 = vmatmul.bf16.gmra.mxu1 %v12756_v34  ;;  %v6219_v21 = vadd.f32 %v6141_v40, %v5874_v32 }
 0x842   : > { %v6449_v11 = vadd.f32 1.0, %v6286_v36  ;;  %6091 = vmatmul.bf16.gmra.mxu2 %v12657_v59 }
 0x843   : > { %v6289_v1 = vadd.f32 %v11580_v19, %v6219_v21 }
 0x844   : > { %v6481_v18 = vmul.f32 %v6449_v11, %v6417_v55 }
 0x845   : > { %v6052_v33 = vpop.f32.mrf.mxu2  ;;  %v6143_v58 = vpop.f32.mrf.mxu3 }
 0x846   : > { %v6513_v15 = vadd.f32 %v6481_v18, %v6287_v57  ;;  %v6218_v30 = vadd.f32 %v6052_v33, %v5873_v44  ;;  %v5798_v35 = vpop.f32.mrf.mxu1  ;;  %v6419_v44 = vmul.f32 %v11578_v20, %v6383_v56  ;;  %v12759_v57 = vld [vmem:[#allocation7_spill] sm:$0xff]  ;;  %v6348_v18 = vld [vmem:[%s11560_s13 + $0x40] sm:$0xff] }
 0x847   : > { %v5876_v40 = vadd.f32 %v5798_v35, %v11313_v17  ;;  %v12760_v17 = vld [vmem:[#allocation65_spill] sm:$0xff]  ;;  %v6384_v35 = vsub.f32 %v6348_v18, %v11563_v47 }
 0x848   : > { %6545 = vst.msk [vmem:[%s11596_s18 + $0x28] sm:$0xff] %vm989_vm5, %v6513_v15  ;;  %v6288_v59 = vadd.f32 %v11574_v5, %v6218_v30  ;;  %v5877_v4 = vadd.f32 %v11607_v16, %v12760_v17  ;;  %v12761_v30 = vld [vmem:[#allocation34_spill] sm:$0xff] }
 0x849   : > { %v6221_v48 = vadd.f32 %v6143_v58, %v5876_v40  ;;  %v6420_v16 = vmul.f32 %v11578_v20, %v6384_v35  ;;  %v5879_v40 = vadd.f32 %v11623_v10, %v11353_v0 }
 0x84a   : > { %v6450_v6 = vadd.f32 1.0, %v6288_v59  ;;  %6185 = vmatmul.bf16.gmra.mxu3 %v12663_v9 }
 0x84b   : > { %v6291_v33 = vadd.f32 %v11580_v19, %v6221_v48 }
 0x84c   : > { %v6482_v23 = vmul.f32 %v6450_v6, %v6418_v25  ;;  %v11689_v25 = vpop.f32.mrf.mxu0 }
 0x84d   : > { %v6054_v36 = vpop.f32.mrf.mxu2  ;;  %v6146_v55 = vpop.f32.mrf.mxu3 }
 0x84e   : > { %v6514_v34 = vadd.f32 %v6482_v23, %v6289_v1  ;;  %v6220_v43 = vadd.f32 %v6054_v36, %v5875_v31  ;;  %v5801_v11 = vpop.f32.mrf.mxu1  ;;  %v6349_v1 = vld [vmem:[%s11560_s13 + $0x48] sm:$0xff] }
 0x84f   : > { %v5878_v58 = vadd.f32 %v5801_v11, %v12761_v30 }
 0x850   : > { %6546 = vst.msk [vmem:[%s11596_s18 + $0x30] sm:$0xff] %vm989_vm5, %v6514_v34  ;;  %v6290_v42 = vadd.f32 %v11574_v5, %v6220_v43 }
 0x851   : > { %5840 = vmatmul.bf16.gmra.mxu1 %v12759_v57 }
 0x852   : > { %v6451_v32 = vadd.f32 1.0, %v6290_v42  ;;  %6096 = vmatmul.bf16.gmra.mxu2 %v12663_v9  ;;  %v6223_v9 = vadd.f32 %v6146_v55, %v5878_v58  ;;  %v6385_v55 = vsub.f32 %v6349_v1, %v11563_v47 }
 0x854   : > { %v6483_v15 = vmul.f32 %v6451_v32, %v6419_v44  ;;  %v6293_v56 = vadd.f32 %v11580_v19, %v6223_v9  ;;  %v11702_v57 = vpop.f32.mrf.mxu0  ;;  %v6421_v10 = vmul.f32 %v11578_v20, %v6385_v55  ;;  %v12762_v32 = vld [vmem:[#allocation13_spill] sm:$0xff] }
 0x855   : > { %v6057_v21 = vpop.f32.mrf.mxu2  ;;  %v6148_v59 = vpop.f32.mrf.mxu3 }
 0x856   : > { %v6515_v27 = vadd.f32 %v6483_v15, %v6291_v33  ;;  %v6222_v6 = vadd.f32 %v6057_v21, %v5877_v4  ;;  %v5803_v28 = vpop.f32.mrf.mxu1  ;;  %v5881_v4 = vadd.f32 %v11637_v62, %v11362_v37  ;;  %v6351_v62 = vld [vmem:[%s11560_s13 + $0x58] sm:$0xff] }
 0x857   : > { %v5880_v34 = vadd.f32 %v5803_v28, %v11348_v2  ;;  %v6350_v2 = vld [vmem:[%s11560_s13 + $0x50] sm:$0xff] }
 0x858   : > { %6547 = vst.msk [vmem:[%s11596_s18 + $0x38] sm:$0xff] %vm989_vm5, %v6515_v27  ;;  %v6292_v31 = vadd.f32 %v11574_v5, %v6222_v6  ;;  %v6386_v58 = vsub.f32 %v6350_v2, %v11563_v47 }
 0x859   : > { %v6225_v18 = vadd.f32 %v6148_v59, %v5880_v34 }
 0x85a   : > { %v6452_v23 = vadd.f32 1.0, %v6292_v31  ;;  %6190 = vmatmul.bf16.gmra.mxu3 %v12666_v39  ;;  %v6422_v37 = vmul.f32 %v11578_v20, %v6386_v58 }
 0x85b   : > { %v6295_v33 = vadd.f32 %v11580_v19, %v6225_v18 }
 0x85c   : > { %v6484_v36 = vmul.f32 %v6452_v23, %v6420_v16  ;;  %v11721_v9 = vpop.f32.mrf.mxu0 }
 0x85d   : > { %v6059_v43 = vpop.f32.mrf.mxu2  ;;  %v6151_v11 = vpop.f32.mrf.mxu3 }
 0x85e   : > { %v6516_v48 = vadd.f32 %v6484_v36, %v6293_v56  ;;  %v6224_v42 = vadd.f32 %v6059_v43, %v5879_v40  ;;  %v5806_v44 = vpop.f32.mrf.mxu1  ;;  %v6387_v40 = vsub.f32 %v6351_v62, %v11563_v47 }
 0x85f   : > { %v5882_v30 = vadd.f32 %v5806_v44, %v11357_v51  ;;  %v5883_v51 = vadd.f32 %v11656_v12, %v11370_v8  ;;  %v12763_v8 = vld [vmem:[#allocation32_spill] sm:$0xff]  ;;  %v6352_v12 = vld [vmem:[%s11560_s13 + $0x60] sm:$0xff] }
 0x860   : > { %6548 = vst.msk [vmem:[%s11596_s18 + $0x40] sm:$0xff] %vm989_vm5, %v6516_v48  ;;  %v6294_v0 = vadd.f32 %v11574_v5, %v6224_v42  ;;  %v6423_v42 = vmul.f32 %v11578_v20, %v6387_v40  ;;  %v6388_v2 = vsub.f32 %v6352_v12, %v11563_v47 }
 0x861   : > { %5845 = vmatmul.bf16.gmra.mxu1 %v12762_v32  ;;  %v6227_v28 = vadd.f32 %v6151_v11, %v5882_v30 }
 0x862   : > { %v6453_v17 = vadd.f32 1.0, %v6294_v0  ;;  %6101 = vmatmul.bf16.gmra.mxu2 %v12666_v39 }
 0x863   : > { %v6297_v16 = vadd.f32 %v11580_v19, %v6227_v28 }
 0x864   : > { %v6485_v15 = vmul.f32 %v6453_v17, %v6421_v10  ;;  %v11738_v18 = vpop.f32.mrf.mxu0 }
 0x865   : > { %v6062_v35 = vpop.f32.mrf.mxu2  ;;  %v6153_v21 = vpop.f32.mrf.mxu3 }
 0x866   : > { %v6517_v59 = vadd.f32 %v6485_v15, %v6295_v33  ;;  %v6226_v27 = vadd.f32 %v6062_v35, %v5881_v4  ;;  %v5808_v6 = vpop.f32.mrf.mxu1 }
 0x867   : > { %v5884_v23 = vadd.f32 %v5808_v6, %v11365_v29  ;;  %v5885_v29 = vadd.f32 %v11672_v46, %v11379_v54  ;;  %v6424_v54 = vmul.f32 %v11578_v20, %v6388_v2  ;;  %v6353_v46 = vld [vmem:[%s11560_s13 + $0x68] sm:$0xff]  ;;  %v12765_v6 = vld [vmem:[#allocation117_spill] sm:$0xff] }
 0x868   : > { %6549 = vst.msk [vmem:[%s11596_s18 + $0x48] sm:$0xff] %vm989_vm5, %v6517_v59  ;;  %v6296_v39 = vadd.f32 %v11574_v5, %v6226_v27 }
 0x869   : > { %v6229_v11 = vadd.f32 %v6153_v21, %v5884_v23  ;;  %v12764_v21 = vld [vmem:[#allocation17_spill] sm:$0xff] }
 0x86a   : > { %v6454_v31 = vadd.f32 1.0, %v6296_v39  ;;  %6195 = vmatmul.bf16.gmra.mxu3 %v12671_v38  ;;  %v6389_v39 = vsub.f32 %v6353_v46, %v11563_v47 }
 0x86b   : > { %v6299_v0 = vadd.f32 %v11580_v19, %v6229_v11 }
 0x86c   : > { %v6486_v1 = vmul.f32 %v6454_v31, %v6422_v37  ;;  %v5734_v31 = vpop.f32.mrf.mxu0 }
 0x86d   : > { %v6064_v56 = vpop.f32.mrf.mxu2  ;;  %v6156_v36 = vpop.f32.mrf.mxu3 }
 0x86e   : > { %v6518_v34 = vadd.f32 %v6486_v1, %v6297_v16  ;;  %v6228_v55 = vadd.f32 %v6064_v56, %v5883_v51  ;;  %v5811_v43 = vpop.f32.mrf.mxu1  ;;  %v6354_v56 = vld [vmem:[%s11560_s13 + $0x70] sm:$0xff] }
 0x86f   : > { %v5886_v32 = vadd.f32 %v5811_v43, %v11374_v41  ;;  %v5887_v41 = vadd.f32 %v11689_v25, %v11387_v14  ;;  %v6425_v14 = vmul.f32 %v11578_v20, %v6389_v39  ;;  %v12766_v25 = vld [vmem:[#allocation33_spill] sm:$0xff] }
 0x870   : > { %6550 = vst.msk [vmem:[%s11596_s18 + $0x50] sm:$0xff] %vm989_vm5, %v6518_v34  ;;  %v6298_v48 = vadd.f32 %v11574_v5, %v6228_v55  ;;  %v12767_v34 = vld [vmem:[#allocation105_spill] sm:$0xff] }
 0x871   : > { %5850 = vmatmul.bf16.gmra.mxu1 %v12763_v8  ;;  %v5889_v55 = vadd.f32 %v11702_v57, %v12767_v34  ;;  %v6390_v8 = vsub.f32 %v6354_v56, %v11563_v47 }
 0x872   : > { %v6455_v44 = vadd.f32 1.0, %v6298_v48  ;;  %6106 = vmatmul.bf16.gmra.mxu2 %v12671_v38  ;;  %v6231_v38 = vadd.f32 %v6156_v36, %v5886_v32  ;;  %v12768_v48 = vld [vmem:[#allocation118_spill] sm:$0xff] }
 0x873   : > { %v6426_v57 = vmul.f32 %v11578_v20, %v6390_v8  ;;  %v5895_v8 = vadd.f32 %v5734_v31, %v11433_v45  ;;  %v6358_v31 = vld [vmem:[%s11560_s13 + $0x90] sm:$0xff] }
 0x874   : > { %v6487_v10 = vmul.f32 %v6455_v44, %v6423_v42  ;;  %v6301_v59 = vadd.f32 %v11580_v19, %v6231_v38  ;;  %v5737_v32 = vpop.f32.mrf.mxu0 }
 0x875   : > { %v6067_v17 = vpop.f32.mrf.mxu2  ;;  %v6158_v4 = vpop.f32.mrf.mxu3 }
 0x876   : > { %v6519_v33 = vadd.f32 %v6487_v10, %v6299_v0  ;;  %v6230_v15 = vadd.f32 %v6067_v17, %v5885_v29  ;;  %v5813_v30 = vpop.f32.mrf.mxu1 }
 0x877   : > { %v5888_v28 = vadd.f32 %v5813_v30, %v12765_v6 }
 0x878   : > { %6551 = vst.msk [vmem:[%s11596_s18 + $0x58] sm:$0xff] %vm989_vm5, %v6519_v33  ;;  %v6300_v58 = vadd.f32 %v11574_v5, %v6230_v15  ;;  %v12769_v15 = vld [vmem:[#allocation77_spill] sm:$0xff] }
 0x879   : > { %v6233_v23 = vadd.f32 %v6158_v4, %v5888_v28  ;;  %v6355_v4 = vld [vmem:[%s11560_s13 + $0x78] sm:$0xff]  ;;  %v5891_v30 = vadd.f32 %v11721_v9, %v12769_v15 }
 0x87a   : > { %v6456_v35 = vadd.f32 1.0, %v6300_v58  ;;  %6200 = vmatmul.bf16.gmra.mxu3 %v12764_v21 }
 0x87b   : > { %v6303_v43 = vadd.f32 %v11580_v19, %v6233_v23 }
 0x87c   : > { %v6488_v27 = vmul.f32 %v6456_v35, %v6424_v54  ;;  %v12770_v54 = vld [vmem:[#allocation74_spill] sm:$0xff]  ;;  %v6391_v35 = vsub.f32 %v6355_v4, %v11563_v47 }
 0x87d   : > { %v6069_v37 = vpop.f32.mrf.mxu2  ;;  %v6161_v62 = vpop.f32.mrf.mxu3 }
 0x87e   : > { %v6520_v51 = vadd.f32 %v6488_v27, %v6301_v59  ;;  %v6232_v16 = vadd.f32 %v6069_v37, %v5887_v41  ;;  %v5816_v1 = vpop.f32.mrf.mxu1  ;;  %v6427_v9 = vmul.f32 %v11578_v20, %v6391_v35  ;;  %v6356_v37 = vld [vmem:[%s11560_s13 + $0x80] sm:$0xff] }
 0x87f   : > { %v5890_v42 = vadd.f32 %v5816_v1, %v12768_v48 }
 0x880   : > { %6552 = vst.msk [vmem:[%s11596_s18 + $0x60] sm:$0xff] %vm989_vm5, %v6520_v51  ;;  %v6302_v40 = vadd.f32 %v11574_v5, %v6232_v16  ;;  %v5893_v16 = vadd.f32 %v11738_v18, %v11425_v13  ;;  %v6357_v18 = vld [vmem:[%s11560_s13 + $0x88] sm:$0xff] }
 0x881   : > { %5855 = vmatmul.bf16.gmra.mxu1 %v12766_v25  ;;  %v6235_v2 = vadd.f32 %v6161_v62, %v5890_v42  ;;  %v5739_v62 = vpop.f32.mrf.mxu0  ;;  %v6392_v25 = vsub.f32 %v6356_v37, %v11563_v47 }
 0x882   : > { %v6457_v36 = vadd.f32 1.0, %v6302_v40  ;;  %6111 = vmatmul.bf16.gmra.mxu2 %v12764_v21  ;;  %v12771_v40 = vld [vmem:[#allocation3_spill] sm:$0xff] }
 0x883   : > { %v6305_v38 = vadd.f32 %v11580_v19, %v6235_v2  ;;  %v6428_v13 = vmul.f32 %v11578_v20, %v6392_v25  ;;  %v6393_v2 = vsub.f32 %v6357_v18, %v11563_v47  ;;  %v12774_v25 = vld [vmem:[#allocation78_spill] sm:$0xff] }
 0x884   : > { %v6489_v11 = vmul.f32 %v6457_v36, %v6425_v14 }
 0x885   : > { %v6072_v12 = vpop.f32.mrf.mxu2  ;;  %v6163_v44 = vpop.f32.mrf.mxu3  ;;  %v6429_v45 = vmul.f32 %v11578_v20, %v6393_v2 }
 0x886   : > { %v6521_v29 = vadd.f32 %v6489_v11, %v6303_v43  ;;  %v6234_v0 = vadd.f32 %v6072_v12, %v5889_v55  ;;  %v5818_v10 = vpop.f32.mrf.mxu1 }
 0x887   : > { %v5892_v46 = vadd.f32 %v5818_v10, %v12770_v54  ;;  %v5897_v54 = vadd.f32 %v5737_v32, %v11442_v3  ;;  %v6359_v32 = vld [vmem:[%s11560_s13 + $0x98] sm:$0xff] }
 0x888   : > { %6553 = vst.msk [vmem:[%s11596_s18 + $0x68] sm:$0xff] %vm989_vm5, %v6521_v29  ;;  %v6304_v17 = vadd.f32 %v11574_v5, %v6234_v0  ;;  %v12772_v0 = vld [vmem:[#allocation73_spill] sm:$0xff] }
 0x889   : > { %v6237_v28 = vadd.f32 %v6163_v44, %v5892_v46  ;;  %v5742_v12 = vpop.f32.mrf.mxu0 }
 0x88a   : > { %v6458_v33 = vadd.f32 1.0, %v6304_v17 }
 0x88b   : > { %v6307_v1 = vadd.f32 %v11580_v19, %v6237_v28 }
 0x88c   : > { %v6490_v58 = vmul.f32 %v6458_v33, %v6426_v57 }
 0x88d   : > { %v6074_v21 = vpop.f32.mrf.mxu2  ;;  %v6166_v41 = vpop.f32.mrf.mxu3 }
 0x88e   : > { %v6522_v59 = vadd.f32 %v6490_v58, %v6305_v38  ;;  %v6236_v27 = vadd.f32 %v6074_v21, %v5891_v30  ;;  %v5821_v6 = vpop.f32.mrf.mxu1  ;;  %v12773_v21 = vld [vmem:[#allocation54_spill] sm:$0xff] }
 0x88f   : > { %v5894_v14 = vadd.f32 %v5821_v6, %v12771_v40 }
 0x890   : > { %6554 = vst.msk [vmem:[%s11596_s18 + $0x70] sm:$0xff] %vm989_vm5, %v6522_v59  ;;  %v6306_v39 = vadd.f32 %v11574_v5, %v6236_v27  ;;  %v6394_v59 = vsub.f32 %v6358_v31, %v11563_v47 }
 0x891   : > { %v6239_v11 = vadd.f32 %v6166_v41, %v5894_v14  ;;  %v5744_v28 = vpop.f32.mrf.mxu0 }
 0x892   : > { %v6459_v51 = vadd.f32 1.0, %v6306_v39  ;;  %v6430_v3 = vmul.f32 %v11578_v20, %v6394_v59 }
 0x893   : > { %v6309_v44 = vadd.f32 %v11580_v19, %v6239_v11 }
 0x894   : > { %v6491_v23 = vmul.f32 %v6459_v51, %v6427_v9 }
 0x895   : > { %v6077_v56 = vpop.f32.mrf.mxu2  ;;  %v6168_v36 = vpop.f32.mrf.mxu3 }
 0x896   : > { %v6523_v34 = vadd.f32 %v6491_v23, %v6307_v1  ;;  %v6238_v55 = vadd.f32 %v6077_v56, %v5893_v16  ;;  %v5823_v43 = vpop.f32.mrf.mxu1  ;;  %v5899_v23 = vadd.f32 %v5739_v62, %v11450_v22  ;;  %v6360_v62 = vld [vmem:[%s11560_s13 + $0xa0] sm:$0xff] }
 0x897   : > { %v5896_v10 = vadd.f32 %v5823_v43, %v12772_v0  ;;  %v6396_v2 = vsub.f32 %v6360_v62, %v11563_v47 }
 0x898   : > { %6555 = vst.msk [vmem:[%s11596_s18 + $0x78] sm:$0xff] %vm989_vm5, %v6523_v34  ;;  %v6308_v48 = vadd.f32 %v11574_v5, %v6238_v55 }
 0x899   : > { %v6241_v30 = vadd.f32 %v6168_v36, %v5896_v10  ;;  %v6395_v36 = vsub.f32 %v6359_v32, %v11563_v47 }
 0x89a   : > { %v6460_v42 = vadd.f32 1.0, %v6308_v48 }
 0x89b   : > { %v6311_v46 = vadd.f32 %v11580_v19, %v6241_v30  ;;  %v6431_v22 = vmul.f32 %v11578_v20, %v6395_v36 }
 0x89c   : > { %v6492_v29 = vmul.f32 %v6460_v42, %v6428_v13  ;;  %v5747_v13 = vpop.f32.mrf.mxu0 }
 0x89d   : > { %v6079_v17 = vpop.f32.mrf.mxu2  ;;  %v6171_v57 = vpop.f32.mrf.mxu3 }
 0x89e   : > { %v6524_v4 = vadd.f32 %v6492_v29, %v6309_v44  ;;  %v6240_v33 = vadd.f32 %v6079_v17, %v5895_v8  ;;  %v5826_v15 = vpop.f32.mrf.mxu1  ;;  %v5901_v44 = vadd.f32 %v5742_v12, %v11459_v24  ;;  %v6432_v24 = vmul.f32 %v11578_v20, %v6396_v2  ;;  %v6361_v12 = vld [vmem:[%s11560_s13 + $0xa8] sm:$0xff] }
 0x89f   : > { %v5898_v41 = vadd.f32 %v5826_v15, %v12773_v21 }
 0x8a0   : > { %6556 = vst.msk [vmem:[%s11596_s18 + $0x80] sm:$0xff] %vm989_vm5, %v6524_v4  ;;  %v6310_v38 = vadd.f32 %v11574_v5, %v6240_v33 }
 0x8a1   : > { %v6243_v51 = vadd.f32 %v6171_v57, %v5898_v41 }
 0x8a2   : > { %v6461_v58 = vadd.f32 1.0, %v6310_v38 }
 0x8a3   : > { %v6313_v40 = vadd.f32 %v11580_v19, %v6243_v51 }
 0x8a4   : > { %v6493_v35 = vmul.f32 %v6461_v58, %v6429_v45  ;;  %v5749_v45 = vpop.f32.mrf.mxu0 }
 0x8a5   : > { %v6082_v27 = vpop.f32.mrf.mxu2  ;;  %v6173_v6 = vpop.f32.mrf.mxu3 }
 0x8a6   : > { %v6525_v39 = vadd.f32 %v6493_v35, %v6311_v46  ;;  %v6242_v9 = vadd.f32 %v6082_v27, %v5897_v54  ;;  %v5828_v37 = vpop.f32.mrf.mxu1  ;;  %v6397_v35 = vsub.f32 %v6361_v12, %v11563_v47 }
 0x8a7   : > { %v5900_v56 = vadd.f32 %v5828_v37, %v12774_v25 }
 0x8a8   : > { %6557 = vst.msk [vmem:[%s11596_s18 + $0x88] sm:$0xff] %vm989_vm5, %v6525_v39  ;;  %v6312_v16 = vadd.f32 %v11574_v5, %v6242_v9 }
 0x8a9   : > { %v6245_v18 = vadd.f32 %v6173_v6, %v5900_v56 }
 0x8aa   : > { %v6462_v1 = vadd.f32 1.0, %v6312_v16 }
 0x8ab   : > { %v6315_v29 = vadd.f32 %v11580_v19, %v6245_v18 }
 0x8ac   : > { %v6494_v14 = vmul.f32 %v6462_v1, %v6430_v3  ;;  %v5752_v51 = vpop.f32.mrf.mxu0 }
 0x8ad   : > { %v6084_v34 = vpop.f32.mrf.mxu2  ;;  %v6176_v55 = vpop.f32.mrf.mxu3 }
 0x8ae   : > { %v6526_v43 = vadd.f32 %v6494_v14, %v6313_v40  ;;  %v6244_v11 = vadd.f32 %v6084_v34, %v5899_v23  ;;  %v5831_v48 = vpop.f32.mrf.mxu1 }
 0x8af   : > { %v5902_v10 = vadd.f32 %v5831_v48, %v11454_v49  ;;  %v5903_v49 = vadd.f32 %v5744_v28, %v11467_v60  ;;  %v6433_v60 = vmul.f32 %v11578_v20, %v6397_v35  ;;  %v6362_v28 = vld [vmem:[%s11560_s13 + $0xb0] sm:$0xff] }
 0x8b0   : > { %6558 = vst.msk [vmem:[%s11596_s18 + $0x90] sm:$0xff] %vm989_vm5, %v6526_v43  ;;  %v6314_v42 = vadd.f32 %v11574_v5, %v6244_v11  ;;  %v6398_v1 = vsub.f32 %v6362_v28, %v11563_v47 }
 0x8b1   : > { %v6247_v30 = vadd.f32 %v6176_v55, %v5902_v10  ;;  %v6363_v55 = vld [vmem:[%s11560_s13 + $0xb8] sm:$0xff] }
 0x8b2   : > { %v6463_v8 = vadd.f32 1.0, %v6314_v42  ;;  %v6399_v42 = vsub.f32 %v6363_v55, %v11563_v47 }
 0x8b3   : > { %v6317_v58 = vadd.f32 %v11580_v19, %v6247_v30  ;;  %v12776_v30 = vld [vmem:[#allocation76_spill] sm:$0xff] }
 0x8b4   : > { %v6495_v0 = vmul.f32 %v6463_v8, %v6431_v22  ;;  %v5754_v8 = vpop.f32.mrf.mxu0 }
 0x8b5   : > { %v6087_v17 = vpop.f32.mrf.mxu2  ;;  %v6178_v57 = vpop.f32.mrf.mxu3 }
 0x8b6   : > { %v6527_v4 = vadd.f32 %v6495_v0, %v6315_v29  ;;  %v6246_v33 = vadd.f32 %v6087_v17, %v5901_v44  ;;  %v5833_v15 = vpop.f32.mrf.mxu1  ;;  %v6364_v17 = vld [vmem:[%s11560_s13 + $0xc0] sm:$0xff] }
 0x8b7   : > { %v5904_v46 = vadd.f32 %v5833_v15, %v11462_v26  ;;  %v5905_v26 = vadd.f32 %v5747_v13, %v11476_v52  ;;  %v6434_v52 = vmul.f32 %v11578_v20, %v6398_v1  ;;  %v12775_v13 = vld [vmem:[#allocation106_spill] sm:$0xff] }
 0x8b8   : > { %6559 = vst.msk [vmem:[%s11596_s18 + $0x98] sm:$0xff] %vm989_vm5, %v6527_v4  ;;  %v6316_v38 = vadd.f32 %v11574_v5, %v6246_v33  ;;  %v5909_v4 = vadd.f32 %v5752_v51, %v11493_v7 }
 0x8b9   : > { %v6249_v39 = vadd.f32 %v6178_v57, %v5904_v46 }
 0x8ba   : > { %v6464_v31 = vadd.f32 1.0, %v6316_v38 }
 0x8bb   : > { %v6319_v16 = vadd.f32 %v11580_v19, %v6249_v39 }
 0x8bc   : > { %v6496_v54 = vmul.f32 %v6464_v31, %v6432_v24  ;;  %v6400_v24 = vsub.f32 %v6364_v17, %v11563_v47 }
 0x8bd   : > { %v6089_v21 = vpop.f32.mrf.mxu2  ;;  %v6181_v41 = vpop.f32.mrf.mxu3 }
 0x8be   : > { %v6528_v59 = vadd.f32 %v6496_v54, %v6317_v58  ;;  %v6248_v27 = vadd.f32 %v6089_v21, %v5903_v49  ;;  %v5836_v6 = vpop.f32.mrf.mxu1  ;;  %v5757_v54 = vpop.f32.mrf.mxu0  ;;  %v6436_v7 = vmul.f32 %v11578_v20, %v6400_v24  ;;  %v6365_v21 = vld [vmem:[%s11560_s13 + $0xc8] sm:$0xff] }
 0x8bf   : > { %v5906_v32 = vadd.f32 %v5836_v6, %v11471_v63  ;;  %v5907_v63 = vadd.f32 %v5749_v45, %v11484_v61  ;;  %v6435_v61 = vmul.f32 %v11578_v20, %v6399_v42  ;;  %v6401_v28 = vsub.f32 %v6365_v21, %v11563_v47 }
 0x8c0   : > { %6560 = vst.msk [vmem:[%s11596_s18 + $0xa0] sm:$0xff] %vm989_vm5, %v6528_v59  ;;  %v6318_v9 = vadd.f32 %v11574_v5, %v6248_v27  ;;  %v12777_v59 = vld [vmem:[#allocation80_spill] sm:$0xff] }
 0x8c1   : > { %v6251_v36 = vadd.f32 %v6181_v41, %v5906_v32  ;;  %v5911_v27 = vadd.f32 %v5754_v8, %v12777_v59 }
 0x8c2   : > { %v6465_v37 = vadd.f32 1.0, %v6318_v9  ;;  %v12778_v9 = vld [vmem:[#allocation84_spill] sm:$0xff] }
 0x8c3   : > { %v6321_v11 = vadd.f32 %v11580_v19, %v6251_v36 }
 0x8c4   : > { %v6497_v3 = vmul.f32 %v6465_v37, %v6433_v60 }
 0x8c5   : > { %v6092_v23 = vpop.f32.mrf.mxu2  ;;  %v6183_v40 = vpop.f32.mrf.mxu3 }
 0x8c6   : > { %v6529_v14 = vadd.f32 %v6497_v3, %v6319_v16  ;;  %v6250_v25 = vadd.f32 %v6092_v23, %v5905_v26  ;;  %v5838_v56 = vpop.f32.mrf.mxu1  ;;  %v6437_v23 = vmul.f32 %v11578_v20, %v6401_v28  ;;  %v6369_v28 = vld [vmem:[%s11560_s13 + $0xe8] sm:$0xff] }
 0x8c7   : > { %v5908_v18 = vadd.f32 %v5838_v56, %v12775_v13  ;;  %v5913_v56 = vadd.f32 %v5757_v54, %v11510_v50 }
 0x8c8   : > { %6561 = vst.msk [vmem:[%s11596_s18 + $0xa8] sm:$0xff] %vm989_vm5, %v6529_v14  ;;  %v6320_v34 = vadd.f32 %v11574_v5, %v6250_v25  ;;  %v5759_v14 = vpop.f32.mrf.mxu0 }
 0x8c9   : > { %v6253_v10 = vadd.f32 %v6183_v40, %v5908_v18  ;;  %v6366_v40 = vld [vmem:[%s11560_s13 + $0xd0] sm:$0xff] }
 0x8ca   : > { %v6466_v43 = vadd.f32 1.0, %v6320_v34 }
 0x8cb   : > { %v6323_v33 = vadd.f32 %v11580_v19, %v6253_v10 }
 0x8cc   : > { %v6498_v48 = vmul.f32 %v6466_v43, %v6434_v52  ;;  %v12779_v52 = vld [vmem:[#allocation5_spill] sm:$0xff]  ;;  %v6402_v43 = vsub.f32 %v6366_v40, %v11563_v47 }
 0x8cd   : > { %v6094_v22 = vpop.f32.mrf.mxu2  ;;  %v6186_v62 = vpop.f32.mrf.mxu3 }
 0x8ce   : > { %v6530_v44 = vadd.f32 %v6498_v48, %v6321_v11  ;;  %v6252_v29 = vadd.f32 %v6094_v22, %v5907_v63  ;;  %v5841_v0 = vpop.f32.mrf.mxu1  ;;  %v6438_v50 = vmul.f32 %v11578_v20, %v6402_v43 }
 0x8cf   : > { %v5910_v38 = vadd.f32 %v5841_v0, %v12776_v30 }
 0x8d0   : > { %6562 = vst.msk [vmem:[%s11596_s18 + $0xb0] sm:$0xff] %vm989_vm5, %v6530_v44  ;;  %v6322_v2 = vadd.f32 %v11574_v5, %v6252_v29  ;;  %v5915_v44 = vadd.f32 %v5759_v14, %v11518_v53  ;;  %v5762_v29 = vpop.f32.mrf.mxu0 }
 0x8d1   : > { %v6255_v46 = vadd.f32 %v6186_v62, %v5910_v38  ;;  %v6367_v62 = vld [vmem:[%s11560_s13 + $0xd8] sm:$0xff] }
 0x8d2   : > { %v6467_v57 = vadd.f32 1.0, %v6322_v2  ;;  %v12780_v2 = vld [vmem:[#allocation120_spill] sm:$0xff]  ;;  %v6403_v17 = vsub.f32 %v6367_v62, %v11563_v47 }
 0x8d3   : > { %v6325_v6 = vadd.f32 %v11580_v19, %v6255_v46  ;;  %v12782_v46 = vld [vmem:[#allocation61_spill] sm:$0xff] }
 0x8d4   : > { %v6499_v15 = vmul.f32 %v6467_v57, %v6435_v61  ;;  %v6439_v53 = vmul.f32 %v11578_v20, %v6403_v17 }
 0x8d5   : > { %v6097_v12 = vpop.f32.mrf.mxu2  ;;  %v6188_v45 = vpop.f32.mrf.mxu3 }
 0x8d6   : > { %v6531_v31 = vadd.f32 %v6499_v15, %v6323_v33  ;;  %v6254_v49 = vadd.f32 %v6097_v12, %v5909_v4  ;;  %v5843_v58 = vpop.f32.mrf.mxu1  ;;  %v6368_v12 = vld [vmem:[%s11560_s13 + $0xe0] sm:$0xff] }
 0x8d7   : > { %v5912_v60 = vadd.f32 %v5843_v58, %v12778_v9 }
 0x8d8   : > { %6563 = vst.msk [vmem:[%s11596_s18 + $0xb8] sm:$0xff] %vm989_vm5, %v6531_v31  ;;  %v6324_v35 = vadd.f32 %v11574_v5, %v6254_v49  ;;  %v12781_v31 = vld [vmem:[#allocation83_spill] sm:$0xff] }
 0x8d9   : > { %v6257_v32 = vadd.f32 %v6188_v45, %v5912_v60  ;;  %v5917_v49 = vadd.f32 %v5762_v29, %v12781_v31 }
 0x8da   : > { %v6468_v41 = vadd.f32 1.0, %v6324_v35 }
 0x8db   : > { %v6327_v36 = vadd.f32 %v11580_v19, %v6257_v32  ;;  %v12784_v32 = vld [vmem:[#allocation108_spill] sm:$0xff] }
 0x8dc   : > { %v6500_v39 = vmul.f32 %v6468_v41, %v6436_v7  ;;  %v6404_v7 = vsub.f32 %v6368_v12, %v11563_v47  ;;  %v5764_v41 = vpop.f32.mrf.mxu0 }
 0x8dd   : > { %v6099_v37 = vpop.f32.mrf.mxu2  ;;  %v6191_v26 = vpop.f32.mrf.mxu3 }
 0x8de   : > { %v6532_v51 = vadd.f32 %v6500_v39, %v6325_v6  ;;  %v6256_v16 = vadd.f32 %v6099_v37, %v5911_v27  ;;  %v5846_v3 = vpop.f32.mrf.mxu1  ;;  %v6440_v60 = vmul.f32 %v11578_v20, %v6404_v7 }
 0x8df   : > { %v5914_v55 = vadd.f32 %v5846_v3, %v12779_v52 }
 0x8e0   : > { %6564 = vst.msk [vmem:[%s11596_s18 + $0xc0] sm:$0xff] %vm989_vm5, %v6532_v51  ;;  %v6326_v1 = vadd.f32 %v11574_v5, %v6256_v16  ;;  %v12783_v51 = vld [vmem:[#allocation122_spill] sm:$0xff] }
 0x8e1   : > { %v6259_v42 = vadd.f32 %v6191_v26, %v5914_v55  ;;  %v5919_v47 = vadd.f32 %v5764_v41, %v12783_v51  ;;  %v7864_v55 = vld [vmem:[%s11423_s9] ss:$0 sm:$0xff] }
 0x8e2   : > { %v6469_v25 = vadd.f32 1.0, %v6326_v1 }
 0x8e3   : > { %v6329_v0 = vadd.f32 %v11580_v19, %v6259_v42 }
 0x8e4   : > { %v6501_v34 = vmul.f32 %v6469_v25, %v6437_v23  ;;  %v7863_v23 = vld [vmem:[%s11415_s24] ss:$0 sm:$0xff]  ;;  %v5767_v25 = vpop.f32.mrf.mxu0 }
 0x8e5   : > { %v6102_v63 = vpop.f32.mrf.mxu2  ;;  %v6193_v18 = vpop.f32.mrf.mxu3  ;;  %v6405_v40 = vsub.f32 %v6369_v28, %v7863_v23 }
 0x8e6   : > { %v6533_v11 = vadd.f32 %v6501_v34, %v6327_v36  ;;  %v6258_v48 = vadd.f32 %v6102_v63, %v5913_v56  ;;  %v5848_v13 = vpop.f32.mrf.mxu1  ;;  %v6370_v63 = vld [vmem:[%s11560_s13 + $0xf0] sm:$0xff] }
 0x8e7   : > { %v5916_v61 = vadd.f32 %v5848_v13, %v12780_v2  ;;  %v6441_v43 = vmul.f32 %v7864_v55, %v6405_v40 }
 0x8e8   : > { %6565 = vst.msk [vmem:[%s11596_s18 + $0xc8] sm:$0xff] %vm989_vm5, %v6533_v11  ;;  %v6328_v22 = vadd.f32 %v11574_v5, %v6258_v48  ;;  %v12785_v48 = vld [vmem:[#allocation86_spill] sm:$0xff] }
 0x8e9   : > { %v6261_v30 = vadd.f32 %v6193_v18, %v5916_v61  ;;  %v5921_v13 = vadd.f32 %v5767_v25, %v12785_v48 }
 0x8ea   : > { %v6470_v8 = vadd.f32 1.0, %v6328_v22 }
 0x8eb   : > { %v6331_v58 = vadd.f32 %v11580_v19, %v6261_v30 }
 0x8ec   : > { %v6502_v10 = vmul.f32 %v6470_v8, %v6438_v50  ;;  %v12786_v50 = vld [vmem:[#allocation89_spill] sm:$0xff]  ;;  %v6406_v8 = vsub.f32 %v6370_v63, %v7863_v23 }
 0x8ed   : > { %v6104_v57 = vpop.f32.mrf.mxu2  ;;  %v6196_v24 = vpop.f32.mrf.mxu3 }
 0x8ee   : > { %v6534_v4 = vadd.f32 %v6502_v10, %v6329_v0  ;;  %v6260_v33 = vadd.f32 %v6104_v57, %v5915_v44  ;;  %v5851_v15 = vpop.f32.mrf.mxu1  ;;  %v5769_v10 = vpop.f32.mrf.mxu0  ;;  %v6442_v17 = vmul.f32 %v7864_v55, %v6406_v8 }
 0x8ef   : > { %v5918_v35 = vadd.f32 %v5851_v15, %v12782_v46  ;;  %v12787_v15 = vld [vmem:[#allocation124_spill] sm:$0xff] }
 0x8f0   : > { %6566 = vst.msk [vmem:[%s11596_s18 + $0xd0] sm:$0xff] %vm989_vm5, %v6534_v4  ;;  %v6330_v38 = vadd.f32 %v11574_v5, %v6260_v33  ;;  %v6371_v4 = vld [vmem:[%s11560_s13 + $0xf8] sm:$0xff]  ;;  %v5923_v30 = vadd.f32 %v5769_v10, %v12787_v15 }
 0x8f1   : > { %v6263_v39 = vadd.f32 %v6196_v24, %v5918_v35  ;;  %v12788_v24 = vld [vmem:[#allocation10_spill] sm:$0xff] }
 0x8f2   : > { %v6471_v45 = vadd.f32 1.0, %v6330_v38 }
 0x8f3   : > { %v6333_v16 = vadd.f32 %v11580_v19, %v6263_v39 }
 0x8f4   : > { %v6503_v54 = vmul.f32 %v6471_v45, %v6439_v53  ;;  %v6407_v45 = vsub.f32 %v6371_v4, %v7863_v23 }
 0x8f5   : > { %v6107_v21 = vpop.f32.mrf.mxu2  ;;  %v6198_v26 = vpop.f32.mrf.mxu3 }
 0x8f6   : > { %v6535_v59 = vadd.f32 %v6503_v54, %v6331_v58  ;;  %v6262_v27 = vadd.f32 %v6107_v21, %v5917_v49  ;;  %v5853_v6 = vpop.f32.mrf.mxu1  ;;  %v6443_v7 = vmul.f32 %v7864_v55, %v6407_v45 }
 0x8f7   : > { %v5920_v1 = vadd.f32 %v5853_v6, %v12784_v32 }
 0x8f8   : > { %6567 = vst.msk [vmem:[%s11596_s18 + $0xd8] sm:$0xff] %vm989_vm5, %v6535_v59  ;;  %v6332_v9 = vadd.f32 %v11574_v5, %v6262_v27 }
 0x8f9   : > { %v6265_v20 = vadd.f32 %v6198_v26, %v5920_v1 }
 0x8fa   : > { %v6472_v37 = vadd.f32 1.0, %v6332_v9 }
 0x8fb   : > { %v6335_v42 = vadd.f32 %v11580_v19, %v6265_v20 }
 0x8fc   : > { %v6504_v3 = vmul.f32 %v6472_v37, %v6440_v60 }
 0x8fd   : > { %v6109_v14 = vpop.f32.mrf.mxu2  ;;  %v6201_v18 = vpop.f32.mrf.mxu3 }
 0x8fe   : > { %v6536_v56 = vadd.f32 %v6504_v3, %v6333_v16  ;;  %v6264_v36 = vadd.f32 %v6109_v14, %v5919_v47  ;;  %v5856_v34 = vpop.f32.mrf.mxu1 }
 0x8ff   : > { %v5922_v62 = vadd.f32 %v5856_v34, %v12786_v50 }
 0x900   : > { %6568 = vst.msk [vmem:[%s11596_s18 + $0xe0] sm:$0xff] %vm989_vm5, %v6536_v56  ;;  %v6334_v52 = vadd.f32 %v11574_v5, %v6264_v36 }
 0x901   : > { %v6267_v2 = vadd.f32 %v6201_v18, %v5922_v62 }
 0x902   : > { %v6473_v11 = vadd.f32 1.0, %v6334_v52 }
 0x903   : > { %v6337_v38 = vadd.f32 %v11580_v19, %v6267_v2 }
 0x904   : > { %v6505_v22 = vmul.f32 %v6473_v11, %v6441_v43 }
 0x905   : > { %v6112_v44 = vpop.f32.mrf.mxu2  ;;  %v6203_v31 = vpop.f32.mrf.mxu3 }
 0x906   : > { %v6537_v29 = vadd.f32 %v6505_v22, %v6335_v42  ;;  %v6266_v0 = vadd.f32 %v6112_v44, %v5921_v13  ;;  %v5858_v57 = vpop.f32.mrf.mxu1 }
 0x907   : > { %v5924_v12 = vadd.f32 %v5858_v57, %v12788_v24 }
 0x908   : > { %6569 = vst.msk [vmem:[%s11596_s18 + $0xe8] sm:$0xff] %vm989_vm5, %v6537_v29  ;;  %v6336_v61 = vadd.f32 %v11574_v5, %v6266_v0 }
 0x909   : > { %v6269_v46 = vadd.f32 %v6203_v31, %v5924_v12 }
 0x90a   : > { %v6474_v33 = vadd.f32 1.0, %v6336_v61 }
 0x90b   : > { %v6339_v41 = vadd.f32 %v11580_v19, %v6269_v46 }
 0x90c   : > { %v6506_v53 = vmul.f32 %v6474_v33, %v6442_v17 }
 0x90d   : > { %v6114_v49 = vpop.f32.mrf.mxu2 }
 0x90e   : > { %v6538_v58 = vadd.f32 %v6506_v53, %v6337_v38  ;;  %v6268_v54 = vadd.f32 %v6114_v49, %v5923_v30 }
 0x910   : > { %6570 = vst.msk [vmem:[%s11596_s18 + $0xf0] sm:$0xff] %vm989_vm5, %v6538_v58  ;;  %v6338_v35 = vadd.f32 %v11574_v5, %v6268_v54 }
 0x912   : > { %v6475_v21 = vadd.f32 1.0, %v6338_v35 }
 0x914   : > { %v6507_v59 = vmul.f32 %v6475_v21, %v6443_v7 }
 0x916   : > { %v6539_v27 = vadd.f32 %v6507_v59, %v6339_v41 }
 0x918   : > { %6571 = vst.msk [vmem:[%s11596_s18 + $0xf8] sm:$0xff] %vm989_vm5, %v6539_v27 }
 0x919 PF: > { %s18_s29 = sadd.s32 1, %s7887_s29   ;;  %s12789_s27 = smov %s7883_s28 }
 0x91a   : > { %p15_p5 = scmp.ge.s32.totalorder %s18_s29, 4   ;;  %s12790_s28 = smov %s12792_s30 }
 0x91c   :  { %17 = sbr.rel (!%p15_p5) target bundleno = 2 (0x2), region = 107 }

</bundles_post_ra>
